<compile_context>
chip_gen: v6e
topology: v6e:2x2x1
jax: 0.10.0
libtpu: 0.0.40
codegen_flags: <defaults>
</compile_context>

<pallas_src>
from functools import partial

import jax
import jax.numpy as jnp
from jax import lax
from jax.experimental import pallas as pl
from jax.experimental.pallas import tpu as pltpu

ROW_TILE = 512   # rows (output pixels) per grid step -- perf review: 128 -> 512
LANE = 128       # channel padding so output stores are lane-dense
EPS = 1e-5


def _round_up(x, m):
    return ((x + m - 1) // m) * m


def _pick_row_tiling(m_rows):
    """Pad the row count and pick the per-step row tile."""
    if m_rows <= ROW_TILE:
        m_pad = max(8, _round_up(m_rows, 8))
        return m_pad, m_pad                    # single grid step, block == full rows
    m_pad = _round_up(m_rows, ROW_TILE)
    return m_pad, ROW_TILE


# ------------------------------ Pallas kernels ------------------------------

def _activate(z, activation):
    if activation == "relu":
        return jnp.maximum(z, 0.0)
    if activation == "mish":
        sp = jnp.maximum(z, 0.0) + jnp.log1p(jnp.exp(-jnp.abs(z)))   # stable softplus
        return z * jnp.tanh(sp)
    return z


def conv_stats_kernel(m_valid, p_ref, w_ref, b_ref, sum_ref, ssq_ref):
    """im2col matmul tile; accumulate per-channel sum / sum-of-squares only."""
    i = pl.program_id(0)
    acc = jnp.dot(p_ref[...], w_ref[...], preferred_element_type=jnp.float32)
    acc = acc + b_ref[...]
    rows = lax.broadcasted_iota(jnp.int32, acc.shape, 0) + i * acc.shape[0]
    acc = jnp.where(rows < m_valid, acc, 0.0)   # keep padded rows out of BN stats

    @pl.when(i == 0)
    def _():
        sum_ref[...] = jnp.zeros_like(sum_ref)
        ssq_ref[...] = jnp.zeros_like(ssq_ref)

    sum_ref[...] += jnp.sum(acc, axis=0, keepdims=True)
    ssq_ref[...] += jnp.sum(acc * acc, axis=0, keepdims=True)


def conv_stats_out_kernel(m_valid, p_ref, w_ref, b_ref, o_ref, sum_ref, ssq_ref):
    """Like conv_stats_kernel but also materialises the conv output tile
    (used for wide-K layers where recomputing the matmul would re-read more
    patch bytes than the conv-out round trip costs)."""
    i = pl.program_id(0)
    acc = jnp.dot(p_ref[...], w_ref[...], preferred_element_type=jnp.float32)
    acc = acc + b_ref[...]
    o_ref[...] = acc
    rows = lax.broadcasted_iota(jnp.int32, acc.shape, 0) + i * acc.shape[0]
    acc = jnp.where(rows < m_valid, acc, 0.0)

    @pl.when(i == 0)
    def _():
        sum_ref[...] = jnp.zeros_like(sum_ref)
        ssq_ref[...] = jnp.zeros_like(ssq_ref)

    sum_ref[...] += jnp.sum(acc, axis=0, keepdims=True)
    ssq_ref[...] += jnp.sum(acc * acc, axis=0, keepdims=True)


def conv_act_kernel(p_ref, w_ref, b_ref, o_ref, *, activation):
    """Matmul (BN may already be folded into w/b) + activation."""
    z = jnp.dot(p_ref[...], w_ref[...], preferred_element_type=jnp.float32)
    o_ref[...] = _activate(z + b_ref[...], activation)


def conv_add_act_kernel(p_ref, w_ref, b_ref, r_ref, o_ref, *, activation):
    """Matmul (folded BN) + fused residual add + activation (ResBlock tail)."""
    z = jnp.dot(p_ref[...], w_ref[...], preferred_element_type=jnp.float32)
    o_ref[...] = _activate(z + b_ref[...] + r_ref[...], activation)


def bn_act_kernel(x_ref, scale_ref, shift_ref, o_ref, *, activation):
    o_ref[...] = _activate(x_ref[...] * scale_ref[...] + shift_ref[...], activation)


def bn_add_act_kernel(x_ref, scale_ref, shift_ref, r_ref, o_ref, *, activation):
    o_ref[...] = _activate(
        x_ref[...] * scale_ref[...] + shift_ref[...] + r_ref[...], activation)


def avgpool_kernel(x_ref, o_ref):
    """(N, H*W, C_pad) -> (N, C_pad) mean over the spatial axis."""
    o_ref[...] = jnp.mean(x_ref[...], axis=1)


# ------------------------------ wrappers ------------------------------------

def _im2col(x_nhwc, kh, kw, stride, padding):
    n, h, w, c = x_nhwc.shape
    x_p = jnp.pad(x_nhwc, ((0, 0), (padding[0],) * 2, (padding[1],) * 2, (0, 0)))
    ho = (h + 2 * padding[0] - kh) // stride[0] + 1
    wo = (w + 2 * padding[1] - kw) // stride[1] + 1
    cols = []
    for i in range(kh):
        for j in range(kw):
            cols.append(x_p[:, i:i + ho * stride[0]:stride[0],
                            j:j + wo * stride[1]:stride[1], :])
    patches = jnp.stack(cols, axis=3).reshape(n * ho * wo, kh * kw * c)
    return patches, ho, wo


def _row_spec(tm, c):
    return pl.BlockSpec((tm, c), lambda i: (i, 0))


def _rep_spec(r, c):
    return pl.BlockSpec((r, c), lambda i: (0, 0))


def _conv_pass(p_mat, w2, b2, residual, grid, tm, k, c_pad, m_pad, activation):
    in_specs = [_row_spec(tm, k), _rep_spec(k, c_pad), _rep_spec(1, c_pad)]
    if residual is None:
        kernel = partial(conv_act_kernel, activation=activation)
        args = (p_mat, w2, b2)
    else:
        kernel = partial(conv_add_act_kernel, activation=activation)
        in_specs = in_specs + [_row_spec(tm, c_pad)]
        args = (p_mat, w2, b2, residual)
    return pl.pallas_call(
        kernel,
        out_shape=jax.ShapeDtypeStruct((m_pad, c_pad), jnp.float32),
        grid_spec=pltpu.PrefetchScalarGridSpec(
            num_scalar_prefetch=0, grid=grid,
            in_specs=in_specs, out_specs=_row_spec(tm, c_pad)),
        compiler_params=pltpu.CompilerParams(dimension_semantics=("parallel",)),
    )(*args)


def _bn_pass(conv_out, scale, shift, residual, grid, tm, c_pad, m_pad, activation):
    in_specs = [_row_spec(tm, c_pad), _rep_spec(1, c_pad), _rep_spec(1, c_pad)]
    if residual is None:
        kernel = partial(bn_act_kernel, activation=activation)
        args = (conv_out, scale, shift)
    else:
        kernel = partial(bn_add_act_kernel, activation=activation)
        in_specs = in_specs + [_row_spec(tm, c_pad)]
        args = (conv_out, scale, shift, residual)
    return pl.pallas_call(
        kernel,
        out_shape=jax.ShapeDtypeStruct((m_pad, c_pad), jnp.float32),
        grid_spec=pltpu.PrefetchScalarGridSpec(
            num_scalar_prefetch=0, grid=grid,
            in_specs=in_specs, out_specs=_row_spec(tm, c_pad)),
        compiler_params=pltpu.CompilerParams(dimension_semantics=("parallel",)),
    )(*args)


def conv_layer(x_nhwc, w_oihw, bias, stride, padding, *, gamma=None, beta=None,
               activation="none", residual=None, return_matrix=False):
    """Conv2d (+ optional training-mode BatchNorm) (+ optional fused residual
    add) + activation, built from Pallas MXU matmul kernels over im2col rows."""
    n = x_nhwc.shape[0]
    cout, _, kh, kw = w_oihw.shape

    patches, ho, wo = _im2col(x_nhwc, kh, kw, stride, padding)
    m, k = patches.shape
    c_pad = _round_up(cout, LANE)
    m_pad, tm = _pick_row_tiling(m)
    grid = (m_pad // tm,)

    p_mat = jnp.pad(patches, ((0, m_pad - m), (0, 0))).astype(jnp.float32)
    w2 = jnp.transpose(w_oihw, (2, 3, 1, 0)).reshape(k, cout)
    w2 = jnp.pad(w2, ((0, 0), (0, c_pad - cout))).astype(jnp.float32)
    b2 = jnp.pad(bias.reshape(1, cout), ((0, 0), (0, c_pad - cout))).astype(jnp.float32)

    if residual is not None:
        assert residual.shape == (m_pad, c_pad), (residual.shape, (m_pad, c_pad))

    if gamma is None:
        # plain conv + bias (+ residual) + activation, single pass
        out_mat = _conv_pass(p_mat, w2, b2, residual, grid, tm, k, c_pad, m_pad,
                             activation)
    else:
        g2 = jnp.pad(gamma.reshape(1, cout), ((0, 0), (0, c_pad - cout))).astype(jnp.float32)
        bt2 = jnp.pad(beta.reshape(1, cout), ((0, 0), (0, c_pad - cout))).astype(jnp.float32)

        # HBM-traffic crossover: recompute pass re-reads K f32/row of patches,
        # materialising conv_out costs 2*C_pad f32/row (write + read back).
        recompute = k <= 2 * c_pad

        if recompute:
            csum, cssq = pl.pallas_call(
                partial(conv_stats_kernel, m),
                out_shape=(jax.ShapeDtypeStruct((1, c_pad), jnp.float32),
                           jax.ShapeDtypeStruct((1, c_pad), jnp.float32)),
                grid_spec=pltpu.PrefetchScalarGridSpec(
                    num_scalar_prefetch=0, grid=grid,
                    in_specs=[_row_spec(tm, k), _rep_spec(k, c_pad), _rep_spec(1, c_pad)],
                    out_specs=(_rep_spec(1, c_pad), _rep_spec(1, c_pad))),
                compiler_params=pltpu.CompilerParams(dimension_semantics=("arbitrary",)),
            )(p_mat, w2, b2)
            conv_out = None
        else:
            conv_out, csum, cssq = pl.pallas_call(
                partial(conv_stats_out_kernel, m),
                out_shape=(jax.ShapeDtypeStruct((m_pad, c_pad), jnp.float32),
                           jax.ShapeDtypeStruct((1, c_pad), jnp.float32),
                           jax.ShapeDtypeStruct((1, c_pad), jnp.float32)),
                grid_spec=pltpu.PrefetchScalarGridSpec(
                    num_scalar_prefetch=0, grid=grid,
                    in_specs=[_row_spec(tm, k), _rep_spec(k, c_pad), _rep_spec(1, c_pad)],
                    out_specs=(_row_spec(tm, c_pad), _rep_spec(1, c_pad),
                               _rep_spec(1, c_pad))),
                compiler_params=pltpu.CompilerParams(dimension_semantics=("arbitrary",)),
            )(p_mat, w2, b2)

        # tiny per-channel epilogue (plain JAX): fold BN into scale / shift
        mean = csum / m
        var = cssq / m - mean * mean            # biased variance (PyTorch BN)
        scale = g2 / jnp.sqrt(var + EPS)
        shift = bt2 - mean * scale

        if recompute:
            # fold BN into weights/bias and redo the cheap matmul: no conv_out
            # HBM round trip (perf-review item #2)
            out_mat = _conv_pass(p_mat, w2 * scale, b2 * scale + shift, residual,
                                 grid, tm, k, c_pad, m_pad, activation)
        else:
            out_mat = _bn_pass(conv_out, scale, shift, residual,
                               grid, tm, c_pad, m_pad, activation)

    if return_matrix:
        return out_mat, (n, ho, wo, cout)
    return out_mat[:m, :cout].reshape(n, ho, wo, cout)


def resblock_forward(x_nhwc, p, is_downsampling, return_matrix=False):
    stride1 = (2, 2) if is_downsampling else (1, 1)
    # residual path: 1x1 conv (bias, no BN, no activation); kept in the padded
    # (M_pad, C_pad) matrix layout so the add fuses into the second conv's pass
    r_mat, _ = conv_layer(x_nhwc, p["w_res"], p["b_res"], stride1, (0, 0),
                          activation="none", return_matrix=True)
    # main path: conv -> BN -> Mish
    h = conv_layer(x_nhwc, p["w1"], p["b1"], stride1, (1, 1),
                   gamma=p["g1"], beta=p["bt1"], activation="mish")
    # conv -> BN, then fused (+ residual) -> Mish
    return conv_layer(h, p["w2"], p["b2"], (1, 1), (1, 1),
                      gamma=p["g2"], beta=p["bt2"], activation="mish",
                      residual=r_mat, return_matrix=return_matrix)


def adaptive_avg_pool(out_mat, meta):
    n, ho, wo, cout = meta
    c_pad = out_mat.shape[1]
    hw = ho * wo
    x3 = out_mat[:n * hw].reshape(n, hw, c_pad)        # lane-dense (C_pad) layout
    pooled = pl.pallas_call(
        avgpool_kernel,
        out_shape=jax.ShapeDtypeStruct((n, c_pad), jnp.float32),
    )(x3)
    return pooled[:, :cout].reshape(n, cout, 1, 1)


BLOCK_CFG = (
    ("conv2_x1", 64, 64, 64, False),
    ("conv2_x2", 64, 64, 64, False),
    ("conv3_x1", 64, 128, 128, True),
    ("conv3_x2", 128, 128, 128, False),
    ("conv4_x1", 128, 64, 64, True),
    ("conv4_x2", 64, 64, 64, False),
    ("conv5_x1", 64, 64, 32, True),
    ("conv5_x3", 32, 2, 2, False),
)


def resnet18_block_forward(x_nchw, params):
    x = jnp.transpose(x_nchw, (0, 2, 3, 1))            # NCHW -> NHWC internally
    s = params["conv1"]
    x = conv_layer(x, s["w"], s["b"], (2, 2), (1, 1),
                   gamma=s["g"], beta=s["bt"], activation="relu")
    for name, _, _, _, is_ds in BLOCK_CFG[:-1]:
        x = resblock_forward(x, params[name], is_ds)
    name, _, _, _, is_ds = BLOCK_CFG[-1]
    out_mat, meta = resblock_forward(x, params[name], is_ds, return_matrix=True)
    # NOTE: nn.Linear(18, 2) exists in the module but is never called in forward().
    return adaptive_avg_pool(out_mat, meta)


# -------------------------- params + pure-JAX reference ---------------------

def _conv_init(key, cin, cout, kh, kw):
    k1, k2 = jax.random.split(key)
    fan_in = cin * kh * kw
    w = jax.random.normal(k1, (cout, cin, kh, kw), jnp.float32) * (2.0 / fan_in) ** 0.5
    b = 0.05 * jax.random.normal(k2, (cout,), jnp.float32)
    return w, b


def _bn_init(key, c):
    k1, k2 = jax.random.split(key)
    return (1.0 + 0.1 * jax.random.normal(k1, (c,), jnp.float32),
            0.1 * jax.random.normal(k2, (c,), jnp.float32))


def make_params(key):
    params = {}
    keys = jax.random.split(key, 1 + len(BLOCK_CFG))
    kw_, kb = jax.random.split(keys[0])
    w, b = _conv_init(kw_, 1, 64, 3, 3)
    g, bt = _bn_init(kb, 64)
    params["conv1"] = dict(w=w, b=b, g=g, bt=bt)
    for bk, (name, cin, cmid, cout, _) in zip(keys[1:], BLOCK_CFG):
        k0, k1, k2, k3, k4 = jax.random.split(bk, 5)
        w_res, b_res = _conv_init(k0, cin, cout, 1, 1)
        w1, b1 = _conv_init(k1, cin, cmid, 3, 3)
        g1, bt1 = _bn_init(k2, cmid)
        w2, b2 = _conv_init(k3, cmid, cout, 3, 3)
        g2, bt2 = _bn_init(k4, cout)
        params[name] = dict(w_res=w_res, b_res=b_res, w1=w1, b1=b1,
                            g1=g1, bt1=bt1, w2=w2, b2=b2, g2=g2, bt2=bt2)
    return params


def _ref_conv(x, w, b, stride, padding):
    y = lax.conv_general_dilated(
        x, w, stride, [(padding[0], padding[0]), (padding[1], padding[1])],
        dimension_numbers=("NCHW", "OIHW", "NCHW"),
        precision=lax.Precision.HIGHEST)
    return y + b.reshape(1, -1, 1, 1)


def _ref_bn(x, g, bt):
    mean = x.mean(axis=(0, 2, 3), keepdims=True)
    var = ((x - mean) ** 2).mean(axis=(0, 2, 3), keepdims=True)
    return (x - mean) / jnp.sqrt(var + EPS) * g.reshape(1, -1, 1, 1) + bt.reshape(1, -1, 1, 1)


def _ref_mish(x):
    return x * jnp.tanh(jax.nn.softplus(x))


def _ref_resblock(x, p, is_ds):
    stride1 = (2, 2) if is_ds else (1, 1)
    r = _ref_conv(x, p["w_res"], p["b_res"], stride1, (0, 0))
    h = _ref_conv(x, p["w1"], p["b1"], stride1, (1, 1))
    h = _ref_mish(_ref_bn(h, p["g1"], p["bt1"]))
    h = _ref_conv(h, p["w2"], p["b2"], (1, 1), (1, 1))
    h = _ref_bn(h, p["g2"], p["bt2"])
    return _ref_mish(h + r)


def _ref_forward(x, params):
    s = params["conv1"]
    h = jnp.maximum(_ref_bn(_ref_conv(x, s["w"], s["b"], (2, 2), (1, 1)),
                            s["g"], s["bt"]), 0.0)
    for name, _, _, _, is_ds in BLOCK_CFG:
        h = _ref_resblock(h, params[name], is_ds)
    return h.mean(axis=(2, 3), keepdims=True)


if __name__ == "__main__":
    key = jax.random.PRNGKey(0)
    kp, kx = jax.random.split(key)
    params = make_params(kp)

    # ResNet18_Block.conv1 = Conv_Pool(1, 64, ...) -> single-channel input
    x = jax.random.normal(kx, (2, 1, 16, 16), jnp.float32)

    fwd = jax.jit(resnet18_block_forward)
    out = jax.block_until_ready(fwd(x, params))

    ref = _ref_forward(x, params)
    assert out.shape == ref.shape == (2, 2, 1, 1), (out.shape, ref.shape)
    max_err = float(jnp.max(jnp.abs(out - ref)))
    assert jnp.allclose(out, ref, atol=5e-3, rtol=5e-3), max_err
    print("KERNEL_OK")
</pallas_src>

<mosaic_0001>
module attributes {stable_mosaic.version = 11 : i64} {
  func.func @conv_stats_kernel(%arg0: i32, %arg1: memref<128x9xf32, #tpu.memory_space<vmem>>, %arg2: memref<9x128xf32, #tpu.memory_space<vmem>>, %arg3: memref<1x128xf32, #tpu.memory_space<vmem>>, %arg4: memref<1x128xf32, #tpu.memory_space<vmem>>, %arg5: memref<1x128xf32, #tpu.memory_space<vmem>>) attributes {dimension_semantics = [#tpu.dimension_semantics<arbitrary>], iteration_bounds = array<i64: 1>, scalar_prefetch = 0 : i64, scratch_operands = 0 : i64, tpu.core_type = #tpu.core_type<tc>, window_params = [{transform_indices = @transform_0, window_bounds = array<i64: 128, 9>}, {pipeline_mode = #tpu.pipeline_mode<synchronous>, transform_indices = @transform_1, window_bounds = array<i64: 9, 128>}, {pipeline_mode = #tpu.pipeline_mode<synchronous>, transform_indices = @transform_2, window_bounds = array<i64: 1, 128>}, {pipeline_mode = #tpu.pipeline_mode<synchronous>, transform_indices = @transform_3, window_bounds = array<i64: 1, 128>}, {pipeline_mode = #tpu.pipeline_mode<synchronous>, transform_indices = @transform_4, window_bounds = array<i64: 1, 128>}]} {
    %c0 = arith.constant 0 : index
    %c0_0 = arith.constant 0 : index
    %0 = vector.load %arg1[%c0, %c0_0] : memref<128x9xf32, #tpu.memory_space<vmem>>, vector<128x9xf32>
    %c0_1 = arith.constant 0 : index
    %c0_2 = arith.constant 0 : index
    %1 = vector.load %arg2[%c0_1, %c0_2] : memref<9x128xf32, #tpu.memory_space<vmem>>, vector<9x128xf32>
    %cst = arith.constant dense<0.000000e+00> : vector<128x128xf32>
    %2 = tpu.matmul %0, %1, %cst {dimension_numbers = #tpu.dot_dimension_numbers<[1], [0], [0], [1], [0, 0, 1, 1], [], []>} : vector<128x9xf32>, vector<9x128xf32>, vector<128x128xf32> -> vector<128x128xf32>
    %c0_3 = arith.constant 0 : index
    %c0_4 = arith.constant 0 : index
    %3 = vector.load %arg3[%c0_3, %c0_4] : memref<1x128xf32, #tpu.memory_space<vmem>>, vector<1x128xf32>
    %4 = vector.broadcast %3 : vector<1x128xf32> to vector<128x128xf32>
    %5 = arith.addf %2, %4 : vector<128x128xf32>
    %6 = tpu.iota {dimensions = array<i32: 0>} : vector<128x128xi32>
    %c128_i32 = arith.constant 128 : i32
    %7 = arith.muli %arg0, %c128_i32 : i32
    %8 = vector.broadcast %7 : i32 to vector<128x128xi32>
    %9 = arith.addi %6, %8 : vector<128x128xi32>
    %c128_i32_5 = arith.constant 128 : i32
    %10 = vector.broadcast %c128_i32_5 : i32 to vector<128x128xi32>
    %11 = arith.cmpi slt, %9, %10 : vector<128x128xi32>
    %cst_6 = arith.constant 0.000000e+00 : f32
    %12 = vector.broadcast %cst_6 : f32 to vector<128x128xf32>
    %13 = arith.select %11, %5, %12 : vector<128x128xi1>, vector<128x128xf32>
    %c0_i32 = arith.constant 0 : i32
    %14 = arith.cmpi eq, %arg0, %c0_i32 : i32
    %15 = arith.extui %14 : i1 to i32
    %c0_i32_7 = arith.constant 0 : i32
    %16 = arith.cmpi ne, %15, %c0_i32_7 : i32
    scf.if %16 {
      %cst_18 = arith.constant 0.000000e+00 : f32
      %28 = vector.broadcast %cst_18 : f32 to vector<1x128xf32>
      %c0_19 = arith.constant 0 : index
      %c0_20 = arith.constant 0 : index
      %29 = vector.load %arg4[%c0_19, %c0_20] : memref<1x128xf32, #tpu.memory_space<vmem>>, vector<1x128xf32>
      tpu.vector_store %arg4[%c0_19, %c0_20], %28 {strides = array<i32>} : memref<1x128xf32, #tpu.memory_space<vmem>>, vector<1x128xf32>,
      %cst_21 = arith.constant 0.000000e+00 : f32
      %30 = vector.broadcast %cst_21 : f32 to vector<1x128xf32>
      %c0_22 = arith.constant 0 : index
      %c0_23 = arith.constant 0 : index
      %31 = vector.load %arg5[%c0_22, %c0_23] : memref<1x128xf32, #tpu.memory_space<vmem>>, vector<1x128xf32>
      tpu.vector_store %arg5[%c0_22, %c0_23], %30 {strides = array<i32>} : memref<1x128xf32, #tpu.memory_space<vmem>>, vector<1x128xf32>,
    } else {
    }
    %c0_8 = arith.constant 0 : index
    %c0_9 = arith.constant 0 : index
    %17 = vector.load %arg4[%c0_8, %c0_9] : memref<1x128xf32, #tpu.memory_space<vmem>>, vector<1x128xf32>
    %cst_10 = arith.constant dense<0.000000e+00> : vector<128xf32>
    %18 = vector.multi_reduction <add>, %13, %cst_10 [0] : vector<128x128xf32> to vector<128xf32>
    %19 = vector.shape_cast %18 : vector<128xf32> to vector<1x128xf32>
    %20 = arith.addf %17, %19 : vector<1x128xf32>
    %c0_11 = arith.constant 0 : index
    %c0_12 = arith.constant 0 : index
    %21 = vector.load %arg4[%c0_11, %c0_12] : memref<1x128xf32, #tpu.memory_space<vmem>>, vector<1x128xf32>
    tpu.vector_store %arg4[%c0_11, %c0_12], %20 {strides = array<i32>} : memref<1x128xf32, #tpu.memory_space<vmem>>, vector<1x128xf32>,
    %c0_13 = arith.constant 0 : index
    %c0_14 = arith.constant 0 : index
    %22 = vector.load %arg5[%c0_13, %c0_14] : memref<1x128xf32, #tpu.memory_space<vmem>>, vector<1x128xf32>
    %23 = arith.mulf %13, %13 : vector<128x128xf32>
    %cst_15 = arith.constant dense<0.000000e+00> : vector<128xf32>
    %24 = vector.multi_reduction <add>, %23, %cst_15 [0] : vector<128x128xf32> to vector<128xf32>
    %25 = vector.shape_cast %24 : vector<128xf32> to vector<1x128xf32>
    %26 = arith.addf %22, %25 : vector<1x128xf32>
    %c0_16 = arith.constant 0 : index
    %c0_17 = arith.constant 0 : index
    %27 = vector.load %arg5[%c0_16, %c0_17] : memref<1x128xf32, #tpu.memory_space<vmem>>, vector<1x128xf32>
    tpu.vector_store %arg5[%c0_16, %c0_17], %26 {strides = array<i32>} : memref<1x128xf32, #tpu.memory_space<vmem>>, vector<1x128xf32>,
    return
  }
  func.func @transform_0(%arg0: i32) -> (i32, i32) {
    %c0_i32 = arith.constant 0 : i32
    %c0_i32_0 = arith.constant 0 : i32
    return %arg0, %c0_i32 : i32, i32
  }
  func.func @transform_1(%arg0: i32) -> (i32, i32) {
    %c0_i32 = arith.constant 0 : i32
    %c0_i32_0 = arith.constant 0 : i32
    %c0_i32_1 = arith.constant 0 : i32
    return %c0_i32, %c0_i32_0 : i32, i32
  }
  func.func @transform_2(%arg0: i32) -> (i32, i32) {
    %c0_i32 = arith.constant 0 : i32
    %c0_i32_0 = arith.constant 0 : i32
    %c0_i32_1 = arith.constant 0 : i32
    return %c0_i32, %c0_i32_0 : i32, i32
  }
  func.func @transform_3(%arg0: i32) -> (i32, i32) {
    %c0_i32 = arith.constant 0 : i32
    %c0_i32_0 = arith.constant 0 : i32
    %c0_i32_1 = arith.constant 0 : i32
    return %c0_i32, %c0_i32_0 : i32, i32
  }
  func.func @transform_4(%arg0: i32) -> (i32, i32) {
    %c0_i32 = arith.constant 0 : i32
    %c0_i32_0 = arith.constant 0 : i32
    %c0_i32_1 = arith.constant 0 : i32
    return %c0_i32, %c0_i32_0 : i32, i32
  }
}

module attributes {stable_mosaic.version = 11 : i64} {
  func.func @conv_act_kernel(%arg0: i32, %arg1: memref<128x9xf32, #tpu.memory_space<vmem>>, %arg2: memref<9x128xf32, #tpu.memory_space<vmem>>, %arg3: memref<1x128xf32, #tpu.memory_space<vmem>>, %arg4: memref<128x128xf32, #tpu.memory_space<vmem>>) attributes {dimension_semantics = [#tpu.dimension_semantics<parallel>], iteration_bounds = array<i64: 1>, scalar_prefetch = 0 : i64, scratch_operands = 0 : i64, tpu.core_type = #tpu.core_type<tc>, window_params = [{transform_indices = @transform_0, window_bounds = array<i64: 128, 9>}, {pipeline_mode = #tpu.pipeline_mode<synchronous>, transform_indices = @transform_1, window_bounds = array<i64: 9, 128>}, {pipeline_mode = #tpu.pipeline_mode<synchronous>, transform_indices = @transform_2, window_bounds = array<i64: 1, 128>}, {transform_indices = @transform_3, window_bounds = array<i64: 128, 128>}]} {
    %c0 = arith.constant 0 : index
    %c0_0 = arith.constant 0 : index
    %0 = vector.load %arg1[%c0, %c0_0] : memref<128x9xf32, #tpu.memory_space<vmem>>, vector<128x9xf32>
    %c0_1 = arith.constant 0 : index
    %c0_2 = arith.constant 0 : index
    %1 = vector.load %arg2[%c0_1, %c0_2] : memref<9x128xf32, #tpu.memory_space<vmem>>, vector<9x128xf32>
    %cst = arith.constant dense<0.000000e+00> : vector<128x128xf32>
    %2 = tpu.matmul %0, %1, %cst {dimension_numbers = #tpu.dot_dimension_numbers<[1], [0], [0], [1], [0, 0, 1, 1], [], []>} : vector<128x9xf32>, vector<9x128xf32>, vector<128x128xf32> -> vector<128x128xf32>
    %c0_3 = arith.constant 0 : index
    %c0_4 = arith.constant 0 : index
    %3 = vector.load %arg3[%c0_3, %c0_4] : memref<1x128xf32, #tpu.memory_space<vmem>>, vector<1x128xf32>
    %4 = vector.broadcast %3 : vector<1x128xf32> to vector<128x128xf32>
    %5 = arith.addf %2, %4 : vector<128x128xf32>
    %cst_5 = arith.constant 0.000000e+00 : f32
    %6 = vector.broadcast %cst_5 : f32 to vector<128x128xf32>
    %7 = arith.maximumf %5, %6 : vector<128x128xf32>
    %c0_6 = arith.constant 0 : index
    %c0_7 = arith.constant 0 : index
    %8 = vector.load %arg4[%c0_6, %c0_7] : memref<128x128xf32, #tpu.memory_space<vmem>>, vector<128x128xf32>
    tpu.vector_store %arg4[%c0_6, %c0_7], %7 {strides = array<i32>} : memref<128x128xf32, #tpu.memory_space<vmem>>, vector<128x128xf32>,
    return
  }
  func.func @transform_0(%arg0: i32) -> (i32, i32) {
    %c0_i32 = arith.constant 0 : i32
    %c0_i32_0 = arith.constant 0 : i32
    return %arg0, %c0_i32 : i32, i32
  }
  func.func @transform_1(%arg0: i32) -> (i32, i32) {
    %c0_i32 = arith.constant 0 : i32
    %c0_i32_0 = arith.constant 0 : i32
    %c0_i32_1 = arith.constant 0 : i32
    return %c0_i32, %c0_i32_0 : i32, i32
  }
  func.func @transform_2(%arg0: i32) -> (i32, i32) {
    %c0_i32 = arith.constant 0 : i32
    %c0_i32_0 = arith.constant 0 : i32
    %c0_i32_1 = arith.constant 0 : i32
    return %c0_i32, %c0_i32_0 : i32, i32
  }
  func.func @transform_3(%arg0: i32) -> (i32, i32) {
    %c0_i32 = arith.constant 0 : i32
    %c0_i32_0 = arith.constant 0 : i32
    return %arg0, %c0_i32 : i32, i32
  }
}

module attributes {stable_mosaic.version = 11 : i64} {
  func.func @conv_stats_out_kernel(%arg0: i32, %arg1: memref<128x576xf32, #tpu.memory_space<vmem>>, %arg2: memref<576x128xf32, #tpu.memory_space<vmem>>, %arg3: memref<1x128xf32, #tpu.memory_space<vmem>>, %arg4: memref<128x128xf32, #tpu.memory_space<vmem>>, %arg5: memref<1x128xf32, #tpu.memory_space<vmem>>, %arg6: memref<1x128xf32, #tpu.memory_space<vmem>>) attributes {dimension_semantics = [#tpu.dimension_semantics<arbitrary>], iteration_bounds = array<i64: 1>, scalar_prefetch = 0 : i64, scratch_operands = 0 : i64, tpu.core_type = #tpu.core_type<tc>, window_params = [{transform_indices = @transform_0, window_bounds = array<i64: 128, 576>}, {pipeline_mode = #tpu.pipeline_mode<synchronous>, transform_indices = @transform_1, window_bounds = array<i64: 576, 128>}, {pipeline_mode = #tpu.pipeline_mode<synchronous>, transform_indices = @transform_2, window_bounds = array<i64: 1, 128>}, {transform_indices = @transform_3, window_bounds = array<i64: 128, 128>}, {pipeline_mode = #tpu.pipeline_mode<synchronous>, transform_indices = @transform_4, window_bounds = array<i64: 1, 128>}, {pipeline_mode = #tpu.pipeline_mode<synchronous>, transform_indices = @transform_5, window_bounds = array<i64: 1, 128>}]} {
    %c0 = arith.constant 0 : index
    %c0_0 = arith.constant 0 : index
    %0 = vector.load %arg1[%c0, %c0_0] : memref<128x576xf32, #tpu.memory_space<vmem>>, vector<128x576xf32>
    %c0_1 = arith.constant 0 : index
    %c0_2 = arith.constant 0 : index
    %1 = vector.load %arg2[%c0_1, %c0_2] : memref<576x128xf32, #tpu.memory_space<vmem>>, vector<576x128xf32>
    %cst = arith.constant dense<0.000000e+00> : vector<128x128xf32>
    %2 = tpu.matmul %0, %1, %cst {dimension_numbers = #tpu.dot_dimension_numbers<[1], [0], [0], [1], [0, 0, 1, 1], [], []>} : vector<128x576xf32>, vector<576x128xf32>, vector<128x128xf32> -> vector<128x128xf32>
    %c0_3 = arith.constant 0 : index
    %c0_4 = arith.constant 0 : index
    %3 = vector.load %arg3[%c0_3, %c0_4] : memref<1x128xf32, #tpu.memory_space<vmem>>, vector<1x128xf32>
    %4 = vector.broadcast %3 : vector<1x128xf32> to vector<128x128xf32>
    %5 = arith.addf %2, %4 : vector<128x128xf32>
    %c0_5 = arith.constant 0 : index
    %c0_6 = arith.constant 0 : index
    %6 = vector.load %arg4[%c0_5, %c0_6] : memref<128x128xf32, #tpu.memory_space<vmem>>, vector<128x128xf32>
    tpu.vector_store %arg4[%c0_5, %c0_6], %5 {strides = array<i32>} : memref<128x128xf32, #tpu.memory_space<vmem>>, vector<128x128xf32>,
    %7 = tpu.iota {dimensions = array<i32: 0>} : vector<128x128xi32>
    %c128_i32 = arith.constant 128 : i32
    %8 = arith.muli %arg0, %c128_i32 : i32
    %9 = vector.broadcast %8 : i32 to vector<128x128xi32>
    %10 = arith.addi %7, %9 : vector<128x128xi32>
    %c128_i32_7 = arith.constant 128 : i32
    %11 = vector.broadcast %c128_i32_7 : i32 to vector<128x128xi32>
    %12 = arith.cmpi slt, %10, %11 : vector<128x128xi32>
    %cst_8 = arith.constant 0.000000e+00 : f32
    %13 = vector.broadcast %cst_8 : f32 to vector<128x128xf32>
    %14 = arith.select %12, %5, %13 : vector<128x128xi1>, vector<128x128xf32>
    %c0_i32 = arith.constant 0 : i32
    %15 = arith.cmpi eq, %arg0, %c0_i32 : i32
    %16 = arith.extui %15 : i1 to i32
    %c0_i32_9 = arith.constant 0 : i32
    %17 = arith.cmpi ne, %16, %c0_i32_9 : i32
    scf.if %17 {
      %cst_20 = arith.constant 0.000000e+00 : f32
      %29 = vector.broadcast %cst_20 : f32 to vector<1x128xf32>
      %c0_21 = arith.constant 0 : index
      %c0_22 = arith.constant 0 : index
      %30 = vector.load %arg5[%c0_21, %c0_22] : memref<1x128xf32, #tpu.memory_space<vmem>>, vector<1x128xf32>
      tpu.vector_store %arg5[%c0_21, %c0_22], %29 {strides = array<i32>} : memref<1x128xf32, #tpu.memory_space<vmem>>, vector<1x128xf32>,
      %cst_23 = arith.constant 0.000000e+00 : f32
      %31 = vector.broadcast %cst_23 : f32 to vector<1x128xf32>
      %c0_24 = arith.constant 0 : index
      %c0_25 = arith.constant 0 : index
      %32 = vector.load %arg6[%c0_24, %c0_25] : memref<1x128xf32, #tpu.memory_space<vmem>>, vector<1x128xf32>
      tpu.vector_store %arg6[%c0_24, %c0_25], %31 {strides = array<i32>} : memref<1x128xf32, #tpu.memory_space<vmem>>, vector<1x128xf32>,
    } else {
    }
    %c0_10 = arith.constant 0 : index
    %c0_11 = arith.constant 0 : index
    %18 = vector.load %arg5[%c0_10, %c0_11] : memref<1x128xf32, #tpu.memory_space<vmem>>, vector<1x128xf32>
    %cst_12 = arith.constant dense<0.000000e+00> : vector<128xf32>
    %19 = vector.multi_reduction <add>, %14, %cst_12 [0] : vector<128x128xf32> to vector<128xf32>
    %20 = vector.shape_cast %19 : vector<128xf32> to vector<1x128xf32>
    %21 = arith.addf %18, %20 : vector<1x128xf32>
    %c0_13 = arith.constant 0 : index
    %c0_14 = arith.constant 0 : index
    %22 = vector.load %arg5[%c0_13, %c0_14] : memref<1x128xf32, #tpu.memory_space<vmem>>, vector<1x128xf32>
    tpu.vector_store %arg5[%c0_13, %c0_14], %21 {strides = array<i32>} : memref<1x128xf32, #tpu.memory_space<vmem>>, vector<1x128xf32>,
    %c0_15 = arith.constant 0 : index
    %c0_16 = arith.constant 0 : index
    %23 = vector.load %arg6[%c0_15, %c0_16] : memref<1x128xf32, #tpu.memory_space<vmem>>, vector<1x128xf32>
    %24 = arith.mulf %14, %14 : vector<128x128xf32>
    %cst_17 = arith.constant dense<0.000000e+00> : vector<128xf32>
    %25 = vector.multi_reduction <add>, %24, %cst_17 [0] : vector<128x128xf32> to vector<128xf32>
    %26 = vector.shape_cast %25 : vector<128xf32> to vector<1x128xf32>
    %27 = arith.addf %23, %26 : vector<1x128xf32>
    %c0_18 = arith.constant 0 : index
    %c0_19 = arith.constant 0 : index
    %28 = vector.load %arg6[%c0_18, %c0_19] : memref<1x128xf32, #tpu.memory_space<vmem>>, vector<1x128xf32>
    tpu.vector_store %arg6[%c0_18, %c0_19], %27 {strides = array<i32>} : memref<1x128xf32, #tpu.memory_space<vmem>>, vector<1x128xf32>,
    return
  }
  func.func @transform_0(%arg0: i32) -> (i32, i32) {
    %c0_i32 = arith.constant 0 : i32
    %c0_i32_0 = arith.constant 0 : i32
    return %arg0, %c0_i32 : i32, i32
  }
  func.func @transform_1(%arg0: i32) -> (i32, i32) {
    %c0_i32 = arith.constant 0 : i32
    %c0_i32_0 = arith.constant 0 : i32
    %c0_i32_1 = arith.constant 0 : i32
    return %c0_i32, %c0_i32_0 : i32, i32
  }
  func.func @transform_2(%arg0: i32) -> (i32, i32) {
    %c0_i32 = arith.constant 0 : i32
    %c0_i32_0 = arith.constant 0 : i32
    %c0_i32_1 = arith.constant 0 : i32
    return %c0_i32, %c0_i32_0 : i32, i32
  }
  func.func @transform_3(%arg0: i32) -> (i32, i32) {
    %c0_i32 = arith.constant 0 : i32
    %c0_i32_0 = arith.constant 0 : i32
    return %arg0, %c0_i32 : i32, i32
  }
  func.func @transform_4(%arg0: i32) -> (i32, i32) {
    %c0_i32 = arith.constant 0 : i32
    %c0_i32_0 = arith.constant 0 : i32
    %c0_i32_1 = arith.constant 0 : i32
    return %c0_i32, %c0_i32_0 : i32, i32
  }
  func.func @transform_5(%arg0: i32) -> (i32, i32) {
    %c0_i32 = arith.constant 0 : i32
    %c0_i32_0 = arith.constant 0 : i32
    %c0_i32_1 = arith.constant 0 : i32
    return %c0_i32, %c0_i32_0 : i32, i32
  }
}

module attributes {stable_mosaic.version = 11 : i64} {
  func.func @bn_act_kernel(%arg0: i32, %arg1: memref<128x128xf32, #tpu.memory_space<vmem>>, %arg2: memref<1x128xf32, #tpu.memory_space<vmem>>, %arg3: memref<1x128xf32, #tpu.memory_space<vmem>>, %arg4: memref<128x128xf32, #tpu.memory_space<vmem>>) attributes {dimension_semantics = [#tpu.dimension_semantics<parallel>], iteration_bounds = array<i64: 1>, scalar_prefetch = 0 : i64, scratch_operands = 0 : i64, tpu.core_type = #tpu.core_type<tc>, window_params = [{transform_indices = @transform_0, window_bounds = array<i64: 128, 128>}, {pipeline_mode = #tpu.pipeline_mode<synchronous>, transform_indices = @transform_1, window_bounds = array<i64: 1, 128>}, {pipeline_mode = #tpu.pipeline_mode<synchronous>, transform_indices = @transform_2, window_bounds = array<i64: 1, 128>}, {transform_indices = @transform_3, window_bounds = array<i64: 128, 128>}]} {
    %c0 = arith.constant 0 : index
    %c0_0 = arith.constant 0 : index
    %0 = vector.load %arg1[%c0, %c0_0] : memref<128x128xf32, #tpu.memory_space<vmem>>, vector<128x128xf32>
    %c0_1 = arith.constant 0 : index
    %c0_2 = arith.constant 0 : index
    %1 = vector.load %arg2[%c0_1, %c0_2] : memref<1x128xf32, #tpu.memory_space<vmem>>, vector<1x128xf32>
    %2 = vector.broadcast %1 : vector<1x128xf32> to vector<128x128xf32>
    %3 = arith.mulf %0, %2 : vector<128x128xf32>
    %c0_3 = arith.constant 0 : index
    %c0_4 = arith.constant 0 : index
    %4 = vector.load %arg3[%c0_3, %c0_4] : memref<1x128xf32, #tpu.memory_space<vmem>>, vector<1x128xf32>
    %5 = vector.broadcast %4 : vector<1x128xf32> to vector<128x128xf32>
    %6 = arith.addf %3, %5 : vector<128x128xf32>
    %cst = arith.constant 0.000000e+00 : f32
    %7 = vector.broadcast %cst : f32 to vector<128x128xf32>
    %8 = arith.maximumf %6, %7 : vector<128x128xf32>
    %9 = math.absf %6 : vector<128x128xf32>
    %cst_5 = arith.constant 0.000000e+00 : f32
    %10 = vector.broadcast %cst_5 : f32 to vector<128x128xf32>
    %11 = arith.subf %10, %9 : vector<128x128xf32>
    %12 = math.exp %11 : vector<128x128xf32>
    %13 = math.log1p %12 : vector<128x128xf32>
    %14 = arith.addf %8, %13 : vector<128x128xf32>
    %15 = math.tanh %14 : vector<128x128xf32>
    %16 = arith.mulf %6, %15 : vector<128x128xf32>
    %c0_6 = arith.constant 0 : index
    %c0_7 = arith.constant 0 : index
    %17 = vector.load %arg4[%c0_6, %c0_7] : memref<128x128xf32, #tpu.memory_space<vmem>>, vector<128x128xf32>
    tpu.vector_store %arg4[%c0_6, %c0_7], %16 {strides = array<i32>} : memref<128x128xf32, #tpu.memory_space<vmem>>, vector<128x128xf32>,
    return
  }
  func.func @transform_0(%arg0: i32) -> (i32, i32) {
    %c0_i32 = arith.constant 0 : i32
    %c0_i32_0 = arith.constant 0 : i32
    return %arg0, %c0_i32 : i32, i32
  }
  func.func @transform_1(%arg0: i32) -> (i32, i32) {
    %c0_i32 = arith.constant 0 : i32
    %c0_i32_0 = arith.constant 0 : i32
    %c0_i32_1 = arith.constant 0 : i32
    return %c0_i32, %c0_i32_0 : i32, i32
  }
  func.func @transform_2(%arg0: i32) -> (i32, i32) {
    %c0_i32 = arith.constant 0 : i32
    %c0_i32_0 = arith.constant 0 : i32
    %c0_i32_1 = arith.constant 0 : i32
    return %c0_i32, %c0_i32_0 : i32, i32
  }
  func.func @transform_3(%arg0: i32) -> (i32, i32) {
    %c0_i32 = arith.constant 0 : i32
    %c0_i32_0 = arith.constant 0 : i32
    return %arg0, %c0_i32 : i32, i32
  }
}

module attributes {stable_mosaic.version = 11 : i64} {
  func.func @conv_act_kernel(%arg0: i32, %arg1: memref<128x64xf32, #tpu.memory_space<vmem>>, %arg2: memref<64x128xf32, #tpu.memory_space<vmem>>, %arg3: memref<1x128xf32, #tpu.memory_space<vmem>>, %arg4: memref<128x128xf32, #tpu.memory_space<vmem>>) attributes {dimension_semantics = [#tpu.dimension_semantics<parallel>], iteration_bounds = array<i64: 1>, scalar_prefetch = 0 : i64, scratch_operands = 0 : i64, tpu.core_type = #tpu.core_type<tc>, window_params = [{transform_indices = @transform_0, window_bounds = array<i64: 128, 64>}, {pipeline_mode = #tpu.pipeline_mode<synchronous>, transform_indices = @transform_1, window_bounds = array<i64: 64, 128>}, {pipeline_mode = #tpu.pipeline_mode<synchronous>, transform_indices = @transform_2, window_bounds = array<i64: 1, 128>}, {transform_indices = @transform_3, window_bounds = array<i64: 128, 128>}]} {
    %c0 = arith.constant 0 : index
    %c0_0 = arith.constant 0 : index
    %0 = vector.load %arg1[%c0, %c0_0] : memref<128x64xf32, #tpu.memory_space<vmem>>, vector<128x64xf32>
    %c0_1 = arith.constant 0 : index
    %c0_2 = arith.constant 0 : index
    %1 = vector.load %arg2[%c0_1, %c0_2] : memref<64x128xf32, #tpu.memory_space<vmem>>, vector<64x128xf32>
    %cst = arith.constant dense<0.000000e+00> : vector<128x128xf32>
    %2 = tpu.matmul %0, %1, %cst {dimension_numbers = #tpu.dot_dimension_numbers<[1], [0], [0], [1], [0, 0, 1, 1], [], []>} : vector<128x64xf32>, vector<64x128xf32>, vector<128x128xf32> -> vector<128x128xf32>
    %c0_3 = arith.constant 0 : index
    %c0_4 = arith.constant 0 : index
    %3 = vector.load %arg3[%c0_3, %c0_4] : memref<1x128xf32, #tpu.memory_space<vmem>>, vector<1x128xf32>
    %4 = vector.broadcast %3 : vector<1x128xf32> to vector<128x128xf32>
    %5 = arith.addf %2, %4 : vector<128x128xf32>
    %c0_5 = arith.constant 0 : index
    %c0_6 = arith.constant 0 : index
    %6 = vector.load %arg4[%c0_5, %c0_6] : memref<128x128xf32, #tpu.memory_space<vmem>>, vector<128x128xf32>
    tpu.vector_store %arg4[%c0_5, %c0_6], %5 {strides = array<i32>} : memref<128x128xf32, #tpu.memory_space<vmem>>, vector<128x128xf32>,
    return
  }
  func.func @transform_0(%arg0: i32) -> (i32, i32) {
    %c0_i32 = arith.constant 0 : i32
    %c0_i32_0 = arith.constant 0 : i32
    return %arg0, %c0_i32 : i32, i32
  }
  func.func @transform_1(%arg0: i32) -> (i32, i32) {
    %c0_i32 = arith.constant 0 : i32
    %c0_i32_0 = arith.constant 0 : i32
    %c0_i32_1 = arith.constant 0 : i32
    return %c0_i32, %c0_i32_0 : i32, i32
  }
  func.func @transform_2(%arg0: i32) -> (i32, i32) {
    %c0_i32 = arith.constant 0 : i32
    %c0_i32_0 = arith.constant 0 : i32
    %c0_i32_1 = arith.constant 0 : i32
    return %c0_i32, %c0_i32_0 : i32, i32
  }
  func.func @transform_3(%arg0: i32) -> (i32, i32) {
    %c0_i32 = arith.constant 0 : i32
    %c0_i32_0 = arith.constant 0 : i32
    return %arg0, %c0_i32 : i32, i32
  }
}

module attributes {stable_mosaic.version = 11 : i64} {
  func.func @bn_add_act_kernel(%arg0: i32, %arg1: memref<128x128xf32, #tpu.memory_space<vmem>>, %arg2: memref<1x128xf32, #tpu.memory_space<vmem>>, %arg3: memref<1x128xf32, #tpu.memory_space<vmem>>, %arg4: memref<128x128xf32, #tpu.memory_space<vmem>>, %arg5: memref<128x128xf32, #tpu.memory_space<vmem>>) attributes {dimension_semantics = [#tpu.dimension_semantics<parallel>], iteration_bounds = array<i64: 1>, scalar_prefetch = 0 : i64, scratch_operands = 0 : i64, tpu.core_type = #tpu.core_type<tc>, window_params = [{transform_indices = @transform_0, window_bounds = array<i64: 128, 128>}, {pipeline_mode = #tpu.pipeline_mode<synchronous>, transform_indices = @transform_1, window_bounds = array<i64: 1, 128>}, {pipeline_mode = #tpu.pipeline_mode<synchronous>, transform_indices = @transform_2, window_bounds = array<i64: 1, 128>}, {transform_indices = @transform_3, window_bounds = array<i64: 128, 128>}, {transform_indices = @transform_4, window_bounds = array<i64: 128, 128>}]} {
    %c0 = arith.constant 0 : index
    %c0_0 = arith.constant 0 : index
    %0 = vector.load %arg1[%c0, %c0_0] : memref<128x128xf32, #tpu.memory_space<vmem>>, vector<128x128xf32>
    %c0_1 = arith.constant 0 : index
    %c0_2 = arith.constant 0 : index
    %1 = vector.load %arg2[%c0_1, %c0_2] : memref<1x128xf32, #tpu.memory_space<vmem>>, vector<1x128xf32>
    %2 = vector.broadcast %1 : vector<1x128xf32> to vector<128x128xf32>
    %3 = arith.mulf %0, %2 : vector<128x128xf32>
    %c0_3 = arith.constant 0 : index
    %c0_4 = arith.constant 0 : index
    %4 = vector.load %arg3[%c0_3, %c0_4] : memref<1x128xf32, #tpu.memory_space<vmem>>, vector<1x128xf32>
    %5 = vector.broadcast %4 : vector<1x128xf32> to vector<128x128xf32>
    %6 = arith.addf %3, %5 : vector<128x128xf32>
    %c0_5 = arith.constant 0 : index
    %c0_6 = arith.constant 0 : index
    %7 = vector.load %arg4[%c0_5, %c0_6] : memref<128x128xf32, #tpu.memory_space<vmem>>, vector<128x128xf32>
    %8 = arith.addf %6, %7 : vector<128x128xf32>
    %cst = arith.constant 0.000000e+00 : f32
    %9 = vector.broadcast %cst : f32 to vector<128x128xf32>
    %10 = arith.maximumf %8, %9 : vector<128x128xf32>
    %11 = math.absf %8 : vector<128x128xf32>
    %cst_7 = arith.constant 0.000000e+00 : f32
    %12 = vector.broadcast %cst_7 : f32 to vector<128x128xf32>
    %13 = arith.subf %12, %11 : vector<128x128xf32>
    %14 = math.exp %13 : vector<128x128xf32>
    %15 = math.log1p %14 : vector<128x128xf32>
    %16 = arith.addf %10, %15 : vector<128x128xf32>
    %17 = math.tanh %16 : vector<128x128xf32>
    %18 = arith.mulf %8, %17 : vector<128x128xf32>
    %c0_8 = arith.constant 0 : index
    %c0_9 = arith.constant 0 : index
    %19 = vector.load %arg5[%c0_8, %c0_9] : memref<128x128xf32, #tpu.memory_space<vmem>>, vector<128x128xf32>
    tpu.vector_store %arg5[%c0_8, %c0_9], %18 {strides = array<i32>} : memref<128x128xf32, #tpu.memory_space<vmem>>, vector<128x128xf32>,
    return
  }
  func.func @transform_0(%arg0: i32) -> (i32, i32) {
    %c0_i32 = arith.constant 0 : i32
    %c0_i32_0 = arith.constant 0 : i32
    return %arg0, %c0_i32 : i32, i32
  }
  func.func @transform_1(%arg0: i32) -> (i32, i32) {
    %c0_i32 = arith.constant 0 : i32
    %c0_i32_0 = arith.constant 0 : i32
    %c0_i32_1 = arith.constant 0 : i32
    return %c0_i32, %c0_i32_0 : i32, i32
  }
  func.func @transform_2(%arg0: i32) -> (i32, i32) {
    %c0_i32 = arith.constant 0 : i32
    %c0_i32_0 = arith.constant 0 : i32
    %c0_i32_1 = arith.constant 0 : i32
    return %c0_i32, %c0_i32_0 : i32, i32
  }
  func.func @transform_3(%arg0: i32) -> (i32, i32) {
    %c0_i32 = arith.constant 0 : i32
    %c0_i32_0 = arith.constant 0 : i32
    return %arg0, %c0_i32 : i32, i32
  }
  func.func @transform_4(%arg0: i32) -> (i32, i32) {
    %c0_i32 = arith.constant 0 : i32
    %c0_i32_0 = arith.constant 0 : i32
    return %arg0, %c0_i32 : i32, i32
  }
}

module attributes {stable_mosaic.version = 11 : i64} {
  func.func @bn_act_kernel(%arg0: i32, %arg1: memref<32x128xf32, #tpu.memory_space<vmem>>, %arg2: memref<1x128xf32, #tpu.memory_space<vmem>>, %arg3: memref<1x128xf32, #tpu.memory_space<vmem>>, %arg4: memref<32x128xf32, #tpu.memory_space<vmem>>) attributes {dimension_semantics = [#tpu.dimension_semantics<parallel>], iteration_bounds = array<i64: 1>, scalar_prefetch = 0 : i64, scratch_operands = 0 : i64, tpu.core_type = #tpu.core_type<tc>, window_params = [{transform_indices = @transform_0, window_bounds = array<i64: 32, 128>}, {pipeline_mode = #tpu.pipeline_mode<synchronous>, transform_indices = @transform_1, window_bounds = array<i64: 1, 128>}, {pipeline_mode = #tpu.pipeline_mode<synchronous>, transform_indices = @transform_2, window_bounds = array<i64: 1, 128>}, {transform_indices = @transform_3, window_bounds = array<i64: 32, 128>}]} {
    %c0 = arith.constant 0 : index
    %c0_0 = arith.constant 0 : index
    %0 = vector.load %arg1[%c0, %c0_0] : memref<32x128xf32, #tpu.memory_space<vmem>>, vector<32x128xf32>
    %c0_1 = arith.constant 0 : index
    %c0_2 = arith.constant 0 : index
    %1 = vector.load %arg2[%c0_1, %c0_2] : memref<1x128xf32, #tpu.memory_space<vmem>>, vector<1x128xf32>
    %2 = vector.broadcast %1 : vector<1x128xf32> to vector<32x128xf32>
    %3 = arith.mulf %0, %2 : vector<32x128xf32>
    %c0_3 = arith.constant 0 : index
    %c0_4 = arith.constant 0 : index
    %4 = vector.load %arg3[%c0_3, %c0_4] : memref<1x128xf32, #tpu.memory_space<vmem>>, vector<1x128xf32>
    %5 = vector.broadcast %4 : vector<1x128xf32> to vector<32x128xf32>
    %6 = arith.addf %3, %5 : vector<32x128xf32>
    %cst = arith.constant 0.000000e+00 : f32
    %7 = vector.broadcast %cst : f32 to vector<32x128xf32>
    %8 = arith.maximumf %6, %7 : vector<32x128xf32>
    %9 = math.absf %6 : vector<32x128xf32>
    %cst_5 = arith.constant 0.000000e+00 : f32
    %10 = vector.broadcast %cst_5 : f32 to vector<32x128xf32>
    %11 = arith.subf %10, %9 : vector<32x128xf32>
    %12 = math.exp %11 : vector<32x128xf32>
    %13 = math.log1p %12 : vector<32x128xf32>
    %14 = arith.addf %8, %13 : vector<32x128xf32>
    %15 = math.tanh %14 : vector<32x128xf32>
    %16 = arith.mulf %6, %15 : vector<32x128xf32>
    %c0_6 = arith.constant 0 : index
    %c0_7 = arith.constant 0 : index
    %17 = vector.load %arg4[%c0_6, %c0_7] : memref<32x128xf32, #tpu.memory_space<vmem>>, vector<32x128xf32>
    tpu.vector_store %arg4[%c0_6, %c0_7], %16 {strides = array<i32>} : memref<32x128xf32, #tpu.memory_space<vmem>>, vector<32x128xf32>,
    return
  }
  func.func @transform_0(%arg0: i32) -> (i32, i32) {
    %c0_i32 = arith.constant 0 : i32
    %c0_i32_0 = arith.constant 0 : i32
    return %arg0, %c0_i32 : i32, i32
  }
  func.func @transform_1(%arg0: i32) -> (i32, i32) {
    %c0_i32 = arith.constant 0 : i32
    %c0_i32_0 = arith.constant 0 : i32
    %c0_i32_1 = arith.constant 0 : i32
    return %c0_i32, %c0_i32_0 : i32, i32
  }
  func.func @transform_2(%arg0: i32) -> (i32, i32) {
    %c0_i32 = arith.constant 0 : i32
    %c0_i32_0 = arith.constant 0 : i32
    %c0_i32_1 = arith.constant 0 : i32
    return %c0_i32, %c0_i32_0 : i32, i32
  }
  func.func @transform_3(%arg0: i32) -> (i32, i32) {
    %c0_i32 = arith.constant 0 : i32
    %c0_i32_0 = arith.constant 0 : i32
    return %arg0, %c0_i32 : i32, i32
  }
}

module attributes {stable_mosaic.version = 11 : i64} {
  func.func @conv_stats_out_kernel(%arg0: i32, %arg1: memref<32x576xf32, #tpu.memory_space<vmem>>, %arg2: memref<576x128xf32, #tpu.memory_space<vmem>>, %arg3: memref<1x128xf32, #tpu.memory_space<vmem>>, %arg4: memref<32x128xf32, #tpu.memory_space<vmem>>, %arg5: memref<1x128xf32, #tpu.memory_space<vmem>>, %arg6: memref<1x128xf32, #tpu.memory_space<vmem>>) attributes {dimension_semantics = [#tpu.dimension_semantics<arbitrary>], iteration_bounds = array<i64: 1>, scalar_prefetch = 0 : i64, scratch_operands = 0 : i64, tpu.core_type = #tpu.core_type<tc>, window_params = [{transform_indices = @transform_0, window_bounds = array<i64: 32, 576>}, {pipeline_mode = #tpu.pipeline_mode<synchronous>, transform_indices = @transform_1, window_bounds = array<i64: 576, 128>}, {pipeline_mode = #tpu.pipeline_mode<synchronous>, transform_indices = @transform_2, window_bounds = array<i64: 1, 128>}, {transform_indices = @transform_3, window_bounds = array<i64: 32, 128>}, {pipeline_mode = #tpu.pipeline_mode<synchronous>, transform_indices = @transform_4, window_bounds = array<i64: 1, 128>}, {pipeline_mode = #tpu.pipeline_mode<synchronous>, transform_indices = @transform_5, window_bounds = array<i64: 1, 128>}]} {
    %c0 = arith.constant 0 : index
    %c0_0 = arith.constant 0 : index
    %0 = vector.load %arg1[%c0, %c0_0] : memref<32x576xf32, #tpu.memory_space<vmem>>, vector<32x576xf32>
    %c0_1 = arith.constant 0 : index
    %c0_2 = arith.constant 0 : index
    %1 = vector.load %arg2[%c0_1, %c0_2] : memref<576x128xf32, #tpu.memory_space<vmem>>, vector<576x128xf32>
    %cst = arith.constant dense<0.000000e+00> : vector<32x128xf32>
    %2 = tpu.matmul %0, %1, %cst {dimension_numbers = #tpu.dot_dimension_numbers<[1], [0], [0], [1], [0, 0, 1, 1], [], []>} : vector<32x576xf32>, vector<576x128xf32>, vector<32x128xf32> -> vector<32x128xf32>
    %c0_3 = arith.constant 0 : index
    %c0_4 = arith.constant 0 : index
    %3 = vector.load %arg3[%c0_3, %c0_4] : memref<1x128xf32, #tpu.memory_space<vmem>>, vector<1x128xf32>
    %4 = vector.broadcast %3 : vector<1x128xf32> to vector<32x128xf32>
    %5 = arith.addf %2, %4 : vector<32x128xf32>
    %c0_5 = arith.constant 0 : index
    %c0_6 = arith.constant 0 : index
    %6 = vector.load %arg4[%c0_5, %c0_6] : memref<32x128xf32, #tpu.memory_space<vmem>>, vector<32x128xf32>
    tpu.vector_store %arg4[%c0_5, %c0_6], %5 {strides = array<i32>} : memref<32x128xf32, #tpu.memory_space<vmem>>, vector<32x128xf32>,
    %7 = tpu.iota {dimensions = array<i32: 0>} : vector<32x128xi32>
    %c32_i32 = arith.constant 32 : i32
    %8 = arith.muli %arg0, %c32_i32 : i32
    %9 = vector.broadcast %8 : i32 to vector<32x128xi32>
    %10 = arith.addi %7, %9 : vector<32x128xi32>
    %c32_i32_7 = arith.constant 32 : i32
    %11 = vector.broadcast %c32_i32_7 : i32 to vector<32x128xi32>
    %12 = arith.cmpi slt, %10, %11 : vector<32x128xi32>
    %cst_8 = arith.constant 0.000000e+00 : f32
    %13 = vector.broadcast %cst_8 : f32 to vector<32x128xf32>
    %14 = arith.select %12, %5, %13 : vector<32x128xi1>, vector<32x128xf32>
    %c0_i32 = arith.constant 0 : i32
    %15 = arith.cmpi eq, %arg0, %c0_i32 : i32
    %16 = arith.extui %15 : i1 to i32
    %c0_i32_9 = arith.constant 0 : i32
    %17 = arith.cmpi ne, %16, %c0_i32_9 : i32
    scf.if %17 {
      %cst_20 = arith.constant 0.000000e+00 : f32
      %29 = vector.broadcast %cst_20 : f32 to vector<1x128xf32>
      %c0_21 = arith.constant 0 : index
      %c0_22 = arith.constant 0 : index
      %30 = vector.load %arg5[%c0_21, %c0_22] : memref<1x128xf32, #tpu.memory_space<vmem>>, vector<1x128xf32>
      tpu.vector_store %arg5[%c0_21, %c0_22], %29 {strides = array<i32>} : memref<1x128xf32, #tpu.memory_space<vmem>>, vector<1x128xf32>,
      %cst_23 = arith.constant 0.000000e+00 : f32
      %31 = vector.broadcast %cst_23 : f32 to vector<1x128xf32>
      %c0_24 = arith.constant 0 : index
      %c0_25 = arith.constant 0 : index
      %32 = vector.load %arg6[%c0_24, %c0_25] : memref<1x128xf32, #tpu.memory_space<vmem>>, vector<1x128xf32>
      tpu.vector_store %arg6[%c0_24, %c0_25], %31 {strides = array<i32>} : memref<1x128xf32, #tpu.memory_space<vmem>>, vector<1x128xf32>,
    } else {
    }
    %c0_10 = arith.constant 0 : index
    %c0_11 = arith.constant 0 : index
    %18 = vector.load %arg5[%c0_10, %c0_11] : memref<1x128xf32, #tpu.memory_space<vmem>>, vector<1x128xf32>
    %cst_12 = arith.constant dense<0.000000e+00> : vector<128xf32>
    %19 = vector.multi_reduction <add>, %14, %cst_12 [0] : vector<32x128xf32> to vector<128xf32>
    %20 = vector.shape_cast %19 : vector<128xf32> to vector<1x128xf32>
    %21 = arith.addf %18, %20 : vector<1x128xf32>
    %c0_13 = arith.constant 0 : index
    %c0_14 = arith.constant 0 : index
    %22 = vector.load %arg5[%c0_13, %c0_14] : memref<1x128xf32, #tpu.memory_space<vmem>>, vector<1x128xf32>
    tpu.vector_store %arg5[%c0_13, %c0_14], %21 {strides = array<i32>} : memref<1x128xf32, #tpu.memory_space<vmem>>, vector<1x128xf32>,
    %c0_15 = arith.constant 0 : index
    %c0_16 = arith.constant 0 : index
    %23 = vector.load %arg6[%c0_15, %c0_16] : memref<1x128xf32, #tpu.memory_space<vmem>>, vector<1x128xf32>
    %24 = arith.mulf %14, %14 : vector<32x128xf32>
    %cst_17 = arith.constant dense<0.000000e+00> : vector<128xf32>
    %25 = vector.multi_reduction <add>, %24, %cst_17 [0] : vector<32x128xf32> to vector<128xf32>
    %26 = vector.shape_cast %25 : vector<128xf32> to vector<1x128xf32>
    %27 = arith.addf %23, %26 : vector<1x128xf32>
    %c0_18 = arith.constant 0 : index
    %c0_19 = arith.constant 0 : index
    %28 = vector.load %arg6[%c0_18, %c0_19] : memref<1x128xf32, #tpu.memory_space<vmem>>, vector<1x128xf32>
    tpu.vector_store %arg6[%c0_18, %c0_19], %27 {strides = array<i32>} : memref<1x128xf32, #tpu.memory_space<vmem>>, vector<1x128xf32>,
    return
  }
  func.func @transform_0(%arg0: i32) -> (i32, i32) {
    %c0_i32 = arith.constant 0 : i32
    %c0_i32_0 = arith.constant 0 : i32
    return %arg0, %c0_i32 : i32, i32
  }
  func.func @transform_1(%arg0: i32) -> (i32, i32) {
    %c0_i32 = arith.constant 0 : i32
    %c0_i32_0 = arith.constant 0 : i32
    %c0_i32_1 = arith.constant 0 : i32
    return %c0_i32, %c0_i32_0 : i32, i32
  }
  func.func @transform_2(%arg0: i32) -> (i32, i32) {
    %c0_i32 = arith.constant 0 : i32
    %c0_i32_0 = arith.constant 0 : i32
    %c0_i32_1 = arith.constant 0 : i32
    return %c0_i32, %c0_i32_0 : i32, i32
  }
  func.func @transform_3(%arg0: i32) -> (i32, i32) {
    %c0_i32 = arith.constant 0 : i32
    %c0_i32_0 = arith.constant 0 : i32
    return %arg0, %c0_i32 : i32, i32
  }
  func.func @transform_4(%arg0: i32) -> (i32, i32) {
    %c0_i32 = arith.constant 0 : i32
    %c0_i32_0 = arith.constant 0 : i32
    %c0_i32_1 = arith.constant 0 : i32
    return %c0_i32, %c0_i32_0 : i32, i32
  }
  func.func @transform_5(%arg0: i32) -> (i32, i32) {
    %c0_i32 = arith.constant 0 : i32
    %c0_i32_0 = arith.constant 0 : i32
    %c0_i32_1 = arith.constant 0 : i32
    return %c0_i32, %c0_i32_0 : i32, i32
  }
}

module attributes {stable_mosaic.version = 11 : i64} {
  func.func @conv_stats_out_kernel(%arg0: i32, %arg1: memref<32x1152xf32, #tpu.memory_space<vmem>>, %arg2: memref<1152x128xf32, #tpu.memory_space<vmem>>, %arg3: memref<1x128xf32, #tpu.memory_space<vmem>>, %arg4: memref<32x128xf32, #tpu.memory_space<vmem>>, %arg5: memref<1x128xf32, #tpu.memory_space<vmem>>, %arg6: memref<1x128xf32, #tpu.memory_space<vmem>>) attributes {dimension_semantics = [#tpu.dimension_semantics<arbitrary>], iteration_bounds = array<i64: 1>, scalar_prefetch = 0 : i64, scratch_operands = 0 : i64, tpu.core_type = #tpu.core_type<tc>, window_params = [{transform_indices = @transform_0, window_bounds = array<i64: 32, 1152>}, {pipeline_mode = #tpu.pipeline_mode<synchronous>, transform_indices = @transform_1, window_bounds = array<i64: 1152, 128>}, {pipeline_mode = #tpu.pipeline_mode<synchronous>, transform_indices = @transform_2, window_bounds = array<i64: 1, 128>}, {transform_indices = @transform_3, window_bounds = array<i64: 32, 128>}, {pipeline_mode = #tpu.pipeline_mode<synchronous>, transform_indices = @transform_4, window_bounds = array<i64: 1, 128>}, {pipeline_mode = #tpu.pipeline_mode<synchronous>, transform_indices = @transform_5, window_bounds = array<i64: 1, 128>}]} {
    %c0 = arith.constant 0 : index
    %c0_0 = arith.constant 0 : index
    %0 = vector.load %arg1[%c0, %c0_0] : memref<32x1152xf32, #tpu.memory_space<vmem>>, vector<32x1152xf32>
    %c0_1 = arith.constant 0 : index
    %c0_2 = arith.constant 0 : index
    %1 = vector.load %arg2[%c0_1, %c0_2] : memref<1152x128xf32, #tpu.memory_space<vmem>>, vector<1152x128xf32>
    %cst = arith.constant dense<0.000000e+00> : vector<32x128xf32>
    %2 = tpu.matmul %0, %1, %cst {dimension_numbers = #tpu.dot_dimension_numbers<[1], [0], [0], [1], [0, 0, 1, 1], [], []>} : vector<32x1152xf32>, vector<1152x128xf32>, vector<32x128xf32> -> vector<32x128xf32>
    %c0_3 = arith.constant 0 : index
    %c0_4 = arith.constant 0 : index
    %3 = vector.load %arg3[%c0_3, %c0_4] : memref<1x128xf32, #tpu.memory_space<vmem>>, vector<1x128xf32>
    %4 = vector.broadcast %3 : vector<1x128xf32> to vector<32x128xf32>
    %5 = arith.addf %2, %4 : vector<32x128xf32>
    %c0_5 = arith.constant 0 : index
    %c0_6 = arith.constant 0 : index
    %6 = vector.load %arg4[%c0_5, %c0_6] : memref<32x128xf32, #tpu.memory_space<vmem>>, vector<32x128xf32>
    tpu.vector_store %arg4[%c0_5, %c0_6], %5 {strides = array<i32>} : memref<32x128xf32, #tpu.memory_space<vmem>>, vector<32x128xf32>,
    %7 = tpu.iota {dimensions = array<i32: 0>} : vector<32x128xi32>
    %c32_i32 = arith.constant 32 : i32
    %8 = arith.muli %arg0, %c32_i32 : i32
    %9 = vector.broadcast %8 : i32 to vector<32x128xi32>
    %10 = arith.addi %7, %9 : vector<32x128xi32>
    %c32_i32_7 = arith.constant 32 : i32
    %11 = vector.broadcast %c32_i32_7 : i32 to vector<32x128xi32>
    %12 = arith.cmpi slt, %10, %11 : vector<32x128xi32>
    %cst_8 = arith.constant 0.000000e+00 : f32
    %13 = vector.broadcast %cst_8 : f32 to vector<32x128xf32>
    %14 = arith.select %12, %5, %13 : vector<32x128xi1>, vector<32x128xf32>
    %c0_i32 = arith.constant 0 : i32
    %15 = arith.cmpi eq, %arg0, %c0_i32 : i32
    %16 = arith.extui %15 : i1 to i32
    %c0_i32_9 = arith.constant 0 : i32
    %17 = arith.cmpi ne, %16, %c0_i32_9 : i32
    scf.if %17 {
      %cst_20 = arith.constant 0.000000e+00 : f32
      %29 = vector.broadcast %cst_20 : f32 to vector<1x128xf32>
      %c0_21 = arith.constant 0 : index
      %c0_22 = arith.constant 0 : index
      %30 = vector.load %arg5[%c0_21, %c0_22] : memref<1x128xf32, #tpu.memory_space<vmem>>, vector<1x128xf32>
      tpu.vector_store %arg5[%c0_21, %c0_22], %29 {strides = array<i32>} : memref<1x128xf32, #tpu.memory_space<vmem>>, vector<1x128xf32>,
      %cst_23 = arith.constant 0.000000e+00 : f32
      %31 = vector.broadcast %cst_23 : f32 to vector<1x128xf32>
      %c0_24 = arith.constant 0 : index
      %c0_25 = arith.constant 0 : index
      %32 = vector.load %arg6[%c0_24, %c0_25] : memref<1x128xf32, #tpu.memory_space<vmem>>, vector<1x128xf32>
      tpu.vector_store %arg6[%c0_24, %c0_25], %31 {strides = array<i32>} : memref<1x128xf32, #tpu.memory_space<vmem>>, vector<1x128xf32>,
    } else {
    }
    %c0_10 = arith.constant 0 : index
    %c0_11 = arith.constant 0 : index
    %18 = vector.load %arg5[%c0_10, %c0_11] : memref<1x128xf32, #tpu.memory_space<vmem>>, vector<1x128xf32>
    %cst_12 = arith.constant dense<0.000000e+00> : vector<128xf32>
    %19 = vector.multi_reduction <add>, %14, %cst_12 [0] : vector<32x128xf32> to vector<128xf32>
    %20 = vector.shape_cast %19 : vector<128xf32> to vector<1x128xf32>
    %21 = arith.addf %18, %20 : vector<1x128xf32>
    %c0_13 = arith.constant 0 : index
    %c0_14 = arith.constant 0 : index
    %22 = vector.load %arg5[%c0_13, %c0_14] : memref<1x128xf32, #tpu.memory_space<vmem>>, vector<1x128xf32>
    tpu.vector_store %arg5[%c0_13, %c0_14], %21 {strides = array<i32>} : memref<1x128xf32, #tpu.memory_space<vmem>>, vector<1x128xf32>,
    %c0_15 = arith.constant 0 : index
    %c0_16 = arith.constant 0 : index
    %23 = vector.load %arg6[%c0_15, %c0_16] : memref<1x128xf32, #tpu.memory_space<vmem>>, vector<1x128xf32>
    %24 = arith.mulf %14, %14 : vector<32x128xf32>
    %cst_17 = arith.constant dense<0.000000e+00> : vector<128xf32>
    %25 = vector.multi_reduction <add>, %24, %cst_17 [0] : vector<32x128xf32> to vector<128xf32>
    %26 = vector.shape_cast %25 : vector<128xf32> to vector<1x128xf32>
    %27 = arith.addf %23, %26 : vector<1x128xf32>
    %c0_18 = arith.constant 0 : index
    %c0_19 = arith.constant 0 : index
    %28 = vector.load %arg6[%c0_18, %c0_19] : memref<1x128xf32, #tpu.memory_space<vmem>>, vector<1x128xf32>
    tpu.vector_store %arg6[%c0_18, %c0_19], %27 {strides = array<i32>} : memref<1x128xf32, #tpu.memory_space<vmem>>, vector<1x128xf32>,
    return
  }
  func.func @transform_0(%arg0: i32) -> (i32, i32) {
    %c0_i32 = arith.constant 0 : i32
    %c0_i32_0 = arith.constant 0 : i32
    return %arg0, %c0_i32 : i32, i32
  }
  func.func @transform_1(%arg0: i32) -> (i32, i32) {
    %c0_i32 = arith.constant 0 : i32
    %c0_i32_0 = arith.constant 0 : i32
    %c0_i32_1 = arith.constant 0 : i32
    return %c0_i32, %c0_i32_0 : i32, i32
  }
  func.func @transform_2(%arg0: i32) -> (i32, i32) {
    %c0_i32 = arith.constant 0 : i32
    %c0_i32_0 = arith.constant 0 : i32
    %c0_i32_1 = arith.constant 0 : i32
    return %c0_i32, %c0_i32_0 : i32, i32
  }
  func.func @transform_3(%arg0: i32) -> (i32, i32) {
    %c0_i32 = arith.constant 0 : i32
    %c0_i32_0 = arith.constant 0 : i32
    return %arg0, %c0_i32 : i32, i32
  }
  func.func @transform_4(%arg0: i32) -> (i32, i32) {
    %c0_i32 = arith.constant 0 : i32
    %c0_i32_0 = arith.constant 0 : i32
    %c0_i32_1 = arith.constant 0 : i32
    return %c0_i32, %c0_i32_0 : i32, i32
  }
  func.func @transform_5(%arg0: i32) -> (i32, i32) {
    %c0_i32 = arith.constant 0 : i32
    %c0_i32_0 = arith.constant 0 : i32
    %c0_i32_1 = arith.constant 0 : i32
    return %c0_i32, %c0_i32_0 : i32, i32
  }
}

module attributes {stable_mosaic.version = 11 : i64} {
  func.func @bn_add_act_kernel(%arg0: i32, %arg1: memref<32x128xf32, #tpu.memory_space<vmem>>, %arg2: memref<1x128xf32, #tpu.memory_space<vmem>>, %arg3: memref<1x128xf32, #tpu.memory_space<vmem>>, %arg4: memref<32x128xf32, #tpu.memory_space<vmem>>, %arg5: memref<32x128xf32, #tpu.memory_space<vmem>>) attributes {dimension_semantics = [#tpu.dimension_semantics<parallel>], iteration_bounds = array<i64: 1>, scalar_prefetch = 0 : i64, scratch_operands = 0 : i64, tpu.core_type = #tpu.core_type<tc>, window_params = [{transform_indices = @transform_0, window_bounds = array<i64: 32, 128>}, {pipeline_mode = #tpu.pipeline_mode<synchronous>, transform_indices = @transform_1, window_bounds = array<i64: 1, 128>}, {pipeline_mode = #tpu.pipeline_mode<synchronous>, transform_indices = @transform_2, window_bounds = array<i64: 1, 128>}, {transform_indices = @transform_3, window_bounds = array<i64: 32, 128>}, {transform_indices = @transform_4, window_bounds = array<i64: 32, 128>}]} {
    %c0 = arith.constant 0 : index
    %c0_0 = arith.constant 0 : index
    %0 = vector.load %arg1[%c0, %c0_0] : memref<32x128xf32, #tpu.memory_space<vmem>>, vector<32x128xf32>
    %c0_1 = arith.constant 0 : index
    %c0_2 = arith.constant 0 : index
    %1 = vector.load %arg2[%c0_1, %c0_2] : memref<1x128xf32, #tpu.memory_space<vmem>>, vector<1x128xf32>
    %2 = vector.broadcast %1 : vector<1x128xf32> to vector<32x128xf32>
    %3 = arith.mulf %0, %2 : vector<32x128xf32>
    %c0_3 = arith.constant 0 : index
    %c0_4 = arith.constant 0 : index
    %4 = vector.load %arg3[%c0_3, %c0_4] : memref<1x128xf32, #tpu.memory_space<vmem>>, vector<1x128xf32>
    %5 = vector.broadcast %4 : vector<1x128xf32> to vector<32x128xf32>
    %6 = arith.addf %3, %5 : vector<32x128xf32>
    %c0_5 = arith.constant 0 : index
    %c0_6 = arith.constant 0 : index
    %7 = vector.load %arg4[%c0_5, %c0_6] : memref<32x128xf32, #tpu.memory_space<vmem>>, vector<32x128xf32>
    %8 = arith.addf %6, %7 : vector<32x128xf32>
    %cst = arith.constant 0.000000e+00 : f32
    %9 = vector.broadcast %cst : f32 to vector<32x128xf32>
    %10 = arith.maximumf %8, %9 : vector<32x128xf32>
    %11 = math.absf %8 : vector<32x128xf32>
    %cst_7 = arith.constant 0.000000e+00 : f32
    %12 = vector.broadcast %cst_7 : f32 to vector<32x128xf32>
    %13 = arith.subf %12, %11 : vector<32x128xf32>
    %14 = math.exp %13 : vector<32x128xf32>
    %15 = math.log1p %14 : vector<32x128xf32>
    %16 = arith.addf %10, %15 : vector<32x128xf32>
    %17 = math.tanh %16 : vector<32x128xf32>
    %18 = arith.mulf %8, %17 : vector<32x128xf32>
    %c0_8 = arith.constant 0 : index
    %c0_9 = arith.constant 0 : index
    %19 = vector.load %arg5[%c0_8, %c0_9] : memref<32x128xf32, #tpu.memory_space<vmem>>, vector<32x128xf32>
    tpu.vector_store %arg5[%c0_8, %c0_9], %18 {strides = array<i32>} : memref<32x128xf32, #tpu.memory_space<vmem>>, vector<32x128xf32>,
    return
  }
  func.func @transform_0(%arg0: i32) -> (i32, i32) {
    %c0_i32 = arith.constant 0 : i32
    %c0_i32_0 = arith.constant 0 : i32
    return %arg0, %c0_i32 : i32, i32
  }
  func.func @transform_1(%arg0: i32) -> (i32, i32) {
    %c0_i32 = arith.constant 0 : i32
    %c0_i32_0 = arith.constant 0 : i32
    %c0_i32_1 = arith.constant 0 : i32
    return %c0_i32, %c0_i32_0 : i32, i32
  }
  func.func @transform_2(%arg0: i32) -> (i32, i32) {
    %c0_i32 = arith.constant 0 : i32
    %c0_i32_0 = arith.constant 0 : i32
    %c0_i32_1 = arith.constant 0 : i32
    return %c0_i32, %c0_i32_0 : i32, i32
  }
  func.func @transform_3(%arg0: i32) -> (i32, i32) {
    %c0_i32 = arith.constant 0 : i32
    %c0_i32_0 = arith.constant 0 : i32
    return %arg0, %c0_i32 : i32, i32
  }
  func.func @transform_4(%arg0: i32) -> (i32, i32) {
    %c0_i32 = arith.constant 0 : i32
    %c0_i32_0 = arith.constant 0 : i32
    return %arg0, %c0_i32 : i32, i32
  }
}

module attributes {stable_mosaic.version = 11 : i64} {
  func.func @conv_act_kernel(%arg0: i32, %arg1: memref<32x64xf32, #tpu.memory_space<vmem>>, %arg2: memref<64x128xf32, #tpu.memory_space<vmem>>, %arg3: memref<1x128xf32, #tpu.memory_space<vmem>>, %arg4: memref<32x128xf32, #tpu.memory_space<vmem>>) attributes {dimension_semantics = [#tpu.dimension_semantics<parallel>], iteration_bounds = array<i64: 1>, scalar_prefetch = 0 : i64, scratch_operands = 0 : i64, tpu.core_type = #tpu.core_type<tc>, window_params = [{transform_indices = @transform_0, window_bounds = array<i64: 32, 64>}, {pipeline_mode = #tpu.pipeline_mode<synchronous>, transform_indices = @transform_1, window_bounds = array<i64: 64, 128>}, {pipeline_mode = #tpu.pipeline_mode<synchronous>, transform_indices = @transform_2, window_bounds = array<i64: 1, 128>}, {transform_indices = @transform_3, window_bounds = array<i64: 32, 128>}]} {
    %c0 = arith.constant 0 : index
    %c0_0 = arith.constant 0 : index
    %0 = vector.load %arg1[%c0, %c0_0] : memref<32x64xf32, #tpu.memory_space<vmem>>, vector<32x64xf32>
    %c0_1 = arith.constant 0 : index
    %c0_2 = arith.constant 0 : index
    %1 = vector.load %arg2[%c0_1, %c0_2] : memref<64x128xf32, #tpu.memory_space<vmem>>, vector<64x128xf32>
    %cst = arith.constant dense<0.000000e+00> : vector<32x128xf32>
    %2 = tpu.matmul %0, %1, %cst {dimension_numbers = #tpu.dot_dimension_numbers<[1], [0], [0], [1], [0, 0, 1, 1], [], []>} : vector<32x64xf32>, vector<64x128xf32>, vector<32x128xf32> -> vector<32x128xf32>
    %c0_3 = arith.constant 0 : index
    %c0_4 = arith.constant 0 : index
    %3 = vector.load %arg3[%c0_3, %c0_4] : memref<1x128xf32, #tpu.memory_space<vmem>>, vector<1x128xf32>
    %4 = vector.broadcast %3 : vector<1x128xf32> to vector<32x128xf32>
    %5 = arith.addf %2, %4 : vector<32x128xf32>
    %c0_5 = arith.constant 0 : index
    %c0_6 = arith.constant 0 : index
    %6 = vector.load %arg4[%c0_5, %c0_6] : memref<32x128xf32, #tpu.memory_space<vmem>>, vector<32x128xf32>
    tpu.vector_store %arg4[%c0_5, %c0_6], %5 {strides = array<i32>} : memref<32x128xf32, #tpu.memory_space<vmem>>, vector<32x128xf32>,
    return
  }
  func.func @transform_0(%arg0: i32) -> (i32, i32) {
    %c0_i32 = arith.constant 0 : i32
    %c0_i32_0 = arith.constant 0 : i32
    return %arg0, %c0_i32 : i32, i32
  }
  func.func @transform_1(%arg0: i32) -> (i32, i32) {
    %c0_i32 = arith.constant 0 : i32
    %c0_i32_0 = arith.constant 0 : i32
    %c0_i32_1 = arith.constant 0 : i32
    return %c0_i32, %c0_i32_0 : i32, i32
  }
  func.func @transform_2(%arg0: i32) -> (i32, i32) {
    %c0_i32 = arith.constant 0 : i32
    %c0_i32_0 = arith.constant 0 : i32
    %c0_i32_1 = arith.constant 0 : i32
    return %c0_i32, %c0_i32_0 : i32, i32
  }
  func.func @transform_3(%arg0: i32) -> (i32, i32) {
    %c0_i32 = arith.constant 0 : i32
    %c0_i32_0 = arith.constant 0 : i32
    return %arg0, %c0_i32 : i32, i32
  }
}

module attributes {stable_mosaic.version = 11 : i64} {
  func.func @conv_act_kernel(%arg0: i32, %arg1: memref<32x128xf32, #tpu.memory_space<vmem>>, %arg2: memref<128x128xf32, #tpu.memory_space<vmem>>, %arg3: memref<1x128xf32, #tpu.memory_space<vmem>>, %arg4: memref<32x128xf32, #tpu.memory_space<vmem>>) attributes {dimension_semantics = [#tpu.dimension_semantics<parallel>], iteration_bounds = array<i64: 1>, scalar_prefetch = 0 : i64, scratch_operands = 0 : i64, tpu.core_type = #tpu.core_type<tc>, window_params = [{transform_indices = @transform_0, window_bounds = array<i64: 32, 128>}, {pipeline_mode = #tpu.pipeline_mode<synchronous>, transform_indices = @transform_1, window_bounds = array<i64: 128, 128>}, {pipeline_mode = #tpu.pipeline_mode<synchronous>, transform_indices = @transform_2, window_bounds = array<i64: 1, 128>}, {transform_indices = @transform_3, window_bounds = array<i64: 32, 128>}]} {
    %c0 = arith.constant 0 : index
    %c0_0 = arith.constant 0 : index
    %0 = vector.load %arg1[%c0, %c0_0] : memref<32x128xf32, #tpu.memory_space<vmem>>, vector<32x128xf32>
    %c0_1 = arith.constant 0 : index
    %c0_2 = arith.constant 0 : index
    %1 = vector.load %arg2[%c0_1, %c0_2] : memref<128x128xf32, #tpu.memory_space<vmem>>, vector<128x128xf32>
    %cst = arith.constant dense<0.000000e+00> : vector<32x128xf32>
    %2 = tpu.matmul %0, %1, %cst {dimension_numbers = #tpu.dot_dimension_numbers<[1], [0], [0], [1], [0, 0, 1, 1], [], []>} : vector<32x128xf32>, vector<128x128xf32>, vector<32x128xf32> -> vector<32x128xf32>
    %c0_3 = arith.constant 0 : index
    %c0_4 = arith.constant 0 : index
    %3 = vector.load %arg3[%c0_3, %c0_4] : memref<1x128xf32, #tpu.memory_space<vmem>>, vector<1x128xf32>
    %4 = vector.broadcast %3 : vector<1x128xf32> to vector<32x128xf32>
    %5 = arith.addf %2, %4 : vector<32x128xf32>
    %c0_5 = arith.constant 0 : index
    %c0_6 = arith.constant 0 : index
    %6 = vector.load %arg4[%c0_5, %c0_6] : memref<32x128xf32, #tpu.memory_space<vmem>>, vector<32x128xf32>
    tpu.vector_store %arg4[%c0_5, %c0_6], %5 {strides = array<i32>} : memref<32x128xf32, #tpu.memory_space<vmem>>, vector<32x128xf32>,
    return
  }
  func.func @transform_0(%arg0: i32) -> (i32, i32) {
    %c0_i32 = arith.constant 0 : i32
    %c0_i32_0 = arith.constant 0 : i32
    return %arg0, %c0_i32 : i32, i32
  }
  func.func @transform_1(%arg0: i32) -> (i32, i32) {
    %c0_i32 = arith.constant 0 : i32
    %c0_i32_0 = arith.constant 0 : i32
    %c0_i32_1 = arith.constant 0 : i32
    return %c0_i32, %c0_i32_0 : i32, i32
  }
  func.func @transform_2(%arg0: i32) -> (i32, i32) {
    %c0_i32 = arith.constant 0 : i32
    %c0_i32_0 = arith.constant 0 : i32
    %c0_i32_1 = arith.constant 0 : i32
    return %c0_i32, %c0_i32_0 : i32, i32
  }
  func.func @transform_3(%arg0: i32) -> (i32, i32) {
    %c0_i32 = arith.constant 0 : i32
    %c0_i32_0 = arith.constant 0 : i32
    return %arg0, %c0_i32 : i32, i32
  }
}

module attributes {stable_mosaic.version = 11 : i64} {
  func.func @conv_stats_out_kernel(%arg0: i32, %arg1: memref<8x1152xf32, #tpu.memory_space<vmem>>, %arg2: memref<1152x128xf32, #tpu.memory_space<vmem>>, %arg3: memref<1x128xf32, #tpu.memory_space<vmem>>, %arg4: memref<8x128xf32, #tpu.memory_space<vmem>>, %arg5: memref<1x128xf32, #tpu.memory_space<vmem>>, %arg6: memref<1x128xf32, #tpu.memory_space<vmem>>) attributes {dimension_semantics = [#tpu.dimension_semantics<arbitrary>], iteration_bounds = array<i64: 1>, scalar_prefetch = 0 : i64, scratch_operands = 0 : i64, tpu.core_type = #tpu.core_type<tc>, window_params = [{transform_indices = @transform_0, window_bounds = array<i64: 8, 1152>}, {pipeline_mode = #tpu.pipeline_mode<synchronous>, transform_indices = @transform_1, window_bounds = array<i64: 1152, 128>}, {pipeline_mode = #tpu.pipeline_mode<synchronous>, transform_indices = @transform_2, window_bounds = array<i64: 1, 128>}, {transform_indices = @transform_3, window_bounds = array<i64: 8, 128>}, {pipeline_mode = #tpu.pipeline_mode<synchronous>, transform_indices = @transform_4, window_bounds = array<i64: 1, 128>}, {pipeline_mode = #tpu.pipeline_mode<synchronous>, transform_indices = @transform_5, window_bounds = array<i64: 1, 128>}]} {
    %c0 = arith.constant 0 : index
    %c0_0 = arith.constant 0 : index
    %0 = vector.load %arg1[%c0, %c0_0] : memref<8x1152xf32, #tpu.memory_space<vmem>>, vector<8x1152xf32>
    %c0_1 = arith.constant 0 : index
    %c0_2 = arith.constant 0 : index
    %1 = vector.load %arg2[%c0_1, %c0_2] : memref<1152x128xf32, #tpu.memory_space<vmem>>, vector<1152x128xf32>
    %cst = arith.constant dense<0.000000e+00> : vector<8x128xf32>
    %2 = tpu.matmul %0, %1, %cst {dimension_numbers = #tpu.dot_dimension_numbers<[1], [0], [0], [1], [0, 0, 1, 1], [], []>} : vector<8x1152xf32>, vector<1152x128xf32>, vector<8x128xf32> -> vector<8x128xf32>
    %c0_3 = arith.constant 0 : index
    %c0_4 = arith.constant 0 : index
    %3 = vector.load %arg3[%c0_3, %c0_4] : memref<1x128xf32, #tpu.memory_space<vmem>>, vector<1x128xf32>
    %4 = vector.broadcast %3 : vector<1x128xf32> to vector<8x128xf32>
    %5 = arith.addf %2, %4 : vector<8x128xf32>
    %c0_5 = arith.constant 0 : index
    %c0_6 = arith.constant 0 : index
    %6 = vector.load %arg4[%c0_5, %c0_6] : memref<8x128xf32, #tpu.memory_space<vmem>>, vector<8x128xf32>
    tpu.vector_store %arg4[%c0_5, %c0_6], %5 {strides = array<i32>} : memref<8x128xf32, #tpu.memory_space<vmem>>, vector<8x128xf32>,
    %7 = tpu.iota {dimensions = array<i32: 0>} : vector<8x128xi32>
    %c8_i32 = arith.constant 8 : i32
    %8 = arith.muli %arg0, %c8_i32 : i32
    %9 = vector.broadcast %8 : i32 to vector<8x128xi32>
    %10 = arith.addi %7, %9 : vector<8x128xi32>
    %c8_i32_7 = arith.constant 8 : i32
    %11 = vector.broadcast %c8_i32_7 : i32 to vector<8x128xi32>
    %12 = arith.cmpi slt, %10, %11 : vector<8x128xi32>
    %cst_8 = arith.constant 0.000000e+00 : f32
    %13 = vector.broadcast %cst_8 : f32 to vector<8x128xf32>
    %14 = arith.select %12, %5, %13 : vector<8x128xi1>, vector<8x128xf32>
    %c0_i32 = arith.constant 0 : i32
    %15 = arith.cmpi eq, %arg0, %c0_i32 : i32
    %16 = arith.extui %15 : i1 to i32
    %c0_i32_9 = arith.constant 0 : i32
    %17 = arith.cmpi ne, %16, %c0_i32_9 : i32
    scf.if %17 {
      %cst_20 = arith.constant 0.000000e+00 : f32
      %29 = vector.broadcast %cst_20 : f32 to vector<1x128xf32>
      %c0_21 = arith.constant 0 : index
      %c0_22 = arith.constant 0 : index
      %30 = vector.load %arg5[%c0_21, %c0_22] : memref<1x128xf32, #tpu.memory_space<vmem>>, vector<1x128xf32>
      tpu.vector_store %arg5[%c0_21, %c0_22], %29 {strides = array<i32>} : memref<1x128xf32, #tpu.memory_space<vmem>>, vector<1x128xf32>,
      %cst_23 = arith.constant 0.000000e+00 : f32
      %31 = vector.broadcast %cst_23 : f32 to vector<1x128xf32>
      %c0_24 = arith.constant 0 : index
      %c0_25 = arith.constant 0 : index
      %32 = vector.load %arg6[%c0_24, %c0_25] : memref<1x128xf32, #tpu.memory_space<vmem>>, vector<1x128xf32>
      tpu.vector_store %arg6[%c0_24, %c0_25], %31 {strides = array<i32>} : memref<1x128xf32, #tpu.memory_space<vmem>>, vector<1x128xf32>,
    } else {
    }
    %c0_10 = arith.constant 0 : index
    %c0_11 = arith.constant 0 : index
    %18 = vector.load %arg5[%c0_10, %c0_11] : memref<1x128xf32, #tpu.memory_space<vmem>>, vector<1x128xf32>
    %cst_12 = arith.constant dense<0.000000e+00> : vector<128xf32>
    %19 = vector.multi_reduction <add>, %14, %cst_12 [0] : vector<8x128xf32> to vector<128xf32>
    %20 = vector.shape_cast %19 : vector<128xf32> to vector<1x128xf32>
    %21 = arith.addf %18, %20 : vector<1x128xf32>
    %c0_13 = arith.constant 0 : index
    %c0_14 = arith.constant 0 : index
    %22 = vector.load %arg5[%c0_13, %c0_14] : memref<1x128xf32, #tpu.memory_space<vmem>>, vector<1x128xf32>
    tpu.vector_store %arg5[%c0_13, %c0_14], %21 {strides = array<i32>} : memref<1x128xf32, #tpu.memory_space<vmem>>, vector<1x128xf32>,
    %c0_15 = arith.constant 0 : index
    %c0_16 = arith.constant 0 : index
    %23 = vector.load %arg6[%c0_15, %c0_16] : memref<1x128xf32, #tpu.memory_space<vmem>>, vector<1x128xf32>
    %24 = arith.mulf %14, %14 : vector<8x128xf32>
    %cst_17 = arith.constant dense<0.000000e+00> : vector<128xf32>
    %25 = vector.multi_reduction <add>, %24, %cst_17 [0] : vector<8x128xf32> to vector<128xf32>
    %26 = vector.shape_cast %25 : vector<128xf32> to vector<1x128xf32>
    %27 = arith.addf %23, %26 : vector<1x128xf32>
    %c0_18 = arith.constant 0 : index
    %c0_19 = arith.constant 0 : index
    %28 = vector.load %arg6[%c0_18, %c0_19] : memref<1x128xf32, #tpu.memory_space<vmem>>, vector<1x128xf32>
    tpu.vector_store %arg6[%c0_18, %c0_19], %27 {strides = array<i32>} : memref<1x128xf32, #tpu.memory_space<vmem>>, vector<1x128xf32>,
    return
  }
  func.func @transform_0(%arg0: i32) -> (i32, i32) {
    %c0_i32 = arith.constant 0 : i32
    %c0_i32_0 = arith.constant 0 : i32
    return %arg0, %c0_i32 : i32, i32
  }
  func.func @transform_1(%arg0: i32) -> (i32, i32) {
    %c0_i32 = arith.constant 0 : i32
    %c0_i32_0 = arith.constant 0 : i32
    %c0_i32_1 = arith.constant 0 : i32
    return %c0_i32, %c0_i32_0 : i32, i32
  }
  func.func @transform_2(%arg0: i32) -> (i32, i32) {
    %c0_i32 = arith.constant 0 : i32
    %c0_i32_0 = arith.constant 0 : i32
    %c0_i32_1 = arith.constant 0 : i32
    return %c0_i32, %c0_i32_0 : i32, i32
  }
  func.func @transform_3(%arg0: i32) -> (i32, i32) {
    %c0_i32 = arith.constant 0 : i32
    %c0_i32_0 = arith.constant 0 : i32
    return %arg0, %c0_i32 : i32, i32
  }
  func.func @transform_4(%arg0: i32) -> (i32, i32) {
    %c0_i32 = arith.constant 0 : i32
    %c0_i32_0 = arith.constant 0 : i32
    %c0_i32_1 = arith.constant 0 : i32
    return %c0_i32, %c0_i32_0 : i32, i32
  }
  func.func @transform_5(%arg0: i32) -> (i32, i32) {
    %c0_i32 = arith.constant 0 : i32
    %c0_i32_0 = arith.constant 0 : i32
    %c0_i32_1 = arith.constant 0 : i32
    return %c0_i32, %c0_i32_0 : i32, i32
  }
}

module attributes {stable_mosaic.version = 11 : i64} {
  func.func @bn_act_kernel(%arg0: i32, %arg1: memref<8x128xf32, #tpu.memory_space<vmem>>, %arg2: memref<1x128xf32, #tpu.memory_space<vmem>>, %arg3: memref<1x128xf32, #tpu.memory_space<vmem>>, %arg4: memref<8x128xf32, #tpu.memory_space<vmem>>) attributes {dimension_semantics = [#tpu.dimension_semantics<parallel>], iteration_bounds = array<i64: 1>, scalar_prefetch = 0 : i64, scratch_operands = 0 : i64, tpu.core_type = #tpu.core_type<tc>, window_params = [{transform_indices = @transform_0, window_bounds = array<i64: 8, 128>}, {pipeline_mode = #tpu.pipeline_mode<synchronous>, transform_indices = @transform_1, window_bounds = array<i64: 1, 128>}, {pipeline_mode = #tpu.pipeline_mode<synchronous>, transform_indices = @transform_2, window_bounds = array<i64: 1, 128>}, {transform_indices = @transform_3, window_bounds = array<i64: 8, 128>}]} {
    %c0 = arith.constant 0 : index
    %c0_0 = arith.constant 0 : index
    %0 = vector.load %arg1[%c0, %c0_0] : memref<8x128xf32, #tpu.memory_space<vmem>>, vector<8x128xf32>
    %c0_1 = arith.constant 0 : index
    %c0_2 = arith.constant 0 : index
    %1 = vector.load %arg2[%c0_1, %c0_2] : memref<1x128xf32, #tpu.memory_space<vmem>>, vector<1x128xf32>
    %2 = vector.broadcast %1 : vector<1x128xf32> to vector<8x128xf32>
    %3 = arith.mulf %0, %2 : vector<8x128xf32>
    %c0_3 = arith.constant 0 : index
    %c0_4 = arith.constant 0 : index
    %4 = vector.load %arg3[%c0_3, %c0_4] : memref<1x128xf32, #tpu.memory_space<vmem>>, vector<1x128xf32>
    %5 = vector.broadcast %4 : vector<1x128xf32> to vector<8x128xf32>
    %6 = arith.addf %3, %5 : vector<8x128xf32>
    %cst = arith.constant 0.000000e+00 : f32
    %7 = vector.broadcast %cst : f32 to vector<8x128xf32>
    %8 = arith.maximumf %6, %7 : vector<8x128xf32>
    %9 = math.absf %6 : vector<8x128xf32>
    %cst_5 = arith.constant 0.000000e+00 : f32
    %10 = vector.broadcast %cst_5 : f32 to vector<8x128xf32>
    %11 = arith.subf %10, %9 : vector<8x128xf32>
    %12 = math.exp %11 : vector<8x128xf32>
    %13 = math.log1p %12 : vector<8x128xf32>
    %14 = arith.addf %8, %13 : vector<8x128xf32>
    %15 = math.tanh %14 : vector<8x128xf32>
    %16 = arith.mulf %6, %15 : vector<8x128xf32>
    %c0_6 = arith.constant 0 : index
    %c0_7 = arith.constant 0 : index
    %17 = vector.load %arg4[%c0_6, %c0_7] : memref<8x128xf32, #tpu.memory_space<vmem>>, vector<8x128xf32>
    tpu.vector_store %arg4[%c0_6, %c0_7], %16 {strides = array<i32>} : memref<8x128xf32, #tpu.memory_space<vmem>>, vector<8x128xf32>,
    return
  }
  func.func @transform_0(%arg0: i32) -> (i32, i32) {
    %c0_i32 = arith.constant 0 : i32
    %c0_i32_0 = arith.constant 0 : i32
    return %arg0, %c0_i32 : i32, i32
  }
  func.func @transform_1(%arg0: i32) -> (i32, i32) {
    %c0_i32 = arith.constant 0 : i32
    %c0_i32_0 = arith.constant 0 : i32
    %c0_i32_1 = arith.constant 0 : i32
    return %c0_i32, %c0_i32_0 : i32, i32
  }
  func.func @transform_2(%arg0: i32) -> (i32, i32) {
    %c0_i32 = arith.constant 0 : i32
    %c0_i32_0 = arith.constant 0 : i32
    %c0_i32_1 = arith.constant 0 : i32
    return %c0_i32, %c0_i32_0 : i32, i32
  }
  func.func @transform_3(%arg0: i32) -> (i32, i32) {
    %c0_i32 = arith.constant 0 : i32
    %c0_i32_0 = arith.constant 0 : i32
    return %arg0, %c0_i32 : i32, i32
  }
}

module attributes {stable_mosaic.version = 11 : i64} {
  func.func @conv_stats_out_kernel(%arg0: i32, %arg1: memref<8x576xf32, #tpu.memory_space<vmem>>, %arg2: memref<576x128xf32, #tpu.memory_space<vmem>>, %arg3: memref<1x128xf32, #tpu.memory_space<vmem>>, %arg4: memref<8x128xf32, #tpu.memory_space<vmem>>, %arg5: memref<1x128xf32, #tpu.memory_space<vmem>>, %arg6: memref<1x128xf32, #tpu.memory_space<vmem>>) attributes {dimension_semantics = [#tpu.dimension_semantics<arbitrary>], iteration_bounds = array<i64: 1>, scalar_prefetch = 0 : i64, scratch_operands = 0 : i64, tpu.core_type = #tpu.core_type<tc>, window_params = [{transform_indices = @transform_0, window_bounds = array<i64: 8, 576>}, {pipeline_mode = #tpu.pipeline_mode<synchronous>, transform_indices = @transform_1, window_bounds = array<i64: 576, 128>}, {pipeline_mode = #tpu.pipeline_mode<synchronous>, transform_indices = @transform_2, window_bounds = array<i64: 1, 128>}, {transform_indices = @transform_3, window_bounds = array<i64: 8, 128>}, {pipeline_mode = #tpu.pipeline_mode<synchronous>, transform_indices = @transform_4, window_bounds = array<i64: 1, 128>}, {pipeline_mode = #tpu.pipeline_mode<synchronous>, transform_indices = @transform_5, window_bounds = array<i64: 1, 128>}]} {
    %c0 = arith.constant 0 : index
    %c0_0 = arith.constant 0 : index
    %0 = vector.load %arg1[%c0, %c0_0] : memref<8x576xf32, #tpu.memory_space<vmem>>, vector<8x576xf32>
    %c0_1 = arith.constant 0 : index
    %c0_2 = arith.constant 0 : index
    %1 = vector.load %arg2[%c0_1, %c0_2] : memref<576x128xf32, #tpu.memory_space<vmem>>, vector<576x128xf32>
    %cst = arith.constant dense<0.000000e+00> : vector<8x128xf32>
    %2 = tpu.matmul %0, %1, %cst {dimension_numbers = #tpu.dot_dimension_numbers<[1], [0], [0], [1], [0, 0, 1, 1], [], []>} : vector<8x576xf32>, vector<576x128xf32>, vector<8x128xf32> -> vector<8x128xf32>
    %c0_3 = arith.constant 0 : index
    %c0_4 = arith.constant 0 : index
    %3 = vector.load %arg3[%c0_3, %c0_4] : memref<1x128xf32, #tpu.memory_space<vmem>>, vector<1x128xf32>
    %4 = vector.broadcast %3 : vector<1x128xf32> to vector<8x128xf32>
    %5 = arith.addf %2, %4 : vector<8x128xf32>
    %c0_5 = arith.constant 0 : index
    %c0_6 = arith.constant 0 : index
    %6 = vector.load %arg4[%c0_5, %c0_6] : memref<8x128xf32, #tpu.memory_space<vmem>>, vector<8x128xf32>
    tpu.vector_store %arg4[%c0_5, %c0_6], %5 {strides = array<i32>} : memref<8x128xf32, #tpu.memory_space<vmem>>, vector<8x128xf32>,
    %7 = tpu.iota {dimensions = array<i32: 0>} : vector<8x128xi32>
    %c8_i32 = arith.constant 8 : i32
    %8 = arith.muli %arg0, %c8_i32 : i32
    %9 = vector.broadcast %8 : i32 to vector<8x128xi32>
    %10 = arith.addi %7, %9 : vector<8x128xi32>
    %c8_i32_7 = arith.constant 8 : i32
    %11 = vector.broadcast %c8_i32_7 : i32 to vector<8x128xi32>
    %12 = arith.cmpi slt, %10, %11 : vector<8x128xi32>
    %cst_8 = arith.constant 0.000000e+00 : f32
    %13 = vector.broadcast %cst_8 : f32 to vector<8x128xf32>
    %14 = arith.select %12, %5, %13 : vector<8x128xi1>, vector<8x128xf32>
    %c0_i32 = arith.constant 0 : i32
    %15 = arith.cmpi eq, %arg0, %c0_i32 : i32
    %16 = arith.extui %15 : i1 to i32
    %c0_i32_9 = arith.constant 0 : i32
    %17 = arith.cmpi ne, %16, %c0_i32_9 : i32
    scf.if %17 {
      %cst_20 = arith.constant 0.000000e+00 : f32
      %29 = vector.broadcast %cst_20 : f32 to vector<1x128xf32>
      %c0_21 = arith.constant 0 : index
      %c0_22 = arith.constant 0 : index
      %30 = vector.load %arg5[%c0_21, %c0_22] : memref<1x128xf32, #tpu.memory_space<vmem>>, vector<1x128xf32>
      tpu.vector_store %arg5[%c0_21, %c0_22], %29 {strides = array<i32>} : memref<1x128xf32, #tpu.memory_space<vmem>>, vector<1x128xf32>,
      %cst_23 = arith.constant 0.000000e+00 : f32
      %31 = vector.broadcast %cst_23 : f32 to vector<1x128xf32>
      %c0_24 = arith.constant 0 : index
      %c0_25 = arith.constant 0 : index
      %32 = vector.load %arg6[%c0_24, %c0_25] : memref<1x128xf32, #tpu.memory_space<vmem>>, vector<1x128xf32>
      tpu.vector_store %arg6[%c0_24, %c0_25], %31 {strides = array<i32>} : memref<1x128xf32, #tpu.memory_space<vmem>>, vector<1x128xf32>,
    } else {
    }
    %c0_10 = arith.constant 0 : index
    %c0_11 = arith.constant 0 : index
    %18 = vector.load %arg5[%c0_10, %c0_11] : memref<1x128xf32, #tpu.memory_space<vmem>>, vector<1x128xf32>
    %cst_12 = arith.constant dense<0.000000e+00> : vector<128xf32>
    %19 = vector.multi_reduction <add>, %14, %cst_12 [0] : vector<8x128xf32> to vector<128xf32>
    %20 = vector.shape_cast %19 : vector<128xf32> to vector<1x128xf32>
    %21 = arith.addf %18, %20 : vector<1x128xf32>
    %c0_13 = arith.constant 0 : index
    %c0_14 = arith.constant 0 : index
    %22 = vector.load %arg5[%c0_13, %c0_14] : memref<1x128xf32, #tpu.memory_space<vmem>>, vector<1x128xf32>
    tpu.vector_store %arg5[%c0_13, %c0_14], %21 {strides = array<i32>} : memref<1x128xf32, #tpu.memory_space<vmem>>, vector<1x128xf32>,
    %c0_15 = arith.constant 0 : index
    %c0_16 = arith.constant 0 : index
    %23 = vector.load %arg6[%c0_15, %c0_16] : memref<1x128xf32, #tpu.memory_space<vmem>>, vector<1x128xf32>
    %24 = arith.mulf %14, %14 : vector<8x128xf32>
    %cst_17 = arith.constant dense<0.000000e+00> : vector<128xf32>
    %25 = vector.multi_reduction <add>, %24, %cst_17 [0] : vector<8x128xf32> to vector<128xf32>
    %26 = vector.shape_cast %25 : vector<128xf32> to vector<1x128xf32>
    %27 = arith.addf %23, %26 : vector<1x128xf32>
    %c0_18 = arith.constant 0 : index
    %c0_19 = arith.constant 0 : index
    %28 = vector.load %arg6[%c0_18, %c0_19] : memref<1x128xf32, #tpu.memory_space<vmem>>, vector<1x128xf32>
    tpu.vector_store %arg6[%c0_18, %c0_19], %27 {strides = array<i32>} : memref<1x128xf32, #tpu.memory_space<vmem>>, vector<1x128xf32>,
    return
  }
  func.func @transform_0(%arg0: i32) -> (i32, i32) {
    %c0_i32 = arith.constant 0 : i32
    %c0_i32_0 = arith.constant 0 : i32
    return %arg0, %c0_i32 : i32, i32
  }
  func.func @transform_1(%arg0: i32) -> (i32, i32) {
    %c0_i32 = arith.constant 0 : i32
    %c0_i32_0 = arith.constant 0 : i32
    %c0_i32_1 = arith.constant 0 : i32
    return %c0_i32, %c0_i32_0 : i32, i32
  }
  func.func @transform_2(%arg0: i32) -> (i32, i32) {
    %c0_i32 = arith.constant 0 : i32
    %c0_i32_0 = arith.constant 0 : i32
    %c0_i32_1 = arith.constant 0 : i32
    return %c0_i32, %c0_i32_0 : i32, i32
  }
  func.func @transform_3(%arg0: i32) -> (i32, i32) {
    %c0_i32 = arith.constant 0 : i32
    %c0_i32_0 = arith.constant 0 : i32
    return %arg0, %c0_i32 : i32, i32
  }
  func.func @transform_4(%arg0: i32) -> (i32, i32) {
    %c0_i32 = arith.constant 0 : i32
    %c0_i32_0 = arith.constant 0 : i32
    %c0_i32_1 = arith.constant 0 : i32
    return %c0_i32, %c0_i32_0 : i32, i32
  }
  func.func @transform_5(%arg0: i32) -> (i32, i32) {
    %c0_i32 = arith.constant 0 : i32
    %c0_i32_0 = arith.constant 0 : i32
    %c0_i32_1 = arith.constant 0 : i32
    return %c0_i32, %c0_i32_0 : i32, i32
  }
}

module attributes {stable_mosaic.version = 11 : i64} {
  func.func @conv_act_kernel(%arg0: i32, %arg1: memref<8x64xf32, #tpu.memory_space<vmem>>, %arg2: memref<64x128xf32, #tpu.memory_space<vmem>>, %arg3: memref<1x128xf32, #tpu.memory_space<vmem>>, %arg4: memref<8x128xf32, #tpu.memory_space<vmem>>) attributes {dimension_semantics = [#tpu.dimension_semantics<parallel>], iteration_bounds = array<i64: 1>, scalar_prefetch = 0 : i64, scratch_operands = 0 : i64, tpu.core_type = #tpu.core_type<tc>, window_params = [{transform_indices = @transform_0, window_bounds = array<i64: 8, 64>}, {pipeline_mode = #tpu.pipeline_mode<synchronous>, transform_indices = @transform_1, window_bounds = array<i64: 64, 128>}, {pipeline_mode = #tpu.pipeline_mode<synchronous>, transform_indices = @transform_2, window_bounds = array<i64: 1, 128>}, {transform_indices = @transform_3, window_bounds = array<i64: 8, 128>}]} {
    %c0 = arith.constant 0 : index
    %c0_0 = arith.constant 0 : index
    %0 = vector.load %arg1[%c0, %c0_0] : memref<8x64xf32, #tpu.memory_space<vmem>>, vector<8x64xf32>
    %c0_1 = arith.constant 0 : index
    %c0_2 = arith.constant 0 : index
    %1 = vector.load %arg2[%c0_1, %c0_2] : memref<64x128xf32, #tpu.memory_space<vmem>>, vector<64x128xf32>
    %cst = arith.constant dense<0.000000e+00> : vector<8x128xf32>
    %2 = tpu.matmul %0, %1, %cst {dimension_numbers = #tpu.dot_dimension_numbers<[1], [0], [0], [1], [0, 0, 1, 1], [], []>} : vector<8x64xf32>, vector<64x128xf32>, vector<8x128xf32> -> vector<8x128xf32>
    %c0_3 = arith.constant 0 : index
    %c0_4 = arith.constant 0 : index
    %3 = vector.load %arg3[%c0_3, %c0_4] : memref<1x128xf32, #tpu.memory_space<vmem>>, vector<1x128xf32>
    %4 = vector.broadcast %3 : vector<1x128xf32> to vector<8x128xf32>
    %5 = arith.addf %2, %4 : vector<8x128xf32>
    %c0_5 = arith.constant 0 : index
    %c0_6 = arith.constant 0 : index
    %6 = vector.load %arg4[%c0_5, %c0_6] : memref<8x128xf32, #tpu.memory_space<vmem>>, vector<8x128xf32>
    tpu.vector_store %arg4[%c0_5, %c0_6], %5 {strides = array<i32>} : memref<8x128xf32, #tpu.memory_space<vmem>>, vector<8x128xf32>,
    return
  }
  func.func @transform_0(%arg0: i32) -> (i32, i32) {
    %c0_i32 = arith.constant 0 : i32
    %c0_i32_0 = arith.constant 0 : i32
    return %arg0, %c0_i32 : i32, i32
  }
  func.func @transform_1(%arg0: i32) -> (i32, i32) {
    %c0_i32 = arith.constant 0 : i32
    %c0_i32_0 = arith.constant 0 : i32
    %c0_i32_1 = arith.constant 0 : i32
    return %c0_i32, %c0_i32_0 : i32, i32
  }
  func.func @transform_2(%arg0: i32) -> (i32, i32) {
    %c0_i32 = arith.constant 0 : i32
    %c0_i32_0 = arith.constant 0 : i32
    %c0_i32_1 = arith.constant 0 : i32
    return %c0_i32, %c0_i32_0 : i32, i32
  }
  func.func @transform_3(%arg0: i32) -> (i32, i32) {
    %c0_i32 = arith.constant 0 : i32
    %c0_i32_0 = arith.constant 0 : i32
    return %arg0, %c0_i32 : i32, i32
  }
}

module attributes {stable_mosaic.version = 11 : i64} {
  func.func @bn_add_act_kernel(%arg0: i32, %arg1: memref<8x128xf32, #tpu.memory_space<vmem>>, %arg2: memref<1x128xf32, #tpu.memory_space<vmem>>, %arg3: memref<1x128xf32, #tpu.memory_space<vmem>>, %arg4: memref<8x128xf32, #tpu.memory_space<vmem>>, %arg5: memref<8x128xf32, #tpu.memory_space<vmem>>) attributes {dimension_semantics = [#tpu.dimension_semantics<parallel>], iteration_bounds = array<i64: 1>, scalar_prefetch = 0 : i64, scratch_operands = 0 : i64, tpu.core_type = #tpu.core_type<tc>, window_params = [{transform_indices = @transform_0, window_bounds = array<i64: 8, 128>}, {pipeline_mode = #tpu.pipeline_mode<synchronous>, transform_indices = @transform_1, window_bounds = array<i64: 1, 128>}, {pipeline_mode = #tpu.pipeline_mode<synchronous>, transform_indices = @transform_2, window_bounds = array<i64: 1, 128>}, {transform_indices = @transform_3, window_bounds = array<i64: 8, 128>}, {transform_indices = @transform_4, window_bounds = array<i64: 8, 128>}]} {
    %c0 = arith.constant 0 : index
    %c0_0 = arith.constant 0 : index
    %0 = vector.load %arg1[%c0, %c0_0] : memref<8x128xf32, #tpu.memory_space<vmem>>, vector<8x128xf32>
    %c0_1 = arith.constant 0 : index
    %c0_2 = arith.constant 0 : index
    %1 = vector.load %arg2[%c0_1, %c0_2] : memref<1x128xf32, #tpu.memory_space<vmem>>, vector<1x128xf32>
    %2 = vector.broadcast %1 : vector<1x128xf32> to vector<8x128xf32>
    %3 = arith.mulf %0, %2 : vector<8x128xf32>
    %c0_3 = arith.constant 0 : index
    %c0_4 = arith.constant 0 : index
    %4 = vector.load %arg3[%c0_3, %c0_4] : memref<1x128xf32, #tpu.memory_space<vmem>>, vector<1x128xf32>
    %5 = vector.broadcast %4 : vector<1x128xf32> to vector<8x128xf32>
    %6 = arith.addf %3, %5 : vector<8x128xf32>
    %c0_5 = arith.constant 0 : index
    %c0_6 = arith.constant 0 : index
    %7 = vector.load %arg4[%c0_5, %c0_6] : memref<8x128xf32, #tpu.memory_space<vmem>>, vector<8x128xf32>
    %8 = arith.addf %6, %7 : vector<8x128xf32>
    %cst = arith.constant 0.000000e+00 : f32
    %9 = vector.broadcast %cst : f32 to vector<8x128xf32>
    %10 = arith.maximumf %8, %9 : vector<8x128xf32>
    %11 = math.absf %8 : vector<8x128xf32>
    %cst_7 = arith.constant 0.000000e+00 : f32
    %12 = vector.broadcast %cst_7 : f32 to vector<8x128xf32>
    %13 = arith.subf %12, %11 : vector<8x128xf32>
    %14 = math.exp %13 : vector<8x128xf32>
    %15 = math.log1p %14 : vector<8x128xf32>
    %16 = arith.addf %10, %15 : vector<8x128xf32>
    %17 = math.tanh %16 : vector<8x128xf32>
    %18 = arith.mulf %8, %17 : vector<8x128xf32>
    %c0_8 = arith.constant 0 : index
    %c0_9 = arith.constant 0 : index
    %19 = vector.load %arg5[%c0_8, %c0_9] : memref<8x128xf32, #tpu.memory_space<vmem>>, vector<8x128xf32>
    tpu.vector_store %arg5[%c0_8, %c0_9], %18 {strides = array<i32>} : memref<8x128xf32, #tpu.memory_space<vmem>>, vector<8x128xf32>,
    return
  }
  func.func @transform_0(%arg0: i32) -> (i32, i32) {
    %c0_i32 = arith.constant 0 : i32
    %c0_i32_0 = arith.constant 0 : i32
    return %arg0, %c0_i32 : i32, i32
  }
  func.func @transform_1(%arg0: i32) -> (i32, i32) {
    %c0_i32 = arith.constant 0 : i32
    %c0_i32_0 = arith.constant 0 : i32
    %c0_i32_1 = arith.constant 0 : i32
    return %c0_i32, %c0_i32_0 : i32, i32
  }
  func.func @transform_2(%arg0: i32) -> (i32, i32) {
    %c0_i32 = arith.constant 0 : i32
    %c0_i32_0 = arith.constant 0 : i32
    %c0_i32_1 = arith.constant 0 : i32
    return %c0_i32, %c0_i32_0 : i32, i32
  }
  func.func @transform_3(%arg0: i32) -> (i32, i32) {
    %c0_i32 = arith.constant 0 : i32
    %c0_i32_0 = arith.constant 0 : i32
    return %arg0, %c0_i32 : i32, i32
  }
  func.func @transform_4(%arg0: i32) -> (i32, i32) {
    %c0_i32 = arith.constant 0 : i32
    %c0_i32_0 = arith.constant 0 : i32
    return %arg0, %c0_i32 : i32, i32
  }
}

module attributes {stable_mosaic.version = 11 : i64} {
  func.func @conv_act_kernel(%arg0: i32, %arg1: memref<8x128xf32, #tpu.memory_space<vmem>>, %arg2: memref<128x128xf32, #tpu.memory_space<vmem>>, %arg3: memref<1x128xf32, #tpu.memory_space<vmem>>, %arg4: memref<8x128xf32, #tpu.memory_space<vmem>>) attributes {dimension_semantics = [#tpu.dimension_semantics<parallel>], iteration_bounds = array<i64: 1>, scalar_prefetch = 0 : i64, scratch_operands = 0 : i64, tpu.core_type = #tpu.core_type<tc>, window_params = [{transform_indices = @transform_0, window_bounds = array<i64: 8, 128>}, {pipeline_mode = #tpu.pipeline_mode<synchronous>, transform_indices = @transform_1, window_bounds = array<i64: 128, 128>}, {pipeline_mode = #tpu.pipeline_mode<synchronous>, transform_indices = @transform_2, window_bounds = array<i64: 1, 128>}, {transform_indices = @transform_3, window_bounds = array<i64: 8, 128>}]} {
    %c0 = arith.constant 0 : index
    %c0_0 = arith.constant 0 : index
    %0 = vector.load %arg1[%c0, %c0_0] : memref<8x128xf32, #tpu.memory_space<vmem>>, vector<8x128xf32>
    %c0_1 = arith.constant 0 : index
    %c0_2 = arith.constant 0 : index
    %1 = vector.load %arg2[%c0_1, %c0_2] : memref<128x128xf32, #tpu.memory_space<vmem>>, vector<128x128xf32>
    %cst = arith.constant dense<0.000000e+00> : vector<8x128xf32>
    %2 = tpu.matmul %0, %1, %cst {dimension_numbers = #tpu.dot_dimension_numbers<[1], [0], [0], [1], [0, 0, 1, 1], [], []>} : vector<8x128xf32>, vector<128x128xf32>, vector<8x128xf32> -> vector<8x128xf32>
    %c0_3 = arith.constant 0 : index
    %c0_4 = arith.constant 0 : index
    %3 = vector.load %arg3[%c0_3, %c0_4] : memref<1x128xf32, #tpu.memory_space<vmem>>, vector<1x128xf32>
    %4 = vector.broadcast %3 : vector<1x128xf32> to vector<8x128xf32>
    %5 = arith.addf %2, %4 : vector<8x128xf32>
    %c0_5 = arith.constant 0 : index
    %c0_6 = arith.constant 0 : index
    %6 = vector.load %arg4[%c0_5, %c0_6] : memref<8x128xf32, #tpu.memory_space<vmem>>, vector<8x128xf32>
    tpu.vector_store %arg4[%c0_5, %c0_6], %5 {strides = array<i32>} : memref<8x128xf32, #tpu.memory_space<vmem>>, vector<8x128xf32>,
    return
  }
  func.func @transform_0(%arg0: i32) -> (i32, i32) {
    %c0_i32 = arith.constant 0 : i32
    %c0_i32_0 = arith.constant 0 : i32
    return %arg0, %c0_i32 : i32, i32
  }
  func.func @transform_1(%arg0: i32) -> (i32, i32) {
    %c0_i32 = arith.constant 0 : i32
    %c0_i32_0 = arith.constant 0 : i32
    %c0_i32_1 = arith.constant 0 : i32
    return %c0_i32, %c0_i32_0 : i32, i32
  }
  func.func @transform_2(%arg0: i32) -> (i32, i32) {
    %c0_i32 = arith.constant 0 : i32
    %c0_i32_0 = arith.constant 0 : i32
    %c0_i32_1 = arith.constant 0 : i32
    return %c0_i32, %c0_i32_0 : i32, i32
  }
  func.func @transform_3(%arg0: i32) -> (i32, i32) {
    %c0_i32 = arith.constant 0 : i32
    %c0_i32_0 = arith.constant 0 : i32
    return %arg0, %c0_i32 : i32, i32
  }
}

module attributes {stable_mosaic.version = 11 : i64} {
  func.func @conv_stats_out_kernel(%arg0: i32, %arg1: memref<8x576xf32, #tpu.memory_space<vmem>>, %arg2: memref<576x128xf32, #tpu.memory_space<vmem>>, %arg3: memref<1x128xf32, #tpu.memory_space<vmem>>, %arg4: memref<8x128xf32, #tpu.memory_space<vmem>>, %arg5: memref<1x128xf32, #tpu.memory_space<vmem>>, %arg6: memref<1x128xf32, #tpu.memory_space<vmem>>) attributes {dimension_semantics = [#tpu.dimension_semantics<arbitrary>], iteration_bounds = array<i64: 1>, scalar_prefetch = 0 : i64, scratch_operands = 0 : i64, tpu.core_type = #tpu.core_type<tc>, window_params = [{transform_indices = @transform_0, window_bounds = array<i64: 8, 576>}, {pipeline_mode = #tpu.pipeline_mode<synchronous>, transform_indices = @transform_1, window_bounds = array<i64: 576, 128>}, {pipeline_mode = #tpu.pipeline_mode<synchronous>, transform_indices = @transform_2, window_bounds = array<i64: 1, 128>}, {transform_indices = @transform_3, window_bounds = array<i64: 8, 128>}, {pipeline_mode = #tpu.pipeline_mode<synchronous>, transform_indices = @transform_4, window_bounds = array<i64: 1, 128>}, {pipeline_mode = #tpu.pipeline_mode<synchronous>, transform_indices = @transform_5, window_bounds = array<i64: 1, 128>}]} {
    %c0 = arith.constant 0 : index
    %c0_0 = arith.constant 0 : index
    %0 = vector.load %arg1[%c0, %c0_0] : memref<8x576xf32, #tpu.memory_space<vmem>>, vector<8x576xf32>
    %c0_1 = arith.constant 0 : index
    %c0_2 = arith.constant 0 : index
    %1 = vector.load %arg2[%c0_1, %c0_2] : memref<576x128xf32, #tpu.memory_space<vmem>>, vector<576x128xf32>
    %cst = arith.constant dense<0.000000e+00> : vector<8x128xf32>
    %2 = tpu.matmul %0, %1, %cst {dimension_numbers = #tpu.dot_dimension_numbers<[1], [0], [0], [1], [0, 0, 1, 1], [], []>} : vector<8x576xf32>, vector<576x128xf32>, vector<8x128xf32> -> vector<8x128xf32>
    %c0_3 = arith.constant 0 : index
    %c0_4 = arith.constant 0 : index
    %3 = vector.load %arg3[%c0_3, %c0_4] : memref<1x128xf32, #tpu.memory_space<vmem>>, vector<1x128xf32>
    %4 = vector.broadcast %3 : vector<1x128xf32> to vector<8x128xf32>
    %5 = arith.addf %2, %4 : vector<8x128xf32>
    %c0_5 = arith.constant 0 : index
    %c0_6 = arith.constant 0 : index
    %6 = vector.load %arg4[%c0_5, %c0_6] : memref<8x128xf32, #tpu.memory_space<vmem>>, vector<8x128xf32>
    tpu.vector_store %arg4[%c0_5, %c0_6], %5 {strides = array<i32>} : memref<8x128xf32, #tpu.memory_space<vmem>>, vector<8x128xf32>,
    %7 = tpu.iota {dimensions = array<i32: 0>} : vector<8x128xi32>
    %c8_i32 = arith.constant 8 : i32
    %8 = arith.muli %arg0, %c8_i32 : i32
    %9 = vector.broadcast %8 : i32 to vector<8x128xi32>
    %10 = arith.addi %7, %9 : vector<8x128xi32>
    %c2_i32 = arith.constant 2 : i32
    %11 = vector.broadcast %c2_i32 : i32 to vector<8x128xi32>
    %12 = arith.cmpi slt, %10, %11 : vector<8x128xi32>
    %cst_7 = arith.constant 0.000000e+00 : f32
    %13 = vector.broadcast %cst_7 : f32 to vector<8x128xf32>
    %14 = arith.select %12, %5, %13 : vector<8x128xi1>, vector<8x128xf32>
    %c0_i32 = arith.constant 0 : i32
    %15 = arith.cmpi eq, %arg0, %c0_i32 : i32
    %16 = arith.extui %15 : i1 to i32
    %c0_i32_8 = arith.constant 0 : i32
    %17 = arith.cmpi ne, %16, %c0_i32_8 : i32
    scf.if %17 {
      %cst_19 = arith.constant 0.000000e+00 : f32
      %29 = vector.broadcast %cst_19 : f32 to vector<1x128xf32>
      %c0_20 = arith.constant 0 : index
      %c0_21 = arith.constant 0 : index
      %30 = vector.load %arg5[%c0_20, %c0_21] : memref<1x128xf32, #tpu.memory_space<vmem>>, vector<1x128xf32>
      tpu.vector_store %arg5[%c0_20, %c0_21], %29 {strides = array<i32>} : memref<1x128xf32, #tpu.memory_space<vmem>>, vector<1x128xf32>,
      %cst_22 = arith.constant 0.000000e+00 : f32
      %31 = vector.broadcast %cst_22 : f32 to vector<1x128xf32>
      %c0_23 = arith.constant 0 : index
      %c0_24 = arith.constant 0 : index
      %32 = vector.load %arg6[%c0_23, %c0_24] : memref<1x128xf32, #tpu.memory_space<vmem>>, vector<1x128xf32>
      tpu.vector_store %arg6[%c0_23, %c0_24], %31 {strides = array<i32>} : memref<1x128xf32, #tpu.memory_space<vmem>>, vector<1x128xf32>,
    } else {
    }
    %c0_9 = arith.constant 0 : index
    %c0_10 = arith.constant 0 : index
    %18 = vector.load %arg5[%c0_9, %c0_10] : memref<1x128xf32, #tpu.memory_space<vmem>>, vector<1x128xf32>
    %cst_11 = arith.constant dense<0.000000e+00> : vector<128xf32>
    %19 = vector.multi_reduction <add>, %14, %cst_11 [0] : vector<8x128xf32> to vector<128xf32>
    %20 = vector.shape_cast %19 : vector<128xf32> to vector<1x128xf32>
    %21 = arith.addf %18, %20 : vector<1x128xf32>
    %c0_12 = arith.constant 0 : index
    %c0_13 = arith.constant 0 : index
    %22 = vector.load %arg5[%c0_12, %c0_13] : memref<1x128xf32, #tpu.memory_space<vmem>>, vector<1x128xf32>
    tpu.vector_store %arg5[%c0_12, %c0_13], %21 {strides = array<i32>} : memref<1x128xf32, #tpu.memory_space<vmem>>, vector<1x128xf32>,
    %c0_14 = arith.constant 0 : index
    %c0_15 = arith.constant 0 : index
    %23 = vector.load %arg6[%c0_14, %c0_15] : memref<1x128xf32, #tpu.memory_space<vmem>>, vector<1x128xf32>
    %24 = arith.mulf %14, %14 : vector<8x128xf32>
    %cst_16 = arith.constant dense<0.000000e+00> : vector<128xf32>
    %25 = vector.multi_reduction <add>, %24, %cst_16 [0] : vector<8x128xf32> to vector<128xf32>
    %26 = vector.shape_cast %25 : vector<128xf32> to vector<1x128xf32>
    %27 = arith.addf %23, %26 : vector<1x128xf32>
    %c0_17 = arith.constant 0 : index
    %c0_18 = arith.constant 0 : index
    %28 = vector.load %arg6[%c0_17, %c0_18] : memref<1x128xf32, #tpu.memory_space<vmem>>, vector<1x128xf32>
    tpu.vector_store %arg6[%c0_17, %c0_18], %27 {strides = array<i32>} : memref<1x128xf32, #tpu.memory_space<vmem>>, vector<1x128xf32>,
    return
  }
  func.func @transform_0(%arg0: i32) -> (i32, i32) {
    %c0_i32 = arith.constant 0 : i32
    %c0_i32_0 = arith.constant 0 : i32
    return %arg0, %c0_i32 : i32, i32
  }
  func.func @transform_1(%arg0: i32) -> (i32, i32) {
    %c0_i32 = arith.constant 0 : i32
    %c0_i32_0 = arith.constant 0 : i32
    %c0_i32_1 = arith.constant 0 : i32
    return %c0_i32, %c0_i32_0 : i32, i32
  }
  func.func @transform_2(%arg0: i32) -> (i32, i32) {
    %c0_i32 = arith.constant 0 : i32
    %c0_i32_0 = arith.constant 0 : i32
    %c0_i32_1 = arith.constant 0 : i32
    return %c0_i32, %c0_i32_0 : i32, i32
  }
  func.func @transform_3(%arg0: i32) -> (i32, i32) {
    %c0_i32 = arith.constant 0 : i32
    %c0_i32_0 = arith.constant 0 : i32
    return %arg0, %c0_i32 : i32, i32
  }
  func.func @transform_4(%arg0: i32) -> (i32, i32) {
    %c0_i32 = arith.constant 0 : i32
    %c0_i32_0 = arith.constant 0 : i32
    %c0_i32_1 = arith.constant 0 : i32
    return %c0_i32, %c0_i32_0 : i32, i32
  }
  func.func @transform_5(%arg0: i32) -> (i32, i32) {
    %c0_i32 = arith.constant 0 : i32
    %c0_i32_0 = arith.constant 0 : i32
    %c0_i32_1 = arith.constant 0 : i32
    return %c0_i32, %c0_i32_0 : i32, i32
  }
}

module attributes {stable_mosaic.version = 11 : i64} {
  func.func @conv_stats_out_kernel(%arg0: i32, %arg1: memref<8x288xf32, #tpu.memory_space<vmem>>, %arg2: memref<288x128xf32, #tpu.memory_space<vmem>>, %arg3: memref<1x128xf32, #tpu.memory_space<vmem>>, %arg4: memref<8x128xf32, #tpu.memory_space<vmem>>, %arg5: memref<1x128xf32, #tpu.memory_space<vmem>>, %arg6: memref<1x128xf32, #tpu.memory_space<vmem>>) attributes {dimension_semantics = [#tpu.dimension_semantics<arbitrary>], iteration_bounds = array<i64: 1>, scalar_prefetch = 0 : i64, scratch_operands = 0 : i64, tpu.core_type = #tpu.core_type<tc>, window_params = [{transform_indices = @transform_0, window_bounds = array<i64: 8, 288>}, {pipeline_mode = #tpu.pipeline_mode<synchronous>, transform_indices = @transform_1, window_bounds = array<i64: 288, 128>}, {pipeline_mode = #tpu.pipeline_mode<synchronous>, transform_indices = @transform_2, window_bounds = array<i64: 1, 128>}, {transform_indices = @transform_3, window_bounds = array<i64: 8, 128>}, {pipeline_mode = #tpu.pipeline_mode<synchronous>, transform_indices = @transform_4, window_bounds = array<i64: 1, 128>}, {pipeline_mode = #tpu.pipeline_mode<synchronous>, transform_indices = @transform_5, window_bounds = array<i64: 1, 128>}]} {
    %c0 = arith.constant 0 : index
    %c0_0 = arith.constant 0 : index
    %0 = vector.load %arg1[%c0, %c0_0] : memref<8x288xf32, #tpu.memory_space<vmem>>, vector<8x288xf32>
    %c0_1 = arith.constant 0 : index
    %c0_2 = arith.constant 0 : index
    %1 = vector.load %arg2[%c0_1, %c0_2] : memref<288x128xf32, #tpu.memory_space<vmem>>, vector<288x128xf32>
    %cst = arith.constant dense<0.000000e+00> : vector<8x128xf32>
    %2 = tpu.matmul %0, %1, %cst {dimension_numbers = #tpu.dot_dimension_numbers<[1], [0], [0], [1], [0, 0, 1, 1], [], []>} : vector<8x288xf32>, vector<288x128xf32>, vector<8x128xf32> -> vector<8x128xf32>
    %c0_3 = arith.constant 0 : index
    %c0_4 = arith.constant 0 : index
    %3 = vector.load %arg3[%c0_3, %c0_4] : memref<1x128xf32, #tpu.memory_space<vmem>>, vector<1x128xf32>
    %4 = vector.broadcast %3 : vector<1x128xf32> to vector<8x128xf32>
    %5 = arith.addf %2, %4 : vector<8x128xf32>
    %c0_5 = arith.constant 0 : index
    %c0_6 = arith.constant 0 : index
    %6 = vector.load %arg4[%c0_5, %c0_6] : memref<8x128xf32, #tpu.memory_space<vmem>>, vector<8x128xf32>
    tpu.vector_store %arg4[%c0_5, %c0_6], %5 {strides = array<i32>} : memref<8x128xf32, #tpu.memory_space<vmem>>, vector<8x128xf32>,
    %7 = tpu.iota {dimensions = array<i32: 0>} : vector<8x128xi32>
    %c8_i32 = arith.constant 8 : i32
    %8 = arith.muli %arg0, %c8_i32 : i32
    %9 = vector.broadcast %8 : i32 to vector<8x128xi32>
    %10 = arith.addi %7, %9 : vector<8x128xi32>
    %c2_i32 = arith.constant 2 : i32
    %11 = vector.broadcast %c2_i32 : i32 to vector<8x128xi32>
    %12 = arith.cmpi slt, %10, %11 : vector<8x128xi32>
    %cst_7 = arith.constant 0.000000e+00 : f32
    %13 = vector.broadcast %cst_7 : f32 to vector<8x128xf32>
    %14 = arith.select %12, %5, %13 : vector<8x128xi1>, vector<8x128xf32>
    %c0_i32 = arith.constant 0 : i32
    %15 = arith.cmpi eq, %arg0, %c0_i32 : i32
    %16 = arith.extui %15 : i1 to i32
    %c0_i32_8 = arith.constant 0 : i32
    %17 = arith.cmpi ne, %16, %c0_i32_8 : i32
    scf.if %17 {
      %cst_19 = arith.constant 0.000000e+00 : f32
      %29 = vector.broadcast %cst_19 : f32 to vector<1x128xf32>
      %c0_20 = arith.constant 0 : index
      %c0_21 = arith.constant 0 : index
      %30 = vector.load %arg5[%c0_20, %c0_21] : memref<1x128xf32, #tpu.memory_space<vmem>>, vector<1x128xf32>
      tpu.vector_store %arg5[%c0_20, %c0_21], %29 {strides = array<i32>} : memref<1x128xf32, #tpu.memory_space<vmem>>, vector<1x128xf32>,
      %cst_22 = arith.constant 0.000000e+00 : f32
      %31 = vector.broadcast %cst_22 : f32 to vector<1x128xf32>
      %c0_23 = arith.constant 0 : index
      %c0_24 = arith.constant 0 : index
      %32 = vector.load %arg6[%c0_23, %c0_24] : memref<1x128xf32, #tpu.memory_space<vmem>>, vector<1x128xf32>
      tpu.vector_store %arg6[%c0_23, %c0_24], %31 {strides = array<i32>} : memref<1x128xf32, #tpu.memory_space<vmem>>, vector<1x128xf32>,
    } else {
    }
    %c0_9 = arith.constant 0 : index
    %c0_10 = arith.constant 0 : index
    %18 = vector.load %arg5[%c0_9, %c0_10] : memref<1x128xf32, #tpu.memory_space<vmem>>, vector<1x128xf32>
    %cst_11 = arith.constant dense<0.000000e+00> : vector<128xf32>
    %19 = vector.multi_reduction <add>, %14, %cst_11 [0] : vector<8x128xf32> to vector<128xf32>
    %20 = vector.shape_cast %19 : vector<128xf32> to vector<1x128xf32>
    %21 = arith.addf %18, %20 : vector<1x128xf32>
    %c0_12 = arith.constant 0 : index
    %c0_13 = arith.constant 0 : index
    %22 = vector.load %arg5[%c0_12, %c0_13] : memref<1x128xf32, #tpu.memory_space<vmem>>, vector<1x128xf32>
    tpu.vector_store %arg5[%c0_12, %c0_13], %21 {strides = array<i32>} : memref<1x128xf32, #tpu.memory_space<vmem>>, vector<1x128xf32>,
    %c0_14 = arith.constant 0 : index
    %c0_15 = arith.constant 0 : index
    %23 = vector.load %arg6[%c0_14, %c0_15] : memref<1x128xf32, #tpu.memory_space<vmem>>, vector<1x128xf32>
    %24 = arith.mulf %14, %14 : vector<8x128xf32>
    %cst_16 = arith.constant dense<0.000000e+00> : vector<128xf32>
    %25 = vector.multi_reduction <add>, %24, %cst_16 [0] : vector<8x128xf32> to vector<128xf32>
    %26 = vector.shape_cast %25 : vector<128xf32> to vector<1x128xf32>
    %27 = arith.addf %23, %26 : vector<1x128xf32>
    %c0_17 = arith.constant 0 : index
    %c0_18 = arith.constant 0 : index
    %28 = vector.load %arg6[%c0_17, %c0_18] : memref<1x128xf32, #tpu.memory_space<vmem>>, vector<1x128xf32>
    tpu.vector_store %arg6[%c0_17, %c0_18], %27 {strides = array<i32>} : memref<1x128xf32, #tpu.memory_space<vmem>>, vector<1x128xf32>,
    return
  }
  func.func @transform_0(%arg0: i32) -> (i32, i32) {
    %c0_i32 = arith.constant 0 : i32
    %c0_i32_0 = arith.constant 0 : i32
    return %arg0, %c0_i32 : i32, i32
  }
  func.func @transform_1(%arg0: i32) -> (i32, i32) {
    %c0_i32 = arith.constant 0 : i32
    %c0_i32_0 = arith.constant 0 : i32
    %c0_i32_1 = arith.constant 0 : i32
    return %c0_i32, %c0_i32_0 : i32, i32
  }
  func.func @transform_2(%arg0: i32) -> (i32, i32) {
    %c0_i32 = arith.constant 0 : i32
    %c0_i32_0 = arith.constant 0 : i32
    %c0_i32_1 = arith.constant 0 : i32
    return %c0_i32, %c0_i32_0 : i32, i32
  }
  func.func @transform_3(%arg0: i32) -> (i32, i32) {
    %c0_i32 = arith.constant 0 : i32
    %c0_i32_0 = arith.constant 0 : i32
    return %arg0, %c0_i32 : i32, i32
  }
  func.func @transform_4(%arg0: i32) -> (i32, i32) {
    %c0_i32 = arith.constant 0 : i32
    %c0_i32_0 = arith.constant 0 : i32
    %c0_i32_1 = arith.constant 0 : i32
    return %c0_i32, %c0_i32_0 : i32, i32
  }
  func.func @transform_5(%arg0: i32) -> (i32, i32) {
    %c0_i32 = arith.constant 0 : i32
    %c0_i32_0 = arith.constant 0 : i32
    %c0_i32_1 = arith.constant 0 : i32
    return %c0_i32, %c0_i32_0 : i32, i32
  }
}

module attributes {stable_mosaic.version = 11 : i64} {
  func.func @conv_stats_kernel(%arg0: i32, %arg1: memref<8x18xf32, #tpu.memory_space<vmem>>, %arg2: memref<18x128xf32, #tpu.memory_space<vmem>>, %arg3: memref<1x128xf32, #tpu.memory_space<vmem>>, %arg4: memref<1x128xf32, #tpu.memory_space<vmem>>, %arg5: memref<1x128xf32, #tpu.memory_space<vmem>>) attributes {dimension_semantics = [#tpu.dimension_semantics<arbitrary>], iteration_bounds = array<i64: 1>, scalar_prefetch = 0 : i64, scratch_operands = 0 : i64, tpu.core_type = #tpu.core_type<tc>, window_params = [{transform_indices = @transform_0, window_bounds = array<i64: 8, 18>}, {pipeline_mode = #tpu.pipeline_mode<synchronous>, transform_indices = @transform_1, window_bounds = array<i64: 18, 128>}, {pipeline_mode = #tpu.pipeline_mode<synchronous>, transform_indices = @transform_2, window_bounds = array<i64: 1, 128>}, {pipeline_mode = #tpu.pipeline_mode<synchronous>, transform_indices = @transform_3, window_bounds = array<i64: 1, 128>}, {pipeline_mode = #tpu.pipeline_mode<synchronous>, transform_indices = @transform_4, window_bounds = array<i64: 1, 128>}]} {
    %c0 = arith.constant 0 : index
    %c0_0 = arith.constant 0 : index
    %0 = vector.load %arg1[%c0, %c0_0] : memref<8x18xf32, #tpu.memory_space<vmem>>, vector<8x18xf32>
    %c0_1 = arith.constant 0 : index
    %c0_2 = arith.constant 0 : index
    %1 = vector.load %arg2[%c0_1, %c0_2] : memref<18x128xf32, #tpu.memory_space<vmem>>, vector<18x128xf32>
    %cst = arith.constant dense<0.000000e+00> : vector<8x128xf32>
    %2 = tpu.matmul %0, %1, %cst {dimension_numbers = #tpu.dot_dimension_numbers<[1], [0], [0], [1], [0, 0, 1, 1], [], []>} : vector<8x18xf32>, vector<18x128xf32>, vector<8x128xf32> -> vector<8x128xf32>
    %c0_3 = arith.constant 0 : index
    %c0_4 = arith.constant 0 : index
    %3 = vector.load %arg3[%c0_3, %c0_4] : memref<1x128xf32, #tpu.memory_space<vmem>>, vector<1x128xf32>
    %4 = vector.broadcast %3 : vector<1x128xf32> to vector<8x128xf32>
    %5 = arith.addf %2, %4 : vector<8x128xf32>
    %6 = tpu.iota {dimensions = array<i32: 0>} : vector<8x128xi32>
    %c8_i32 = arith.constant 8 : i32
    %7 = arith.muli %arg0, %c8_i32 : i32
    %8 = vector.broadcast %7 : i32 to vector<8x128xi32>
    %9 = arith.addi %6, %8 : vector<8x128xi32>
    %c2_i32 = arith.constant 2 : i32
    %10 = vector.broadcast %c2_i32 : i32 to vector<8x128xi32>
    %11 = arith.cmpi slt, %9, %10 : vector<8x128xi32>
    %cst_5 = arith.constant 0.000000e+00 : f32
    %12 = vector.broadcast %cst_5 : f32 to vector<8x128xf32>
    %13 = arith.select %11, %5, %12 : vector<8x128xi1>, vector<8x128xf32>
    %c0_i32 = arith.constant 0 : i32
    %14 = arith.cmpi eq, %arg0, %c0_i32 : i32
    %15 = arith.extui %14 : i1 to i32
    %c0_i32_6 = arith.constant 0 : i32
    %16 = arith.cmpi ne, %15, %c0_i32_6 : i32
    scf.if %16 {
      %cst_17 = arith.constant 0.000000e+00 : f32
      %28 = vector.broadcast %cst_17 : f32 to vector<1x128xf32>
      %c0_18 = arith.constant 0 : index
      %c0_19 = arith.constant 0 : index
      %29 = vector.load %arg4[%c0_18, %c0_19] : memref<1x128xf32, #tpu.memory_space<vmem>>, vector<1x128xf32>
      tpu.vector_store %arg4[%c0_18, %c0_19], %28 {strides = array<i32>} : memref<1x128xf32, #tpu.memory_space<vmem>>, vector<1x128xf32>,
      %cst_20 = arith.constant 0.000000e+00 : f32
      %30 = vector.broadcast %cst_20 : f32 to vector<1x128xf32>
      %c0_21 = arith.constant 0 : index
      %c0_22 = arith.constant 0 : index
      %31 = vector.load %arg5[%c0_21, %c0_22] : memref<1x128xf32, #tpu.memory_space<vmem>>, vector<1x128xf32>
      tpu.vector_store %arg5[%c0_21, %c0_22], %30 {strides = array<i32>} : memref<1x128xf32, #tpu.memory_space<vmem>>, vector<1x128xf32>,
    } else {
    }
    %c0_7 = arith.constant 0 : index
    %c0_8 = arith.constant 0 : index
    %17 = vector.load %arg4[%c0_7, %c0_8] : memref<1x128xf32, #tpu.memory_space<vmem>>, vector<1x128xf32>
    %cst_9 = arith.constant dense<0.000000e+00> : vector<128xf32>
    %18 = vector.multi_reduction <add>, %13, %cst_9 [0] : vector<8x128xf32> to vector<128xf32>
    %19 = vector.shape_cast %18 : vector<128xf32> to vector<1x128xf32>
    %20 = arith.addf %17, %19 : vector<1x128xf32>
    %c0_10 = arith.constant 0 : index
    %c0_11 = arith.constant 0 : index
    %21 = vector.load %arg4[%c0_10, %c0_11] : memref<1x128xf32, #tpu.memory_space<vmem>>, vector<1x128xf32>
    tpu.vector_store %arg4[%c0_10, %c0_11], %20 {strides = array<i32>} : memref<1x128xf32, #tpu.memory_space<vmem>>, vector<1x128xf32>,
    %c0_12 = arith.constant 0 : index
    %c0_13 = arith.constant 0 : index
    %22 = vector.load %arg5[%c0_12, %c0_13] : memref<1x128xf32, #tpu.memory_space<vmem>>, vector<1x128xf32>
    %23 = arith.mulf %13, %13 : vector<8x128xf32>
    %cst_14 = arith.constant dense<0.000000e+00> : vector<128xf32>
    %24 = vector.multi_reduction <add>, %23, %cst_14 [0] : vector<8x128xf32> to vector<128xf32>
    %25 = vector.shape_cast %24 : vector<128xf32> to vector<1x128xf32>
    %26 = arith.addf %22, %25 : vector<1x128xf32>
    %c0_15 = arith.constant 0 : index
    %c0_16 = arith.constant 0 : index
    %27 = vector.load %arg5[%c0_15, %c0_16] : memref<1x128xf32, #tpu.memory_space<vmem>>, vector<1x128xf32>
    tpu.vector_store %arg5[%c0_15, %c0_16], %26 {strides = array<i32>} : memref<1x128xf32, #tpu.memory_space<vmem>>, vector<1x128xf32>,
    return
  }
  func.func @transform_0(%arg0: i32) -> (i32, i32) {
    %c0_i32 = arith.constant 0 : i32
    %c0_i32_0 = arith.constant 0 : i32
    return %arg0, %c0_i32 : i32, i32
  }
  func.func @transform_1(%arg0: i32) -> (i32, i32) {
    %c0_i32 = arith.constant 0 : i32
    %c0_i32_0 = arith.constant 0 : i32
    %c0_i32_1 = arith.constant 0 : i32
    return %c0_i32, %c0_i32_0 : i32, i32
  }
  func.func @transform_2(%arg0: i32) -> (i32, i32) {
    %c0_i32 = arith.constant 0 : i32
    %c0_i32_0 = arith.constant 0 : i32
    %c0_i32_1 = arith.constant 0 : i32
    return %c0_i32, %c0_i32_0 : i32, i32
  }
  func.func @transform_3(%arg0: i32) -> (i32, i32) {
    %c0_i32 = arith.constant 0 : i32
    %c0_i32_0 = arith.constant 0 : i32
    %c0_i32_1 = arith.constant 0 : i32
    return %c0_i32, %c0_i32_0 : i32, i32
  }
  func.func @transform_4(%arg0: i32) -> (i32, i32) {
    %c0_i32 = arith.constant 0 : i32
    %c0_i32_0 = arith.constant 0 : i32
    %c0_i32_1 = arith.constant 0 : i32
    return %c0_i32, %c0_i32_0 : i32, i32
  }
}

module attributes {stable_mosaic.version = 11 : i64} {
  func.func @conv_add_act_kernel(%arg0: i32, %arg1: memref<8x18xf32, #tpu.memory_space<vmem>>, %arg2: memref<18x128xf32, #tpu.memory_space<vmem>>, %arg3: memref<1x128xf32, #tpu.memory_space<vmem>>, %arg4: memref<8x128xf32, #tpu.memory_space<vmem>>, %arg5: memref<8x128xf32, #tpu.memory_space<vmem>>) attributes {dimension_semantics = [#tpu.dimension_semantics<parallel>], iteration_bounds = array<i64: 1>, scalar_prefetch = 0 : i64, scratch_operands = 0 : i64, tpu.core_type = #tpu.core_type<tc>, window_params = [{transform_indices = @transform_0, window_bounds = array<i64: 8, 18>}, {pipeline_mode = #tpu.pipeline_mode<synchronous>, transform_indices = @transform_1, window_bounds = array<i64: 18, 128>}, {pipeline_mode = #tpu.pipeline_mode<synchronous>, transform_indices = @transform_2, window_bounds = array<i64: 1, 128>}, {transform_indices = @transform_3, window_bounds = array<i64: 8, 128>}, {transform_indices = @transform_4, window_bounds = array<i64: 8, 128>}]} {
    %c0 = arith.constant 0 : index
    %c0_0 = arith.constant 0 : index
    %0 = vector.load %arg1[%c0, %c0_0] : memref<8x18xf32, #tpu.memory_space<vmem>>, vector<8x18xf32>
    %c0_1 = arith.constant 0 : index
    %c0_2 = arith.constant 0 : index
    %1 = vector.load %arg2[%c0_1, %c0_2] : memref<18x128xf32, #tpu.memory_space<vmem>>, vector<18x128xf32>
    %cst = arith.constant dense<0.000000e+00> : vector<8x128xf32>
    %2 = tpu.matmul %0, %1, %cst {dimension_numbers = #tpu.dot_dimension_numbers<[1], [0], [0], [1], [0, 0, 1, 1], [], []>} : vector<8x18xf32>, vector<18x128xf32>, vector<8x128xf32> -> vector<8x128xf32>
    %c0_3 = arith.constant 0 : index
    %c0_4 = arith.constant 0 : index
    %3 = vector.load %arg3[%c0_3, %c0_4] : memref<1x128xf32, #tpu.memory_space<vmem>>, vector<1x128xf32>
    %4 = vector.broadcast %3 : vector<1x128xf32> to vector<8x128xf32>
    %5 = arith.addf %2, %4 : vector<8x128xf32>
    %c0_5 = arith.constant 0 : index
    %c0_6 = arith.constant 0 : index
    %6 = vector.load %arg4[%c0_5, %c0_6] : memref<8x128xf32, #tpu.memory_space<vmem>>, vector<8x128xf32>
    %7 = arith.addf %5, %6 : vector<8x128xf32>
    %cst_7 = arith.constant 0.000000e+00 : f32
    %8 = vector.broadcast %cst_7 : f32 to vector<8x128xf32>
    %9 = arith.maximumf %7, %8 : vector<8x128xf32>
    %10 = math.absf %7 : vector<8x128xf32>
    %cst_8 = arith.constant 0.000000e+00 : f32
    %11 = vector.broadcast %cst_8 : f32 to vector<8x128xf32>
    %12 = arith.subf %11, %10 : vector<8x128xf32>
    %13 = math.exp %12 : vector<8x128xf32>
    %14 = math.log1p %13 : vector<8x128xf32>
    %15 = arith.addf %9, %14 : vector<8x128xf32>
    %16 = math.tanh %15 : vector<8x128xf32>
    %17 = arith.mulf %7, %16 : vector<8x128xf32>
    %c0_9 = arith.constant 0 : index
    %c0_10 = arith.constant 0 : index
    %18 = vector.load %arg5[%c0_9, %c0_10] : memref<8x128xf32, #tpu.memory_space<vmem>>, vector<8x128xf32>
    tpu.vector_store %arg5[%c0_9, %c0_10], %17 {strides = array<i32>} : memref<8x128xf32, #tpu.memory_space<vmem>>, vector<8x128xf32>,
    return
  }
  func.func @transform_0(%arg0: i32) -> (i32, i32) {
    %c0_i32 = arith.constant 0 : i32
    %c0_i32_0 = arith.constant 0 : i32
    return %arg0, %c0_i32 : i32, i32
  }
  func.func @transform_1(%arg0: i32) -> (i32, i32) {
    %c0_i32 = arith.constant 0 : i32
    %c0_i32_0 = arith.constant 0 : i32
    %c0_i32_1 = arith.constant 0 : i32
    return %c0_i32, %c0_i32_0 : i32, i32
  }
  func.func @transform_2(%arg0: i32) -> (i32, i32) {
    %c0_i32 = arith.constant 0 : i32
    %c0_i32_0 = arith.constant 0 : i32
    %c0_i32_1 = arith.constant 0 : i32
    return %c0_i32, %c0_i32_0 : i32, i32
  }
  func.func @transform_3(%arg0: i32) -> (i32, i32) {
    %c0_i32 = arith.constant 0 : i32
    %c0_i32_0 = arith.constant 0 : i32
    return %arg0, %c0_i32 : i32, i32
  }
  func.func @transform_4(%arg0: i32) -> (i32, i32) {
    %c0_i32 = arith.constant 0 : i32
    %c0_i32_0 = arith.constant 0 : i32
    return %arg0, %c0_i32 : i32, i32
  }
}

module attributes {stable_mosaic.version = 11 : i64} {
  func.func @conv_act_kernel(%arg0: i32, %arg1: memref<8x32xf32, #tpu.memory_space<vmem>>, %arg2: memref<32x128xf32, #tpu.memory_space<vmem>>, %arg3: memref<1x128xf32, #tpu.memory_space<vmem>>, %arg4: memref<8x128xf32, #tpu.memory_space<vmem>>) attributes {dimension_semantics = [#tpu.dimension_semantics<parallel>], iteration_bounds = array<i64: 1>, scalar_prefetch = 0 : i64, scratch_operands = 0 : i64, tpu.core_type = #tpu.core_type<tc>, window_params = [{transform_indices = @transform_0, window_bounds = array<i64: 8, 32>}, {pipeline_mode = #tpu.pipeline_mode<synchronous>, transform_indices = @transform_1, window_bounds = array<i64: 32, 128>}, {pipeline_mode = #tpu.pipeline_mode<synchronous>, transform_indices = @transform_2, window_bounds = array<i64: 1, 128>}, {transform_indices = @transform_3, window_bounds = array<i64: 8, 128>}]} {
    %c0 = arith.constant 0 : index
    %c0_0 = arith.constant 0 : index
    %0 = vector.load %arg1[%c0, %c0_0] : memref<8x32xf32, #tpu.memory_space<vmem>>, vector<8x32xf32>
    %c0_1 = arith.constant 0 : index
    %c0_2 = arith.constant 0 : index
    %1 = vector.load %arg2[%c0_1, %c0_2] : memref<32x128xf32, #tpu.memory_space<vmem>>, vector<32x128xf32>
    %cst = arith.constant dense<0.000000e+00> : vector<8x128xf32>
    %2 = tpu.matmul %0, %1, %cst {dimension_numbers = #tpu.dot_dimension_numbers<[1], [0], [0], [1], [0, 0, 1, 1], [], []>} : vector<8x32xf32>, vector<32x128xf32>, vector<8x128xf32> -> vector<8x128xf32>
    %c0_3 = arith.constant 0 : index
    %c0_4 = arith.constant 0 : index
    %3 = vector.load %arg3[%c0_3, %c0_4] : memref<1x128xf32, #tpu.memory_space<vmem>>, vector<1x128xf32>
    %4 = vector.broadcast %3 : vector<1x128xf32> to vector<8x128xf32>
    %5 = arith.addf %2, %4 : vector<8x128xf32>
    %c0_5 = arith.constant 0 : index
    %c0_6 = arith.constant 0 : index
    %6 = vector.load %arg4[%c0_5, %c0_6] : memref<8x128xf32, #tpu.memory_space<vmem>>, vector<8x128xf32>
    tpu.vector_store %arg4[%c0_5, %c0_6], %5 {strides = array<i32>} : memref<8x128xf32, #tpu.memory_space<vmem>>, vector<8x128xf32>,
    return
  }
  func.func @transform_0(%arg0: i32) -> (i32, i32) {
    %c0_i32 = arith.constant 0 : i32
    %c0_i32_0 = arith.constant 0 : i32
    return %arg0, %c0_i32 : i32, i32
  }
  func.func @transform_1(%arg0: i32) -> (i32, i32) {
    %c0_i32 = arith.constant 0 : i32
    %c0_i32_0 = arith.constant 0 : i32
    %c0_i32_1 = arith.constant 0 : i32
    return %c0_i32, %c0_i32_0 : i32, i32
  }
  func.func @transform_2(%arg0: i32) -> (i32, i32) {
    %c0_i32 = arith.constant 0 : i32
    %c0_i32_0 = arith.constant 0 : i32
    %c0_i32_1 = arith.constant 0 : i32
    return %c0_i32, %c0_i32_0 : i32, i32
  }
  func.func @transform_3(%arg0: i32) -> (i32, i32) {
    %c0_i32 = arith.constant 0 : i32
    %c0_i32_0 = arith.constant 0 : i32
    return %arg0, %c0_i32 : i32, i32
  }
}

module attributes {stable_mosaic.version = 11 : i64} {
  func.func @avgpool_kernel(%arg0: memref<2x1x128xf32, #tpu.memory_space<vmem>>, %arg1: memref<2x128xf32, #tpu.memory_space<vmem>>) attributes {dimension_semantics = [], scalar_prefetch = 0 : i64, scratch_operands = 0 : i64, tpu.core_type = #tpu.core_type<tc>} {
    %c0 = arith.constant 0 : index
    %c0_0 = arith.constant 0 : index
    %c0_1 = arith.constant 0 : index
    %0 = vector.load %arg0[%c0, %c0_0, %c0_1] : memref<2x1x128xf32, #tpu.memory_space<vmem>>, vector<2x1x128xf32>
    %cst = arith.constant dense<0.000000e+00> : vector<2x128xf32>
    %1 = vector.multi_reduction <add>, %0, %cst [1] : vector<2x1x128xf32> to vector<2x128xf32>
    %cst_2 = arith.constant 1.000000e+00 : f32
    %2 = vector.broadcast %cst_2 : f32 to vector<2x128xf32>
    %3 = arith.divf %1, %2 : vector<2x128xf32>
    %c0_3 = arith.constant 0 : index
    %c0_4 = arith.constant 0 : index
    %4 = vector.load %arg1[%c0_3, %c0_4] : memref<2x128xf32, #tpu.memory_space<vmem>>, vector<2x128xf32>
    tpu.vector_store %arg1[%c0_3, %c0_4], %3 {strides = array<i32>} : memref<2x128xf32, #tpu.memory_space<vmem>>, vector<2x128xf32>,
    return
  }
}

</mosaic_0001>

<bundles_post_ra>
// kernel: resnet18_block_forward.44
= control target key start
LH: loop header
LB: loop body
LE: loop exit
PB: predicated region body
PF: predicated region fallthrough
CT: control target
= control target key end

     0   :  { %vm88_vm0 = vcmask 1040384   ;;  %vm39_vm1 = vcmask 72704   ;;  %s482_s1 = inlined_call_operand.vmem [shape: f32[9,128], index: 1, kind: input, shape index: {}]   ;;  %s483_s0 = inlined_call_operand.vmem [shape: f32[128,9], index: 0, kind: input, shape index: {}]   ;;  %s484_s2 = inlined_call_operand.vmem [shape: f32[1,128], index: 2, kind: input, shape index: {}]   ;;  %s485_s3 = inlined_call_operand.vmem [shape: f32[128,128], index: 3, kind: output, shape index: {}]  }
   0x1   :  { %v31_v0 = vld [vmem:[%s482_s1 + $0x8] sm:$0x1]  ;;  %v30_v1 = vld [vmem:[%s482_s1] sm:$0xff]  ;;  %v16_v6 = vld [vmem:[%s483_s0 + $0x10] sm:$0xff] }
   0x2   :  { %309 = vmatprep.subr.msk.mxu0 %vm88_vm0, %v31_v0  ;;  %337 = vmatprep.subr.msk.mxu1 %vm88_vm0, %v31_v0  ;;  %v14_v2 = vld [vmem:[%s483_s0] sm:$0xff]  ;;  %v15_v4 = vld [vmem:[%s483_s0 + $0x8] sm:$0xff]  ;;  %v24_v7 = vld [vmem:[%s483_s0 + $0x50] sm:$0xff] }
   0x3   :  { %310 = vmatpush3.msk.msra.mxu0 %vm88_vm0, %v31_v0  ;;  %339 = vmatpush3.msk.msra.mxu1 %vm88_vm0, %v31_v0  ;;  %v22_v3 = vld [vmem:[%s483_s0 + $0x40] sm:$0xff]  ;;  %v23_v5 = vld [vmem:[%s483_s0 + $0x48] sm:$0xff]  ;;  %v17_v8 = vld [vmem:[%s483_s0 + $0x18] sm:$0xff] }
   0x4   :  { %311 = vmatprep.subr.mxu0 %v30_v1  ;;  %338 = vmatprep.subr.mxu1 %v30_v1  ;;  %v25_v9 = vld [vmem:[%s483_s0 + $0x58] sm:$0xff]  ;;  %v18_v10 = vld [vmem:[%s483_s0 + $0x20] sm:$0xff]  ;;  %v19_v12 = vld [vmem:[%s483_s0 + $0x28] sm:$0xff] }
   0x5   :  { %312 = vmatpush3.msra.mxu0 %v30_v1  ;;  %340 = vmatpush3.msra.mxu1 %v30_v1  ;;  %v26_v11 = vld [vmem:[%s483_s0 + $0x60] sm:$0xff]  ;;  %v27_v13 = vld [vmem:[%s483_s0 + $0x68] sm:$0xff]  ;;  %v20_v14 = vld [vmem:[%s483_s0 + $0x30] sm:$0xff] }
   0x6   :  { %313 = vmatprep.mubr.msk.f32.mxu0 %vm39_vm1, %v14_v2  ;;  %325 = vmatprep.mubr.msk.f32.mxu1 %vm39_vm1, %v22_v3  ;;  %v28_v15 = vld [vmem:[%s483_s0 + $0x70] sm:$0xff]  ;;  %v21_v16 = vld [vmem:[%s483_s0 + $0x38] sm:$0xff]  ;;  %v273_v18 = vld [vmem:[%s484_s2] ss:$0 sm:$0xff] }
   0x7   :  { %314 = vmatmul.mubr.msk.f32.vlgmr.msra.gmra.mxu0 %vm39_vm1, %v15_v4  ;;  %326 = vmatmul.mubr.msk.f32.vlgmr.msra.gmra.mxu1 %vm39_vm1, %v23_v5  ;;  %v29_v17 = vld [vmem:[%s483_s0 + $0x78] sm:$0xff] }
   0x8   :  { %316 = vmatprep.mubr.msk.f32.mxu0 %vm39_vm1, %v16_v6  ;;  %328 = vmatprep.mubr.msk.f32.mxu1 %vm39_vm1, %v24_v7 }
   0xb   :  { %317 = vmatmul.mubr.msk.f32.gmra.mxu0 %vm39_vm1, %v17_v8  ;;  %329 = vmatmul.mubr.msk.f32.gmra.mxu1 %vm39_vm1, %v25_v9 }
   0xc   :  { %319 = vmatprep.mubr.msk.f32.mxu0 %vm39_vm1, %v18_v10  ;;  %331 = vmatprep.mubr.msk.f32.mxu1 %vm39_vm1, %v26_v11 }
   0xf   :  { %320 = vmatmul.mubr.msk.f32.gmra.mxu0 %vm39_vm1, %v19_v12  ;;  %332 = vmatmul.mubr.msk.f32.gmra.mxu1 %vm39_vm1, %v27_v13 }
  0x10   :  { %322 = vmatprep.mubr.msk.f32.mxu0 %vm39_vm1, %v20_v14  ;;  %334 = vmatprep.mubr.msk.f32.mxu1 %vm39_vm1, %v28_v15 }
  0x13   :  { %323 = vmatmul.mubr.msk.f32.gmra.mxu0 %vm39_vm1, %v21_v16  ;;  %335 = vmatmul.mubr.msk.f32.gmra.mxu1 %vm39_vm1, %v29_v17 }
  0xc7   :  { %v315_v19 = vpop.f32.mrf.mxu0  ;;  %v327_v20 = vpop.f32.mrf.mxu1 }
  0xc8   :  { %v164_v21 = vadd.f32 %v315_v19, %v273_v18  ;;  %v204_v22 = vadd.f32 %v327_v20, %v273_v18 }
  0xc9   :  { %v158_v23 = vpop.f32.mrf.mxu0  ;;  %v198_v24 = vpop.f32.mrf.mxu1 }
  0xca   :  { %v238_v25 = vmax.f32 %v164_v21, 0.0  ;;  %v246_v26 = vmax.f32 %v204_v22, 0.0  ;;  %v159_v27 = vadd.f32 %v273_v18, %v158_v23  ;;  %v199_v28 = vadd.f32 %v273_v18, %v198_v24 }
  0xcb   :  { %v318_v29 = vpop.f32.mrf.mxu0  ;;  %v330_v30 = vpop.f32.mrf.mxu1 }
  0xcc   :  { %254 = vst [vmem:[%s485_s3 + $0x8] sm:$0xff] %v238_v25  ;;  %262 = vst [vmem:[%s485_s3 + $0x48] sm:$0xff] %v246_v26  ;;  %v237_v31 = vmax.f32 %v159_v27, 0.0  ;;  %v245_v32 = vmax.f32 %v199_v28, 0.0  ;;  %v174_v33 = vadd.f32 %v318_v29, %v273_v18  ;;  %v214_v34 = vadd.f32 %v330_v30, %v273_v18 }
  0xcd   :  { %v168_v35 = vpop.f32.mrf.mxu0  ;;  %v208_v36 = vpop.f32.mrf.mxu1 }
  0xce   :  { %253 = vst [vmem:[%s485_s3] sm:$0xff] %v237_v31  ;;  %261 = vst [vmem:[%s485_s3 + $0x40] sm:$0xff] %v245_v32  ;;  %v240_v37 = vmax.f32 %v174_v33, 0.0  ;;  %v248_v38 = vmax.f32 %v214_v34, 0.0  ;;  %v169_v39 = vadd.f32 %v273_v18, %v168_v35  ;;  %v209_v40 = vadd.f32 %v273_v18, %v208_v36 }
  0xcf   :  { %v321_v41 = vpop.f32.mrf.mxu0  ;;  %v333_v42 = vpop.f32.mrf.mxu1 }
  0xd0   :  { %256 = vst [vmem:[%s485_s3 + $0x18] sm:$0xff] %v240_v37  ;;  %264 = vst [vmem:[%s485_s3 + $0x58] sm:$0xff] %v248_v38  ;;  %v239_v43 = vmax.f32 %v169_v39, 0.0  ;;  %v247_v44 = vmax.f32 %v209_v40, 0.0  ;;  %v184_v45 = vadd.f32 %v321_v41, %v273_v18  ;;  %v224_v46 = vadd.f32 %v333_v42, %v273_v18 }
  0xd1   :  { %v178_v47 = vpop.f32.mrf.mxu0  ;;  %v218_v48 = vpop.f32.mrf.mxu1 }
  0xd2   :  { %255 = vst [vmem:[%s485_s3 + $0x10] sm:$0xff] %v239_v43  ;;  %263 = vst [vmem:[%s485_s3 + $0x50] sm:$0xff] %v247_v44  ;;  %v242_v49 = vmax.f32 %v184_v45, 0.0  ;;  %v250_v50 = vmax.f32 %v224_v46, 0.0  ;;  %v179_v51 = vadd.f32 %v273_v18, %v178_v47  ;;  %v219_v52 = vadd.f32 %v273_v18, %v218_v48 }
  0xd3   :  { %v324_v53 = vpop.f32.mrf.mxu0  ;;  %v336_v54 = vpop.f32.mrf.mxu1 }
  0xd4   :  { %258 = vst [vmem:[%s485_s3 + $0x28] sm:$0xff] %v242_v49  ;;  %266 = vst [vmem:[%s485_s3 + $0x68] sm:$0xff] %v250_v50  ;;  %v241_v55 = vmax.f32 %v179_v51, 0.0  ;;  %v249_v56 = vmax.f32 %v219_v52, 0.0  ;;  %v194_v57 = vadd.f32 %v324_v53, %v273_v18  ;;  %v234_v58 = vadd.f32 %v336_v54, %v273_v18 }
  0xd5   :  { %v188_v59 = vpop.f32.mrf.mxu0  ;;  %v228_v60 = vpop.f32.mrf.mxu1 }
  0xd6   :  { %257 = vst [vmem:[%s485_s3 + $0x20] sm:$0xff] %v241_v55  ;;  %265 = vst [vmem:[%s485_s3 + $0x60] sm:$0xff] %v249_v56  ;;  %v244_v61 = vmax.f32 %v194_v57, 0.0  ;;  %v252_v62 = vmax.f32 %v234_v58, 0.0  ;;  %v189_v63 = vadd.f32 %v273_v18, %v188_v59  ;;  %v229_v0 = vadd.f32 %v273_v18, %v228_v60 }
  0xd8   :  { %260 = vst [vmem:[%s485_s3 + $0x38] sm:$0xff] %v244_v61  ;;  %268 = vst [vmem:[%s485_s3 + $0x78] sm:$0xff] %v252_v62  ;;  %v243_v1 = vmax.f32 %v189_v63, 0.0  ;;  %v251_v2 = vmax.f32 %v229_v0, 0.0 }
  0xda   :  { %259 = vst [vmem:[%s485_s3 + $0x30] sm:$0xff] %v243_v1  ;;  %267 = vst [vmem:[%s485_s3 + $0x70] sm:$0xff] %v251_v2 }

// kernel: resnet18_block_forward.43
= control target key start
LH: loop header
LB: loop body
LE: loop exit
PB: predicated region body
PF: predicated region fallthrough
CT: control target
= control target key end

     0   :  { %vm90_vm0 = vcmask 1040384   ;;  %vm41_vm1 = vcmask 72704   ;;  %v453_v18 = vmov 0.0   ;;  %s588_s1 = inlined_call_operand.vmem [shape: f32[9,128], index: 1, kind: input, shape index: {}]   ;;  %s589_s0 = inlined_call_operand.vmem [shape: f32[128,9], index: 0, kind: input, shape index: {}]   ;;  %s590_s3 = inlined_call_operand.vmem [shape: f32[1,128], index: 3, kind: output, shape index: {0}]   ;;  %s591_s4 = inlined_call_operand.vmem [shape: f32[1,128], index: 4, kind: output, shape index: {1}]   ;;  %s592_s2 = inlined_call_operand.vmem [shape: f32[1,128], index: 2, kind: input, shape index: {}]  }
   0x1   :  { %v33_v0 = vld [vmem:[%s588_s1 + $0x8] sm:$0x1]  ;;  %v32_v1 = vld [vmem:[%s588_s1] sm:$0xff]  ;;  %v18_v4 = vld [vmem:[%s589_s0 + $0x10] sm:$0xff]  ;;  %310 = vst [vmem:[%s590_s3] sm:$0x1] %v453_v18 }
   0x2   :  { %v16_v2 = vld [vmem:[%s589_s0] sm:$0xff]  ;;  %420 = vmatprep.subr.msk.mxu0 %vm90_vm0, %v33_v0  ;;  %v17_v3 = vld [vmem:[%s589_s0 + $0x8] sm:$0xff]  ;;  %448 = vmatprep.subr.msk.mxu1 %vm90_vm0, %v33_v0  ;;  %v26_v7 = vld [vmem:[%s589_s0 + $0x50] sm:$0xff]  ;;  %311 = vst [vmem:[%s591_s4] sm:$0x1] %v453_v18 }
   0x3   :  { %424 = vmatprep.mubr.msk.f32.mxu0 %vm41_vm1, %v16_v2  ;;  %421 = vmatpush3.msk.msra.mxu0 %vm90_vm0, %v33_v0  ;;  %v24_v5 = vld [vmem:[%s589_s0 + $0x40] sm:$0xff]  ;;  %v25_v6 = vld [vmem:[%s589_s0 + $0x48] sm:$0xff]  ;;  %v19_v8 = vld [vmem:[%s589_s0 + $0x18] sm:$0xff] }
   0x4   :  { %422 = vmatprep.subr.mxu0 %v32_v1  ;;  %450 = vmatpush3.msk.msra.mxu1 %vm90_vm0, %v33_v0  ;;  %v20_v9 = vld [vmem:[%s589_s0 + $0x20] sm:$0xff]  ;;  %v27_v10 = vld [vmem:[%s589_s0 + $0x58] sm:$0xff]  ;;  %v21_v12 = vld [vmem:[%s589_s0 + $0x28] sm:$0xff] }
   0x5   :  { %423 = vmatpush3.msra.mxu0 %v32_v1  ;;  %449 = vmatprep.subr.mxu1 %v32_v1  ;;  %v28_v11 = vld [vmem:[%s589_s0 + $0x60] sm:$0xff]  ;;  %v22_v13 = vld [vmem:[%s589_s0 + $0x30] sm:$0xff]  ;;  %v29_v14 = vld [vmem:[%s589_s0 + $0x68] sm:$0xff] }
   0x6   :  { %425 = vmatmul.mubr.msk.f32.vlgmr.msra.gmra.mxu0 %vm41_vm1, %v17_v3  ;;  %451 = vmatpush3.msra.mxu1 %v32_v1  ;;  %v30_v15 = vld [vmem:[%s589_s0 + $0x70] sm:$0xff]  ;;  %v23_v16 = vld [vmem:[%s589_s0 + $0x38] sm:$0xff]  ;;  %v558_v20 = vld [vmem:[%s592_s2] ss:$0 sm:$0xff] }
   0x7   :  { %427 = vmatprep.mubr.msk.f32.mxu0 %vm41_vm1, %v18_v4  ;;  %436 = vmatprep.mubr.msk.f32.mxu1 %vm41_vm1, %v24_v5  ;;  %v31_v17 = vld [vmem:[%s589_s0 + $0x78] sm:$0xff] }
   0x8   :  { %437 = vmatmul.mubr.msk.f32.vlgmr.msra.gmra.mxu1 %vm41_vm1, %v25_v6 }
   0x9   :  { %439 = vmatprep.mubr.msk.f32.mxu1 %vm41_vm1, %v26_v7 }
   0xa   :  { %428 = vmatmul.mubr.msk.f32.gmra.mxu0 %vm41_vm1, %v19_v8 }
   0xb   :  { %430 = vmatprep.mubr.msk.f32.mxu0 %vm41_vm1, %v20_v9 }
   0xc   :  { %440 = vmatmul.mubr.msk.f32.gmra.mxu1 %vm41_vm1, %v27_v10 }
   0xd   :  { %442 = vmatprep.mubr.msk.f32.mxu1 %vm41_vm1, %v28_v11 }
   0xe   :  { %431 = vmatmul.mubr.msk.f32.gmra.mxu0 %vm41_vm1, %v21_v12 }
   0xf   :  { %433 = vmatprep.mubr.msk.f32.mxu0 %vm41_vm1, %v22_v13 }
  0x10   :  { %443 = vmatmul.mubr.msk.f32.gmra.mxu1 %vm41_vm1, %v29_v14 }
  0x11   :  { %445 = vmatprep.mubr.msk.f32.mxu1 %vm41_vm1, %v30_v15 }
  0x12   :  { %434 = vmatmul.mubr.msk.f32.gmra.mxu0 %vm41_vm1, %v23_v16 }
  0x14   :  { %446 = vmatmul.mubr.msk.f32.gmra.mxu1 %vm41_vm1, %v31_v17 }
  0xc6   :  { %v426_v19 = vpop.f32.mrf.mxu0 }
  0xc7   :  { %v166_v23 = vadd.f32 %v426_v19, %v558_v20 }
  0xc8   :  { %v160_v21 = vpop.f32.mrf.mxu0  ;;  %v438_v22 = vpop.f32.mrf.mxu1 }
  0xc9   :  { %v161_v24 = vadd.f32 %v558_v20, %v160_v21  ;;  %v338_v30 = vmul.f32 %v166_v23, %v166_v23  ;;  %v206_v63 = vadd.f32 %v438_v22, %v558_v20 }
  0xca   :  { %v429_v25 = vpop.f32.mrf.mxu0  ;;  %v200_v26 = vpop.f32.mrf.mxu1 }
  0xcb   :  { %v337_v27 = vmul.f32 %v161_v24, %v161_v24  ;;  %v313_v31 = vadd.f32 %v166_v23, %v161_v24  ;;  %v176_v32 = vadd.f32 %v429_v25, %v558_v20  ;;  %v201_v59 = vadd.f32 %v558_v20, %v200_v26 }
  0xcc   :  { %v170_v28 = vpop.f32.mrf.mxu0  ;;  %v441_v29 = vpop.f32.mrf.mxu1  ;;  %v346_v6 = vmul.f32 %v206_v63, %v206_v63 }
  0xcd   :  { %v171_v33 = vadd.f32 %v558_v20, %v170_v28  ;;  %v353_v35 = vadd.f32 %v338_v30, %v337_v27  ;;  %v340_v41 = vmul.f32 %v176_v32, %v176_v32  ;;  %v345_v2 = vmul.f32 %v201_v59, %v201_v59 }
  0xce   :  { %v432_v34 = vpop.f32.mrf.mxu0  ;;  %v210_v40 = vpop.f32.mrf.mxu1  ;;  %v216_v8 = vadd.f32 %v441_v29, %v558_v20 }
  0xcf   :  { %v314_v36 = vadd.f32 %v313_v31, %v171_v33  ;;  %v339_v37 = vmul.f32 %v171_v33, %v171_v33  ;;  %v186_v38 = vadd.f32 %v432_v34, %v558_v20  ;;  %v211_v4 = vadd.f32 %v558_v20, %v210_v40 }
  0xd0   :  { %v180_v39 = vpop.f32.mrf.mxu0  ;;  %v444_v51 = vpop.f32.mrf.mxu1  ;;  %v348_v15 = vmul.f32 %v216_v8, %v216_v8 }
  0xd1   :  { %v354_v42 = vadd.f32 %v353_v35, %v339_v37  ;;  %v181_v43 = vadd.f32 %v558_v20, %v180_v39  ;;  %v315_v44 = vadd.f32 %v314_v36, %v176_v32  ;;  %v342_v49 = vmul.f32 %v186_v38, %v186_v38 }
  0xd2   :  { %v435_v45 = vpop.f32.mrf.mxu0  ;;  %v220_v60 = vpop.f32.mrf.mxu1  ;;  %v347_v11 = vmul.f32 %v211_v4, %v211_v4  ;;  %v226_v17 = vadd.f32 %v444_v51, %v558_v20 }
  0xd3   :  { %v316_v46 = vadd.f32 %v315_v44, %v181_v43  ;;  %v341_v47 = vmul.f32 %v181_v43, %v181_v43  ;;  %v355_v48 = vadd.f32 %v354_v42, %v340_v41  ;;  %v196_v53 = vadd.f32 %v435_v45, %v558_v20 }
  0xd4   :  { %v190_v50 = vpop.f32.mrf.mxu0  ;;  %v447_v5 = vpop.f32.mrf.mxu1  ;;  %v221_v13 = vadd.f32 %v558_v20, %v220_v60  ;;  %v350_v24 = vmul.f32 %v226_v17, %v226_v17 }
  0xd5   :  { %v356_v52 = vadd.f32 %v355_v48, %v341_v47  ;;  %v191_v54 = vadd.f32 %v558_v20, %v190_v50  ;;  %v317_v55 = vadd.f32 %v316_v46, %v186_v38  ;;  %v344_v61 = vmul.f32 %v196_v53, %v196_v53  ;;  %v336_v46 = vld [vmem:[%s591_s4] sm:$0x1] }
  0xd6   :  { %v230_v14 = vpop.f32.mrf.mxu1  ;;  %v349_v21 = vmul.f32 %v221_v13, %v221_v13  ;;  %v236_v26 = vadd.f32 %v447_v5, %v558_v20 }
  0xd7   :  { %v318_v56 = vadd.f32 %v317_v55, %v191_v54  ;;  %v343_v57 = vmul.f32 %v191_v54, %v191_v54  ;;  %v357_v58 = vadd.f32 %v356_v52, %v342_v49  ;;  %v231_v23 = vadd.f32 %v558_v20, %v230_v14  ;;  %v312_v20 = vld [vmem:[%s590_s3] sm:$0x1] }
  0xd8   :  { %v352_v31 = vmul.f32 %v236_v26, %v236_v26 }
  0xd9   :  { %v358_v62 = vadd.f32 %v357_v58, %v343_v57  ;;  %v319_v0 = vadd.f32 %v318_v56, %v196_v53  ;;  %v351_v29 = vmul.f32 %v231_v23, %v231_v23 }
  0xdb   :  { %v320_v1 = vadd.f32 %v319_v0, %v201_v59  ;;  %v359_v3 = vadd.f32 %v358_v62, %v344_v61 }
  0xdd   :  { %v360_v7 = vadd.f32 %v359_v3, %v345_v2  ;;  %v321_v9 = vadd.f32 %v320_v1, %v206_v63 }
  0xdf   :  { %v322_v10 = vadd.f32 %v321_v9, %v211_v4  ;;  %v361_v12 = vadd.f32 %v360_v7, %v346_v6 }
  0xe1   :  { %v362_v16 = vadd.f32 %v361_v12, %v347_v11  ;;  %v323_v18 = vadd.f32 %v322_v10, %v216_v8 }
  0xe3   :  { %v324_v19 = vadd.f32 %v323_v18, %v221_v13  ;;  %v363_v22 = vadd.f32 %v362_v16, %v348_v15 }
  0xe5   :  { %v364_v25 = vadd.f32 %v363_v22, %v349_v21  ;;  %v325_v27 = vadd.f32 %v324_v19, %v226_v17 }
  0xe7   :  { %v326_v28 = vadd.f32 %v325_v27, %v231_v23  ;;  %v365_v30 = vadd.f32 %v364_v25, %v350_v24 }
  0xe9   :  { %v327_v32 = vadd.f32 %v326_v28, %v236_v26  ;;  %v366_v33 = vadd.f32 %v365_v30, %v351_v29 }
  0xeb   :  { %v328_v34 = vrot.slane %v327_v32, 4  ;;  %v367_v35 = vadd.f32 %v366_v33, %v352_v31 }
  0xed   :  { %v329_v36 = vadd.f32 %v328_v34, %v327_v32  ;;  %v368_v37 = vrot.slane %v367_v35, 4 }
  0xef   :  { %v330_v38 = vrot.slane %v329_v36, 2  ;;  %v369_v39 = vadd.f32 %v368_v37, %v367_v35 }
  0xf1   :  { %v331_v40 = vadd.f32 %v330_v38, %v329_v36  ;;  %v370_v41 = vrot.slane %v369_v39, 2 }
  0xf3   :  { %v332_v42 = vrot.slane %v331_v40, 1  ;;  %v371_v43 = vadd.f32 %v370_v41, %v369_v39 }
  0xf5   :  { %v333_v44 = vadd.f32 %v332_v42, %v331_v40  ;;  %v372_v45 = vrot.slane %v371_v43, 1 }
  0xf7   :  { %v334_v47 = vadd.f32 %v333_v44, %v312_v20  ;;  %v373_v48 = vadd.f32 %v372_v45, %v371_v43 }
  0xf9   :  { %335 = vst [vmem:[%s590_s3] sm:$0x1] %v334_v47  ;;  %v374_v49 = vadd.f32 %v373_v48, %v336_v46 }
  0xfb   :  { %375 = vst [vmem:[%s591_s4] sm:$0x1] %v374_v49 }

// kernel: resnet18_block_forward.47
= control target key start
LH: loop header
LB: loop body
LE: loop exit
PB: predicated region body
PF: predicated region fallthrough
CT: control target
= control target key end

     0   :  { %s820_s0 = inlined_call_operand.vmem [shape: f32[128,128], index: 0, kind: input, shape index: {}]   ;;  %s821_s1 = inlined_call_operand.vmem [shape: f32[1,128], index: 1, kind: input, shape index: {}]   ;;  %s822_s2 = inlined_call_operand.vmem [shape: f32[1,128], index: 2, kind: input, shape index: {}]   ;;  %s823_s3 = inlined_call_operand.vmem [shape: f32[128,128], index: 3, kind: output, shape index: {}]  }
   0x1   :  { %v14_v0 = vld [vmem:[%s820_s0] sm:$0xff]  ;;  %v15_v4 = vld [vmem:[%s820_s0 + $0x8] sm:$0xff]  ;;  %v16_v5 = vld [vmem:[%s820_s0 + $0x10] sm:$0xff] }
   0x2   :  { %v492_v1 = vld [vmem:[%s821_s1] ss:$0 sm:$0xff]  ;;  %v17_v6 = vld [vmem:[%s820_s0 + $0x18] sm:$0xff]  ;;  %v19_v11 = vld [vmem:[%s820_s0 + $0x28] sm:$0xff] }
   0x3   :  { %v497_v2 = vld [vmem:[%s822_s2] ss:$0 sm:$0xff]  ;;  %v37_v3 = vmul.f32 %v492_v1, %v14_v0  ;;  %v38_v7 = vmul.f32 %v492_v1, %v15_v4  ;;  %v39_v8 = vmul.f32 %v492_v1, %v16_v5  ;;  %v40_v9 = vmul.f32 %v492_v1, %v17_v6  ;;  %v20_v12 = vld [vmem:[%s820_s0 + $0x30] sm:$0xff]  ;;  %v21_v16 = vld [vmem:[%s820_s0 + $0x38] sm:$0xff] }
   0x4   :  { %v18_v10 = vld [vmem:[%s820_s0 + $0x20] sm:$0xff]  ;;  %v42_v15 = vmul.f32 %v492_v1, %v19_v11  ;;  %v43_v23 = vmul.f32 %v492_v1, %v20_v12  ;;  %v44_v26 = vmul.f32 %v492_v1, %v21_v16  ;;  %v23_v43 = vld [vmem:[%s820_s0 + $0x48] sm:$0xff]  ;;  %v24_v44 = vld [vmem:[%s820_s0 + $0x50] sm:$0xff] }
   0x5   :  { %v522_v13 = vadd.f32 %v497_v2, %v37_v3  ;;  %v41_v14 = vmul.f32 %v492_v1, %v18_v10  ;;  %v530_v17 = vadd.f32 %v497_v2, %v38_v7  ;;  %v533_v18 = vadd.f32 %v497_v2, %v39_v8  ;;  %v22_v40 = vld [vmem:[%s820_s0 + $0x40] sm:$0xff]  ;;  %v25_v47 = vld [vmem:[%s820_s0 + $0x58] sm:$0xff]  ;;  %v27_v12 = vld [vmem:[%s820_s0 + $0x68] sm:$0xff] }
   0x6   :  { %v536_v19 = vadd.f32 %v497_v2, %v40_v9  ;;  %v543_v22 = vadd.f32 %v497_v2, %v42_v15  ;;  %v553_v35 = vadd.f32 %v497_v2, %v43_v23  ;;  %v556_v39 = vadd.f32 %v497_v2, %v44_v26  ;;  %v26_v11 = vld [vmem:[%s820_s0 + $0x60] sm:$0xff]  ;;  %v28_v23 = vld [vmem:[%s820_s0 + $0x70] sm:$0xff] }
   0x7   :  { %v92_v20 = vand.u32 2147483647, %v522_v13  ;;  %v540_v21 = vadd.f32 %v497_v2, %v41_v14  ;;  %v93_v24 = vand.u32 2147483647, %v530_v17  ;;  %v94_v25 = vand.u32 2147483647, %v533_v18 }
   0x8   :  { %v95_v28 = vand.u32 2147483647, %v536_v19  ;;  %v97_v34 = vand.u32 2147483647, %v543_v22  ;;  %v98_v46 = vand.u32 2147483647, %v553_v35  ;;  %v45_v50 = vmul.f32 %v492_v1, %v22_v40 }
   0x9   :  { %v108_v27 = vsub.f32 0.0, %v92_v20  ;;  %v109_v29 = vsub.f32 0.0, %v93_v24  ;;  %v110_v30 = vsub.f32 0.0, %v94_v25  ;;  %v96_v31 = vand.u32 2147483647, %v540_v21 }
   0xa   :  { %v111_v33 = vsub.f32 0.0, %v95_v28  ;;  %v113_v42 = vsub.f32 0.0, %v97_v34  ;;  %v99_v49 = vand.u32 2147483647, %v556_v39  ;;  %v114_v51 = vsub.f32 0.0, %v98_v46  ;;  %v29_v28 = vld [vmem:[%s820_s0 + $0x78] sm:$0xff] }
   0xb   :  { %v124_v32 = vmul.f32 1.442695, %v108_v27  ;;  %v126_v36 = vmul.f32 1.442695, %v109_v29  ;;  %v128_v37 = vmul.f32 1.442695, %v110_v30  ;;  %v46_v52 = vmul.f32 %v492_v1, %v23_v43 }
   0xc   :  { %v112_v38 = vsub.f32 0.0, %v96_v31  ;;  %v130_v41 = vmul.f32 1.442695, %v111_v33  ;;  %v134_v48 = vmul.f32 1.442695, %v113_v42  ;;  %v47_v53 = vmul.f32 %v492_v1, %v24_v44 }
   0xd   :  { %370 = vpow2.f32 %v124_v32  ;;  %v115_v54 = vsub.f32 0.0, %v99_v49  ;;  %v576_v55 = vadd.f32 %v497_v2, %v45_v50  ;;  %v48_v56 = vmul.f32 %v492_v1, %v25_v47 }
   0xe   :  { %372 = vpow2.f32 %v126_v36  ;;  %v132_v45 = vmul.f32 1.442695, %v112_v38  ;;  %v136_v57 = vmul.f32 1.442695, %v114_v51  ;;  %v580_v58 = vadd.f32 %v497_v2, %v46_v52 }
   0xf   :  { %374 = vpow2.f32 %v128_v37  ;;  %v583_v59 = vadd.f32 %v497_v2, %v47_v53  ;;  %v138_v60 = vmul.f32 1.442695, %v115_v54  ;;  %v100_v61 = vand.u32 2147483647, %v576_v55 }
  0x10   :  { %376 = vpow2.f32 %v130_v41  ;;  %v587_v62 = vadd.f32 %v497_v2, %v48_v56  ;;  %v76_v63 = vmax.f32 %v522_v13, 0.0  ;;  %v77_v0 = vmax.f32 %v530_v17, 0.0 }
  0x11   :  { %378 = vpow2.f32 %v132_v45  ;;  %v101_v3 = vand.u32 2147483647, %v580_v58  ;;  %v78_v4 = vmax.f32 %v533_v18, 0.0  ;;  %v79_v5 = vmax.f32 %v536_v19, 0.0 }
  0x12   :  { %380 = vpow2.f32 %v134_v48  ;;  %v116_v6 = vsub.f32 0.0, %v100_v61  ;;  %v102_v7 = vand.u32 2147483647, %v583_v59  ;;  %v80_v8 = vmax.f32 %v540_v21, 0.0 }
  0x13   :  { %382 = vpow2.f32 %v136_v57  ;;  %v117_v9 = vsub.f32 0.0, %v101_v3  ;;  %v103_v10 = vand.u32 2147483647, %v587_v62  ;;  %v81_v14 = vmax.f32 %v543_v22, 0.0 }
  0x14   :  { %384 = vpow2.f32 %v138_v60  ;;  %v82_v15 = vmax.f32 %v553_v35, 0.0  ;;  %v140_v16 = vmul.f32 1.442695, %v116_v6  ;;  %v118_v20 = vsub.f32 0.0, %v102_v7 }
  0x15   :  { %v83_v24 = vmax.f32 %v556_v39, 0.0  ;;  %v84_v25 = vmax.f32 %v576_v55, 0.0  ;;  %v142_v26 = vmul.f32 1.442695, %v117_v9  ;;  %v119_v27 = vsub.f32 0.0, %v103_v10 }
  0x16   :  { %386 = vpow2.f32 %v140_v16  ;;  %v144_v29 = vmul.f32 1.442695, %v118_v20  ;;  %v49_v30 = vmul.f32 %v492_v1, %v26_v11  ;;  %v50_v31 = vmul.f32 %v492_v1, %v27_v12 }
  0x17   :  { %v85_v33 = vmax.f32 %v580_v58, 0.0  ;;  %388 = vpow2.f32 %v142_v26  ;;  %v51_v41 = vmul.f32 %v492_v1, %v28_v23  ;;  %v52_v42 = vmul.f32 %v492_v1, %v29_v28 }
  0x18   :  { %390 = vpow2.f32 %v144_v29  ;;  %v146_v46 = vmul.f32 1.442695, %v119_v27  ;;  %v621_v49 = vadd.f32 %v497_v2, %v49_v30  ;;  %v624_v50 = vadd.f32 %v497_v2, %v50_v31 }
  0x19   :  { %v627_v6 = vadd.f32 %v497_v2, %v51_v41  ;;  %v630_v11 = vadd.f32 %v497_v2, %v52_v42 }
  0x1a   :  { %v371_v32 = vpop.eup %370  ;;  %v104_v23 = vand.u32 2147483647, %v621_v49 }
  0x1b   :  { %v373_v37 = vpop.eup %372  ;;  %v156_v38 = vadd.f32 1.0, %v371_v32  ;;  %v159_v40 = vmul.f32 -0.5, %v371_v32  ;;  %v162_v53 = vand.u32 2147483647, %v371_v32 }
  0x1c   :  { %v375_v43 = vpop.eup %374  ;;  %v165_v44 = vadd.f32 1.0, %v373_v37  ;;  %v168_v45 = vmul.f32 -0.5, %v373_v37  ;;  %v171_v56 = vand.u32 2147483647, %v373_v37 }
  0x1d   :  { %v377_v47 = vpop.eup %376  ;;  %392 = vlog2.f32 %v156_v38  ;;  %v174_v48 = vadd.f32 1.0, %v375_v43  ;;  %v160_v52 = vadd.f32 1.0, %v159_v40  ;;  %v177_v54 = vmul.f32 -0.5, %v375_v43 }
  0x1e   :  { %v379_v51 = vpop.eup %378  ;;  %394 = vlog2.f32 %v165_v44  ;;  %v169_v1 = vadd.f32 1.0, %v168_v45  ;;  %v183_v57 = vadd.f32 1.0, %v377_v47  ;;  %v180_v61 = vand.u32 2147483647, %v375_v43 }
  0x1f   :  { %396 = vlog2.f32 %v174_v48  ;;  %v381_v60 = vpop.eup %380  ;;  %v186_v3 = vmul.f32 -0.5, %v377_v47  ;;  %v192_v9 = vadd.f32 1.0, %v379_v51  ;;  %v195_v10 = vmul.f32 -0.5, %v379_v51 }
  0x20   :  { %398 = vpow2.f32 %v146_v46  ;;  %v383_v7 = vpop.eup %382  ;;  %v161_v12 = vmul.f32 %v371_v32, %v160_v52  ;;  %vm632_vm0 = vcmp.lt.f32.partialorder %v162_v53, 0.0004427343  ;;  %v178_v20 = vadd.f32 1.0, %v177_v54 }
  0x21   :  { %400 = vlog2.f32 %v183_v57  ;;  %v385_v26 = vpop.eup %384  ;;  %v170_v27 = vmul.f32 %v373_v37, %v169_v1  ;;  %vm637_vm1 = vcmp.lt.f32.partialorder %v171_v56, 0.0004427343  ;;  %v201_v29 = vadd.f32 1.0, %v381_v60 }
  0x22   :  { %402 = vlog2.f32 %v192_v9  ;;  %v204_v30 = vmul.f32 -0.5, %v381_v60  ;;  %vm641_vm2 = vcmp.lt.f32.partialorder %v180_v61, 0.0004427343  ;;  %v187_v31 = vadd.f32 1.0, %v186_v3 }
  0x23   :  { %v189_v32 = vand.u32 2147483647, %v377_v47  ;;  %v210_v38 = vadd.f32 1.0, %v383_v7  ;;  %v196_v40 = vadd.f32 1.0, %v195_v10  ;;  %v198_v41 = vand.u32 2147483647, %v379_v51  ;;  %v387_v44 = vpop.eup %386 }
  0x24   :  { %404 = vlog2.f32 %v201_v29  ;;  %v213_v42 = vmul.f32 -0.5, %v383_v7  ;;  %v179_v37 = vmul.f32 %v375_v43, %v178_v20  ;;  %v207_v45 = vand.u32 2147483647, %v381_v60  ;;  %v645_v48 = vpop.eup %388 }
  0x25   :  { %406 = vlog2.f32 %v210_v38  ;;  %v219_v46 = vadd.f32 1.0, %v385_v26  ;;  %v205_v52 = vadd.f32 1.0, %v204_v30  ;;  %v216_v54 = vand.u32 2147483647, %v383_v7  ;;  %v651_v3 = vpop.eup %390 }
  0x26   :  { %v214_v53 = vadd.f32 1.0, %v213_v42  ;;  %v222_v1 = vmul.f32 -0.5, %v385_v26  ;;  %v188_v56 = vmul.f32 %v377_v47, %v187_v31  ;;  %vm647_vm3 = vcmp.lt.f32.partialorder %v189_v32, 0.0004427343 }
  0x27   :  { %408 = vlog2.f32 %v219_v46  ;;  %v228_v61 = vadd.f32 1.0, %v387_v44  ;;  %v197_v9 = vmul.f32 %v379_v51, %v196_v40  ;;  %vm653_vm4 = vcmp.lt.f32.partialorder %v198_v41, 0.0004427343 }
  0x28   :  { %v225_v10 = vand.u32 2147483647, %v385_v26  ;;  %v231_v20 = vmul.f32 -0.5, %v387_v44  ;;  %vm657_vm5 = vcmp.lt.f32.partialorder %v207_v45, 0.0004427343  ;;  %v223_v47 = vadd.f32 1.0, %v222_v1 }
  0x29   :  { %410 = vlog2.f32 %v228_v61  ;;  %v237_v31 = vadd.f32 1.0, %v645_v48  ;;  %v206_v42 = vmul.f32 %v381_v60, %v205_v52  ;;  %v215_v46 = vmul.f32 %v383_v7, %v214_v53 }
  0x2a   :  { %v393_v29 = vpop.eup %392  ;;  %vm662_vm6 = vcmp.lt.f32.partialorder %v216_v54, 0.0004427343  ;;  %v234_v36 = vand.u32 2147483647, %v387_v44  ;;  %v240_v45 = vmul.f32 -0.5, %v645_v48  ;;  %v232_v60 = vadd.f32 1.0, %v231_v20 }
  0x2b   :  { %v395_v32 = vpop.eup %394  ;;  %v158_v38 = vmul.f32 0.6931472, %v393_v29  ;;  %412 = vlog2.f32 %v237_v31  ;;  %vm671_vm7 = vcmp.lt.f32.partialorder %v225_v10, 0.0004427343  ;;  %v246_v7 = vadd.f32 1.0, %v651_v3 }
  0x2c   :  { %v397_v40 = vpop.eup %396  ;;  %v167_v41 = vmul.f32 0.6931472, %v395_v32  ;;  %v224_v31 = vmul.f32 %v385_v26, %v223_v47  ;;  %v249_v32 = vmul.f32 -0.5, %v651_v3  ;;  %v243_v28 = vand.u32 2147483647, %v645_v48 }
  0x2d   :  { %v667_v34 = vpop.eup %398  ;;  %v164_v1 = vsel %vm632_vm0, %v161_v12, %v158_v38  ;;  %v176_v61 = vmul.f32 0.6931472, %v397_v40  ;;  %414 = vlog2.f32 %v246_v7  ;;  %vm693_vm8 = vcmp.lt.f32.partialorder %v234_v36, 0.0004427343 }
  0x2e   :  { %v401_v52 = vpop.eup %400  ;;  %v300_v53 = vadd.f32 %v164_v1, %v76_v63  ;;  %v173_v54 = vsel %vm637_vm1, %v170_v27, %v167_v41  ;;  %v241_v63 = vadd.f32 1.0, %v240_v45  ;;  %v250_v57 = vadd.f32 1.0, %v249_v32 }
  0x2f   :  { %v301_v12 = vadd.f32 %v173_v54, %v77_v0  ;;  %v182_v16 = vsel %vm641_vm2, %v179_v37, %v176_v61  ;;  %v185_v10 = vmul.f32 0.6931472, %v401_v52  ;;  %v403_v20 = vpop.eup %402  ;;  %v255_v0 = vadd.f32 1.0, %v667_v34 }
  0x30   :  { %416 = vtanh.f32 %v300_v53  ;;  %v302_v38 = vadd.f32 %v182_v16, %v78_v4  ;;  %v194_v27 = vmul.f32 0.6931472, %v403_v20  ;;  %v233_v37 = vmul.f32 %v387_v44, %v232_v60 }
  0x31   :  { %418 = vtanh.f32 %v301_v12  ;;  %v191_v26 = vsel %vm647_vm3, %v188_v56, %v185_v10  ;;  %v405_v47 = vpop.eup %404  ;;  %vm701_vm9 = vcmp.lt.f32.partialorder %v243_v28, 0.0004427343  ;;  %v242_v44 = vmul.f32 %v645_v48, %v241_v63 }
  0x32   :  { %420 = vtanh.f32 %v302_v38  ;;  %v303_v2 = vadd.f32 %v191_v26, %v79_v5  ;;  %v407_v4 = vpop.eup %406  ;;  %v200_v41 = vsel %vm653_vm4, %v197_v9, %v194_v27  ;;  %v203_v45 = vmul.f32 0.6931472, %v405_v47 }
  0x33   :  { %422 = vlog2.f32 %v255_v0  ;;  %v304_v56 = vadd.f32 %v200_v41, %v80_v8  ;;  %v212_v1 = vmul.f32 0.6931472, %v407_v4  ;;  %v258_v9 = vmul.f32 -0.5, %v667_v34 }
  0x34   :  { %424 = vtanh.f32 %v303_v2  ;;  %v409_v5 = vpop.eup %408  ;;  %v209_v36 = vsel %vm657_vm5, %v206_v42, %v203_v45  ;;  %v120_v43 = vsub.f32 0.0, %v104_v23  ;;  %v251_v42 = vmul.f32 %v651_v3, %v250_v57 }
  0x35   :  { %426 = vtanh.f32 %v304_v56  ;;  %v305_v8 = vadd.f32 %v209_v36, %v81_v14  ;;  %v218_v60 = vsel %vm662_vm6, %v215_v46, %v212_v1  ;;  %v221_v7 = vmul.f32 0.6931472, %v409_v5 }
  0x36   :  { %v411_v52 = vpop.eup %410  ;;  %v306_v30 = vadd.f32 %v218_v60, %v82_v15  ;;  %v252_v48 = vand.u32 2147483647, %v651_v3  ;;  %v148_v53 = vmul.f32 1.442695, %v120_v43  ;;  %v105_v14 = vand.u32 2147483647, %v624_v50 }
  0x37   :  { %428 = vtanh.f32 %v305_v8  ;;  %v227_v23 = vsel %vm671_vm7, %v224_v31, %v221_v7  ;;  %v230_v54 = vmul.f32 0.6931472, %v411_v52  ;;  %v259_v51 = vadd.f32 1.0, %v258_v9 }
  0x38   :  { %v413_v32 = vpop.eup %412  ;;  %430 = vtanh.f32 %v306_v30  ;;  %v307_v46 = vadd.f32 %v227_v23, %v83_v24  ;;  %v106_v15 = vand.u32 2147483647, %v627_v6  ;;  %v121_v16 = vsub.f32 0.0, %v105_v14 }
  0x39   :  { %v236_v12 = vsel %vm693_vm8, %v233_v37, %v230_v54  ;;  %v239_v3 = vmul.f32 0.6931472, %v413_v32  ;;  %432 = vpow2.f32 %v148_v53  ;;  %v261_v31 = vand.u32 2147483647, %v667_v34 }
  0x3a   :  { %434 = vtanh.f32 %v307_v46  ;;  %v308_v29 = vadd.f32 %v236_v12, %v84_v25  ;;  %v122_v10 = vsub.f32 0.0, %v106_v15  ;;  %v415_v20 = vpop.eup %414  ;;  %vm732_vm10 = vcmp.lt.f32.partialorder %v252_v48, 0.0004427343 }
  0x3b   :  { %v245_v24 = vsel %vm701_vm9, %v242_v44, %v239_v3  ;;  %v150_v63 = vmul.f32 1.442695, %v121_v16  ;;  %v107_v28 = vand.u32 2147483647, %v630_v11  ;;  %v248_v25 = vmul.f32 0.6931472, %v415_v20 }
  0x3c   :  { %436 = vtanh.f32 %v308_v29  ;;  %v309_v27 = vadd.f32 %v245_v24, %v85_v33  ;;  %v152_v0 = vmul.f32 1.442695, %v122_v10  ;;  %v260_v37 = vmul.f32 %v667_v34, %v259_v51 }
  0x3d   :  { %v417_v26 = vpop.eup %416  ;;  %438 = vpow2.f32 %v150_v63  ;;  %v123_v40 = vsub.f32 0.0, %v107_v28  ;;  %v254_v45 = vsel %vm732_vm10, %v251_v42, %v248_v25  ;;  %vm744_vm11 = vcmp.lt.f32.partialorder %v261_v31, 0.0004427343 }
  0x3e   :  { %v419_v47 = vpop.eup %418  ;;  %v332_v2 = vmul.f32 %v417_v26, %v522_v13  ;;  %440 = vtanh.f32 %v309_v27  ;;  %v848_v34 = vmax.f32 %v583_v59, 0.0  ;;  %v849_v9 = vmax.f32 %v587_v62, 0.0 }
  0x3f   :  { %v421_v4 = vpop.eup %420  ;;  %v333_v41 = vmul.f32 %v419_v47, %v530_v17  ;;  %442 = vpow2.f32 %v152_v0  ;;  %v154_v17 = vmul.f32 1.442695, %v123_v40  ;;  %v88_v24 = vmax.f32 %v621_v49, 0.0 }
  0x40   :  { %v423_v33 = vpop.eup %422  ;;  %348 = vst [vmem:[%s823_s3] sm:$0xff] %v332_v2  ;;  %v334_v13 = vmul.f32 %v421_v4, %v533_v18  ;;  %v310_v56 = vadd.f32 %v254_v45, %v848_v34  ;;  %v89_v2 = vmax.f32 %v624_v50, 0.0  ;;  %v90_v57 = vmax.f32 %v627_v6, 0.0 }
  0x41   :  { %v425_v1 = vpop.eup %424  ;;  %349 = vst [vmem:[%s823_s3 + $0x8] sm:$0xff] %v333_v41  ;;  %v257_v61 = vmul.f32 0.6931472, %v423_v33 }
  0x42   :  { %350 = vst [vmem:[%s823_s3 + $0x10] sm:$0xff] %v334_v13  ;;  %v335_v5 = vmul.f32 %v425_v1, %v536_v19  ;;  %444 = vtanh.f32 %v310_v56  ;;  %v427_v36 = vpop.eup %426 }
  0x43   :  { %v263_v18 = vsel %vm744_vm11, %v260_v37, %v257_v61  ;;  %446 = vpow2.f32 %v154_v17  ;;  %v336_v44 = vmul.f32 %v427_v36, %v540_v21  ;;  %v91_v61 = vmax.f32 %v630_v11, 0.0 }
  0x44   :  { %351 = vst [vmem:[%s823_s3 + $0x18] sm:$0xff] %v335_v5  ;;  %v311_v43 = vadd.f32 %v263_v18, %v849_v9  ;;  %v429_v8 = vpop.eup %428 }
  0x45   :  { %v431_v60 = vpop.eup %430  ;;  %352 = vst [vmem:[%s823_s3 + $0x20] sm:$0xff] %v336_v44  ;;  %v337_v19 = vmul.f32 %v429_v8, %v543_v22 }
  0x46   :  { %448 = vtanh.f32 %v311_v43  ;;  %v433_v7 = vpop.eup %432  ;;  %v338_v52 = vmul.f32 %v431_v60, %v553_v35 }
  0x47   :  { %v435_v30 = vpop.eup %434  ;;  %353 = vst [vmem:[%s823_s3 + $0x28] sm:$0xff] %v337_v19  ;;  %v264_v21 = vadd.f32 1.0, %v433_v7  ;;  %v267_v32 = vmul.f32 -0.5, %v433_v7  ;;  %v270_v16 = vand.u32 2147483647, %v433_v7 }
  0x48   :  { %354 = vst [vmem:[%s823_s3 + $0x30] sm:$0xff] %v338_v52  ;;  %v339_v42 = vmul.f32 %v435_v30, %v556_v39 }
  0x49   :  { %v437_v48 = vpop.eup %436  ;;  %450 = vlog2.f32 %v264_v21  ;;  %v268_v12 = vadd.f32 1.0, %v267_v32  ;;  %vm271_vm12 = vcmp.lt.f32.partialorder %v270_v16, 0.0004427343 }
  0x4a   :  { %v439_v53 = vpop.eup %438  ;;  %355 = vst [vmem:[%s823_s3 + $0x38] sm:$0xff] %v339_v42  ;;  %v340_v22 = vmul.f32 %v437_v48, %v576_v55 }
  0x4b   :  { %v441_v35 = vpop.eup %440  ;;  %v273_v23 = vadd.f32 1.0, %v439_v53  ;;  %v276_v3 = vmul.f32 -0.5, %v439_v53  ;;  %v269_v10 = vmul.f32 %v433_v7, %v268_v12  ;;  %v279_v38 = vand.u32 2147483647, %v439_v53 }
  0x4c   :  { %v443_v54 = vpop.eup %442  ;;  %356 = vst [vmem:[%s823_s3 + $0x40] sm:$0xff] %v340_v22  ;;  %v341_v14 = vmul.f32 %v441_v35, %v580_v58 }
  0x4d   :  { %452 = vlog2.f32 %v273_v23  ;;  %v282_v39 = vadd.f32 1.0, %v443_v54  ;;  %v285_v31 = vmul.f32 -0.5, %v443_v54  ;;  %v288_v27 = vand.u32 2147483647, %v443_v54 }
  0x4e   :  { %357 = vst [vmem:[%s823_s3 + $0x48] sm:$0xff] %v341_v14  ;;  %vm280_vm13 = vcmp.lt.f32.partialorder %v279_v38, 0.0004427343 }
  0x4f   :  { %v445_v46 = vpop.eup %444  ;;  %454 = vlog2.f32 %v282_v39  ;;  %v286_v26 = vadd.f32 1.0, %v285_v31  ;;  %vm289_vm14 = vcmp.lt.f32.partialorder %v288_v27, 0.0004427343 }
  0x50   :  { %v447_v51 = vpop.eup %446  ;;  %v342_v55 = vmul.f32 %v445_v46, %v583_v59  ;;  %v277_v59 = vadd.f32 1.0, %v276_v3 }
  0x51   :  { %v291_v15 = vadd.f32 1.0, %v447_v51  ;;  %v294_v63 = vmul.f32 -0.5, %v447_v51  ;;  %v287_v4 = vmul.f32 %v443_v54, %v286_v26  ;;  %v297_v41 = vand.u32 2147483647, %v447_v51 }
  0x52   :  { %358 = vst [vmem:[%s823_s3 + $0x50] sm:$0xff] %v342_v55  ;;  %v278_v0 = vmul.f32 %v439_v53, %v277_v59 }
  0x53   :  { %v449_v58 = vpop.eup %448  ;;  %456 = vlog2.f32 %v291_v15  ;;  %v295_v37 = vadd.f32 1.0, %v294_v63  ;;  %vm298_vm15 = vcmp.lt.f32.partialorder %v297_v41, 0.0004427343 }
  0x54   :  { %v343_v29 = vmul.f32 %v449_v58, %v587_v62 }
  0x55   :  { %v296_v56 = vmul.f32 %v447_v51, %v295_v37 }
  0x56   :  { %359 = vst [vmem:[%s823_s3 + $0x58] sm:$0xff] %v343_v29  ;;  %v451_v20 = vpop.eup %450 }
  0x57   :  { %v266_v28 = vmul.f32 0.6931472, %v451_v20 }
  0x59   :  { %v272_v25 = vsel %vm271_vm12, %v269_v10, %v266_v28 }
  0x5a   :  { %v453_v47 = vpop.eup %452  ;;  %v312_v62 = vadd.f32 %v272_v25, %v88_v24 }
  0x5b   :  { %v275_v40 = vmul.f32 0.6931472, %v453_v47 }
  0x5c   :  { %v455_v45 = vpop.eup %454  ;;  %458 = vtanh.f32 %v312_v62 }
  0x5d   :  { %v281_v33 = vsel %vm280_vm13, %v278_v0, %v275_v40  ;;  %v284_v13 = vmul.f32 0.6931472, %v455_v45 }
  0x5e   :  { %v313_v34 = vadd.f32 %v281_v33, %v89_v2 }
  0x5f   :  { %v290_v1 = vsel %vm289_vm14, %v287_v4, %v284_v13 }
  0x60   :  { %v457_v17 = vpop.eup %456  ;;  %460 = vtanh.f32 %v313_v34  ;;  %v314_v5 = vadd.f32 %v290_v1, %v90_v57 }
  0x61   :  { %v293_v36 = vmul.f32 0.6931472, %v457_v17 }
  0x62   :  { %462 = vtanh.f32 %v314_v5 }
  0x63   :  { %v299_v18 = vsel %vm298_vm15, %v296_v56, %v293_v36 }
  0x64   :  { %v315_v44 = vadd.f32 %v299_v18, %v91_v61 }
  0x66   :  { %464 = vtanh.f32 %v315_v44 }
  0x69   :  { %v459_v9 = vpop.eup %458 }
  0x6a   :  { %v344_v43 = vmul.f32 %v459_v9, %v621_v49 }
  0x6c   :  { %360 = vst [vmem:[%s823_s3 + $0x60] sm:$0xff] %v344_v43 }
  0x6d   :  { %v461_v8 = vpop.eup %460 }
  0x6e   :  { %v345_v60 = vmul.f32 %v461_v8, %v624_v50 }
  0x6f   :  { %v463_v19 = vpop.eup %462 }
  0x70   :  { %361 = vst [vmem:[%s823_s3 + $0x68] sm:$0xff] %v345_v60  ;;  %v346_v7 = vmul.f32 %v463_v19, %v627_v6 }
  0x72   :  { %362 = vst [vmem:[%s823_s3 + $0x70] sm:$0xff] %v346_v7 }
  0x73   :  { %v465_v52 = vpop.eup %464 }
  0x74   :  { %v347_v49 = vmul.f32 %v465_v52, %v630_v11 }
  0x76   :  { %363 = vst [vmem:[%s823_s3 + $0x78] sm:$0xff] %v347_v49 }

// kernel: resnet18_block_forward.45
= control target key start
LH: loop header
LB: loop body
LE: loop exit
PB: predicated region body
PF: predicated region fallthrough
CT: control target
= control target key end

     0   :  { %vm45_vm0 = vcmask 523264   ;;  %s515_s1 = inlined_call_operand.vmem [shape: f32[64,128], index: 1, kind: input, shape index: {}]   ;;  %s516_s0 = inlined_call_operand.vmem [shape: f32[128,64], index: 0, kind: input, shape index: {}]   ;;  %s517_s2 = inlined_call_operand.vmem [shape: f32[1,128], index: 2, kind: input, shape index: {}]   ;;  %s518_s3 = inlined_call_operand.vmem [shape: f32[128,128], index: 3, kind: output, shape index: {}]  }
   0x1   :  { %v37_v0 = vld [vmem:[%s515_s1 + $0x38] sm:$0xff]  ;;  %v36_v1 = vld [vmem:[%s515_s1 + $0x30] sm:$0xff]  ;;  %v35_v2 = vld [vmem:[%s515_s1 + $0x28] sm:$0xff] }
   0x2   :  { %300 = vmatprep.subr.mxu0 %v37_v0  ;;  %340 = vmatprep.subr.mxu1 %v37_v0  ;;  %v34_v3 = vld [vmem:[%s515_s1 + $0x20] sm:$0xff]  ;;  %v33_v4 = vld [vmem:[%s515_s1 + $0x18] sm:$0xff]  ;;  %v32_v5 = vld [vmem:[%s515_s1 + $0x10] sm:$0xff] }
   0x3   :  { %301 = vmatpush3.msra.mxu0 %v37_v0  ;;  %348 = vmatpush3.msra.mxu1 %v37_v0  ;;  %v31_v6 = vld [vmem:[%s515_s1 + $0x8] sm:$0xff]  ;;  %v30_v7 = vld [vmem:[%s515_s1] sm:$0xff]  ;;  %v16_v12 = vld [vmem:[%s516_s0 + $0x10] sm:$0xff] }
   0x4   :  { %302 = vmatprep.subr.mxu0 %v36_v1  ;;  %341 = vmatprep.subr.mxu1 %v36_v1  ;;  %v14_v8 = vld [vmem:[%s516_s0] sm:$0xff]  ;;  %v15_v10 = vld [vmem:[%s516_s0 + $0x8] sm:$0xff]  ;;  %v24_v13 = vld [vmem:[%s516_s0 + $0x50] sm:$0xff] }
   0x5   :  { %303 = vmatpush3.msra.mxu0 %v36_v1  ;;  %349 = vmatpush3.msra.mxu1 %v36_v1  ;;  %v22_v9 = vld [vmem:[%s516_s0 + $0x40] sm:$0xff]  ;;  %v23_v11 = vld [vmem:[%s516_s0 + $0x48] sm:$0xff]  ;;  %v17_v14 = vld [vmem:[%s516_s0 + $0x18] sm:$0xff] }
   0x6   :  { %304 = vmatprep.subr.mxu0 %v35_v2  ;;  %342 = vmatprep.subr.mxu1 %v35_v2  ;;  %v25_v15 = vld [vmem:[%s516_s0 + $0x58] sm:$0xff]  ;;  %v18_v16 = vld [vmem:[%s516_s0 + $0x20] sm:$0xff]  ;;  %v19_v18 = vld [vmem:[%s516_s0 + $0x28] sm:$0xff] }
   0x7   :  { %305 = vmatpush3.msra.mxu0 %v35_v2  ;;  %350 = vmatpush3.msra.mxu1 %v35_v2  ;;  %v26_v17 = vld [vmem:[%s516_s0 + $0x60] sm:$0xff]  ;;  %v27_v19 = vld [vmem:[%s516_s0 + $0x68] sm:$0xff]  ;;  %v20_v20 = vld [vmem:[%s516_s0 + $0x30] sm:$0xff] }
   0x8   :  { %306 = vmatprep.subr.mxu0 %v34_v3  ;;  %343 = vmatprep.subr.mxu1 %v34_v3  ;;  %v28_v21 = vld [vmem:[%s516_s0 + $0x70] sm:$0xff]  ;;  %v21_v22 = vld [vmem:[%s516_s0 + $0x38] sm:$0xff]  ;;  %v259_v24 = vld [vmem:[%s517_s2] ss:$0 sm:$0xff] }
   0x9   :  { %307 = vmatpush3.msra.mxu0 %v34_v3  ;;  %351 = vmatpush3.msra.mxu1 %v34_v3  ;;  %v29_v23 = vld [vmem:[%s516_s0 + $0x78] sm:$0xff] }
   0xa   :  { %308 = vmatprep.subr.mxu0 %v33_v4  ;;  %344 = vmatprep.subr.mxu1 %v33_v4 }
   0xb   :  { %309 = vmatpush3.msra.mxu0 %v33_v4  ;;  %352 = vmatpush3.msra.mxu1 %v33_v4 }
   0xc   :  { %310 = vmatprep.subr.mxu0 %v32_v5  ;;  %345 = vmatprep.subr.mxu1 %v32_v5 }
   0xd   :  { %311 = vmatpush3.msra.mxu0 %v32_v5  ;;  %353 = vmatpush3.msra.mxu1 %v32_v5 }
   0xe   :  { %312 = vmatprep.subr.mxu0 %v31_v6  ;;  %346 = vmatprep.subr.mxu1 %v31_v6 }
   0xf   :  { %313 = vmatpush3.msra.mxu0 %v31_v6  ;;  %354 = vmatpush3.msra.mxu1 %v31_v6 }
  0x10   :  { %314 = vmatprep.subr.mxu0 %v30_v7  ;;  %347 = vmatprep.subr.mxu1 %v30_v7 }
  0x11   :  { %315 = vmatpush3.msra.mxu0 %v30_v7  ;;  %355 = vmatpush3.msra.mxu1 %v30_v7 }
  0x12   :  { %316 = vmatprep.mubr.msk.f32.mxu0 %vm45_vm0, %v14_v8  ;;  %328 = vmatprep.mubr.msk.f32.mxu1 %vm45_vm0, %v22_v9 }
  0x13   :  { %317 = vmatmul.mubr.msk.f32.vlgmr.msra.gmra.mxu0 %vm45_vm0, %v15_v10  ;;  %329 = vmatmul.mubr.msk.f32.vlgmr.msra.gmra.mxu1 %vm45_vm0, %v23_v11 }
  0x14   :  { %319 = vmatprep.mubr.msk.f32.mxu0 %vm45_vm0, %v16_v12  ;;  %331 = vmatprep.mubr.msk.f32.mxu1 %vm45_vm0, %v24_v13 }
  0x17   :  { %320 = vmatmul.mubr.msk.f32.gmra.mxu0 %vm45_vm0, %v17_v14  ;;  %332 = vmatmul.mubr.msk.f32.gmra.mxu1 %vm45_vm0, %v25_v15 }
  0x18   :  { %322 = vmatprep.mubr.msk.f32.mxu0 %vm45_vm0, %v18_v16  ;;  %334 = vmatprep.mubr.msk.f32.mxu1 %vm45_vm0, %v26_v17 }
  0x1b   :  { %323 = vmatmul.mubr.msk.f32.gmra.mxu0 %vm45_vm0, %v19_v18  ;;  %335 = vmatmul.mubr.msk.f32.gmra.mxu1 %vm45_vm0, %v27_v19 }
  0x1c   :  { %325 = vmatprep.mubr.msk.f32.mxu0 %vm45_vm0, %v20_v20  ;;  %337 = vmatprep.mubr.msk.f32.mxu1 %vm45_vm0, %v28_v21 }
  0x1f   :  { %326 = vmatmul.mubr.msk.f32.gmra.mxu0 %vm45_vm0, %v21_v22  ;;  %338 = vmatmul.mubr.msk.f32.gmra.mxu1 %vm45_vm0, %v29_v23 }
  0xd3   :  { %v318_v25 = vpop.f32.mrf.mxu0  ;;  %v330_v26 = vpop.f32.mrf.mxu1 }
  0xd4   :  { %v166_v27 = vadd.f32 %v318_v25, %v259_v24  ;;  %v206_v28 = vadd.f32 %v330_v26, %v259_v24 }
  0xd5   :  { %v160_v29 = vpop.f32.mrf.mxu0  ;;  %v200_v30 = vpop.f32.mrf.mxu1 }
  0xd6   :  { %240 = vst [vmem:[%s518_s3 + $0x8] sm:$0xff] %v166_v27  ;;  %248 = vst [vmem:[%s518_s3 + $0x48] sm:$0xff] %v206_v28  ;;  %v161_v31 = vadd.f32 %v259_v24, %v160_v29  ;;  %v201_v32 = vadd.f32 %v259_v24, %v200_v30 }
  0xd7   :  { %v321_v33 = vpop.f32.mrf.mxu0  ;;  %v333_v34 = vpop.f32.mrf.mxu1 }
  0xd8   :  { %239 = vst [vmem:[%s518_s3] sm:$0xff] %v161_v31  ;;  %247 = vst [vmem:[%s518_s3 + $0x40] sm:$0xff] %v201_v32  ;;  %v176_v35 = vadd.f32 %v321_v33, %v259_v24  ;;  %v216_v36 = vadd.f32 %v333_v34, %v259_v24 }
  0xd9   :  { %v170_v37 = vpop.f32.mrf.mxu0  ;;  %v210_v38 = vpop.f32.mrf.mxu1 }
  0xda   :  { %242 = vst [vmem:[%s518_s3 + $0x18] sm:$0xff] %v176_v35  ;;  %250 = vst [vmem:[%s518_s3 + $0x58] sm:$0xff] %v216_v36  ;;  %v171_v39 = vadd.f32 %v259_v24, %v170_v37  ;;  %v211_v40 = vadd.f32 %v259_v24, %v210_v38 }
  0xdb   :  { %v324_v41 = vpop.f32.mrf.mxu0  ;;  %v336_v42 = vpop.f32.mrf.mxu1 }
  0xdc   :  { %241 = vst [vmem:[%s518_s3 + $0x10] sm:$0xff] %v171_v39  ;;  %249 = vst [vmem:[%s518_s3 + $0x50] sm:$0xff] %v211_v40  ;;  %v186_v43 = vadd.f32 %v324_v41, %v259_v24  ;;  %v226_v44 = vadd.f32 %v336_v42, %v259_v24 }
  0xdd   :  { %v180_v45 = vpop.f32.mrf.mxu0  ;;  %v220_v46 = vpop.f32.mrf.mxu1 }
  0xde   :  { %244 = vst [vmem:[%s518_s3 + $0x28] sm:$0xff] %v186_v43  ;;  %252 = vst [vmem:[%s518_s3 + $0x68] sm:$0xff] %v226_v44  ;;  %v181_v47 = vadd.f32 %v259_v24, %v180_v45  ;;  %v221_v48 = vadd.f32 %v259_v24, %v220_v46 }
  0xdf   :  { %v327_v49 = vpop.f32.mrf.mxu0  ;;  %v339_v50 = vpop.f32.mrf.mxu1 }
  0xe0   :  { %243 = vst [vmem:[%s518_s3 + $0x20] sm:$0xff] %v181_v47  ;;  %251 = vst [vmem:[%s518_s3 + $0x60] sm:$0xff] %v221_v48  ;;  %v196_v51 = vadd.f32 %v327_v49, %v259_v24  ;;  %v236_v52 = vadd.f32 %v339_v50, %v259_v24 }
  0xe1   :  { %v190_v53 = vpop.f32.mrf.mxu0  ;;  %v230_v54 = vpop.f32.mrf.mxu1 }
  0xe2   :  { %246 = vst [vmem:[%s518_s3 + $0x38] sm:$0xff] %v196_v51  ;;  %254 = vst [vmem:[%s518_s3 + $0x78] sm:$0xff] %v236_v52  ;;  %v191_v55 = vadd.f32 %v259_v24, %v190_v53  ;;  %v231_v56 = vadd.f32 %v259_v24, %v230_v54 }
  0xe4   :  { %245 = vst [vmem:[%s518_s3 + $0x30] sm:$0xff] %v191_v55  ;;  %253 = vst [vmem:[%s518_s3 + $0x70] sm:$0xff] %v231_v56 }

// kernel: resnet18_block_forward.46
= control target key start
LH: loop header
LB: loop body
LE: loop exit
PB: predicated region body
PF: predicated region fallthrough
CT: control target
= control target key end

     0   :  { %vm176_vm0 = vcmask 523264   ;;  %s1775_s1 = inlined_call_operand.vmem [shape: f32[576,128], index: 1, kind: input, shape index: {}]   ;;  %s1776_s0 = inlined_call_operand.vmem [shape: f32[128,576], index: 0, kind: input, shape index: {}]   ;;  %s1777_s4 = inlined_call_operand.vmem [shape: f32[1,128], index: 4, kind: output, shape index: {1}]   ;;  %s1778_s5 = inlined_call_operand.vmem [shape: f32[1,128], index: 5, kind: output, shape index: {2}]   ;;  %s1779_s2 = inlined_call_operand.vmem [shape: f32[1,128], index: 2, kind: input, shape index: {}]   ;;  %s1780_s3 = inlined_call_operand.vmem [shape: f32[128,128], index: 3, kind: output, shape index: {0}]  }
   0x1   :  { %v128_v0 = vld [vmem:[%s1775_s1 + $0xf8] sm:$0xff]  ;;  %v127_v4 = vld [vmem:[%s1775_s1 + $0xf0] sm:$0xff]  ;;  %v126_v8 = vld [vmem:[%s1775_s1 + $0xe8] sm:$0xff] }
   0x2   :  { %v160_v1 = vld [vmem:[%s1775_s1 + $0x1f8] sm:$0xff]  ;;  %842 = vmatprep.subr.mxu0 %v128_v0  ;;  %v159_v5 = vld [vmem:[%s1775_s1 + $0x1f0] sm:$0xff]  ;;  %v158_v9 = vld [vmem:[%s1775_s1 + $0x1e8] sm:$0xff] }
   0x3   :  { %v112_v2 = vld [vmem:[%s1775_s1 + $0x78] sm:$0xff]  ;;  %922 = vmatprep.subr.mxu1 %v160_v1  ;;  %v111_v6 = vld [vmem:[%s1775_s1 + $0x70] sm:$0xff]  ;;  %v110_v10 = vld [vmem:[%s1775_s1 + $0x68] sm:$0xff] }
   0x4   :  { %v144_v3 = vld [vmem:[%s1775_s1 + $0x178] sm:$0xff]  ;;  %843 = vmatpush3.msra.mxu0 %v112_v2  ;;  %v143_v7 = vld [vmem:[%s1775_s1 + $0x170] sm:$0xff]  ;;  %v142_v11 = vld [vmem:[%s1775_s1 + $0x168] sm:$0xff] }
   0x5   :  { %923 = vmatpush3.msra.mxu1 %v144_v3  ;;  %844 = vmatprep.subr.mxu0 %v127_v4  ;;  %v125_v12 = vld [vmem:[%s1775_s1 + $0xe0] sm:$0xff]  ;;  %v124_v16 = vld [vmem:[%s1775_s1 + $0xd8] sm:$0xff]  ;;  %v123_v20 = vld [vmem:[%s1775_s1 + $0xd0] sm:$0xff] }
   0x6   :  { %924 = vmatprep.subr.mxu1 %v159_v5  ;;  %845 = vmatpush3.msra.mxu0 %v111_v6  ;;  %v157_v13 = vld [vmem:[%s1775_s1 + $0x1e0] sm:$0xff]  ;;  %v156_v17 = vld [vmem:[%s1775_s1 + $0x1d8] sm:$0xff]  ;;  %v155_v21 = vld [vmem:[%s1775_s1 + $0x1d0] sm:$0xff] }
   0x7   :  { %925 = vmatpush3.msra.mxu1 %v143_v7  ;;  %846 = vmatprep.subr.mxu0 %v126_v8  ;;  %v109_v14 = vld [vmem:[%s1775_s1 + $0x60] sm:$0xff]  ;;  %v108_v18 = vld [vmem:[%s1775_s1 + $0x58] sm:$0xff]  ;;  %v107_v22 = vld [vmem:[%s1775_s1 + $0x50] sm:$0xff] }
   0x8   :  { %926 = vmatprep.subr.mxu1 %v158_v9  ;;  %v141_v15 = vld [vmem:[%s1775_s1 + $0x160] sm:$0xff]  ;;  %847 = vmatpush3.msra.mxu0 %v110_v10  ;;  %v140_v19 = vld [vmem:[%s1775_s1 + $0x158] sm:$0xff]  ;;  %v139_v23 = vld [vmem:[%s1775_s1 + $0x150] sm:$0xff] }
   0x9   :  { %927 = vmatpush3.msra.mxu1 %v142_v11  ;;  %848 = vmatprep.subr.mxu0 %v125_v12  ;;  %v122_v24 = vld [vmem:[%s1775_s1 + $0xc8] sm:$0xff]  ;;  %v121_v28 = vld [vmem:[%s1775_s1 + $0xc0] sm:$0xff]  ;;  %v120_v32 = vld [vmem:[%s1775_s1 + $0xb8] sm:$0xff] }
   0xa   :  { %928 = vmatprep.subr.mxu1 %v157_v13  ;;  %849 = vmatpush3.msra.mxu0 %v109_v14  ;;  %v154_v25 = vld [vmem:[%s1775_s1 + $0x1c8] sm:$0xff]  ;;  %v153_v29 = vld [vmem:[%s1775_s1 + $0x1c0] sm:$0xff]  ;;  %v152_v33 = vld [vmem:[%s1775_s1 + $0x1b8] sm:$0xff] }
   0xb   :  { %929 = vmatpush3.msra.mxu1 %v141_v15  ;;  %850 = vmatprep.subr.mxu0 %v124_v16  ;;  %v106_v26 = vld [vmem:[%s1775_s1 + $0x48] sm:$0xff]  ;;  %v105_v30 = vld [vmem:[%s1775_s1 + $0x40] sm:$0xff]  ;;  %v104_v34 = vld [vmem:[%s1775_s1 + $0x38] sm:$0xff] }
   0xc   :  { %930 = vmatprep.subr.mxu1 %v156_v17  ;;  %851 = vmatpush3.msra.mxu0 %v108_v18  ;;  %v138_v27 = vld [vmem:[%s1775_s1 + $0x148] sm:$0xff]  ;;  %v137_v31 = vld [vmem:[%s1775_s1 + $0x140] sm:$0xff]  ;;  %v136_v35 = vld [vmem:[%s1775_s1 + $0x138] sm:$0xff] }
   0xd   :  { %931 = vmatpush3.msra.mxu1 %v140_v19  ;;  %852 = vmatprep.subr.mxu0 %v123_v20  ;;  %v119_v36 = vld [vmem:[%s1775_s1 + $0xb0] sm:$0xff]  ;;  %v118_v40 = vld [vmem:[%s1775_s1 + $0xa8] sm:$0xff]  ;;  %v117_v44 = vld [vmem:[%s1775_s1 + $0xa0] sm:$0xff] }
   0xe   :  { %932 = vmatprep.subr.mxu1 %v155_v21  ;;  %853 = vmatpush3.msra.mxu0 %v107_v22  ;;  %v151_v37 = vld [vmem:[%s1775_s1 + $0x1b0] sm:$0xff]  ;;  %v150_v41 = vld [vmem:[%s1775_s1 + $0x1a8] sm:$0xff]  ;;  %v149_v45 = vld [vmem:[%s1775_s1 + $0x1a0] sm:$0xff] }
   0xf   :  { %933 = vmatpush3.msra.mxu1 %v139_v23  ;;  %854 = vmatprep.subr.mxu0 %v122_v24  ;;  %v103_v38 = vld [vmem:[%s1775_s1 + $0x30] sm:$0xff]  ;;  %v102_v42 = vld [vmem:[%s1775_s1 + $0x28] sm:$0xff]  ;;  %v101_v46 = vld [vmem:[%s1775_s1 + $0x20] sm:$0xff] }
  0x10   :  { %934 = vmatprep.subr.mxu1 %v154_v25  ;;  %855 = vmatpush3.msra.mxu0 %v106_v26  ;;  %v135_v39 = vld [vmem:[%s1775_s1 + $0x130] sm:$0xff]  ;;  %v134_v43 = vld [vmem:[%s1775_s1 + $0x128] sm:$0xff]  ;;  %v133_v47 = vld [vmem:[%s1775_s1 + $0x120] sm:$0xff] }
  0x11   :  { %935 = vmatpush3.msra.mxu1 %v138_v27  ;;  %856 = vmatprep.subr.mxu0 %v121_v28  ;;  %v116_v48 = vld [vmem:[%s1775_s1 + $0x98] sm:$0xff]  ;;  %v115_v52 = vld [vmem:[%s1775_s1 + $0x90] sm:$0xff]  ;;  %v114_v56 = vld [vmem:[%s1775_s1 + $0x88] sm:$0xff] }
  0x12   :  { %936 = vmatprep.subr.mxu1 %v153_v29  ;;  %857 = vmatpush3.msra.mxu0 %v105_v30  ;;  %v148_v49 = vld [vmem:[%s1775_s1 + $0x198] sm:$0xff]  ;;  %v147_v53 = vld [vmem:[%s1775_s1 + $0x190] sm:$0xff]  ;;  %v146_v57 = vld [vmem:[%s1775_s1 + $0x188] sm:$0xff] }
  0x13   :  { %937 = vmatpush3.msra.mxu1 %v137_v31  ;;  %858 = vmatprep.subr.mxu0 %v120_v32  ;;  %v100_v50 = vld [vmem:[%s1775_s1 + $0x18] sm:$0xff]  ;;  %v99_v54 = vld [vmem:[%s1775_s1 + $0x10] sm:$0xff]  ;;  %v98_v58 = vld [vmem:[%s1775_s1 + $0x8] sm:$0xff] }
  0x14   :  { %938 = vmatprep.subr.mxu1 %v152_v33  ;;  %859 = vmatpush3.msra.mxu0 %v104_v34  ;;  %v132_v51 = vld [vmem:[%s1775_s1 + $0x118] sm:$0xff]  ;;  %v131_v55 = vld [vmem:[%s1775_s1 + $0x110] sm:$0xff]  ;;  %v130_v59 = vld [vmem:[%s1775_s1 + $0x108] sm:$0xff] }
  0x15   :  { %939 = vmatpush3.msra.mxu1 %v136_v35  ;;  %860 = vmatprep.subr.mxu0 %v119_v36  ;;  %v113_v60 = vld [vmem:[%s1775_s1 + $0x80] sm:$0xff]  ;;  %v18_v63 = vld [vmem:[%s1776_s0 + $0x8] sm:$0xff]  ;;  %v20_v1 = vld [vmem:[%s1776_s0 + $0x18] sm:$0xff] }
  0x16   :  { %940 = vmatprep.subr.mxu1 %v151_v37  ;;  %861 = vmatpush3.msra.mxu0 %v103_v38  ;;  %v145_v61 = vld [vmem:[%s1775_s1 + $0x180] sm:$0xff]  ;;  %v19_v3 = vld [vmem:[%s1776_s0 + $0x10] sm:$0xff]  ;;  %v168_v4 = vld [vmem:[%s1775_s1 + $0x238] sm:$0xff] }
  0x17   :  { %941 = vmatpush3.msra.mxu1 %v135_v39  ;;  %862 = vmatprep.subr.mxu0 %v118_v40  ;;  %v97_v62 = vld [vmem:[%s1775_s1] sm:$0xff]  ;;  %v23_v5 = vld [vmem:[%s1776_s0 + $0x30] sm:$0xff]  ;;  %v22_v8 = vld [vmem:[%s1776_s0 + $0x28] sm:$0xff] }
  0x18   :  { %942 = vmatprep.subr.mxu1 %v150_v41  ;;  %863 = vmatpush3.msra.mxu0 %v102_v42  ;;  %v129_v0 = vld [vmem:[%s1775_s1 + $0x100] sm:$0xff]  ;;  %v167_v7 = vld [vmem:[%s1775_s1 + $0x230] sm:$0xff]  ;;  %v24_v9 = vld [vmem:[%s1776_s0 + $0x38] sm:$0xff] }
  0x19   :  { %943 = vmatpush3.msra.mxu1 %v134_v43  ;;  %864 = vmatprep.subr.mxu0 %v117_v44  ;;  %v17_v2 = vld [vmem:[%s1776_s0] sm:$0xff]  ;;  %v28_v10 = vld [vmem:[%s1776_s0 + $0x58] sm:$0xff]  ;;  %v30_v11 = vld [vmem:[%s1776_s0 + $0x68] sm:$0xff] }
  0x1a   :  { %944 = vmatprep.subr.mxu1 %v149_v45  ;;  %865 = vmatpush3.msra.mxu0 %v101_v46  ;;  %v25_v6 = vld [vmem:[%s1776_s0 + $0x40] sm:$0xff]  ;;  %v166_v12 = vld [vmem:[%s1775_s1 + $0x228] sm:$0xff]  ;;  %v27_v13 = vld [vmem:[%s1776_s0 + $0x50] sm:$0xff] }
  0x1b   :  { %945 = vmatpush3.msra.mxu1 %v133_v47  ;;  %866 = vmatprep.subr.mxu0 %v116_v48  ;;  %v29_v14 = vld [vmem:[%s1776_s0 + $0x60] sm:$0xff]  ;;  %v35_v16 = vld [vmem:[%s1776_s0 + $0x90] sm:$0xff]  ;;  %v32_v18 = vld [vmem:[%s1776_s0 + $0x78] sm:$0xff] }
  0x1c   :  { %946 = vmatprep.subr.mxu1 %v148_v49  ;;  %867 = vmatpush3.msra.mxu0 %v100_v50  ;;  %v33_v15 = vld [vmem:[%s1776_s0 + $0x80] sm:$0xff]  ;;  %v34_v19 = vld [vmem:[%s1776_s0 + $0x88] sm:$0xff]  ;;  %v40_v21 = vld [vmem:[%s1776_s0 + $0xb8] sm:$0xff] }
  0x1d   :  { %947 = vmatpush3.msra.mxu1 %v132_v51  ;;  %868 = vmatprep.subr.mxu0 %v115_v52  ;;  %v165_v17 = vld [vmem:[%s1775_s1 + $0x220] sm:$0xff]  ;;  %v38_v20 = vld [vmem:[%s1776_s0 + $0xa8] sm:$0xff]  ;;  %v164_v22 = vld [vmem:[%s1775_s1 + $0x218] sm:$0xff] }
  0x1e   :  { %948 = vmatprep.subr.mxu1 %v147_v53  ;;  %869 = vmatpush3.msra.mxu0 %v99_v54  ;;  %v37_v23 = vld [vmem:[%s1776_s0 + $0xa0] sm:$0xff]  ;;  %v39_v24 = vld [vmem:[%s1776_s0 + $0xb0] sm:$0xff]  ;;  %v42_v28 = vld [vmem:[%s1776_s0 + $0xc8] sm:$0xff] }
  0x1f   :  { %949 = vmatpush3.msra.mxu1 %v131_v55  ;;  %870 = vmatprep.subr.mxu0 %v114_v56  ;;  %v43_v25 = vld [vmem:[%s1776_s0 + $0xd0] sm:$0xff]  ;;  %v45_v26 = vld [vmem:[%s1776_s0 + $0xe0] sm:$0xff]  ;;  %v44_v29 = vld [vmem:[%s1776_s0 + $0xd8] sm:$0xff] }
  0x20   :  { %950 = vmatprep.subr.mxu1 %v146_v57  ;;  %871 = vmatpush3.msra.mxu0 %v98_v58  ;;  %v163_v27 = vld [vmem:[%s1775_s1 + $0x210] sm:$0xff]  ;;  %v48_v30 = vld [vmem:[%s1776_s0 + $0xf8] sm:$0xff]  ;;  %v50_v31 = vld [vmem:[%s1776_s0 + $0x108] sm:$0xff] }
  0x21   :  { %951 = vmatpush3.msra.mxu1 %v130_v59  ;;  %872 = vmatprep.subr.mxu0 %v113_v60  ;;  %v162_v32 = vld [vmem:[%s1775_s1 + $0x208] sm:$0xff]  ;;  %v47_v33 = vld [vmem:[%s1776_s0 + $0xf0] sm:$0xff]  ;;  %v49_v34 = vld [vmem:[%s1776_s0 + $0x100] sm:$0xff] }
  0x22   :  { %952 = vmatprep.subr.mxu1 %v145_v61  ;;  %873 = vmatpush3.msra.mxu0 %v97_v62  ;;  %v53_v35 = vld [vmem:[%s1776_s0 + $0x120] sm:$0xff]  ;;  %v55_v36 = vld [vmem:[%s1776_s0 + $0x130] sm:$0xff]  ;;  %v52_v38 = vld [vmem:[%s1776_s0 + $0x118] sm:$0xff] }
  0x23   :  { %289 = vmatprep.mubr.f32.mxu0 %v18_v63  ;;  %953 = vmatpush3.msra.mxu1 %v129_v0  ;;  %v161_v37 = vld [vmem:[%s1775_s1 + $0x200] sm:$0xff]  ;;  %v54_v39 = vld [vmem:[%s1776_s0 + $0x128] sm:$0xff]  ;;  %v60_v41 = vld [vmem:[%s1776_s0 + $0x158] sm:$0xff] }
  0x24   :  { %434 = vmatprep.mubr.f32.mxu1 %v20_v1  ;;  %290 = vmatmul.mubr.f32.vlgmr.msra.gmra.mxu0 %v17_v2  ;;  %v58_v40 = vld [vmem:[%s1776_s0 + $0x148] sm:$0xff]  ;;  %v57_v42 = vld [vmem:[%s1776_s0 + $0x140] sm:$0xff]  ;;  %v59_v43 = vld [vmem:[%s1776_s0 + $0x150] sm:$0xff] }
  0x25   :  { %435 = vmatmul.mubr.f32.vlgmr.msra.gmra.mxu1 %v19_v3  ;;  %1026 = vmatprep.subr.mxu0 %v168_v4  ;;  %v63_v44 = vld [vmem:[%s1776_s0 + $0x170] sm:$0xff]  ;;  %v65_v45 = vld [vmem:[%s1776_s0 + $0x180] sm:$0xff]  ;;  %v62_v46 = vld [vmem:[%s1776_s0 + $0x168] sm:$0xff] }
  0x26   :  { %294 = vmatprep.mubr.f32.mxu0 %v23_v5  ;;  %1027 = vmatpush3.msra.mxu0 %v168_v4  ;;  %v64_v47 = vld [vmem:[%s1776_s0 + $0x178] sm:$0xff]  ;;  %v70_v49 = vld [vmem:[%s1776_s0 + $0x1a8] sm:$0xff]  ;;  %v67_v50 = vld [vmem:[%s1776_s0 + $0x190] sm:$0xff] }
  0x27   :  { %439 = vmatprep.mubr.f32.mxu1 %v25_v6  ;;  %1028 = vmatprep.subr.mxu0 %v167_v7  ;;  %v68_v48 = vld [vmem:[%s1776_s0 + $0x198] sm:$0xff]  ;;  %v69_v51 = vld [vmem:[%s1776_s0 + $0x1a0] sm:$0xff]  ;;  %v75_v53 = vld [vmem:[%s1776_s0 + $0x1d0] sm:$0xff] }
  0x28   :  { %1066 = vmatprep.subr.mxu1 %v168_v4  ;;  %295 = vmatmul.mubr.f32.gmra.mxu0 %v22_v8  ;;  %v73_v52 = vld [vmem:[%s1776_s0 + $0x1c0] sm:$0xff]  ;;  %v72_v54 = vld [vmem:[%s1776_s0 + $0x1b8] sm:$0xff]  ;;  %v74_v55 = vld [vmem:[%s1776_s0 + $0x1c8] sm:$0xff] }
  0x29   :  { %440 = vmatmul.mubr.f32.gmra.mxu1 %v24_v9  ;;  %299 = vmatprep.mubr.f32.mxu0 %v28_v10  ;;  %v78_v56 = vld [vmem:[%s1776_s0 + $0x1e8] sm:$0xff]  ;;  %v80_v57 = vld [vmem:[%s1776_s0 + $0x1f8] sm:$0xff]  ;;  %v77_v58 = vld [vmem:[%s1776_s0 + $0x1e0] sm:$0xff] }
  0x2a   :  { %444 = vmatprep.mubr.f32.mxu1 %v30_v11  ;;  %1029 = vmatpush3.msra.mxu0 %v167_v7  ;;  %v79_v59 = vld [vmem:[%s1776_s0 + $0x1f0] sm:$0xff]  ;;  %v85_v61 = vld [vmem:[%s1776_s0 + $0x220] sm:$0xff]  ;;  %v82_v62 = vld [vmem:[%s1776_s0 + $0x208] sm:$0xff] }
  0x2b   :  { %1074 = vmatpush3.msra.mxu1 %v168_v4  ;;  %1030 = vmatprep.subr.mxu0 %v166_v12  ;;  %v83_v60 = vld [vmem:[%s1776_s0 + $0x210] sm:$0xff]  ;;  %v84_v63 = vld [vmem:[%s1776_s0 + $0x218] sm:$0xff]  ;;  %v90_v1 = vld [vmem:[%s1776_s0 + $0x248] sm:$0xff] }
  0x2c   :  { %1067 = vmatprep.subr.mxu1 %v167_v7  ;;  %300 = vmatmul.mubr.f32.gmra.mxu0 %v27_v13  ;;  %v88_v0 = vld [vmem:[%s1776_s0 + $0x238] sm:$0xff]  ;;  %v87_v2 = vld [vmem:[%s1776_s0 + $0x230] sm:$0xff]  ;;  %v89_v3 = vld [vmem:[%s1776_s0 + $0x240] sm:$0xff] }
  0x2d   :  { %445 = vmatmul.mubr.f32.gmra.mxu1 %v29_v14  ;;  %304 = vmatprep.mubr.f32.mxu0 %v33_v15  ;;  %v93_v4 = vld [vmem:[%s1776_s0 + $0x260] sm:$0xff]  ;;  %v95_v5 = vld [vmem:[%s1776_s0 + $0x270] sm:$0xff]  ;;  %v92_v6 = vld [vmem:[%s1776_s0 + $0x258] sm:$0xff] }
  0x2e   :  { %449 = vmatprep.mubr.f32.mxu1 %v35_v16  ;;  %1031 = vmatpush3.msra.mxu0 %v166_v12  ;;  %v21_v8 = vld [vmem:[%s1776_s0 + $0x20] sm:$0xff]  ;;  %v26_v10 = vld [vmem:[%s1776_s0 + $0x48] sm:$0xff]  ;;  %v71_v13 = vld [vmem:[%s1776_s0 + $0x1b0] sm:$0xff] }
  0x2f   :  { %1075 = vmatpush3.msra.mxu1 %v167_v7  ;;  %1032 = vmatprep.subr.mxu0 %v165_v17  ;;  %v94_v7 = vld [vmem:[%s1776_s0 + $0x268] sm:$0xff]  ;;  %v61_v9 = vld [vmem:[%s1776_s0 + $0x160] sm:$0xff]  ;;  %v36_v14 = vld [vmem:[%s1776_s0 + $0x98] sm:$0xff] }
  0x30   :  { %1068 = vmatprep.subr.mxu1 %v166_v12  ;;  %305 = vmatmul.mubr.f32.gmra.mxu0 %v32_v18  ;;  %v66_v11 = vld [vmem:[%s1776_s0 + $0x188] sm:$0xff]  ;;  %v76_v15 = vld [vmem:[%s1776_s0 + $0x1d8] sm:$0xff]  ;;  %v41_v16 = vld [vmem:[%s1776_s0 + $0xc0] sm:$0xff] }
  0x31   :  { %450 = vmatmul.mubr.f32.gmra.mxu1 %v34_v19  ;;  %309 = vmatprep.mubr.f32.mxu0 %v38_v20  ;;  %v46_v18 = vld [vmem:[%s1776_s0 + $0xe8] sm:$0xff]  ;;  %v51_v20 = vld [vmem:[%s1776_s0 + $0x110] sm:$0xff] }
  0x32   :  { %454 = vmatprep.mubr.f32.mxu1 %v40_v21  ;;  %1033 = vmatpush3.msra.mxu0 %v165_v17  ;;  %v86_v19 = vld [vmem:[%s1776_s0 + $0x228] sm:$0xff]  ;;  %v91_v21 = vld [vmem:[%s1776_s0 + $0x250] sm:$0xff] }
  0x33   :  { %1076 = vmatpush3.msra.mxu1 %v166_v12  ;;  %1034 = vmatprep.subr.mxu0 %v164_v22  ;;  %v31_v12 = vld [vmem:[%s1776_s0 + $0x70] sm:$0xff] }
  0x34   :  { %1069 = vmatprep.subr.mxu1 %v165_v17  ;;  %310 = vmatmul.mubr.f32.gmra.mxu0 %v37_v23  ;;  %v96_v23 = vld [vmem:[%s1776_s0 + $0x278] sm:$0xff] }
  0x35   :  { %455 = vmatmul.mubr.f32.gmra.mxu1 %v39_v24  ;;  %314 = vmatprep.mubr.f32.mxu0 %v43_v25  ;;  %v1083_v24 = vmov 0.0  }
  0x36   :  { %459 = vmatprep.mubr.f32.mxu1 %v45_v26  ;;  %1035 = vmatpush3.msra.mxu0 %v164_v22  ;;  %747 = vst [vmem:[%s1777_s4] sm:$0x1] %v1083_v24  ;;  %748 = vst [vmem:[%s1778_s5] sm:$0x1] %v1083_v24 }
  0x37   :  { %1077 = vmatpush3.msra.mxu1 %v165_v17  ;;  %1036 = vmatprep.subr.mxu0 %v163_v27  ;;  %v81_v17 = vld [vmem:[%s1776_s0 + $0x200] sm:$0xff] }
  0x38   :  { %1070 = vmatprep.subr.mxu1 %v164_v22  ;;  %315 = vmatmul.mubr.f32.gmra.mxu0 %v42_v28 }
  0x39   :  { %460 = vmatmul.mubr.f32.gmra.mxu1 %v44_v29  ;;  %319 = vmatprep.mubr.f32.mxu0 %v48_v30 }
  0x3a   :  { %464 = vmatprep.mubr.f32.mxu1 %v50_v31  ;;  %1037 = vmatpush3.msra.mxu0 %v163_v27 }
  0x3b   :  { %1078 = vmatpush3.msra.mxu1 %v164_v22  ;;  %1038 = vmatprep.subr.mxu0 %v162_v32  ;;  %v56_v22 = vld [vmem:[%s1776_s0 + $0x138] sm:$0xff] }
  0x3c   :  { %1071 = vmatprep.subr.mxu1 %v163_v27  ;;  %320 = vmatmul.mubr.f32.gmra.mxu0 %v47_v33 }
  0x3d   :  { %465 = vmatmul.mubr.f32.gmra.mxu1 %v49_v34  ;;  %324 = vmatprep.mubr.f32.mxu0 %v53_v35 }
  0x3e   :  { %469 = vmatprep.mubr.f32.mxu1 %v55_v36  ;;  %1039 = vmatpush3.msra.mxu0 %v162_v32 }
  0x3f   :  { %1079 = vmatpush3.msra.mxu1 %v163_v27  ;;  %1040 = vmatprep.subr.mxu0 %v161_v37 }
  0x40   :  { %1072 = vmatprep.subr.mxu1 %v162_v32  ;;  %325 = vmatmul.mubr.f32.gmra.mxu0 %v52_v38 }
  0x41   :  { %470 = vmatmul.mubr.f32.gmra.mxu1 %v54_v39  ;;  %329 = vmatprep.mubr.f32.mxu0 %v58_v40 }
  0x42   :  { %474 = vmatprep.mubr.f32.mxu1 %v60_v41  ;;  %1041 = vmatpush3.msra.mxu0 %v161_v37 }
  0x43   :  { %1080 = vmatpush3.msra.mxu1 %v162_v32 }
  0x44   :  { %1073 = vmatprep.subr.mxu1 %v161_v37  ;;  %330 = vmatmul.mubr.f32.gmra.mxu0 %v57_v42 }
  0x45   :  { %475 = vmatmul.mubr.f32.gmra.mxu1 %v59_v43  ;;  %334 = vmatprep.mubr.f32.mxu0 %v63_v44 }
  0x46   :  { %479 = vmatprep.mubr.f32.mxu1 %v65_v45  ;;  %1081 = vmatpush3.msra.mxu1 %v161_v37 }
  0x48   :  { %335 = vmatmul.mubr.f32.gmra.mxu0 %v62_v46 }
  0x49   :  { %480 = vmatmul.mubr.f32.gmra.mxu1 %v64_v47  ;;  %339 = vmatprep.mubr.f32.mxu0 %v68_v48 }
  0x4a   :  { %484 = vmatprep.mubr.f32.mxu1 %v70_v49 }
  0x4c   :  { %340 = vmatmul.mubr.f32.gmra.mxu0 %v67_v50 }
  0x4d   :  { %485 = vmatmul.mubr.f32.gmra.mxu1 %v69_v51  ;;  %344 = vmatprep.mubr.f32.mxu0 %v73_v52 }
  0x4e   :  { %489 = vmatprep.mubr.f32.mxu1 %v75_v53 }
  0x50   :  { %345 = vmatmul.mubr.f32.gmra.mxu0 %v72_v54 }
  0x51   :  { %490 = vmatmul.mubr.f32.gmra.mxu1 %v74_v55  ;;  %349 = vmatprep.mubr.f32.mxu0 %v78_v56 }
  0x52   :  { %494 = vmatprep.mubr.f32.mxu1 %v80_v57 }
  0x54   :  { %350 = vmatmul.mubr.f32.gmra.mxu0 %v77_v58 }
  0x55   :  { %495 = vmatmul.mubr.f32.gmra.mxu1 %v79_v59  ;;  %354 = vmatprep.mubr.f32.mxu0 %v83_v60 }
  0x56   :  { %499 = vmatprep.mubr.f32.mxu1 %v85_v61 }
  0x58   :  { %355 = vmatmul.mubr.f32.gmra.mxu0 %v82_v62 }
  0x59   :  { %500 = vmatmul.mubr.f32.gmra.mxu1 %v84_v63  ;;  %359 = vmatprep.mubr.f32.mxu0 %v88_v0 }
  0x5a   :  { %504 = vmatprep.mubr.f32.mxu1 %v90_v1 }
  0x5c   :  { %360 = vmatmul.mubr.f32.gmra.mxu0 %v87_v2 }
  0x5d   :  { %505 = vmatmul.mubr.f32.gmra.mxu1 %v89_v3  ;;  %364 = vmatprep.mubr.f32.mxu0 %v93_v4 }
  0x5e   :  { %509 = vmatprep.mubr.f32.mxu1 %v95_v5 }
  0x60   :  { %365 = vmatmul.mubr.f32.gmra.mxu0 %v92_v6 }
  0x61   :  { %510 = vmatmul.mubr.f32.gmra.mxu1 %v94_v7  ;;  %1042 = vmatprep.mubr.msk.f32.mxu0 %vm176_vm0, %v21_v8 }
  0x62   :  { %1054 = vmatprep.mubr.msk.f32.mxu1 %vm176_vm0, %v61_v9 }
  0x64   :  { %1043 = vmatmul.mubr.msk.f32.vlgmr.msra.gmra.mxu0 %vm176_vm0, %v26_v10 }
  0x65   :  { %1055 = vmatmul.mubr.msk.f32.vlgmr.msra.gmra.mxu1 %vm176_vm0, %v66_v11  ;;  %1045 = vmatprep.mubr.msk.f32.mxu0 %vm176_vm0, %v31_v12 }
  0x66   :  { %1057 = vmatprep.mubr.msk.f32.mxu1 %vm176_vm0, %v71_v13 }
  0x68   :  { %1046 = vmatmul.mubr.msk.f32.gmra.mxu0 %vm176_vm0, %v36_v14 }
  0x69   :  { %1058 = vmatmul.mubr.msk.f32.gmra.mxu1 %vm176_vm0, %v76_v15  ;;  %1048 = vmatprep.mubr.msk.f32.mxu0 %vm176_vm0, %v41_v16  ;;  %v1637_v16 = vld [vmem:[%s1779_s2] ss:$0 sm:$0xff] }
  0x6a   :  { %1060 = vmatprep.mubr.msk.f32.mxu1 %vm176_vm0, %v81_v17 }
  0x6c   :  { %1049 = vmatmul.mubr.msk.f32.gmra.mxu0 %vm176_vm0, %v46_v18 }
  0x6d   :  { %1061 = vmatmul.mubr.msk.f32.gmra.mxu1 %vm176_vm0, %v86_v19  ;;  %1051 = vmatprep.mubr.msk.f32.mxu0 %vm176_vm0, %v51_v20 }
  0x6e   :  { %1063 = vmatprep.mubr.msk.f32.mxu1 %vm176_vm0, %v91_v21 }
  0x70   :  { %1052 = vmatmul.mubr.msk.f32.gmra.mxu0 %vm176_vm0, %v56_v22 }
  0x71   :  { %1064 = vmatmul.mubr.msk.f32.gmra.mxu1 %vm176_vm0, %v96_v23 }
  0xe4   :  { %v874_v25 = vpop.f32.mrf.mxu0 }
  0xe5   :  { %v1592_v26 = vpop.f32.mrf.mxu1 }
  0xe6   :  { %v875_v27 = vpop.f32.mrf.mxu0 }
  0xe7   :  { %v955_v28 = vpop.f32.mrf.mxu1  ;;  %v876_v13 = vadd.f32 %v875_v27, %v874_v25 }
  0xe8   :  { %v877_v29 = vpop.f32.mrf.mxu0  ;;  %v956_v24 = vadd.f32 %v955_v28, %v1592_v26 }
  0xe9   :  { %v1594_v30 = vpop.f32.mrf.mxu1  ;;  %v292_v23 = vadd.f32 %v876_v13, %v1637_v16 }
  0xea   :  { %v878_v31 = vpop.f32.mrf.mxu0 }
  0xeb   :  { %v958_v32 = vpop.f32.mrf.mxu1  ;;  %v879_v17 = vadd.f32 %v878_v31, %v877_v29 }
  0xec   :  { %v880_v33 = vpop.f32.mrf.mxu0 }
  0xed   :  { %v960_v34 = vpop.f32.mrf.mxu1 }
  0xee   :  { %v881_v35 = vpop.f32.mrf.mxu0 }
  0xef   :  { %v961_v36 = vpop.f32.mrf.mxu1  ;;  %v882_v18 = vadd.f32 %v881_v35, %v880_v33 }
  0xf0   :  { %v883_v37 = vpop.f32.mrf.mxu0  ;;  %v962_v31 = vadd.f32 %v961_v36, %v960_v34  ;;  %v437_v36 = vadd.f32 %v956_v24, %v292_v23 }
  0xf1   :  { %v1596_v38 = vpop.f32.mrf.mxu1  ;;  %v302_v29 = vadd.f32 %v882_v18, %v1637_v16 }
  0xf2   :  { %v884_v39 = vpop.f32.mrf.mxu0 }
  0xf3   :  { %v964_v40 = vpop.f32.mrf.mxu1  ;;  %v885_v21 = vadd.f32 %v884_v39, %v883_v37 }
  0xf4   :  { %v886_v41 = vpop.f32.mrf.mxu0  ;;  %v965_v26 = vadd.f32 %v964_v40, %v1596_v38 }
  0xf5   :  { %v1598_v42 = vpop.f32.mrf.mxu1 }
  0xf6   :  { %v887_v43 = vpop.f32.mrf.mxu0 }
  0xf7   :  { %v1600_v44 = vpop.f32.mrf.mxu1  ;;  %v888_v33 = vadd.f32 %v887_v43, %v886_v41  ;;  %v447_v41 = vadd.f32 %v962_v31, %v302_v29 }
  0xf8   :  { %v889_v45 = vpop.f32.mrf.mxu0 }
  0xf9   :  { %v1602_v46 = vpop.f32.mrf.mxu1  ;;  %v312_v43 = vadd.f32 %v888_v33, %v1637_v16 }
  0xfa   :  { %v890_v47 = vpop.f32.mrf.mxu0 }
  0xfb   :  { %v1604_v48 = vpop.f32.mrf.mxu1  ;;  %v891_v35 = vadd.f32 %v890_v47, %v889_v45  ;;  %v968_v45 = vadd.f32 %v1600_v44, %v1598_v42 }
  0xfc   :  { %v1606_v49 = vpop.f32.mrf.mxu0  ;;  %v971_v40 = vadd.f32 %v1604_v48, %v1602_v46 }
  0xfd   :  { %v1608_v50 = vpop.f32.mrf.mxu1  ;;  %v317_v38 = vadd.f32 %v891_v35, %v1637_v16 }
  0xfe   :  { %v1610_v51 = vpop.f32.mrf.mxu0 }
  0xff   :  { %v1612_v52 = vpop.f32.mrf.mxu1 }
 0x100   :  { %v1614_v53 = vpop.f32.mrf.mxu0 }
 0x101   :  { %v1616_v54 = vpop.f32.mrf.mxu1 }
 0x102   :  { %v1618_v55 = vpop.f32.mrf.mxu0 }
 0x103   :  { %v1620_v56 = vpop.f32.mrf.mxu1 }
 0x104   :  { %v898_v57 = vpop.f32.mrf.mxu0 }
 0x105   :  { %v978_v58 = vpop.f32.mrf.mxu1 }
 0x106   :  { %v899_v59 = vpop.f32.mrf.mxu0 }
 0x107   :  { %v979_v60 = vpop.f32.mrf.mxu1  ;;  %v900_v25 = vadd.f32 %v899_v59, %v898_v57 }
 0x108   :  { %v901_v61 = vpop.f32.mrf.mxu0 }
 0x109   :  { %v981_v62 = vpop.f32.mrf.mxu1  ;;  %v332_v59 = vadd.f32 %v900_v25, %v1637_v16 }
 0x10a   :  { %v902_v63 = vpop.f32.mrf.mxu0 }
 0x10b   :  { %v982_v0 = vpop.f32.mrf.mxu1  ;;  %v903_v22 = vadd.f32 %v902_v63, %v901_v61  ;;  %v307_v61 = vadd.f32 %v885_v21, %v1637_v16  ;;  %v980_v63 = vadd.f32 %v979_v60, %v978_v58  ;;  %v894_v58 = vadd.f32 %v1610_v51, %v1606_v49 }
 0x10c   :  { %v904_v1 = vpop.f32.mrf.mxu0  ;;  %v983_v57 = vadd.f32 %v982_v0, %v981_v62  ;;  %v897_v60 = vadd.f32 %v1618_v55, %v1614_v53  ;;  %v1674_v49 = vadd.f32 %v1612_v52, %v1608_v50 }
 0x10d   :  { %v1622_v2 = vpop.f32.mrf.mxu1  ;;  %v337_v28 = vadd.f32 %v903_v22, %v1637_v16  ;;  %v322_v22 = vadd.f32 %v894_v58, %v1637_v16 }
 0x10e   :  { %v905_v3 = vpop.f32.mrf.mxu0 }
 0x10f   :  { %v1624_v4 = vpop.f32.mrf.mxu1  ;;  %v482_v0 = vadd.f32 %v983_v57, %v337_v28 }
 0x110   :  { %v907_v5 = vpop.f32.mrf.mxu0  ;;  %v986_v46 = vadd.f32 %v1624_v4, %v1622_v2 }
 0x111   :  { %v987_v6 = vpop.f32.mrf.mxu1 }
 0x112   :  { %v908_v7 = vpop.f32.mrf.mxu0 }
 0x113   :  { %v988_v8 = vpop.f32.mrf.mxu1  ;;  %v909_v13 = vadd.f32 %v908_v7, %v907_v5 }
 0x114   :  { %v1626_v9 = vpop.f32.mrf.mxu0  ;;  %v989_v5 = vadd.f32 %v988_v8, %v987_v6  ;;  %v462_v6 = vadd.f32 %v971_v40, %v317_v38  ;;  %v457_v8 = vadd.f32 %v968_v45, %v312_v43 }
 0x115   :  { %v1628_v10 = vpop.f32.mrf.mxu1 }
 0x116   :  { %1781 = vst [vmem:[#allocation2_spill] sm:$0xff] %v1628_v10  ;;  %v911_v11 = vpop.f32.mrf.mxu0  ;;  %v297_v10 = vadd.f32 %v879_v17, %v1637_v16  ;;  %v906_v17 = vadd.f32 %v905_v3, %v904_v1  ;;  %v452_v1 = vadd.f32 %v965_v26, %v307_v61  ;;  %v347_v3 = vadd.f32 %v909_v13, %v1637_v16 }
 0x117   :  { %v1630_v12 = vpop.f32.mrf.mxu1  ;;  %v912_v51 = vadd.f32 %v911_v11, %v1626_v9 }
 0x118   :  { %1782 = vst [vmem:[#allocation3_spill] sm:$0xff] %v1630_v12  ;;  %v913_v14 = vpop.f32.mrf.mxu0 }
 0x119   :  { %v1632_v15 = vpop.f32.mrf.mxu1 }
 0x11a   :  { %1783 = vst [vmem:[#allocation4_spill] sm:$0xff] %v1632_v15  ;;  %v914_v19 = vpop.f32.mrf.mxu0  ;;  %v959_v15 = vadd.f32 %v958_v32, %v1594_v30 }
 0x11b   :  { %v1639_v20 = vpop.f32.mrf.mxu1  ;;  %v915_v7 = vadd.f32 %v914_v19, %v913_v14  ;;  %v327_v14 = vadd.f32 %v897_v60, %v1637_v16  ;;  %v977_v19 = vadd.f32 %v1620_v56, %v1616_v54  ;;  %v492_v54 = vadd.f32 %v989_v5, %v347_v3 }
 0x11c   :  { %v1643_v27 = vpop.f32.mrf.mxu0  ;;  %v442_v34 = vadd.f32 %v959_v15, %v297_v10  ;;  %v477_v10 = vadd.f32 %v980_v63, %v332_v59  ;;  %v342_v15 = vadd.f32 %v906_v17, %v1637_v16 }
 0x11d   :  { %v1645_v12 = vpop.f32.mrf.mxu1  ;;  %v357_v2 = vadd.f32 %v915_v7, %v1637_v16  ;;  %v1785_v29 = vld [vmem:[#allocation2_spill] sm:$0xff] }
 0x11e   :  { %v917_v37 = vpop.f32.mrf.mxu0  ;;  %v487_v25 = vadd.f32 %v986_v46, %v342_v15 }
 0x11f   :  { %v1650_v39 = vpop.f32.mrf.mxu1  ;;  %v1786_v31 = vld [vmem:[#allocation3_spill] sm:$0xff]  ;;  %v918_v35 = vadd.f32 %v917_v37, %v1643_v27 }
 0x120   :  { %v919_v30 = vpop.f32.mrf.mxu0  ;;  %v992_v33 = vadd.f32 %v1786_v31, %v1785_v29  ;;  %v998_v40 = vadd.f32 %v1650_v39, %v1645_v12  ;;  %v467_v39 = vadd.f32 %v1674_v49, %v322_v22 }
 0x121   :  { %v999_v32 = vpop.f32.mrf.mxu1  ;;  %v1784_v4 = vld [vmem:[#allocation4_spill] sm:$0xff]  ;;  %v362_v38 = vadd.f32 %v918_v35, %v1637_v16 }
 0x122   :  { %v920_v47 = vpop.f32.mrf.mxu0  ;;  %v995_v9 = vadd.f32 %v1639_v20, %v1784_v4  ;;  %v352_v20 = vadd.f32 %v912_v51, %v1637_v16 }
 0x123   :  { %v1000_v62 = vpop.f32.mrf.mxu1  ;;  %v921_v11 = vadd.f32 %v920_v47, %v919_v30 }
 0x124   :  { %v1044_v42 = vpop.f32.mrf.mxu0  ;;  %v1001_v17 = vadd.f32 %v1000_v62, %v999_v32  ;;  %v502_v37 = vadd.f32 %v995_v9, %v357_v2  ;;  %v497_v58 = vadd.f32 %v992_v33, %v352_v20 }
 0x125   :  { %v1056_v44 = vpop.f32.mrf.mxu1  ;;  %v587_v48 = vadd.f32 %v1044_v42, %v442_v34  ;;  %v367_v30 = vadd.f32 %v921_v11, %v1637_v16 }
 0x126   :  { %v1670_v18 = vadd.f32 %v1056_v44, %v482_v0  ;;  %v581_v53 = vpop.f32.mrf.mxu0 }
 0x127   :  { %v621_v55 = vpop.f32.mrf.mxu1  ;;  %661 = vst [vmem:[%s1780_s3 + $0x8] sm:$0xff] %v587_v48  ;;  %v582_v50 = vadd.f32 %v581_v53, %v437_v36  ;;  %v775_v57 = vmul.f32 %v587_v48, %v587_v48  ;;  %v472_v36 = vadd.f32 %v977_v19, %v327_v14  ;;  %v512_v42 = vadd.f32 %v1001_v17, %v367_v30 }
 0x128   :  { %669 = vst [vmem:[%s1780_s3 + $0x48] sm:$0xff] %v1670_v18  ;;  %v1687_v52 = vadd.f32 %v621_v55, %v477_v10  ;;  %v1047_v21 = vpop.f32.mrf.mxu0  ;;  %v507_v53 = vadd.f32 %v998_v40, %v362_v38 }
 0x129   :  { %v1059_v56 = vpop.f32.mrf.mxu1  ;;  %660 = vst [vmem:[%s1780_s3] sm:$0xff] %v582_v50  ;;  %v774_v23 = vmul.f32 %v582_v50, %v582_v50  ;;  %v597_v24 = vadd.f32 %v1047_v21, %v452_v1  ;;  %v750_v59 = vadd.f32 %v587_v48, %v582_v50 }
 0x12a   :  { %668 = vst [vmem:[%s1780_s3 + $0x40] sm:$0xff] %v1687_v52  ;;  %v1704_v61 = vadd.f32 %v1059_v56, %v492_v54  ;;  %v591_v26 = vpop.f32.mrf.mxu0  ;;  %v782_v54 = vmul.f32 %v1687_v52, %v1687_v52 }
 0x12b   :  { %v631_v28 = vpop.f32.mrf.mxu1  ;;  %663 = vst [vmem:[%s1780_s3 + $0x18] sm:$0xff] %v597_v24  ;;  %v592_v63 = vadd.f32 %v591_v26, %v447_v41  ;;  %v790_v43 = vadd.f32 %v775_v57, %v774_v23  ;;  %v777_v0 = vmul.f32 %v597_v24, %v597_v24  ;;  %v783_v23 = vmul.f32 %v1670_v18, %v1670_v18 }
 0x12c   :  { %v1709_v13 = vadd.f32 %v631_v28, %v487_v25  ;;  %671 = vst [vmem:[%s1780_s3 + $0x58] sm:$0xff] %v1704_v61  ;;  %v1050_v27 = vpop.f32.mrf.mxu0  ;;  %v785_v33 = vmul.f32 %v1704_v61, %v1704_v61 }
 0x12d   :  { %v1062_v34 = vpop.f32.mrf.mxu1  ;;  %662 = vst [vmem:[%s1780_s3 + $0x10] sm:$0xff] %v592_v63  ;;  %v751_v41 = vadd.f32 %v750_v59, %v592_v63  ;;  %v776_v45 = vmul.f32 %v592_v63, %v592_v63  ;;  %v607_v32 = vadd.f32 %v1050_v27, %v462_v6 }
 0x12e   :  { %670 = vst [vmem:[%s1780_s3 + $0x50] sm:$0xff] %v1709_v13  ;;  %v647_v47 = vadd.f32 %v1062_v34, %v502_v37  ;;  %v601_v62 = vpop.f32.mrf.mxu0  ;;  %v784_v20 = vmul.f32 %v1709_v13, %v1709_v13 }
 0x12f   :  { %v641_v60 = vpop.f32.mrf.mxu1  ;;  %v791_v1 = vadd.f32 %v790_v43, %v776_v45  ;;  %665 = vst [vmem:[%s1780_s3 + $0x28] sm:$0xff] %v607_v32  ;;  %v602_v3 = vadd.f32 %v601_v62, %v457_v8  ;;  %v752_v5 = vadd.f32 %v751_v41, %v597_v24  ;;  %v779_v6 = vmul.f32 %v607_v32, %v607_v32 }
 0x130   :  { %673 = vst [vmem:[%s1780_s3 + $0x68] sm:$0xff] %v647_v47  ;;  %v642_v16 = vadd.f32 %v641_v60, %v497_v58  ;;  %v1053_v7 = vpop.f32.mrf.mxu0  ;;  %v787_v59 = vmul.f32 %v647_v47, %v647_v47 }
 0x131   :  { %v1065_v12 = vpop.f32.mrf.mxu1  ;;  %664 = vst [vmem:[%s1780_s3 + $0x20] sm:$0xff] %v602_v3  ;;  %v753_v44 = vadd.f32 %v752_v5, %v602_v3  ;;  %v778_v10 = vmul.f32 %v602_v3, %v602_v3  ;;  %v792_v15 = vadd.f32 %v791_v1, %v777_v0  ;;  %v617_v46 = vadd.f32 %v1053_v7, %v472_v36  ;;  %v773_v1 = vld [vmem:[%s1778_s5] sm:$0x1] }
 0x132   :  { %672 = vst [vmem:[%s1780_s3 + $0x60] sm:$0xff] %v642_v16  ;;  %v657_v48 = vadd.f32 %v1065_v12, %v512_v42  ;;  %v611_v51 = vpop.f32.mrf.mxu0 }
 0x133   :  { %v651_v55 = vpop.f32.mrf.mxu1  ;;  %v793_v8 = vadd.f32 %v792_v15, %v778_v10  ;;  %667 = vst [vmem:[%s1780_s3 + $0x38] sm:$0xff] %v617_v46  ;;  %v612_v49 = vadd.f32 %v611_v51, %v467_v39  ;;  %v754_v14 = vadd.f32 %v753_v44, %v607_v32  ;;  %v781_v9 = vmul.f32 %v617_v46, %v617_v46 }
 0x134   :  { %675 = vst [vmem:[%s1780_s3 + $0x78] sm:$0xff] %v657_v48  ;;  %v652_v19 = vadd.f32 %v651_v55, %v507_v53  ;;  %v789_v37 = vmul.f32 %v657_v48, %v657_v48 }
 0x135   :  { %666 = vst [vmem:[%s1780_s3 + $0x30] sm:$0xff] %v612_v49  ;;  %v755_v50 = vadd.f32 %v754_v14, %v612_v49  ;;  %v780_v2 = vmul.f32 %v612_v49, %v612_v49  ;;  %v794_v4 = vadd.f32 %v793_v8, %v779_v6 }
 0x136   :  { %674 = vst [vmem:[%s1780_s3 + $0x70] sm:$0xff] %v652_v19  ;;  %v788_v17 = vmul.f32 %v652_v19, %v652_v19 }
 0x137   :  { %v756_v11 = vadd.f32 %v755_v50, %v617_v46  ;;  %v795_v21 = vadd.f32 %v794_v4, %v780_v2 }
 0x139   :  { %v757_v56 = vadd.f32 %v756_v11, %v1687_v52  ;;  %v796_v22 = vadd.f32 %v795_v21, %v781_v9  ;;  %v786_v52 = vmul.f32 %v642_v16, %v642_v16 }
 0x13b   :  { %v758_v24 = vadd.f32 %v757_v56, %v1670_v18  ;;  %v797_v25 = vadd.f32 %v796_v22, %v782_v54 }
 0x13d   :  { %v798_v29 = vadd.f32 %v797_v25, %v783_v23  ;;  %v759_v31 = vadd.f32 %v758_v24, %v1709_v13 }
 0x13f   :  { %v760_v35 = vadd.f32 %v759_v31, %v1704_v61  ;;  %v799_v26 = vadd.f32 %v798_v29, %v784_v20 }
 0x141   :  { %v761_v28 = vadd.f32 %v760_v35, %v642_v16  ;;  %v800_v57 = vadd.f32 %v799_v26, %v785_v33 }
 0x143   :  { %v762_v63 = vadd.f32 %v761_v28, %v647_v47  ;;  %v801_v30 = vadd.f32 %v800_v57, %v786_v52  ;;  %v749_v47 = vld [vmem:[%s1777_s4] sm:$0x1] }
 0x145   :  { %v763_v18 = vadd.f32 %v762_v63, %v652_v19  ;;  %v802_v27 = vadd.f32 %v801_v30, %v787_v59 }
 0x147   :  { %v764_v34 = vadd.f32 %v763_v18, %v657_v48  ;;  %v803_v36 = vadd.f32 %v802_v27, %v788_v17 }
 0x149   :  { %v765_v43 = vrot.slane %v764_v34, 4  ;;  %v804_v13 = vadd.f32 %v803_v36, %v789_v37 }
 0x14b   :  { %v766_v41 = vadd.f32 %v765_v43, %v764_v34  ;;  %v805_v45 = vrot.slane %v804_v13, 4 }
 0x14d   :  { %v767_v32 = vrot.slane %v766_v41, 2  ;;  %v806_v38 = vadd.f32 %v805_v45, %v804_v13 }
 0x14f   :  { %v768_v61 = vadd.f32 %v767_v32, %v766_v41  ;;  %v807_v40 = vrot.slane %v806_v38, 2 }
 0x151   :  { %v769_v62 = vrot.slane %v768_v61, 1  ;;  %v808_v58 = vadd.f32 %v807_v40, %v806_v38 }
 0x153   :  { %v770_v60 = vadd.f32 %v769_v62, %v768_v61  ;;  %v809_v0 = vrot.slane %v808_v58, 1 }
 0x155   :  { %v771_v3 = vadd.f32 %v770_v60, %v749_v47  ;;  %v810_v5 = vadd.f32 %v809_v0, %v808_v58 }
 0x157   :  { %772 = vst [vmem:[%s1777_s4] sm:$0x1] %v771_v3  ;;  %v811_v16 = vadd.f32 %v810_v5, %v773_v1 }
 0x159   :  { %812 = vst [vmem:[%s1778_s5] sm:$0x1] %v811_v16 }

// kernel: resnet18_block_forward.49
= control target key start
LH: loop header
LB: loop body
LE: loop exit
PB: predicated region body
PF: predicated region fallthrough
CT: control target
= control target key end

     0   :  { %s913_s0 = inlined_call_operand.vmem [shape: f32[128,128], index: 0, kind: input, shape index: {}]   ;;  %s914_s1 = inlined_call_operand.vmem [shape: f32[1,128], index: 1, kind: input, shape index: {}]   ;;  %s915_s2 = inlined_call_operand.vmem [shape: f32[1,128], index: 2, kind: input, shape index: {}]   ;;  %s916_s3 = inlined_call_operand.vmem [shape: f32[128,128], index: 3, kind: input, shape index: {}]   ;;  %s917_s4 = inlined_call_operand.vmem [shape: f32[128,128], index: 4, kind: output, shape index: {}]  }
   0x1   :  { %v17_v0 = vld [vmem:[%s913_s0] sm:$0xff]  ;;  %v18_v4 = vld [vmem:[%s913_s0 + $0x8] sm:$0xff]  ;;  %v19_v7 = vld [vmem:[%s913_s0 + $0x10] sm:$0xff] }
   0x2   :  { %v532_v1 = vld [vmem:[%s914_s1] ss:$0 sm:$0xff]  ;;  %v20_v8 = vld [vmem:[%s913_s0 + $0x18] sm:$0xff]  ;;  %v80_v10 = vld [vmem:[%s916_s3 + $0x8] sm:$0xff] }
   0x3   :  { %v537_v2 = vld [vmem:[%s915_s2] ss:$0 sm:$0xff]  ;;  %v40_v3 = vmul.f32 %v532_v1, %v17_v0  ;;  %v41_v6 = vmul.f32 %v532_v1, %v18_v4  ;;  %v42_v11 = vmul.f32 %v532_v1, %v19_v7  ;;  %v81_v12 = vld [vmem:[%s916_s3 + $0x10] sm:$0xff]  ;;  %v43_v13 = vmul.f32 %v532_v1, %v20_v8  ;;  %v82_v16 = vld [vmem:[%s916_s3 + $0x18] sm:$0xff] }
   0x4   :  { %v79_v5 = vld [vmem:[%s916_s3] sm:$0xff]  ;;  %v22_v18 = vld [vmem:[%s913_s0 + $0x28] sm:$0xff]  ;;  %v23_v19 = vld [vmem:[%s913_s0 + $0x30] sm:$0xff] }
   0x5   :  { %v63_v9 = vadd.f32 %v537_v2, %v40_v3  ;;  %v21_v14 = vld [vmem:[%s913_s0 + $0x20] sm:$0xff]  ;;  %v64_v15 = vadd.f32 %v537_v2, %v41_v6  ;;  %v65_v21 = vadd.f32 %v537_v2, %v42_v11  ;;  %v66_v22 = vadd.f32 %v537_v2, %v43_v13  ;;  %v24_v25 = vld [vmem:[%s913_s0 + $0x38] sm:$0xff]  ;;  %v84_v35 = vld [vmem:[%s916_s3 + $0x28] sm:$0xff] }
   0x6   :  { %v44_v17 = vmul.f32 %v532_v1, %v21_v14  ;;  %v83_v23 = vld [vmem:[%s916_s3 + $0x20] sm:$0xff]  ;;  %v45_v24 = vmul.f32 %v532_v1, %v22_v18  ;;  %v46_v31 = vmul.f32 %v532_v1, %v23_v19  ;;  %v47_v36 = vmul.f32 %v532_v1, %v24_v25  ;;  %v85_v46 = vld [vmem:[%s916_s3 + $0x30] sm:$0xff]  ;;  %v86_v51 = vld [vmem:[%s916_s3 + $0x38] sm:$0xff] }
   0x7   :  { %v576_v20 = vadd.f32 %v79_v5, %v63_v9  ;;  %v587_v26 = vadd.f32 %v80_v10, %v64_v15  ;;  %v591_v29 = vadd.f32 %v81_v12, %v65_v21  ;;  %v593_v30 = vadd.f32 %v82_v16, %v66_v22  ;;  %v25_v52 = vld [vmem:[%s913_s0 + $0x40] sm:$0xff]  ;;  %v26_v55 = vld [vmem:[%s913_s0 + $0x48] sm:$0xff]  ;;  %v27_v62 = vld [vmem:[%s913_s0 + $0x50] sm:$0xff] }
   0x8   :  { %v67_v27 = vadd.f32 %v537_v2, %v44_v17  ;;  %v68_v34 = vadd.f32 %v537_v2, %v45_v24  ;;  %v69_v45 = vadd.f32 %v537_v2, %v46_v31  ;;  %v70_v50 = vadd.f32 %v537_v2, %v47_v36  ;;  %v28_v3 = vld [vmem:[%s913_s0 + $0x58] sm:$0xff]  ;;  %v29_v4 = vld [vmem:[%s913_s0 + $0x60] sm:$0xff]  ;;  %v88_v13 = vld [vmem:[%s916_s3 + $0x48] sm:$0xff] }
   0x9   :  { %v127_v28 = vand.u32 2147483647, %v576_v20  ;;  %v128_v32 = vand.u32 2147483647, %v587_v26  ;;  %v129_v38 = vand.u32 2147483647, %v591_v29  ;;  %v48_v61 = vmul.f32 %v532_v1, %v25_v52 }
   0xa   :  { %v597_v33 = vadd.f32 %v83_v23, %v67_v27  ;;  %v130_v40 = vand.u32 2147483647, %v593_v30  ;;  %v607_v44 = vadd.f32 %v84_v35, %v68_v34  ;;  %v624_v58 = vadd.f32 %v85_v46, %v69_v45  ;;  %v87_v7 = vld [vmem:[%s916_s3 + $0x40] sm:$0xff]  ;;  %v30_v23 = vld [vmem:[%s913_s0 + $0x68] sm:$0xff]  ;;  %v89_v34 = vld [vmem:[%s916_s3 + $0x50] sm:$0xff] }
   0xb   :  { %v143_v37 = vsub.f32 0.0, %v127_v28  ;;  %v144_v39 = vsub.f32 0.0, %v128_v32  ;;  %v145_v43 = vsub.f32 0.0, %v129_v38  ;;  %v626_v60 = vadd.f32 %v86_v51, %v70_v50  ;;  %v90_v35 = vld [vmem:[%s916_s3 + $0x58] sm:$0xff]  ;;  %v91_v36 = vld [vmem:[%s916_s3 + $0x60] sm:$0xff] }
   0xc   :  { %v131_v41 = vand.u32 2147483647, %v597_v33  ;;  %v146_v48 = vsub.f32 0.0, %v130_v40  ;;  %v132_v54 = vand.u32 2147483647, %v607_v44  ;;  %v49_v0 = vmul.f32 %v532_v1, %v26_v55 }
   0xd   :  { %v159_v42 = vmul.f32 1.442695, %v143_v37  ;;  %v161_v47 = vmul.f32 1.442695, %v144_v39  ;;  %v163_v53 = vmul.f32 1.442695, %v145_v43  ;;  %v71_v9 = vadd.f32 %v537_v2, %v48_v61 }
   0xe   :  { %v147_v49 = vsub.f32 0.0, %v131_v41  ;;  %v165_v56 = vmul.f32 1.442695, %v146_v48  ;;  %v148_v59 = vsub.f32 0.0, %v132_v54  ;;  %v133_v63 = vand.u32 2147483647, %v624_v58 }
   0xf   :  { %405 = vpow2.f32 %v159_v42  ;;  %v134_v6 = vand.u32 2147483647, %v626_v60  ;;  %v72_v10 = vadd.f32 %v537_v2, %v49_v0  ;;  %v50_v11 = vmul.f32 %v532_v1, %v27_v62  ;;  %v31_v41 = vld [vmem:[%s913_s0 + $0x70] sm:$0xff] }
  0x10   :  { %407 = vpow2.f32 %v161_v47  ;;  %v167_v57 = vmul.f32 1.442695, %v147_v49  ;;  %v169_v5 = vmul.f32 1.442695, %v148_v59  ;;  %v149_v8 = vsub.f32 0.0, %v133_v63 }
  0x11   :  { %409 = vpow2.f32 %v163_v53  ;;  %v150_v12 = vsub.f32 0.0, %v134_v6  ;;  %v51_v14 = vmul.f32 %v532_v1, %v28_v3  ;;  %v52_v15 = vmul.f32 %v532_v1, %v29_v4 }
  0x12   :  { %411 = vpow2.f32 %v165_v56  ;;  %v171_v16 = vmul.f32 1.442695, %v149_v8  ;;  %v652_v17 = vadd.f32 %v87_v7, %v71_v9  ;;  %v111_v19 = vmax.f32 %v576_v20, 0.0  ;;  %v92_v8 = vld [vmem:[%s916_s3 + $0x68] sm:$0xff] }
  0x13   :  { %413 = vpow2.f32 %v167_v57  ;;  %v173_v18 = vmul.f32 1.442695, %v150_v12  ;;  %v656_v22 = vadd.f32 %v88_v13, %v72_v10  ;;  %v73_v24 = vadd.f32 %v537_v2, %v50_v11 }
  0x14   :  { %415 = vpow2.f32 %v169_v5  ;;  %v135_v21 = vand.u32 2147483647, %v652_v17  ;;  %v74_v25 = vadd.f32 %v537_v2, %v51_v14  ;;  %v75_v27 = vadd.f32 %v537_v2, %v52_v15 }
  0x15   :  { %417 = vpow2.f32 %v171_v16  ;;  %v112_v28 = vmax.f32 %v587_v26, 0.0  ;;  %v113_v31 = vmax.f32 %v591_v29, 0.0  ;;  %v114_v37 = vmax.f32 %v593_v30, 0.0 }
  0x16   :  { %419 = vpow2.f32 %v173_v18  ;;  %v151_v32 = vsub.f32 0.0, %v135_v21  ;;  %v115_v38 = vmax.f32 %v597_v33, 0.0  ;;  %v116_v39 = vmax.f32 %v607_v44, 0.0 }
  0x17   :  { %v53_v40 = vmul.f32 %v532_v1, %v30_v23  ;;  %v117_v43 = vmax.f32 %v624_v58, 0.0  ;;  %v118_v45 = vmax.f32 %v626_v60, 0.0  ;;  %v136_v47 = vand.u32 2147483647, %v656_v22 }
  0x18   :  { %v175_v46 = vmul.f32 1.442695, %v151_v32  ;;  %v685_v50 = vadd.f32 %v89_v34, %v73_v24  ;;  %v687_v51 = vadd.f32 %v90_v35, %v74_v25  ;;  %v689_v52 = vadd.f32 %v91_v36, %v75_v27 }
  0x19   :  { %v76_v61 = vadd.f32 %v537_v2, %v53_v40  ;;  %v693_v62 = vmul.f32 %v532_v1, %v31_v41  ;;  %v152_v4 = vsub.f32 0.0, %v136_v47 }
  0x1a   :  { %421 = vpow2.f32 %v175_v46  ;;  %v137_v7 = vand.u32 2147483647, %v685_v50  ;;  %v138_v13 = vand.u32 2147483647, %v687_v51 }
  0x1b   :  { %v177_v23 = vmul.f32 1.442695, %v152_v4  ;;  %v704_v24 = vadd.f32 %v92_v8, %v76_v61 }
  0x1c   :  { %v406_v42 = vpop.eup %405 }
  0x1d   :  { %v408_v48 = vpop.eup %407  ;;  %v191_v49 = vadd.f32 1.0, %v406_v42  ;;  %v194_v54 = vmul.f32 -0.5, %v406_v42  ;;  %v197_v0 = vand.u32 2147483647, %v406_v42 }
  0x1e   :  { %v410_v53 = vpop.eup %409  ;;  %v200_v55 = vadd.f32 1.0, %v408_v48  ;;  %v203_v56 = vmul.f32 -0.5, %v408_v48  ;;  %v206_v5 = vand.u32 2147483647, %v408_v48 }
  0x1f   :  { %v412_v57 = vpop.eup %411  ;;  %423 = vlog2.f32 %v191_v49  ;;  %v209_v59 = vadd.f32 1.0, %v410_v53  ;;  %v212_v3 = vmul.f32 -0.5, %v410_v53  ;;  %v195_v10 = vadd.f32 1.0, %v194_v54 }
  0x20   :  { %v414_v63 = vpop.eup %413  ;;  %425 = vlog2.f32 %v200_v55  ;;  %v218_v6 = vadd.f32 1.0, %v412_v57  ;;  %v204_v11 = vadd.f32 1.0, %v203_v56  ;;  %v215_v12 = vand.u32 2147483647, %v410_v53 }
  0x21   :  { %427 = vlog2.f32 %v209_v59  ;;  %v416_v9 = vpop.eup %415  ;;  %v221_v14 = vmul.f32 -0.5, %v412_v57  ;;  %v227_v15 = vadd.f32 1.0, %v414_v63  ;;  %v230_v16 = vmul.f32 -0.5, %v414_v63 }
  0x22   :  { %429 = vlog2.f32 %v218_v6  ;;  %vm700_vm0 = vcmp.lt.f32.partialorder %v197_v0, 0.0004427343  ;;  %v213_v21 = vadd.f32 1.0, %v212_v3  ;;  %v706_v25 = vpop.eup %417  ;;  %vm708_vm1 = vcmp.lt.f32.partialorder %v206_v5, 0.0004427343 }
  0x23   :  { %v224_v32 = vand.u32 2147483647, %v412_v57  ;;  %431 = vlog2.f32 %v227_v15  ;;  %v236_v34 = vadd.f32 1.0, %v416_v9  ;;  %v239_v35 = vmul.f32 -0.5, %v416_v9  ;;  %v712_v36 = vpop.eup %419 }
  0x24   :  { %v196_v40 = vmul.f32 %v406_v42, %v195_v10  ;;  %v205_v41 = vmul.f32 %v408_v48, %v204_v11  ;;  %vm714_vm2 = vcmp.lt.f32.partialorder %v215_v12, 0.0004427343  ;;  %v245_v47 = vadd.f32 1.0, %v706_v25 }
  0x25   :  { %v222_v49 = vadd.f32 1.0, %v221_v14  ;;  %v231_v54 = vadd.f32 1.0, %v230_v16  ;;  %v233_v55 = vand.u32 2147483647, %v414_v63  ;;  %433 = vlog2.f32 %v236_v34 }
  0x26   :  { %v242_v56 = vand.u32 2147483647, %v416_v9  ;;  %435 = vlog2.f32 %v245_v47  ;;  %v248_v59 = vmul.f32 -0.5, %v706_v25  ;;  %v254_v61 = vadd.f32 1.0, %v712_v36 }
  0x27   :  { %v214_v0 = vmul.f32 %v410_v53, %v213_v21  ;;  %vm721_vm3 = vcmp.lt.f32.partialorder %v224_v32, 0.0004427343  ;;  %v240_v48 = vadd.f32 1.0, %v239_v35  ;;  %v251_v3 = vand.u32 2147483647, %v706_v25  ;;  %v727_v8 = vpop.eup %421 }
  0x28   :  { %437 = vlog2.f32 %v254_v61  ;;  %v257_v4 = vmul.f32 -0.5, %v712_v36  ;;  %v153_v5 = vsub.f32 0.0, %v137_v7  ;;  %v154_v6 = vsub.f32 0.0, %v138_v13 }
  0x29   :  { %v223_v10 = vmul.f32 %v412_v57, %v222_v49  ;;  %v232_v11 = vmul.f32 %v414_v63, %v231_v54  ;;  %vm729_vm4 = vcmp.lt.f32.partialorder %v233_v55, 0.0004427343  ;;  %439 = vpow2.f32 %v177_v23 }
  0x2a   :  { %vm733_vm5 = vcmp.lt.f32.partialorder %v242_v56, 0.0004427343  ;;  %v249_v15 = vadd.f32 1.0, %v248_v59  ;;  %v260_v16 = vand.u32 2147483647, %v712_v36  ;;  %v263_v7 = vadd.f32 1.0, %v727_v8 }
  0x2b   :  { %v179_v13 = vmul.f32 1.442695, %v153_v5  ;;  %v241_v57 = vmul.f32 %v416_v9, %v240_v48  ;;  %v181_v63 = vmul.f32 1.442695, %v154_v6  ;;  %v139_v34 = vand.u32 2147483647, %v689_v52 }
  0x2c   :  { %v424_v53 = vpop.eup %423  ;;  %vm740_vm6 = vcmp.lt.f32.partialorder %v251_v3, 0.0004427343  ;;  %v258_v49 = vadd.f32 1.0, %v257_v4  ;;  %441 = vlog2.f32 %v263_v7  ;;  %v266_v48 = vmul.f32 -0.5, %v727_v8 }
  0x2d   :  { %v426_v21 = vpop.eup %425  ;;  %v193_v32 = vmul.f32 0.6931472, %v424_v53  ;;  %443 = vpow2.f32 %v179_v13  ;;  %v155_v56 = vsub.f32 0.0, %v139_v34  ;;  %vm781_vm7 = vcmp.lt.f32.partialorder %v260_v16, 0.0004427343 }
  0x2e   :  { %v428_v35 = vpop.eup %427  ;;  %v202_v47 = vmul.f32 0.6931472, %v426_v21  ;;  %445 = vpow2.f32 %v181_v63  ;;  %v259_v27 = vmul.f32 %v712_v36, %v258_v49  ;;  %v267_v36 = vadd.f32 1.0, %v266_v48 }
  0x2f   :  { %v199_v54 = vsel %vm700_vm0, %v196_v40, %v193_v32  ;;  %v211_v55 = vmul.f32 0.6931472, %v428_v35  ;;  %v430_v59 = vpop.eup %429  ;;  %v183_v4 = vmul.f32 1.442695, %v155_v56  ;;  %v119_v16 = vmax.f32 %v652_v17, 0.0 }
  0x30   :  { %v335_v9 = vadd.f32 %v199_v54, %v111_v19  ;;  %v208_v61 = vsel %vm708_vm1, %v205_v41, %v202_v47  ;;  %v220_v40 = vmul.f32 0.6931472, %v430_v59  ;;  %v432_v5 = vpop.eup %431  ;;  %v250_v19 = vmul.f32 %v706_v25, %v249_v15  ;;  %v93_v41 = vld [vmem:[%s916_s3 + $0x70] sm:$0xff] }
  0x31   :  { %v336_v3 = vadd.f32 %v208_v61, %v112_v28  ;;  %v217_v18 = vsel %vm714_vm2, %v214_v0, %v211_v55  ;;  %v229_v46 = vmul.f32 0.6931472, %v432_v5  ;;  %v77_v0 = vadd.f32 %v537_v2, %v693_v62 }
  0x32   :  { %447 = vtanh.f32 %v335_v9  ;;  %v337_v6 = vadd.f32 %v217_v18, %v113_v31  ;;  %v226_v28 = vsel %vm721_vm3, %v223_v10, %v220_v40  ;;  %v32_v31 = vld [vmem:[%s913_s0 + $0x78] sm:$0xff]  ;;  %v434_v53 = vpop.eup %433  ;;  %v140_v15 = vand.u32 2147483647, %v704_v24 }
  0x33   :  { %449 = vtanh.f32 %v336_v3  ;;  %v338_v25 = vadd.f32 %v226_v28, %v114_v37  ;;  %v436_v7 = vpop.eup %435  ;;  %v235_v42 = vsel %vm729_vm4, %v232_v11, %v229_v46  ;;  %v238_v10 = vmul.f32 0.6931472, %v434_v53 }
  0x34   :  { %451 = vtanh.f32 %v337_v6  ;;  %v774_v13 = vadd.f32 %v93_v41, %v77_v0  ;;  %v339_v62 = vadd.f32 %v235_v42, %v115_v38  ;;  %v247_v21 = vmul.f32 0.6931472, %v436_v7 }
  0x35   :  { %453 = vpow2.f32 %v183_v4  ;;  %v55_v32 = vmul.f32 %v532_v1, %v32_v31  ;;  %v438_v63 = vpop.eup %437  ;;  %v244_v37 = vsel %vm733_vm5, %v241_v57, %v238_v10  ;;  %v269_v11 = vand.u32 2147483647, %v727_v8 }
  0x36   :  { %455 = vtanh.f32 %v338_v25  ;;  %v141_v12 = vand.u32 2147483647, %v774_v13  ;;  %v787_v35 = vpop.eup %439  ;;  %v340_v38 = vadd.f32 %v244_v37, %v116_v39  ;;  %v253_v1 = vsel %vm740_vm6, %v250_v19, %v247_v21 }
  0x37   :  { %457 = vtanh.f32 %v339_v62  ;;  %v256_v47 = vmul.f32 0.6931472, %v438_v63  ;;  %v341_v14 = vadd.f32 %v253_v1, %v117_v43  ;;  %v268_v57 = vmul.f32 %v727_v8, %v267_v36  ;;  %v94_v8 = vld [vmem:[%s916_s3 + $0x78] sm:$0xff] }
  0x38   :  { %v272_v49 = vadd.f32 1.0, %v787_v35  ;;  %459 = vtanh.f32 %v340_v38  ;;  %v156_v55 = vsub.f32 0.0, %v140_v15  ;;  %v78_v39 = vadd.f32 %v537_v2, %v55_v32 }
  0x39   :  { %v262_v54 = vsel %vm781_vm7, %v259_v27, %v256_v47  ;;  %v442_v56 = vpop.eup %441  ;;  %461 = vtanh.f32 %v341_v14  ;;  %vm270_vm8 = vcmp.lt.f32.partialorder %v269_v11, 0.0004427343  ;;  %v157_v43 = vsub.f32 0.0, %v141_v12 }
  0x3a   :  { %v342_v23 = vadd.f32 %v262_v54, %v118_v45  ;;  %v806_v59 = vpop.eup %443  ;;  %v265_v9 = vmul.f32 0.6931472, %v442_v56  ;;  %463 = vlog2.f32 %v272_v49  ;;  %v185_v18 = vmul.f32 1.442695, %v156_v55 }
  0x3b   :  { %v808_v61 = vpop.eup %445  ;;  %v281_v2 = vadd.f32 1.0, %v806_v59  ;;  %v812_v45 = vadd.f32 %v94_v8, %v78_v39  ;;  %v275_v5 = vmul.f32 -0.5, %v787_v35  ;;  %v187_v6 = vmul.f32 1.442695, %v157_v43 }
  0x3c   :  { %465 = vtanh.f32 %v342_v23  ;;  %v271_v48 = vsel %vm270_vm8, %v268_v57, %v265_v9  ;;  %v290_v3 = vadd.f32 1.0, %v808_v61  ;;  %v293_v36 = vmul.f32 -0.5, %v808_v61 }
  0x3d   :  { %v343_v4 = vadd.f32 %v271_v48, %v119_v16  ;;  %467 = vlog2.f32 %v281_v2  ;;  %v142_v31 = vand.u32 2147483647, %v812_v45  ;;  %v278_v42 = vand.u32 2147483647, %v787_v35 }
  0x3e   :  { %469 = vlog2.f32 %v290_v3  ;;  %v120_v32 = vmax.f32 %v656_v22, 0.0  ;;  %v287_v11 = vand.u32 2147483647, %v806_v59  ;;  %v294_v12 = vadd.f32 1.0, %v293_v36 }
  0x3f   :  { %v448_v40 = vpop.eup %447  ;;  %471 = vtanh.f32 %v343_v4  ;;  %v158_v15 = vsub.f32 0.0, %v142_v31  ;;  %vm847_vm9 = vcmp.lt.f32.partialorder %v278_v42, 0.0004427343  ;;  %v121_v16 = vmax.f32 %v685_v50, 0.0 }
  0x40   :  { %v450_v19 = vpop.eup %449  ;;  %v367_v27 = vmul.f32 %v448_v40, %v576_v20  ;;  %473 = vpow2.f32 %v185_v18  ;;  %v276_v20 = vadd.f32 1.0, %v275_v5  ;;  %vm864_vm10 = vcmp.lt.f32.partialorder %v287_v11, 0.0004427343 }
  0x41   :  { %v452_v41 = vpop.eup %451  ;;  %v368_v28 = vmul.f32 %v450_v19, %v587_v26  ;;  %v284_v26 = vmul.f32 -0.5, %v806_v59  ;;  %475 = vpow2.f32 %v187_v6  ;;  %v189_v62 = vmul.f32 1.442695, %v158_v15 }
  0x42   :  { %v817_v46 = vpop.eup %453  ;;  %383 = vst [vmem:[%s917_s4] sm:$0xff] %v367_v27  ;;  %v369_v0 = vmul.f32 %v452_v41, %v591_v29  ;;  %v277_v63 = vmul.f32 %v787_v35, %v276_v20  ;;  %v296_v35 = vand.u32 2147483647, %v808_v61  ;;  %v122_v39 = vmax.f32 %v687_v51, 0.0 }
  0x43   :  { %v456_v53 = vpop.eup %455  ;;  %384 = vst [vmem:[%s917_s4 + $0x8] sm:$0xff] %v368_v28  ;;  %v299_v25 = vadd.f32 1.0, %v817_v46  ;;  %v302_v47 = vmul.f32 -0.5, %v817_v46  ;;  %v295_v56 = vmul.f32 %v808_v61, %v294_v12  ;;  %v305_v2 = vand.u32 2147483647, %v817_v46 }
  0x44   :  { %385 = vst [vmem:[%s917_s4 + $0x10] sm:$0xff] %v369_v0  ;;  %v370_v29 = vmul.f32 %v456_v53, %v593_v30  ;;  %v458_v7 = vpop.eup %457  ;;  %v285_v30 = vadd.f32 1.0, %v284_v26  ;;  %vm297_vm11 = vcmp.lt.f32.partialorder %v296_v35, 0.0004427343 }
  0x45   :  { %477 = vlog2.f32 %v299_v25  ;;  %v371_v10 = vmul.f32 %v458_v7, %v597_v33  ;;  %v460_v21 = vpop.eup %459  ;;  %v303_v8 = vadd.f32 1.0, %v302_v47  ;;  %vm306_vm12 = vcmp.lt.f32.partialorder %v305_v2, 0.0004427343 }
  0x46   :  { %386 = vst [vmem:[%s917_s4 + $0x18] sm:$0xff] %v370_v29  ;;  %v462_v37 = vpop.eup %461  ;;  %v372_v34 = vmul.f32 %v460_v21, %v607_v44  ;;  %479 = vpow2.f32 %v189_v62  ;;  %v286_v57 = vmul.f32 %v806_v59, %v285_v30 }
  0x47   :  { %387 = vst [vmem:[%s917_s4 + $0x20] sm:$0xff] %v371_v10  ;;  %v464_v38 = vpop.eup %463  ;;  %v373_v33 = vmul.f32 %v462_v37, %v624_v58  ;;  %v304_v19 = vmul.f32 %v817_v46, %v303_v8  ;;  %v125_v37 = vmax.f32 %v774_v13, 0.0 }
  0x48   :  { %388 = vst [vmem:[%s917_s4 + $0x28] sm:$0xff] %v372_v34  ;;  %v274_v44 = vmul.f32 0.6931472, %v464_v38 }
  0x49   :  { %v466_v14 = vpop.eup %465  ;;  %389 = vst [vmem:[%s917_s4 + $0x30] sm:$0xff] %v373_v33 }
  0x4a   :  { %v374_v58 = vmul.f32 %v466_v14, %v626_v60  ;;  %v468_v49 = vpop.eup %467  ;;  %v280_v54 = vsel %vm847_vm9, %v277_v63, %v274_v44  ;;  %v124_v63 = vmax.f32 %v704_v24, 0.0 }
  0x4b   :  { %v470_v23 = vpop.eup %469  ;;  %v344_v60 = vadd.f32 %v280_v54, %v120_v32  ;;  %v283_v43 = vmul.f32 0.6931472, %v468_v49  ;;  %v126_v49 = vmax.f32 %v812_v45, 0.0 }
  0x4c   :  { %390 = vst [vmem:[%s917_s4 + $0x38] sm:$0xff] %v374_v58  ;;  %v472_v59 = vpop.eup %471  ;;  %v292_v9 = vmul.f32 0.6931472, %v470_v23 }
  0x4d   :  { %v474_v48 = vpop.eup %473  ;;  %v375_v3 = vmul.f32 %v472_v59, %v652_v17  ;;  %481 = vtanh.f32 %v344_v60  ;;  %v289_v61 = vsel %vm864_vm10, %v286_v57, %v283_v43  ;;  %v123_v17 = vmax.f32 %v689_v52, 0.0 }
  0x4e   :  { %v476_v18 = vpop.eup %475  ;;  %v345_v40 = vadd.f32 %v289_v61, %v121_v16  ;;  %v298_v4 = vsel %vm297_vm11, %v295_v56, %v292_v9  ;;  %v308_v5 = vadd.f32 1.0, %v474_v48  ;;  %v311_v26 = vmul.f32 -0.5, %v474_v48 }
  0x4f   :  { %391 = vst [vmem:[%s917_s4 + $0x40] sm:$0xff] %v375_v3  ;;  %v346_v6 = vadd.f32 %v298_v4, %v122_v39  ;;  %v317_v27 = vadd.f32 1.0, %v476_v18  ;;  %v320_v25 = vmul.f32 -0.5, %v476_v18  ;;  %v314_v15 = vand.u32 2147483647, %v474_v48 }
  0x50   :  { %483 = vtanh.f32 %v345_v40  ;;  %v312_v46 = vadd.f32 1.0, %v311_v26  ;;  %v323_v10 = vand.u32 2147483647, %v476_v18 }
  0x51   :  { %485 = vtanh.f32 %v346_v6  ;;  %v321_v7 = vadd.f32 1.0, %v320_v25  ;;  %vm315_vm13 = vcmp.lt.f32.partialorder %v314_v15, 0.0004427343 }
  0x52   :  { %v478_v41 = vpop.eup %477  ;;  %487 = vlog2.f32 %v308_v5  ;;  %v313_v30 = vmul.f32 %v474_v48, %v312_v46  ;;  %vm324_vm14 = vcmp.lt.f32.partialorder %v323_v10, 0.0004427343 }
  0x53   :  { %v301_v28 = vmul.f32 0.6931472, %v478_v41  ;;  %v480_v0 = vpop.eup %479  ;;  %489 = vlog2.f32 %v317_v27  ;;  %v322_v11 = vmul.f32 %v476_v18, %v321_v7 }
  0x54   :  { %v326_v20 = vadd.f32 1.0, %v480_v0  ;;  %v329_v42 = vmul.f32 -0.5, %v480_v0  ;;  %v332_v1 = vand.u32 2147483647, %v480_v0 }
  0x55   :  { %v307_v31 = vsel %vm306_vm12, %v304_v19, %v301_v28 }
  0x56   :  { %v347_v53 = vadd.f32 %v307_v31, %v123_v17  ;;  %v330_v12 = vadd.f32 1.0, %v329_v42  ;;  %vm333_vm15 = vcmp.lt.f32.partialorder %v332_v1, 0.0004427343 }
  0x58   :  { %491 = vtanh.f32 %v347_v53  ;;  %v331_v44 = vmul.f32 %v480_v0, %v330_v12 }
  0x59   :  { %493 = vlog2.f32 %v326_v20 }
  0x5a   :  { %v482_v29 = vpop.eup %481 }
  0x5b   :  { %v376_v36 = vmul.f32 %v482_v29, %v656_v22 }
  0x5d   :  { %v484_v62 = vpop.eup %483  ;;  %392 = vst [vmem:[%s917_s4 + $0x48] sm:$0xff] %v376_v36 }
  0x5e   :  { %v486_v21 = vpop.eup %485  ;;  %v377_v32 = vmul.f32 %v484_v62, %v685_v50 }
  0x5f   :  { %v488_v34 = vpop.eup %487  ;;  %v378_v22 = vmul.f32 %v486_v21, %v687_v51 }
  0x60   :  { %v490_v38 = vpop.eup %489  ;;  %393 = vst [vmem:[%s917_s4 + $0x50] sm:$0xff] %v377_v32  ;;  %v310_v33 = vmul.f32 0.6931472, %v488_v34 }
  0x61   :  { %394 = vst [vmem:[%s917_s4 + $0x58] sm:$0xff] %v378_v22  ;;  %v319_v50 = vmul.f32 0.6931472, %v490_v38 }
  0x62   :  { %v316_v35 = vsel %vm315_vm13, %v313_v30, %v310_v33 }
  0x63   :  { %v348_v14 = vadd.f32 %v316_v35, %v124_v63  ;;  %v325_v51 = vsel %vm324_vm14, %v322_v11, %v319_v50 }
  0x64   :  { %v349_v57 = vadd.f32 %v325_v51, %v125_v37 }
  0x65   :  { %v492_v47 = vpop.eup %491  ;;  %495 = vtanh.f32 %v348_v14 }
  0x66   :  { %v494_v58 = vpop.eup %493  ;;  %v379_v16 = vmul.f32 %v492_v47, %v689_v52  ;;  %497 = vtanh.f32 %v349_v57 }
  0x67   :  { %v328_v54 = vmul.f32 0.6931472, %v494_v58 }
  0x68   :  { %395 = vst [vmem:[%s917_s4 + $0x60] sm:$0xff] %v379_v16 }
  0x69   :  { %v334_v55 = vsel %vm333_vm15, %v331_v44, %v328_v54 }
  0x6a   :  { %v350_v39 = vadd.f32 %v334_v55, %v126_v49 }
  0x6c   :  { %499 = vtanh.f32 %v350_v39 }
  0x72   :  { %v496_v56 = vpop.eup %495 }
  0x73   :  { %v498_v23 = vpop.eup %497  ;;  %v380_v60 = vmul.f32 %v496_v56, %v704_v24 }
  0x74   :  { %v381_v52 = vmul.f32 %v498_v23, %v774_v13 }
  0x75   :  { %396 = vst [vmem:[%s917_s4 + $0x68] sm:$0xff] %v380_v60 }
  0x76   :  { %397 = vst [vmem:[%s917_s4 + $0x70] sm:$0xff] %v381_v52 }
  0x79   :  { %v500_v43 = vpop.eup %499 }
  0x7a   :  { %v382_v8 = vmul.f32 %v500_v43, %v812_v45 }
  0x7c   :  { %398 = vst [vmem:[%s917_s4 + $0x78] sm:$0xff] %v382_v8 }

// kernel: resnet18_block_forward.57
= control target key start
LH: loop header
LB: loop body
LE: loop exit
PB: predicated region body
PF: predicated region fallthrough
CT: control target
= control target key end

     0   :  { %s218_s0 = inlined_call_operand.vmem [shape: f32[32,128], index: 0, kind: input, shape index: {}]   ;;  %s219_s1 = inlined_call_operand.vmem [shape: f32[1,128], index: 1, kind: input, shape index: {}]   ;;  %s220_s2 = inlined_call_operand.vmem [shape: f32[1,128], index: 2, kind: input, shape index: {}]   ;;  %s221_s3 = inlined_call_operand.vmem [shape: f32[32,128], index: 3, kind: output, shape index: {}]  }
   0x1   :  { %v14_v0 = vld [vmem:[%s218_s0] sm:$0xff]  ;;  %v15_v4 = vld [vmem:[%s218_s0 + $0x8] sm:$0xff]  ;;  %v16_v5 = vld [vmem:[%s218_s0 + $0x10] sm:$0xff] }
   0x2   :  { %v116_v1 = vld [vmem:[%s219_s1] ss:$0 sm:$0xff]  ;;  %v17_v6 = vld [vmem:[%s218_s0 + $0x18] sm:$0xff] }
   0x3   :  { %v117_v2 = vld [vmem:[%s220_s2] ss:$0 sm:$0xff]  ;;  %v25_v3 = vmul.f32 %v116_v1, %v14_v0  ;;  %v26_v7 = vmul.f32 %v116_v1, %v15_v4  ;;  %v27_v8 = vmul.f32 %v116_v1, %v16_v5  ;;  %v28_v9 = vmul.f32 %v116_v1, %v17_v6 }
   0x5   :  { %v180_v10 = vadd.f32 %v117_v2, %v25_v3  ;;  %v182_v11 = vadd.f32 %v117_v2, %v26_v7  ;;  %v184_v12 = vadd.f32 %v117_v2, %v27_v8  ;;  %v186_v13 = vadd.f32 %v117_v2, %v28_v9 }
   0x7   :  { %v44_v14 = vand.u32 2147483647, %v180_v10  ;;  %v45_v15 = vand.u32 2147483647, %v182_v11  ;;  %v46_v16 = vand.u32 2147483647, %v184_v12 }
   0x8   :  { %v47_v18 = vand.u32 2147483647, %v186_v13  ;;  %v40_v47 = vmax.f32 %v180_v10, 0.0  ;;  %v41_v53 = vmax.f32 %v182_v11, 0.0  ;;  %v42_v57 = vmax.f32 %v184_v12, 0.0 }
   0x9   :  { %v48_v17 = vsub.f32 0.0, %v44_v14  ;;  %v49_v19 = vsub.f32 0.0, %v45_v15  ;;  %v50_v20 = vsub.f32 0.0, %v46_v16  ;;  %v43_v0 = vmax.f32 %v186_v13, 0.0 }
   0xa   :  { %v51_v22 = vsub.f32 0.0, %v47_v18 }
   0xb   :  { %v52_v21 = vmul.f32 1.442695, %v48_v17  ;;  %v54_v23 = vmul.f32 1.442695, %v49_v19  ;;  %v56_v24 = vmul.f32 1.442695, %v50_v20 }
   0xc   :  { %v58_v25 = vmul.f32 1.442695, %v51_v22 }
   0xd   :  { %118 = vpow2.f32 %v52_v21 }
   0xe   :  { %120 = vpow2.f32 %v54_v23 }
   0xf   :  { %122 = vpow2.f32 %v56_v24 }
  0x10   :  { %124 = vpow2.f32 %v58_v25 }
  0x1a   :  { %v119_v26 = vpop.eup %118 }
  0x1b   :  { %v121_v27 = vpop.eup %120  ;;  %v60_v28 = vadd.f32 1.0, %v119_v26  ;;  %v63_v34 = vmul.f32 -0.5, %v119_v26  ;;  %v66_v39 = vand.u32 2147483647, %v119_v26 }
  0x1c   :  { %v123_v29 = vpop.eup %122  ;;  %v69_v30 = vadd.f32 1.0, %v121_v27  ;;  %v72_v35 = vmul.f32 -0.5, %v121_v27  ;;  %v75_v41 = vand.u32 2147483647, %v121_v27 }
  0x1d   :  { %v125_v31 = vpop.eup %124  ;;  %126 = vlog2.f32 %v60_v28  ;;  %v78_v32 = vadd.f32 1.0, %v123_v29  ;;  %v81_v36 = vmul.f32 -0.5, %v123_v29  ;;  %v64_v37 = vadd.f32 1.0, %v63_v34 }
  0x1e   :  { %128 = vlog2.f32 %v69_v30  ;;  %v87_v33 = vadd.f32 1.0, %v125_v31  ;;  %v90_v38 = vmul.f32 -0.5, %v125_v31  ;;  %v73_v40 = vadd.f32 1.0, %v72_v35 }
  0x1f   :  { %130 = vlog2.f32 %v78_v32  ;;  %v82_v42 = vadd.f32 1.0, %v81_v36  ;;  %v84_v43 = vand.u32 2147483647, %v123_v29  ;;  %v65_v44 = vmul.f32 %v119_v26, %v64_v37 }
  0x20   :  { %132 = vlog2.f32 %v87_v33  ;;  %v91_v45 = vadd.f32 1.0, %v90_v38  ;;  %vm193_vm0 = vcmp.lt.f32.partialorder %v66_v39, 0.0004427343  ;;  %v74_v49 = vmul.f32 %v121_v27, %v73_v40 }
  0x21   :  { %v93_v50 = vand.u32 2147483647, %v125_v31  ;;  %vm76_vm1 = vcmp.lt.f32.partialorder %v75_v41, 0.0004427343  ;;  %v83_v54 = vmul.f32 %v123_v29, %v82_v42  ;;  %vm85_vm2 = vcmp.lt.f32.partialorder %v84_v43, 0.0004427343 }
  0x22   :  { %v92_v60 = vmul.f32 %v125_v31, %v91_v45 }
  0x23   :  { %vm94_vm3 = vcmp.lt.f32.partialorder %v93_v50, 0.0004427343 }
  0x2a   :  { %v127_v46 = vpop.eup %126 }
  0x2b   :  { %v129_v51 = vpop.eup %128  ;;  %v62_v52 = vmul.f32 0.6931472, %v127_v46 }
  0x2c   :  { %v131_v55 = vpop.eup %130  ;;  %v71_v56 = vmul.f32 0.6931472, %v129_v51 }
  0x2d   :  { %v68_v58 = vsel %vm193_vm0, %v65_v44, %v62_v52  ;;  %v80_v59 = vmul.f32 0.6931472, %v131_v55  ;;  %v133_v61 = vpop.eup %132 }
  0x2e   :  { %v96_v62 = vadd.f32 %v68_v58, %v40_v47  ;;  %v77_v63 = vsel %vm76_vm1, %v74_v49, %v71_v56  ;;  %v89_v3 = vmul.f32 0.6931472, %v133_v61 }
  0x2f   :  { %v97_v1 = vadd.f32 %v77_v63, %v41_v53  ;;  %v86_v2 = vsel %vm85_vm2, %v83_v54, %v80_v59 }
  0x30   :  { %134 = vtanh.f32 %v96_v62  ;;  %v98_v4 = vadd.f32 %v86_v2, %v42_v57  ;;  %v95_v5 = vsel %vm94_vm3, %v92_v60, %v89_v3 }
  0x31   :  { %136 = vtanh.f32 %v97_v1  ;;  %v99_v6 = vadd.f32 %v95_v5, %v43_v0 }
  0x32   :  { %138 = vtanh.f32 %v98_v4 }
  0x33   :  { %140 = vtanh.f32 %v99_v6 }
  0x3d   :  { %v135_v7 = vpop.eup %134 }
  0x3e   :  { %v137_v8 = vpop.eup %136  ;;  %v104_v9 = vmul.f32 %v135_v7, %v180_v10 }
  0x3f   :  { %v139_v14 = vpop.eup %138  ;;  %v105_v15 = vmul.f32 %v137_v8, %v182_v11 }
  0x40   :  { %108 = vst [vmem:[%s221_s3] sm:$0xff] %v104_v9  ;;  %v106_v16 = vmul.f32 %v139_v14, %v184_v12  ;;  %v141_v17 = vpop.eup %140 }
  0x41   :  { %109 = vst [vmem:[%s221_s3 + $0x8] sm:$0xff] %v105_v15  ;;  %v107_v10 = vmul.f32 %v141_v17, %v186_v13 }
  0x42   :  { %110 = vst [vmem:[%s221_s3 + $0x10] sm:$0xff] %v106_v16 }
  0x43   :  { %111 = vst [vmem:[%s221_s3 + $0x18] sm:$0xff] %v107_v10 }

// kernel: resnet18_block_forward.56
= control target key start
LH: loop header
LB: loop body
LE: loop exit
PB: predicated region body
PF: predicated region fallthrough
CT: control target
= control target key end

     0   :  { %vm116_vm0 = vcmask 523264   ;;  %s937_s1 = inlined_call_operand.vmem [shape: f32[576,128], index: 1, kind: input, shape index: {}]   ;;  %s938_s0 = inlined_call_operand.vmem [shape: f32[32,576], index: 0, kind: input, shape index: {}]   ;;  %s939_s4 = inlined_call_operand.vmem [shape: f32[1,128], index: 4, kind: output, shape index: {1}]   ;;  %s940_s5 = inlined_call_operand.vmem [shape: f32[1,128], index: 5, kind: output, shape index: {2}]   ;;  %s941_s2 = inlined_call_operand.vmem [shape: f32[1,128], index: 2, kind: input, shape index: {}]   ;;  %s942_s3 = inlined_call_operand.vmem [shape: f32[32,128], index: 3, kind: output, shape index: {0}]  }
   0x1   :  { %v68_v0 = vld [vmem:[%s937_s1 + $0xf8] sm:$0xff]  ;;  %v67_v4 = vld [vmem:[%s937_s1 + $0xf0] sm:$0xff]  ;;  %v66_v8 = vld [vmem:[%s937_s1 + $0xe8] sm:$0xff] }
   0x2   :  { %v100_v1 = vld [vmem:[%s937_s1 + $0x1f8] sm:$0xff]  ;;  %458 = vmatprep.subr.mxu0 %v68_v0  ;;  %v99_v5 = vld [vmem:[%s937_s1 + $0x1f0] sm:$0xff]  ;;  %v98_v9 = vld [vmem:[%s937_s1 + $0x1e8] sm:$0xff] }
   0x3   :  { %v52_v2 = vld [vmem:[%s937_s1 + $0x78] sm:$0xff]  ;;  %502 = vmatprep.subr.mxu1 %v100_v1  ;;  %v51_v6 = vld [vmem:[%s937_s1 + $0x70] sm:$0xff]  ;;  %v50_v10 = vld [vmem:[%s937_s1 + $0x68] sm:$0xff] }
   0x4   :  { %v84_v3 = vld [vmem:[%s937_s1 + $0x178] sm:$0xff]  ;;  %459 = vmatpush3.msra.mxu0 %v52_v2  ;;  %v83_v7 = vld [vmem:[%s937_s1 + $0x170] sm:$0xff]  ;;  %v82_v11 = vld [vmem:[%s937_s1 + $0x168] sm:$0xff] }
   0x5   :  { %503 = vmatpush3.msra.mxu1 %v84_v3  ;;  %460 = vmatprep.subr.mxu0 %v67_v4  ;;  %v65_v12 = vld [vmem:[%s937_s1 + $0xe0] sm:$0xff]  ;;  %v64_v16 = vld [vmem:[%s937_s1 + $0xd8] sm:$0xff]  ;;  %v63_v20 = vld [vmem:[%s937_s1 + $0xd0] sm:$0xff] }
   0x6   :  { %504 = vmatprep.subr.mxu1 %v99_v5  ;;  %461 = vmatpush3.msra.mxu0 %v51_v6  ;;  %v97_v13 = vld [vmem:[%s937_s1 + $0x1e0] sm:$0xff]  ;;  %v96_v17 = vld [vmem:[%s937_s1 + $0x1d8] sm:$0xff]  ;;  %v95_v21 = vld [vmem:[%s937_s1 + $0x1d0] sm:$0xff] }
   0x7   :  { %505 = vmatpush3.msra.mxu1 %v83_v7  ;;  %462 = vmatprep.subr.mxu0 %v66_v8  ;;  %v49_v14 = vld [vmem:[%s937_s1 + $0x60] sm:$0xff]  ;;  %v48_v18 = vld [vmem:[%s937_s1 + $0x58] sm:$0xff]  ;;  %v47_v22 = vld [vmem:[%s937_s1 + $0x50] sm:$0xff] }
   0x8   :  { %506 = vmatprep.subr.mxu1 %v98_v9  ;;  %v81_v15 = vld [vmem:[%s937_s1 + $0x160] sm:$0xff]  ;;  %463 = vmatpush3.msra.mxu0 %v50_v10  ;;  %v80_v19 = vld [vmem:[%s937_s1 + $0x158] sm:$0xff]  ;;  %v79_v23 = vld [vmem:[%s937_s1 + $0x150] sm:$0xff] }
   0x9   :  { %507 = vmatpush3.msra.mxu1 %v82_v11  ;;  %464 = vmatprep.subr.mxu0 %v65_v12  ;;  %v62_v24 = vld [vmem:[%s937_s1 + $0xc8] sm:$0xff]  ;;  %v61_v28 = vld [vmem:[%s937_s1 + $0xc0] sm:$0xff]  ;;  %v60_v32 = vld [vmem:[%s937_s1 + $0xb8] sm:$0xff] }
   0xa   :  { %508 = vmatprep.subr.mxu1 %v97_v13  ;;  %465 = vmatpush3.msra.mxu0 %v49_v14  ;;  %v94_v25 = vld [vmem:[%s937_s1 + $0x1c8] sm:$0xff]  ;;  %v93_v29 = vld [vmem:[%s937_s1 + $0x1c0] sm:$0xff]  ;;  %v92_v33 = vld [vmem:[%s937_s1 + $0x1b8] sm:$0xff] }
   0xb   :  { %509 = vmatpush3.msra.mxu1 %v81_v15  ;;  %466 = vmatprep.subr.mxu0 %v64_v16  ;;  %v46_v26 = vld [vmem:[%s937_s1 + $0x48] sm:$0xff]  ;;  %v45_v30 = vld [vmem:[%s937_s1 + $0x40] sm:$0xff]  ;;  %v44_v34 = vld [vmem:[%s937_s1 + $0x38] sm:$0xff] }
   0xc   :  { %510 = vmatprep.subr.mxu1 %v96_v17  ;;  %467 = vmatpush3.msra.mxu0 %v48_v18  ;;  %v78_v27 = vld [vmem:[%s937_s1 + $0x148] sm:$0xff]  ;;  %v77_v31 = vld [vmem:[%s937_s1 + $0x140] sm:$0xff]  ;;  %v76_v35 = vld [vmem:[%s937_s1 + $0x138] sm:$0xff] }
   0xd   :  { %511 = vmatpush3.msra.mxu1 %v80_v19  ;;  %468 = vmatprep.subr.mxu0 %v63_v20  ;;  %v59_v36 = vld [vmem:[%s937_s1 + $0xb0] sm:$0xff]  ;;  %v58_v40 = vld [vmem:[%s937_s1 + $0xa8] sm:$0xff]  ;;  %v57_v44 = vld [vmem:[%s937_s1 + $0xa0] sm:$0xff] }
   0xe   :  { %512 = vmatprep.subr.mxu1 %v95_v21  ;;  %469 = vmatpush3.msra.mxu0 %v47_v22  ;;  %v91_v37 = vld [vmem:[%s937_s1 + $0x1b0] sm:$0xff]  ;;  %v90_v41 = vld [vmem:[%s937_s1 + $0x1a8] sm:$0xff]  ;;  %v89_v45 = vld [vmem:[%s937_s1 + $0x1a0] sm:$0xff] }
   0xf   :  { %513 = vmatpush3.msra.mxu1 %v79_v23  ;;  %470 = vmatprep.subr.mxu0 %v62_v24  ;;  %v43_v38 = vld [vmem:[%s937_s1 + $0x30] sm:$0xff]  ;;  %v42_v42 = vld [vmem:[%s937_s1 + $0x28] sm:$0xff]  ;;  %v41_v46 = vld [vmem:[%s937_s1 + $0x20] sm:$0xff] }
  0x10   :  { %514 = vmatprep.subr.mxu1 %v94_v25  ;;  %471 = vmatpush3.msra.mxu0 %v46_v26  ;;  %v75_v39 = vld [vmem:[%s937_s1 + $0x130] sm:$0xff]  ;;  %v74_v43 = vld [vmem:[%s937_s1 + $0x128] sm:$0xff]  ;;  %v73_v47 = vld [vmem:[%s937_s1 + $0x120] sm:$0xff] }
  0x11   :  { %515 = vmatpush3.msra.mxu1 %v78_v27  ;;  %472 = vmatprep.subr.mxu0 %v61_v28  ;;  %v56_v48 = vld [vmem:[%s937_s1 + $0x98] sm:$0xff]  ;;  %v55_v52 = vld [vmem:[%s937_s1 + $0x90] sm:$0xff]  ;;  %v54_v56 = vld [vmem:[%s937_s1 + $0x88] sm:$0xff]  ;;  %v597_v28 = vmov 0.0  }
  0x12   :  { %516 = vmatprep.subr.mxu1 %v93_v29  ;;  %473 = vmatpush3.msra.mxu0 %v45_v30  ;;  %v88_v49 = vld [vmem:[%s937_s1 + $0x198] sm:$0xff]  ;;  %v87_v53 = vld [vmem:[%s937_s1 + $0x190] sm:$0xff]  ;;  %v86_v57 = vld [vmem:[%s937_s1 + $0x188] sm:$0xff]  ;;  %411 = vst [vmem:[%s939_s4] sm:$0x1] %v597_v28 }
  0x13   :  { %517 = vmatpush3.msra.mxu1 %v77_v31  ;;  %474 = vmatprep.subr.mxu0 %v60_v32  ;;  %v40_v50 = vld [vmem:[%s937_s1 + $0x18] sm:$0xff]  ;;  %v39_v54 = vld [vmem:[%s937_s1 + $0x10] sm:$0xff]  ;;  %v38_v58 = vld [vmem:[%s937_s1 + $0x8] sm:$0xff]  ;;  %412 = vst [vmem:[%s940_s5] sm:$0x1] %v597_v28 }
  0x14   :  { %518 = vmatprep.subr.mxu1 %v92_v33  ;;  %475 = vmatpush3.msra.mxu0 %v44_v34  ;;  %v72_v51 = vld [vmem:[%s937_s1 + $0x118] sm:$0xff]  ;;  %v71_v55 = vld [vmem:[%s937_s1 + $0x110] sm:$0xff]  ;;  %v70_v59 = vld [vmem:[%s937_s1 + $0x108] sm:$0xff] }
  0x15   :  { %519 = vmatpush3.msra.mxu1 %v76_v35  ;;  %476 = vmatprep.subr.mxu0 %v59_v36  ;;  %v53_v60 = vld [vmem:[%s937_s1 + $0x80] sm:$0xff]  ;;  %v18_v63 = vld [vmem:[%s938_s0 + $0x8] sm:$0xff]  ;;  %v20_v1 = vld [vmem:[%s938_s0 + $0x18] sm:$0xff] }
  0x16   :  { %520 = vmatprep.subr.mxu1 %v91_v37  ;;  %477 = vmatpush3.msra.mxu0 %v43_v38  ;;  %v85_v61 = vld [vmem:[%s937_s1 + $0x180] sm:$0xff]  ;;  %v19_v3 = vld [vmem:[%s938_s0 + $0x10] sm:$0xff]  ;;  %v108_v4 = vld [vmem:[%s937_s1 + $0x238] sm:$0xff] }
  0x17   :  { %521 = vmatpush3.msra.mxu1 %v75_v39  ;;  %478 = vmatprep.subr.mxu0 %v58_v40  ;;  %v37_v62 = vld [vmem:[%s937_s1] sm:$0xff]  ;;  %v107_v5 = vld [vmem:[%s937_s1 + $0x230] sm:$0xff]  ;;  %v22_v8 = vld [vmem:[%s938_s0 + $0x28] sm:$0xff] }
  0x18   :  { %522 = vmatprep.subr.mxu1 %v90_v41  ;;  %479 = vmatpush3.msra.mxu0 %v42_v42  ;;  %v69_v0 = vld [vmem:[%s937_s1 + $0x100] sm:$0xff]  ;;  %v23_v6 = vld [vmem:[%s938_s0 + $0x30] sm:$0xff]  ;;  %v24_v9 = vld [vmem:[%s938_s0 + $0x38] sm:$0xff] }
  0x19   :  { %523 = vmatpush3.msra.mxu1 %v74_v43  ;;  %480 = vmatprep.subr.mxu0 %v57_v44  ;;  %v17_v2 = vld [vmem:[%s938_s0] sm:$0xff]  ;;  %v106_v10 = vld [vmem:[%s937_s1 + $0x228] sm:$0xff]  ;;  %v28_v12 = vld [vmem:[%s938_s0 + $0x58] sm:$0xff] }
  0x1a   :  { %524 = vmatprep.subr.mxu1 %v89_v45  ;;  %481 = vmatpush3.msra.mxu0 %v41_v46  ;;  %v25_v7 = vld [vmem:[%s938_s0 + $0x40] sm:$0xff]  ;;  %v30_v13 = vld [vmem:[%s938_s0 + $0x68] sm:$0xff]  ;;  %v27_v14 = vld [vmem:[%s938_s0 + $0x50] sm:$0xff] }
  0x1b   :  { %525 = vmatpush3.msra.mxu1 %v73_v47  ;;  %482 = vmatprep.subr.mxu0 %v56_v48  ;;  %v105_v11 = vld [vmem:[%s937_s1 + $0x220] sm:$0xff]  ;;  %v104_v16 = vld [vmem:[%s937_s1 + $0x218] sm:$0xff]  ;;  %v103_v17 = vld [vmem:[%s937_s1 + $0x210] sm:$0xff] }
  0x1c   :  { %526 = vmatprep.subr.mxu1 %v88_v49  ;;  %483 = vmatpush3.msra.mxu0 %v40_v50  ;;  %v29_v15 = vld [vmem:[%s938_s0 + $0x60] sm:$0xff]  ;;  %v35_v19 = vld [vmem:[%s938_s0 + $0x90] sm:$0xff]  ;;  %v32_v20 = vld [vmem:[%s938_s0 + $0x78] sm:$0xff] }
  0x1d   :  { %527 = vmatpush3.msra.mxu1 %v72_v51  ;;  %484 = vmatprep.subr.mxu0 %v55_v52  ;;  %v33_v18 = vld [vmem:[%s938_s0 + $0x80] sm:$0xff]  ;;  %v34_v21 = vld [vmem:[%s938_s0 + $0x88] sm:$0xff]  ;;  %v31_v25 = vld [vmem:[%s938_s0 + $0x70] sm:$0xff] }
  0x1e   :  { %528 = vmatprep.subr.mxu1 %v87_v53  ;;  %485 = vmatpush3.msra.mxu0 %v39_v54  ;;  %v102_v22 = vld [vmem:[%s937_s1 + $0x208] sm:$0xff]  ;;  %v101_v23 = vld [vmem:[%s937_s1 + $0x200] sm:$0xff]  ;;  %v36_v27 = vld [vmem:[%s938_s0 + $0x98] sm:$0xff] }
  0x1f   :  { %529 = vmatpush3.msra.mxu1 %v71_v55  ;;  %486 = vmatprep.subr.mxu0 %v54_v56  ;;  %v21_v24 = vld [vmem:[%s938_s0 + $0x20] sm:$0xff]  ;;  %v26_v26 = vld [vmem:[%s938_s0 + $0x48] sm:$0xff] }
  0x20   :  { %530 = vmatprep.subr.mxu1 %v86_v57  ;;  %487 = vmatpush3.msra.mxu0 %v38_v58  ;;  %v453_v44 = vld [vmem:[%s941_s2] ss:$0 sm:$0xff] }
  0x21   :  { %531 = vmatpush3.msra.mxu1 %v70_v59  ;;  %488 = vmatprep.subr.mxu0 %v53_v60  ;;  %v425_v28 = vld [vmem:[%s940_s5] sm:$0x1] }
  0x22   :  { %532 = vmatprep.subr.mxu1 %v85_v61  ;;  %489 = vmatpush3.msra.mxu0 %v37_v62 }
  0x23   :  { %193 = vmatprep.mubr.f32.mxu0 %v18_v63  ;;  %533 = vmatpush3.msra.mxu1 %v69_v0 }
  0x24   :  { %278 = vmatprep.mubr.f32.mxu1 %v20_v1  ;;  %194 = vmatmul.mubr.f32.vlgmr.msra.gmra.mxu0 %v17_v2 }
  0x25   :  { %279 = vmatmul.mubr.f32.vlgmr.msra.gmra.mxu1 %v19_v3  ;;  %558 = vmatprep.subr.mxu0 %v108_v4 }
  0x26   :  { %580 = vmatprep.subr.mxu1 %v108_v4  ;;  %559 = vmatpush3.msra.mxu0 %v108_v4 }
  0x27   :  { %588 = vmatpush3.msra.mxu1 %v108_v4  ;;  %560 = vmatprep.subr.mxu0 %v107_v5 }
  0x28   :  { %581 = vmatprep.subr.mxu1 %v107_v5  ;;  %198 = vmatprep.mubr.f32.mxu0 %v23_v6 }
  0x29   :  { %283 = vmatprep.mubr.f32.mxu1 %v25_v7  ;;  %561 = vmatpush3.msra.mxu0 %v107_v5 }
  0x2a   :  { %589 = vmatpush3.msra.mxu1 %v107_v5  ;;  %199 = vmatmul.mubr.f32.gmra.mxu0 %v22_v8 }
  0x2b   :  { %284 = vmatmul.mubr.f32.gmra.mxu1 %v24_v9  ;;  %562 = vmatprep.subr.mxu0 %v106_v10 }
  0x2c   :  { %582 = vmatprep.subr.mxu1 %v106_v10  ;;  %563 = vmatpush3.msra.mxu0 %v106_v10 }
  0x2d   :  { %590 = vmatpush3.msra.mxu1 %v106_v10  ;;  %564 = vmatprep.subr.mxu0 %v105_v11 }
  0x2e   :  { %583 = vmatprep.subr.mxu1 %v105_v11  ;;  %203 = vmatprep.mubr.f32.mxu0 %v28_v12 }
  0x2f   :  { %288 = vmatprep.mubr.f32.mxu1 %v30_v13  ;;  %565 = vmatpush3.msra.mxu0 %v105_v11 }
  0x30   :  { %591 = vmatpush3.msra.mxu1 %v105_v11  ;;  %204 = vmatmul.mubr.f32.gmra.mxu0 %v27_v14 }
  0x31   :  { %289 = vmatmul.mubr.f32.gmra.mxu1 %v29_v15  ;;  %566 = vmatprep.subr.mxu0 %v104_v16 }
  0x32   :  { %584 = vmatprep.subr.mxu1 %v104_v16  ;;  %567 = vmatpush3.msra.mxu0 %v104_v16 }
  0x33   :  { %592 = vmatpush3.msra.mxu1 %v104_v16  ;;  %568 = vmatprep.subr.mxu0 %v103_v17 }
  0x34   :  { %585 = vmatprep.subr.mxu1 %v103_v17  ;;  %208 = vmatprep.mubr.f32.mxu0 %v33_v18 }
  0x35   :  { %293 = vmatprep.mubr.f32.mxu1 %v35_v19  ;;  %569 = vmatpush3.msra.mxu0 %v103_v17 }
  0x36   :  { %593 = vmatpush3.msra.mxu1 %v103_v17  ;;  %209 = vmatmul.mubr.f32.gmra.mxu0 %v32_v20 }
  0x37   :  { %294 = vmatmul.mubr.f32.gmra.mxu1 %v34_v21  ;;  %570 = vmatprep.subr.mxu0 %v102_v22 }
  0x38   :  { %586 = vmatprep.subr.mxu1 %v102_v22  ;;  %571 = vmatpush3.msra.mxu0 %v102_v22 }
  0x39   :  { %594 = vmatpush3.msra.mxu1 %v102_v22  ;;  %572 = vmatprep.subr.mxu0 %v101_v23 }
  0x3a   :  { %587 = vmatprep.subr.mxu1 %v101_v23  ;;  %573 = vmatpush3.msra.mxu0 %v101_v23 }
  0x3b   :  { %595 = vmatpush3.msra.mxu1 %v101_v23  ;;  %574 = vmatprep.mubr.msk.f32.mxu0 %vm116_vm0, %v21_v24 }
  0x3c   :  { %577 = vmatprep.mubr.msk.f32.mxu1 %vm116_vm0, %v31_v25  ;;  %575 = vmatmul.mubr.msk.f32.vlgmr.msra.gmra.mxu0 %vm116_vm0, %v26_v26  ;;  %v413_v25 = vld [vmem:[%s939_s4] sm:$0x1] }
  0x3d   :  { %578 = vmatmul.mubr.msk.f32.vlgmr.msra.gmra.mxu1 %vm116_vm0, %v36_v27 }
  0xe4   :  { %v490_v29 = vpop.f32.mrf.mxu0 }
  0xe5   :  { %v534_v30 = vpop.f32.mrf.mxu1 }
  0xe6   :  { %v491_v31 = vpop.f32.mrf.mxu0 }
  0xe7   :  { %v535_v32 = vpop.f32.mrf.mxu1  ;;  %v492_v42 = vadd.f32 %v491_v31, %v490_v29 }
  0xe8   :  { %v536_v54 = vadd.f32 %v535_v32, %v534_v30 }
  0xe9   :  { %v196_v50 = vadd.f32 %v492_v42, %v453_v44 }
  0xea   :  { %v493_v33 = vpop.f32.mrf.mxu0 }
  0xeb   :  { %v537_v34 = vpop.f32.mrf.mxu1  ;;  %v281_v63 = vadd.f32 %v536_v54, %v196_v50 }
  0xec   :  { %v494_v35 = vpop.f32.mrf.mxu0 }
  0xed   :  { %v538_v36 = vpop.f32.mrf.mxu1  ;;  %v495_v41 = vadd.f32 %v494_v35, %v493_v33 }
  0xee   :  { %v539_v51 = vadd.f32 %v538_v36, %v537_v34 }
  0xef   :  { %v201_v47 = vadd.f32 %v495_v41, %v453_v44 }
  0xf0   :  { %v496_v37 = vpop.f32.mrf.mxu0 }
  0xf1   :  { %v540_v38 = vpop.f32.mrf.mxu1  ;;  %v286_v58 = vadd.f32 %v539_v51, %v201_v47 }
  0xf2   :  { %v497_v39 = vpop.f32.mrf.mxu0 }
  0xf3   :  { %v541_v40 = vpop.f32.mrf.mxu1  ;;  %v498_v43 = vadd.f32 %v497_v39, %v496_v37 }
  0xf4   :  { %v542_v55 = vadd.f32 %v541_v40, %v540_v38 }
  0xf5   :  { %v206_v52 = vadd.f32 %v498_v43, %v453_v44 }
  0xf6   :  { %v499_v45 = vpop.f32.mrf.mxu0 }
  0xf7   :  { %v543_v46 = vpop.f32.mrf.mxu1  ;;  %v291_v0 = vadd.f32 %v542_v55, %v206_v52 }
  0xf8   :  { %v500_v48 = vpop.f32.mrf.mxu0 }
  0xf9   :  { %v544_v49 = vpop.f32.mrf.mxu1  ;;  %v501_v53 = vadd.f32 %v500_v48, %v499_v45 }
  0xfa   :  { %v545_v57 = vadd.f32 %v544_v49, %v543_v46 }
  0xfb   :  { %v211_v56 = vadd.f32 %v501_v53, %v453_v44 }
  0xfc   :  { %v576_v59 = vpop.f32.mrf.mxu0 }
  0xfd   :  { %v579_v60 = vpop.f32.mrf.mxu1  ;;  %v371_v61 = vadd.f32 %v576_v59, %v286_v58  ;;  %v296_v62 = vadd.f32 %v545_v57, %v211_v56 }
  0xfe   :  { %v365_v1 = vpop.f32.mrf.mxu0 }
  0xff   :  { %v375_v2 = vpop.f32.mrf.mxu1  ;;  %385 = vst [vmem:[%s942_s3 + $0x8] sm:$0xff] %v371_v61  ;;  %v381_v3 = vadd.f32 %v579_v60, %v296_v62  ;;  %v366_v4 = vadd.f32 %v365_v1, %v281_v63  ;;  %v427_v6 = vmul.f32 %v371_v61, %v371_v61 }
 0x100   :  { %v376_v5 = vadd.f32 %v375_v2, %v291_v0 }
 0x101   :  { %387 = vst [vmem:[%s942_s3 + $0x18] sm:$0xff] %v381_v3  ;;  %384 = vst [vmem:[%s942_s3] sm:$0xff] %v366_v4  ;;  %v414_v7 = vadd.f32 %v371_v61, %v366_v4  ;;  %v426_v8 = vmul.f32 %v366_v4, %v366_v4  ;;  %v429_v12 = vmul.f32 %v381_v3, %v381_v3 }
 0x102   :  { %386 = vst [vmem:[%s942_s3 + $0x10] sm:$0xff] %v376_v5  ;;  %v428_v11 = vmul.f32 %v376_v5, %v376_v5 }
 0x103   :  { %v430_v9 = vadd.f32 %v427_v6, %v426_v8  ;;  %v415_v10 = vadd.f32 %v414_v7, %v376_v5 }
 0x105   :  { %v416_v13 = vadd.f32 %v415_v10, %v381_v3  ;;  %v431_v14 = vadd.f32 %v430_v9, %v428_v11 }
 0x107   :  { %v417_v15 = vrot.slane %v416_v13, 4  ;;  %v432_v16 = vadd.f32 %v431_v14, %v429_v12 }
 0x109   :  { %v418_v17 = vadd.f32 %v417_v15, %v416_v13  ;;  %v433_v18 = vrot.slane %v432_v16, 4 }
 0x10b   :  { %v419_v19 = vrot.slane %v418_v17, 2  ;;  %v434_v20 = vadd.f32 %v433_v18, %v432_v16 }
 0x10d   :  { %v420_v21 = vadd.f32 %v419_v19, %v418_v17  ;;  %v435_v22 = vrot.slane %v434_v20, 2 }
 0x10f   :  { %v421_v23 = vrot.slane %v420_v21, 1  ;;  %v436_v24 = vadd.f32 %v435_v22, %v434_v20 }
 0x111   :  { %v422_v26 = vadd.f32 %v421_v23, %v420_v21  ;;  %v437_v27 = vrot.slane %v436_v24, 1 }
 0x113   :  { %v423_v29 = vadd.f32 %v422_v26, %v413_v25  ;;  %v438_v30 = vadd.f32 %v437_v27, %v436_v24 }
 0x115   :  { %424 = vst [vmem:[%s939_s4] sm:$0x1] %v423_v29  ;;  %v439_v31 = vadd.f32 %v438_v30, %v425_v28 }
 0x117   :  { %440 = vst [vmem:[%s940_s5] sm:$0x1] %v439_v31 }

// kernel: resnet18_block_forward.55
= control target key start
LH: loop header
LB: loop body
LE: loop exit
PB: predicated region body
PF: predicated region fallthrough
CT: control target
= control target key end

     0   :  { %vm33_vm0 = vcmask 523264   ;;  %s265_s1 = inlined_call_operand.vmem [shape: f32[64,128], index: 1, kind: input, shape index: {}]   ;;  %s266_s0 = inlined_call_operand.vmem [shape: f32[32,64], index: 0, kind: input, shape index: {}]   ;;  %s267_s2 = inlined_call_operand.vmem [shape: f32[1,128], index: 2, kind: input, shape index: {}]   ;;  %s268_s3 = inlined_call_operand.vmem [shape: f32[32,128], index: 3, kind: output, shape index: {}]  }
   0x1   :  { %v25_v0 = vld [vmem:[%s265_s1 + $0x38] sm:$0xff]  ;;  %v24_v1 = vld [vmem:[%s265_s1 + $0x30] sm:$0xff]  ;;  %v23_v2 = vld [vmem:[%s265_s1 + $0x28] sm:$0xff] }
   0x2   :  { %156 = vmatprep.subr.mxu0 %v25_v0  ;;  %178 = vmatprep.subr.mxu1 %v25_v0  ;;  %v22_v3 = vld [vmem:[%s265_s1 + $0x20] sm:$0xff]  ;;  %v21_v4 = vld [vmem:[%s265_s1 + $0x18] sm:$0xff]  ;;  %v20_v5 = vld [vmem:[%s265_s1 + $0x10] sm:$0xff] }
   0x3   :  { %157 = vmatpush3.msra.mxu0 %v25_v0  ;;  %186 = vmatpush3.msra.mxu1 %v25_v0  ;;  %v19_v6 = vld [vmem:[%s265_s1 + $0x8] sm:$0xff]  ;;  %v18_v7 = vld [vmem:[%s265_s1] sm:$0xff]  ;;  %v16_v9 = vld [vmem:[%s266_s0 + $0x10] sm:$0xff] }
   0x4   :  { %158 = vmatprep.subr.mxu0 %v24_v1  ;;  %179 = vmatprep.subr.mxu1 %v24_v1  ;;  %v14_v8 = vld [vmem:[%s266_s0] sm:$0xff]  ;;  %v15_v10 = vld [vmem:[%s266_s0 + $0x8] sm:$0xff]  ;;  %v17_v11 = vld [vmem:[%s266_s0 + $0x18] sm:$0xff] }
   0x5   :  { %159 = vmatpush3.msra.mxu0 %v24_v1  ;;  %187 = vmatpush3.msra.mxu1 %v24_v1  ;;  %v139_v12 = vld [vmem:[%s267_s2] ss:$0 sm:$0xff] }
   0x6   :  { %160 = vmatprep.subr.mxu0 %v23_v2  ;;  %180 = vmatprep.subr.mxu1 %v23_v2 }
   0x7   :  { %161 = vmatpush3.msra.mxu0 %v23_v2  ;;  %188 = vmatpush3.msra.mxu1 %v23_v2 }
   0x8   :  { %162 = vmatprep.subr.mxu0 %v22_v3  ;;  %181 = vmatprep.subr.mxu1 %v22_v3 }
   0x9   :  { %163 = vmatpush3.msra.mxu0 %v22_v3  ;;  %189 = vmatpush3.msra.mxu1 %v22_v3 }
   0xa   :  { %164 = vmatprep.subr.mxu0 %v21_v4  ;;  %182 = vmatprep.subr.mxu1 %v21_v4 }
   0xb   :  { %165 = vmatpush3.msra.mxu0 %v21_v4  ;;  %190 = vmatpush3.msra.mxu1 %v21_v4 }
   0xc   :  { %166 = vmatprep.subr.mxu0 %v20_v5  ;;  %183 = vmatprep.subr.mxu1 %v20_v5 }
   0xd   :  { %167 = vmatpush3.msra.mxu0 %v20_v5  ;;  %191 = vmatpush3.msra.mxu1 %v20_v5 }
   0xe   :  { %168 = vmatprep.subr.mxu0 %v19_v6  ;;  %184 = vmatprep.subr.mxu1 %v19_v6 }
   0xf   :  { %169 = vmatpush3.msra.mxu0 %v19_v6  ;;  %192 = vmatpush3.msra.mxu1 %v19_v6 }
  0x10   :  { %170 = vmatprep.subr.mxu0 %v18_v7  ;;  %185 = vmatprep.subr.mxu1 %v18_v7 }
  0x11   :  { %171 = vmatpush3.msra.mxu0 %v18_v7  ;;  %193 = vmatpush3.msra.mxu1 %v18_v7 }
  0x12   :  { %172 = vmatprep.mubr.msk.f32.mxu0 %vm33_vm0, %v14_v8  ;;  %175 = vmatprep.mubr.msk.f32.mxu1 %vm33_vm0, %v16_v9 }
  0x13   :  { %173 = vmatmul.mubr.msk.f32.vlgmr.msra.gmra.mxu0 %vm33_vm0, %v15_v10  ;;  %176 = vmatmul.mubr.msk.f32.vlgmr.msra.gmra.mxu1 %vm33_vm0, %v17_v11 }
  0xd3   :  { %v174_v13 = vpop.f32.mrf.mxu0  ;;  %v177_v14 = vpop.f32.mrf.mxu1 }
  0xd4   :  { %v118_v15 = vadd.f32 %v174_v13, %v139_v12  ;;  %v128_v16 = vadd.f32 %v177_v14, %v139_v12 }
  0xd5   :  { %v112_v17 = vpop.f32.mrf.mxu0  ;;  %v122_v18 = vpop.f32.mrf.mxu1 }
  0xd6   :  { %132 = vst [vmem:[%s268_s3 + $0x8] sm:$0xff] %v118_v15  ;;  %134 = vst [vmem:[%s268_s3 + $0x18] sm:$0xff] %v128_v16  ;;  %v113_v19 = vadd.f32 %v139_v12, %v112_v17  ;;  %v123_v20 = vadd.f32 %v139_v12, %v122_v18 }
  0xd8   :  { %131 = vst [vmem:[%s268_s3] sm:$0xff] %v113_v19  ;;  %133 = vst [vmem:[%s268_s3 + $0x10] sm:$0xff] %v123_v20 }

// kernel: resnet18_block_forward.59
= control target key start
LH: loop header
LB: loop body
LE: loop exit
PB: predicated region body
PF: predicated region fallthrough
CT: control target
= control target key end

     0   :  { %s246_s0 = inlined_call_operand.vmem [shape: f32[32,128], index: 0, kind: input, shape index: {}]   ;;  %s247_s1 = inlined_call_operand.vmem [shape: f32[1,128], index: 1, kind: input, shape index: {}]   ;;  %s248_s2 = inlined_call_operand.vmem [shape: f32[1,128], index: 2, kind: input, shape index: {}]   ;;  %s249_s3 = inlined_call_operand.vmem [shape: f32[32,128], index: 3, kind: input, shape index: {}]   ;;  %s250_s4 = inlined_call_operand.vmem [shape: f32[32,128], index: 4, kind: output, shape index: {}]  }
   0x1   :  { %v17_v0 = vld [vmem:[%s246_s0] sm:$0xff]  ;;  %v18_v4 = vld [vmem:[%s246_s0 + $0x8] sm:$0xff]  ;;  %v19_v7 = vld [vmem:[%s246_s0 + $0x10] sm:$0xff] }
   0x2   :  { %v127_v1 = vld [vmem:[%s247_s1] ss:$0 sm:$0xff]  ;;  %v20_v8 = vld [vmem:[%s246_s0 + $0x18] sm:$0xff]  ;;  %v44_v10 = vld [vmem:[%s249_s3 + $0x8] sm:$0xff] }
   0x3   :  { %v128_v2 = vld [vmem:[%s248_s2] ss:$0 sm:$0xff]  ;;  %v28_v3 = vmul.f32 %v127_v1, %v17_v0  ;;  %v29_v6 = vmul.f32 %v127_v1, %v18_v4  ;;  %v30_v11 = vmul.f32 %v127_v1, %v19_v7  ;;  %v31_v12 = vmul.f32 %v127_v1, %v20_v8  ;;  %v45_v14 = vld [vmem:[%s249_s3 + $0x10] sm:$0xff]  ;;  %v46_v15 = vld [vmem:[%s249_s3 + $0x18] sm:$0xff] }
   0x4   :  { %v43_v5 = vld [vmem:[%s249_s3] sm:$0xff] }
   0x5   :  { %v39_v9 = vadd.f32 %v128_v2, %v28_v3  ;;  %v40_v13 = vadd.f32 %v128_v2, %v29_v6  ;;  %v41_v17 = vadd.f32 %v128_v2, %v30_v11  ;;  %v42_v18 = vadd.f32 %v128_v2, %v31_v12 }
   0x7   :  { %v208_v16 = vadd.f32 %v43_v5, %v39_v9  ;;  %v210_v19 = vadd.f32 %v44_v10, %v40_v13  ;;  %v213_v21 = vadd.f32 %v45_v14, %v41_v17  ;;  %v215_v22 = vadd.f32 %v46_v15, %v42_v18 }
   0x9   :  { %v55_v20 = vand.u32 2147483647, %v208_v16  ;;  %v56_v23 = vand.u32 2147483647, %v210_v19  ;;  %v57_v25 = vand.u32 2147483647, %v213_v21 }
   0xa   :  { %v58_v27 = vand.u32 2147483647, %v215_v22  ;;  %v51_v55 = vmax.f32 %v208_v16, 0.0  ;;  %v52_v61 = vmax.f32 %v210_v19, 0.0  ;;  %v53_v1 = vmax.f32 %v213_v21, 0.0 }
   0xb   :  { %v59_v24 = vsub.f32 0.0, %v55_v20  ;;  %v60_v26 = vsub.f32 0.0, %v56_v23  ;;  %v61_v29 = vsub.f32 0.0, %v57_v25  ;;  %v54_v8 = vmax.f32 %v215_v22, 0.0 }
   0xc   :  { %v62_v31 = vsub.f32 0.0, %v58_v27 }
   0xd   :  { %v63_v28 = vmul.f32 1.442695, %v59_v24  ;;  %v65_v30 = vmul.f32 1.442695, %v60_v26  ;;  %v67_v32 = vmul.f32 1.442695, %v61_v29 }
   0xe   :  { %v69_v33 = vmul.f32 1.442695, %v62_v31 }
   0xf   :  { %129 = vpow2.f32 %v63_v28 }
  0x10   :  { %131 = vpow2.f32 %v65_v30 }
  0x11   :  { %133 = vpow2.f32 %v67_v32 }
  0x12   :  { %135 = vpow2.f32 %v69_v33 }
  0x1c   :  { %v130_v34 = vpop.eup %129 }
  0x1d   :  { %v132_v35 = vpop.eup %131  ;;  %v71_v36 = vadd.f32 1.0, %v130_v34  ;;  %v74_v42 = vmul.f32 -0.5, %v130_v34  ;;  %v77_v47 = vand.u32 2147483647, %v130_v34 }
  0x1e   :  { %v134_v37 = vpop.eup %133  ;;  %v80_v38 = vadd.f32 1.0, %v132_v35  ;;  %v83_v43 = vmul.f32 -0.5, %v132_v35  ;;  %v86_v49 = vand.u32 2147483647, %v132_v35 }
  0x1f   :  { %v136_v39 = vpop.eup %135  ;;  %137 = vlog2.f32 %v71_v36  ;;  %v89_v40 = vadd.f32 1.0, %v134_v37  ;;  %v92_v44 = vmul.f32 -0.5, %v134_v37  ;;  %v75_v45 = vadd.f32 1.0, %v74_v42 }
  0x20   :  { %139 = vlog2.f32 %v80_v38  ;;  %v98_v41 = vadd.f32 1.0, %v136_v39  ;;  %v101_v46 = vmul.f32 -0.5, %v136_v39  ;;  %v84_v48 = vadd.f32 1.0, %v83_v43 }
  0x21   :  { %141 = vlog2.f32 %v89_v40  ;;  %v93_v50 = vadd.f32 1.0, %v92_v44  ;;  %v95_v51 = vand.u32 2147483647, %v134_v37  ;;  %v76_v52 = vmul.f32 %v130_v34, %v75_v45 }
  0x22   :  { %143 = vlog2.f32 %v98_v41  ;;  %v102_v53 = vadd.f32 1.0, %v101_v46  ;;  %vm221_vm0 = vcmp.lt.f32.partialorder %v77_v47, 0.0004427343  ;;  %v85_v57 = vmul.f32 %v132_v35, %v84_v48 }
  0x23   :  { %v104_v58 = vand.u32 2147483647, %v136_v39  ;;  %vm87_vm1 = vcmp.lt.f32.partialorder %v86_v49, 0.0004427343  ;;  %v94_v62 = vmul.f32 %v134_v37, %v93_v50  ;;  %vm96_vm2 = vcmp.lt.f32.partialorder %v95_v51, 0.0004427343 }
  0x24   :  { %v103_v4 = vmul.f32 %v136_v39, %v102_v53 }
  0x25   :  { %vm105_vm3 = vcmp.lt.f32.partialorder %v104_v58, 0.0004427343 }
  0x2c   :  { %v138_v54 = vpop.eup %137 }
  0x2d   :  { %v140_v59 = vpop.eup %139  ;;  %v73_v60 = vmul.f32 0.6931472, %v138_v54 }
  0x2e   :  { %v142_v63 = vpop.eup %141  ;;  %v82_v0 = vmul.f32 0.6931472, %v140_v59 }
  0x2f   :  { %v79_v2 = vsel %vm221_vm0, %v76_v52, %v73_v60  ;;  %v91_v3 = vmul.f32 0.6931472, %v142_v63  ;;  %v144_v5 = vpop.eup %143 }
  0x30   :  { %v107_v6 = vadd.f32 %v79_v2, %v51_v55  ;;  %v88_v7 = vsel %vm87_vm1, %v85_v57, %v82_v0  ;;  %v100_v11 = vmul.f32 0.6931472, %v144_v5 }
  0x31   :  { %v108_v9 = vadd.f32 %v88_v7, %v52_v61  ;;  %v97_v10 = vsel %vm96_vm2, %v94_v62, %v91_v3 }
  0x32   :  { %145 = vtanh.f32 %v107_v6  ;;  %v109_v12 = vadd.f32 %v97_v10, %v53_v1  ;;  %v106_v13 = vsel %vm105_vm3, %v103_v4, %v100_v11 }
  0x33   :  { %147 = vtanh.f32 %v108_v9  ;;  %v110_v14 = vadd.f32 %v106_v13, %v54_v8 }
  0x34   :  { %149 = vtanh.f32 %v109_v12 }
  0x35   :  { %151 = vtanh.f32 %v110_v14 }
  0x3f   :  { %v146_v15 = vpop.eup %145 }
  0x40   :  { %v148_v17 = vpop.eup %147  ;;  %v115_v18 = vmul.f32 %v146_v15, %v208_v16 }
  0x41   :  { %v150_v20 = vpop.eup %149  ;;  %v116_v23 = vmul.f32 %v148_v17, %v210_v19 }
  0x42   :  { %119 = vst [vmem:[%s250_s4] sm:$0xff] %v115_v18  ;;  %v117_v24 = vmul.f32 %v150_v20, %v213_v21  ;;  %v152_v25 = vpop.eup %151 }
  0x43   :  { %120 = vst [vmem:[%s250_s4 + $0x8] sm:$0xff] %v116_v23  ;;  %v118_v16 = vmul.f32 %v152_v25, %v215_v22 }
  0x44   :  { %121 = vst [vmem:[%s250_s4 + $0x10] sm:$0xff] %v117_v24 }
  0x45   :  { %122 = vst [vmem:[%s250_s4 + $0x18] sm:$0xff] %v118_v16 }

// kernel: resnet18_block_forward.58
= control target key start
LH: loop header
LB: loop body
LE: loop exit
PB: predicated region body
PF: predicated region fallthrough
CT: control target
= control target key end

     0   :  { %s1570_s1 = inlined_call_operand.vmem [shape: f32[1152,128], index: 1, kind: input, shape index: {}]   ;;  %s1571_s0 = inlined_call_operand.vmem [shape: f32[32,1152], index: 0, kind: input, shape index: {}]   ;;  %s1572_s4 = inlined_call_operand.vmem [shape: f32[1,128], index: 4, kind: output, shape index: {1}]   ;;  %s1573_s5 = inlined_call_operand.vmem [shape: f32[1,128], index: 5, kind: output, shape index: {2}]   ;;  %s1574_s2 = inlined_call_operand.vmem [shape: f32[1,128], index: 2, kind: input, shape index: {}]   ;;  %s1575_s3 = inlined_call_operand.vmem [shape: f32[32,128], index: 3, kind: output, shape index: {0}]  }
   0x1   :  { %v84_v0 = vld [vmem:[%s1570_s1 + $0xf8] sm:$0xff]  ;;  %v83_v4 = vld [vmem:[%s1570_s1 + $0xf0] sm:$0xff]  ;;  %v82_v8 = vld [vmem:[%s1570_s1 + $0xe8] sm:$0xff] }
   0x2   :  { %v116_v1 = vld [vmem:[%s1570_s1 + $0x1f8] sm:$0xff]  ;;  %699 = vmatprep.subr.mxu0 %v84_v0  ;;  %v115_v5 = vld [vmem:[%s1570_s1 + $0x1f0] sm:$0xff]  ;;  %v114_v9 = vld [vmem:[%s1570_s1 + $0x1e8] sm:$0xff] }
   0x3   :  { %v68_v2 = vld [vmem:[%s1570_s1 + $0x78] sm:$0xff]  ;;  %743 = vmatprep.subr.mxu1 %v116_v1  ;;  %v67_v6 = vld [vmem:[%s1570_s1 + $0x70] sm:$0xff]  ;;  %v66_v10 = vld [vmem:[%s1570_s1 + $0x68] sm:$0xff] }
   0x4   :  { %v100_v3 = vld [vmem:[%s1570_s1 + $0x178] sm:$0xff]  ;;  %700 = vmatpush3.msra.mxu0 %v68_v2  ;;  %v99_v7 = vld [vmem:[%s1570_s1 + $0x170] sm:$0xff]  ;;  %v98_v11 = vld [vmem:[%s1570_s1 + $0x168] sm:$0xff] }
   0x5   :  { %744 = vmatpush3.msra.mxu1 %v100_v3  ;;  %701 = vmatprep.subr.mxu0 %v83_v4  ;;  %v81_v12 = vld [vmem:[%s1570_s1 + $0xe0] sm:$0xff]  ;;  %v80_v16 = vld [vmem:[%s1570_s1 + $0xd8] sm:$0xff]  ;;  %v79_v20 = vld [vmem:[%s1570_s1 + $0xd0] sm:$0xff] }
   0x6   :  { %745 = vmatprep.subr.mxu1 %v115_v5  ;;  %702 = vmatpush3.msra.mxu0 %v67_v6  ;;  %v113_v13 = vld [vmem:[%s1570_s1 + $0x1e0] sm:$0xff]  ;;  %v112_v17 = vld [vmem:[%s1570_s1 + $0x1d8] sm:$0xff]  ;;  %v111_v21 = vld [vmem:[%s1570_s1 + $0x1d0] sm:$0xff] }
   0x7   :  { %746 = vmatpush3.msra.mxu1 %v99_v7  ;;  %703 = vmatprep.subr.mxu0 %v82_v8  ;;  %v65_v14 = vld [vmem:[%s1570_s1 + $0x60] sm:$0xff]  ;;  %v64_v18 = vld [vmem:[%s1570_s1 + $0x58] sm:$0xff]  ;;  %v63_v22 = vld [vmem:[%s1570_s1 + $0x50] sm:$0xff] }
   0x8   :  { %747 = vmatprep.subr.mxu1 %v114_v9  ;;  %v97_v15 = vld [vmem:[%s1570_s1 + $0x160] sm:$0xff]  ;;  %704 = vmatpush3.msra.mxu0 %v66_v10  ;;  %v96_v19 = vld [vmem:[%s1570_s1 + $0x158] sm:$0xff]  ;;  %v95_v23 = vld [vmem:[%s1570_s1 + $0x150] sm:$0xff] }
   0x9   :  { %748 = vmatpush3.msra.mxu1 %v98_v11  ;;  %705 = vmatprep.subr.mxu0 %v81_v12  ;;  %v78_v24 = vld [vmem:[%s1570_s1 + $0xc8] sm:$0xff]  ;;  %v77_v28 = vld [vmem:[%s1570_s1 + $0xc0] sm:$0xff]  ;;  %v76_v32 = vld [vmem:[%s1570_s1 + $0xb8] sm:$0xff] }
   0xa   :  { %749 = vmatprep.subr.mxu1 %v113_v13  ;;  %706 = vmatpush3.msra.mxu0 %v65_v14  ;;  %v110_v25 = vld [vmem:[%s1570_s1 + $0x1c8] sm:$0xff]  ;;  %v109_v29 = vld [vmem:[%s1570_s1 + $0x1c0] sm:$0xff]  ;;  %v108_v33 = vld [vmem:[%s1570_s1 + $0x1b8] sm:$0xff] }
   0xb   :  { %750 = vmatpush3.msra.mxu1 %v97_v15  ;;  %707 = vmatprep.subr.mxu0 %v80_v16  ;;  %v62_v26 = vld [vmem:[%s1570_s1 + $0x48] sm:$0xff]  ;;  %v61_v30 = vld [vmem:[%s1570_s1 + $0x40] sm:$0xff]  ;;  %v60_v34 = vld [vmem:[%s1570_s1 + $0x38] sm:$0xff] }
   0xc   :  { %751 = vmatprep.subr.mxu1 %v112_v17  ;;  %708 = vmatpush3.msra.mxu0 %v64_v18  ;;  %v94_v27 = vld [vmem:[%s1570_s1 + $0x148] sm:$0xff]  ;;  %v93_v31 = vld [vmem:[%s1570_s1 + $0x140] sm:$0xff]  ;;  %v92_v35 = vld [vmem:[%s1570_s1 + $0x138] sm:$0xff] }
   0xd   :  { %752 = vmatpush3.msra.mxu1 %v96_v19  ;;  %709 = vmatprep.subr.mxu0 %v79_v20  ;;  %v75_v36 = vld [vmem:[%s1570_s1 + $0xb0] sm:$0xff]  ;;  %v74_v40 = vld [vmem:[%s1570_s1 + $0xa8] sm:$0xff]  ;;  %v73_v44 = vld [vmem:[%s1570_s1 + $0xa0] sm:$0xff] }
   0xe   :  { %753 = vmatprep.subr.mxu1 %v111_v21  ;;  %710 = vmatpush3.msra.mxu0 %v63_v22  ;;  %v107_v37 = vld [vmem:[%s1570_s1 + $0x1b0] sm:$0xff]  ;;  %v106_v41 = vld [vmem:[%s1570_s1 + $0x1a8] sm:$0xff]  ;;  %v105_v45 = vld [vmem:[%s1570_s1 + $0x1a0] sm:$0xff] }
   0xf   :  { %754 = vmatpush3.msra.mxu1 %v95_v23  ;;  %711 = vmatprep.subr.mxu0 %v78_v24  ;;  %v59_v38 = vld [vmem:[%s1570_s1 + $0x30] sm:$0xff]  ;;  %v58_v42 = vld [vmem:[%s1570_s1 + $0x28] sm:$0xff]  ;;  %v57_v46 = vld [vmem:[%s1570_s1 + $0x20] sm:$0xff] }
  0x10   :  { %755 = vmatprep.subr.mxu1 %v110_v25  ;;  %712 = vmatpush3.msra.mxu0 %v62_v26  ;;  %v91_v39 = vld [vmem:[%s1570_s1 + $0x130] sm:$0xff]  ;;  %v90_v43 = vld [vmem:[%s1570_s1 + $0x128] sm:$0xff]  ;;  %v89_v47 = vld [vmem:[%s1570_s1 + $0x120] sm:$0xff] }
  0x11   :  { %756 = vmatpush3.msra.mxu1 %v94_v27  ;;  %713 = vmatprep.subr.mxu0 %v77_v28  ;;  %v72_v48 = vld [vmem:[%s1570_s1 + $0x98] sm:$0xff]  ;;  %v71_v52 = vld [vmem:[%s1570_s1 + $0x90] sm:$0xff]  ;;  %v70_v56 = vld [vmem:[%s1570_s1 + $0x88] sm:$0xff] }
  0x12   :  { %757 = vmatprep.subr.mxu1 %v109_v29  ;;  %714 = vmatpush3.msra.mxu0 %v61_v30  ;;  %v104_v49 = vld [vmem:[%s1570_s1 + $0x198] sm:$0xff]  ;;  %v103_v53 = vld [vmem:[%s1570_s1 + $0x190] sm:$0xff]  ;;  %v102_v57 = vld [vmem:[%s1570_s1 + $0x188] sm:$0xff] }
  0x13   :  { %758 = vmatpush3.msra.mxu1 %v93_v31  ;;  %715 = vmatprep.subr.mxu0 %v76_v32  ;;  %v56_v50 = vld [vmem:[%s1570_s1 + $0x18] sm:$0xff]  ;;  %v55_v54 = vld [vmem:[%s1570_s1 + $0x10] sm:$0xff]  ;;  %v54_v58 = vld [vmem:[%s1570_s1 + $0x8] sm:$0xff] }
  0x14   :  { %759 = vmatprep.subr.mxu1 %v108_v33  ;;  %716 = vmatpush3.msra.mxu0 %v60_v34  ;;  %v88_v51 = vld [vmem:[%s1570_s1 + $0x118] sm:$0xff]  ;;  %v87_v55 = vld [vmem:[%s1570_s1 + $0x110] sm:$0xff]  ;;  %v86_v59 = vld [vmem:[%s1570_s1 + $0x108] sm:$0xff] }
  0x15   :  { %760 = vmatpush3.msra.mxu1 %v92_v35  ;;  %717 = vmatprep.subr.mxu0 %v75_v36  ;;  %v69_v60 = vld [vmem:[%s1570_s1 + $0x80] sm:$0xff]  ;;  %v18_v63 = vld [vmem:[%s1571_s0 + $0x8] sm:$0xff]  ;;  %v20_v2 = vld [vmem:[%s1571_s0 + $0x18] sm:$0xff] }
  0x16   :  { %761 = vmatprep.subr.mxu1 %v107_v37  ;;  %718 = vmatpush3.msra.mxu0 %v59_v38  ;;  %v101_v61 = vld [vmem:[%s1570_s1 + $0x180] sm:$0xff]  ;;  %v148_v3 = vld [vmem:[%s1570_s1 + $0x2f8] sm:$0xff]  ;;  %v19_v5 = vld [vmem:[%s1571_s0 + $0x10] sm:$0xff] }
  0x17   :  { %762 = vmatpush3.msra.mxu1 %v91_v39  ;;  %719 = vmatprep.subr.mxu0 %v74_v40  ;;  %v53_v62 = vld [vmem:[%s1570_s1] sm:$0xff]  ;;  %v180_v4 = vld [vmem:[%s1570_s1 + $0x3f8] sm:$0xff]  ;;  %v147_v8 = vld [vmem:[%s1570_s1 + $0x2f0] sm:$0xff] }
  0x18   :  { %763 = vmatprep.subr.mxu1 %v106_v41  ;;  %720 = vmatpush3.msra.mxu0 %v58_v42  ;;  %v85_v0 = vld [vmem:[%s1570_s1 + $0x100] sm:$0xff]  ;;  %v132_v6 = vld [vmem:[%s1570_s1 + $0x278] sm:$0xff]  ;;  %v179_v9 = vld [vmem:[%s1570_s1 + $0x3f0] sm:$0xff] }
  0x19   :  { %764 = vmatpush3.msra.mxu1 %v90_v43  ;;  %721 = vmatprep.subr.mxu0 %v73_v44  ;;  %v17_v1 = vld [vmem:[%s1571_s0] sm:$0xff]  ;;  %v164_v7 = vld [vmem:[%s1570_s1 + $0x378] sm:$0xff]  ;;  %v131_v10 = vld [vmem:[%s1570_s1 + $0x270] sm:$0xff] }
  0x1a   :  { %765 = vmatprep.subr.mxu1 %v105_v45  ;;  %722 = vmatpush3.msra.mxu0 %v57_v46  ;;  %v163_v11 = vld [vmem:[%s1570_s1 + $0x370] sm:$0xff]  ;;  %v146_v12 = vld [vmem:[%s1570_s1 + $0x2e8] sm:$0xff]  ;;  %v145_v16 = vld [vmem:[%s1570_s1 + $0x2e0] sm:$0xff] }
  0x1b   :  { %766 = vmatpush3.msra.mxu1 %v89_v47  ;;  %723 = vmatprep.subr.mxu0 %v72_v48  ;;  %v178_v13 = vld [vmem:[%s1570_s1 + $0x3e8] sm:$0xff]  ;;  %v177_v17 = vld [vmem:[%s1570_s1 + $0x3e0] sm:$0xff]  ;;  %v144_v20 = vld [vmem:[%s1570_s1 + $0x2d8] sm:$0xff] }
  0x1c   :  { %767 = vmatprep.subr.mxu1 %v104_v49  ;;  %724 = vmatpush3.msra.mxu0 %v56_v50  ;;  %v130_v14 = vld [vmem:[%s1570_s1 + $0x268] sm:$0xff]  ;;  %v129_v18 = vld [vmem:[%s1570_s1 + $0x260] sm:$0xff]  ;;  %v176_v21 = vld [vmem:[%s1570_s1 + $0x3d8] sm:$0xff] }
  0x1d   :  { %768 = vmatpush3.msra.mxu1 %v88_v51  ;;  %725 = vmatprep.subr.mxu0 %v71_v52  ;;  %v162_v15 = vld [vmem:[%s1570_s1 + $0x368] sm:$0xff]  ;;  %v161_v19 = vld [vmem:[%s1570_s1 + $0x360] sm:$0xff]  ;;  %v128_v22 = vld [vmem:[%s1570_s1 + $0x258] sm:$0xff] }
  0x1e   :  { %769 = vmatprep.subr.mxu1 %v103_v53  ;;  %726 = vmatpush3.msra.mxu0 %v55_v54  ;;  %v160_v23 = vld [vmem:[%s1570_s1 + $0x358] sm:$0xff]  ;;  %v143_v24 = vld [vmem:[%s1570_s1 + $0x2d0] sm:$0xff]  ;;  %v142_v28 = vld [vmem:[%s1570_s1 + $0x2c8] sm:$0xff] }
  0x1f   :  { %770 = vmatpush3.msra.mxu1 %v87_v55  ;;  %727 = vmatprep.subr.mxu0 %v70_v56  ;;  %v175_v25 = vld [vmem:[%s1570_s1 + $0x3d0] sm:$0xff]  ;;  %v174_v29 = vld [vmem:[%s1570_s1 + $0x3c8] sm:$0xff]  ;;  %v141_v32 = vld [vmem:[%s1570_s1 + $0x2c0] sm:$0xff] }
  0x20   :  { %771 = vmatprep.subr.mxu1 %v102_v57  ;;  %728 = vmatpush3.msra.mxu0 %v54_v58  ;;  %v127_v26 = vld [vmem:[%s1570_s1 + $0x250] sm:$0xff]  ;;  %v126_v30 = vld [vmem:[%s1570_s1 + $0x248] sm:$0xff]  ;;  %v173_v33 = vld [vmem:[%s1570_s1 + $0x3c0] sm:$0xff] }
  0x21   :  { %772 = vmatpush3.msra.mxu1 %v86_v59  ;;  %729 = vmatprep.subr.mxu0 %v69_v60  ;;  %v159_v27 = vld [vmem:[%s1570_s1 + $0x350] sm:$0xff]  ;;  %v158_v31 = vld [vmem:[%s1570_s1 + $0x348] sm:$0xff]  ;;  %v125_v34 = vld [vmem:[%s1570_s1 + $0x240] sm:$0xff] }
  0x22   :  { %773 = vmatprep.subr.mxu1 %v101_v61  ;;  %730 = vmatpush3.msra.mxu0 %v53_v62  ;;  %v157_v35 = vld [vmem:[%s1570_s1 + $0x340] sm:$0xff]  ;;  %v140_v36 = vld [vmem:[%s1570_s1 + $0x2b8] sm:$0xff]  ;;  %v27_v40 = vld [vmem:[%s1571_s0 + $0x50] sm:$0xff] }
  0x23   :  { %268 = vmatprep.mubr.f32.mxu0 %v18_v63  ;;  %774 = vmatpush3.msra.mxu1 %v85_v0  ;;  %v172_v37 = vld [vmem:[%s1570_s1 + $0x3b8] sm:$0xff]  ;;  %v139_v41 = vld [vmem:[%s1570_s1 + $0x2b0] sm:$0xff]  ;;  %v26_v43 = vld [vmem:[%s1571_s0 + $0x48] sm:$0xff] }
  0x24   :  { %269 = vmatmul.mubr.f32.vlgmr.msra.gmra.mxu0 %v17_v1  ;;  %353 = vmatprep.mubr.f32.mxu1 %v20_v2  ;;  %v124_v38 = vld [vmem:[%s1570_s1 + $0x238] sm:$0xff]  ;;  %v171_v42 = vld [vmem:[%s1570_s1 + $0x3b0] sm:$0xff]  ;;  %v29_v46 = vld [vmem:[%s1571_s0 + $0x60] sm:$0xff] }
  0x25   :  { %787 = vmatprep.subr.mxu0 %v148_v3  ;;  %831 = vmatprep.subr.mxu1 %v180_v4  ;;  %v156_v39 = vld [vmem:[%s1570_s1 + $0x338] sm:$0xff]  ;;  %v123_v44 = vld [vmem:[%s1570_s1 + $0x230] sm:$0xff]  ;;  %v138_v47 = vld [vmem:[%s1570_s1 + $0x2a8] sm:$0xff] }
  0x26   :  { %354 = vmatmul.mubr.f32.vlgmr.msra.gmra.mxu1 %v19_v5  ;;  %788 = vmatpush3.msra.mxu0 %v132_v6  ;;  %v155_v45 = vld [vmem:[%s1570_s1 + $0x330] sm:$0xff]  ;;  %v170_v48 = vld [vmem:[%s1570_s1 + $0x3a8] sm:$0xff]  ;;  %v28_v49 = vld [vmem:[%s1571_s0 + $0x58] sm:$0xff] }
  0x27   :  { %832 = vmatpush3.msra.mxu1 %v164_v7  ;;  %789 = vmatprep.subr.mxu0 %v147_v8  ;;  %v122_v50 = vld [vmem:[%s1570_s1 + $0x228] sm:$0xff]  ;;  %v36_v52 = vld [vmem:[%s1571_s0 + $0x98] sm:$0xff]  ;;  %v137_v53 = vld [vmem:[%s1570_s1 + $0x2a0] sm:$0xff] }
  0x28   :  { %833 = vmatprep.subr.mxu1 %v179_v9  ;;  %790 = vmatpush3.msra.mxu0 %v131_v10  ;;  %v154_v51 = vld [vmem:[%s1570_s1 + $0x328] sm:$0xff]  ;;  %v169_v54 = vld [vmem:[%s1570_s1 + $0x3a0] sm:$0xff]  ;;  %v35_v55 = vld [vmem:[%s1571_s0 + $0x90] sm:$0xff] }
  0x29   :  { %834 = vmatpush3.msra.mxu1 %v163_v11  ;;  %791 = vmatprep.subr.mxu0 %v146_v12  ;;  %v121_v56 = vld [vmem:[%s1570_s1 + $0x220] sm:$0xff]  ;;  %v38_v58 = vld [vmem:[%s1571_s0 + $0xa8] sm:$0xff]  ;;  %v136_v59 = vld [vmem:[%s1570_s1 + $0x298] sm:$0xff] }
  0x2a   :  { %835 = vmatprep.subr.mxu1 %v178_v13  ;;  %792 = vmatpush3.msra.mxu0 %v130_v14  ;;  %v153_v57 = vld [vmem:[%s1570_s1 + $0x320] sm:$0xff]  ;;  %v168_v60 = vld [vmem:[%s1570_s1 + $0x398] sm:$0xff]  ;;  %v135_v1 = vld [vmem:[%s1570_s1 + $0x290] sm:$0xff] }
  0x2b   :  { %836 = vmatpush3.msra.mxu1 %v162_v15  ;;  %793 = vmatprep.subr.mxu0 %v145_v16  ;;  %v37_v61 = vld [vmem:[%s1571_s0 + $0xa0] sm:$0xff]  ;;  %v120_v62 = vld [vmem:[%s1570_s1 + $0x218] sm:$0xff]  ;;  %v167_v2 = vld [vmem:[%s1570_s1 + $0x390] sm:$0xff] }
  0x2c   :  { %837 = vmatprep.subr.mxu1 %v177_v17  ;;  %794 = vmatpush3.msra.mxu0 %v129_v18  ;;  %v152_v63 = vld [vmem:[%s1570_s1 + $0x318] sm:$0xff]  ;;  %v45_v0 = vld [vmem:[%s1571_s0 + $0xe0] sm:$0xff]  ;;  %v119_v4 = vld [vmem:[%s1570_s1 + $0x210] sm:$0xff] }
  0x2d   :  { %838 = vmatpush3.msra.mxu1 %v161_v19  ;;  %795 = vmatprep.subr.mxu0 %v144_v20  ;;  %v44_v3 = vld [vmem:[%s1571_s0 + $0xd8] sm:$0xff]  ;;  %v151_v5 = vld [vmem:[%s1570_s1 + $0x310] sm:$0xff]  ;;  %v134_v7 = vld [vmem:[%s1570_s1 + $0x288] sm:$0xff] }
  0x2e   :  { %839 = vmatprep.subr.mxu1 %v176_v21  ;;  %796 = vmatpush3.msra.mxu0 %v128_v22  ;;  %v47_v6 = vld [vmem:[%s1571_s0 + $0xf0] sm:$0xff]  ;;  %v166_v8 = vld [vmem:[%s1570_s1 + $0x388] sm:$0xff]  ;;  %v133_v12 = vld [vmem:[%s1570_s1 + $0x280] sm:$0xff] }
  0x2f   :  { %840 = vmatpush3.msra.mxu1 %v160_v23  ;;  %797 = vmatprep.subr.mxu0 %v143_v24  ;;  %v46_v9 = vld [vmem:[%s1571_s0 + $0xe8] sm:$0xff]  ;;  %v165_v13 = vld [vmem:[%s1570_s1 + $0x380] sm:$0xff]  ;;  %v24_v18 = vld [vmem:[%s1571_s0 + $0x38] sm:$0xff] }
  0x30   :  { %841 = vmatprep.subr.mxu1 %v175_v25  ;;  %798 = vmatpush3.msra.mxu0 %v127_v26  ;;  %v118_v10 = vld [vmem:[%s1570_s1 + $0x208] sm:$0xff]  ;;  %v117_v14 = vld [vmem:[%s1570_s1 + $0x200] sm:$0xff]  ;;  %v196_v19 = vld [vmem:[%s1570_s1 + $0x478] sm:$0xff] }
  0x31   :  { %842 = vmatpush3.msra.mxu1 %v159_v27  ;;  %799 = vmatprep.subr.mxu0 %v142_v28  ;;  %v150_v11 = vld [vmem:[%s1570_s1 + $0x308] sm:$0xff]  ;;  %v149_v16 = vld [vmem:[%s1570_s1 + $0x300] sm:$0xff]  ;;  %v23_v20 = vld [vmem:[%s1571_s0 + $0x30] sm:$0xff] }
  0x32   :  { %843 = vmatprep.subr.mxu1 %v174_v29  ;;  %800 = vmatpush3.msra.mxu0 %v126_v30  ;;  %v22_v15 = vld [vmem:[%s1571_s0 + $0x28] sm:$0xff]  ;;  %v21_v17 = vld [vmem:[%s1571_s0 + $0x20] sm:$0xff]  ;;  %v195_v21 = vld [vmem:[%s1570_s1 + $0x470] sm:$0xff] }
  0x33   :  { %844 = vmatpush3.msra.mxu1 %v158_v31  ;;  %801 = vmatprep.subr.mxu0 %v141_v32  ;;  %v31_v22 = vld [vmem:[%s1571_s0 + $0x70] sm:$0xff]  ;;  %v30_v23 = vld [vmem:[%s1571_s0 + $0x68] sm:$0xff]  ;;  %v33_v25 = vld [vmem:[%s1571_s0 + $0x80] sm:$0xff] }
  0x34   :  { %845 = vmatprep.subr.mxu1 %v173_v33  ;;  %802 = vmatpush3.msra.mxu0 %v125_v34  ;;  %v194_v24 = vld [vmem:[%s1570_s1 + $0x468] sm:$0xff]  ;;  %v193_v26 = vld [vmem:[%s1570_s1 + $0x460] sm:$0xff]  ;;  %v32_v27 = vld [vmem:[%s1571_s0 + $0x78] sm:$0xff] }
  0x35   :  { %846 = vmatpush3.msra.mxu1 %v157_v35  ;;  %803 = vmatprep.subr.mxu0 %v140_v36  ;;  %v40_v28 = vld [vmem:[%s1571_s0 + $0xb8] sm:$0xff]  ;;  %v39_v29 = vld [vmem:[%s1571_s0 + $0xb0] sm:$0xff]  ;;  %v42_v31 = vld [vmem:[%s1571_s0 + $0xc8] sm:$0xff] }
  0x36   :  { %847 = vmatprep.subr.mxu1 %v172_v37  ;;  %804 = vmatpush3.msra.mxu0 %v124_v38  ;;  %v192_v30 = vld [vmem:[%s1570_s1 + $0x458] sm:$0xff]  ;;  %v191_v32 = vld [vmem:[%s1570_s1 + $0x450] sm:$0xff]  ;;  %v41_v33 = vld [vmem:[%s1571_s0 + $0xc0] sm:$0xff] }
  0x37   :  { %848 = vmatpush3.msra.mxu1 %v156_v39  ;;  %273 = vmatprep.mubr.f32.mxu0 %v27_v40  ;;  %v49_v34 = vld [vmem:[%s1571_s0 + $0x100] sm:$0xff]  ;;  %v48_v35 = vld [vmem:[%s1571_s0 + $0xf8] sm:$0xff]  ;;  %v190_v36 = vld [vmem:[%s1570_s1 + $0x448] sm:$0xff] }
  0x38   :  { %805 = vmatprep.subr.mxu0 %v139_v41  ;;  %849 = vmatprep.subr.mxu1 %v171_v42  ;;  %v51_v37 = vld [vmem:[%s1571_s0 + $0x110] sm:$0xff]  ;;  %v189_v38 = vld [vmem:[%s1570_s1 + $0x440] sm:$0xff]  ;;  %v50_v39 = vld [vmem:[%s1571_s0 + $0x108] sm:$0xff] }
  0x39   :  { %274 = vmatmul.mubr.f32.gmra.mxu0 %v26_v43  ;;  %850 = vmatpush3.msra.mxu1 %v155_v45  ;;  %v188_v40 = vld [vmem:[%s1570_s1 + $0x438] sm:$0xff]  ;;  %v187_v41 = vld [vmem:[%s1570_s1 + $0x430] sm:$0xff]  ;;  %v186_v42 = vld [vmem:[%s1570_s1 + $0x428] sm:$0xff] }
  0x3a   :  { %806 = vmatpush3.msra.mxu0 %v123_v44  ;;  %358 = vmatprep.mubr.f32.mxu1 %v29_v46  ;;  %v185_v43 = vld [vmem:[%s1570_s1 + $0x420] sm:$0xff]  ;;  %v184_v44 = vld [vmem:[%s1570_s1 + $0x418] sm:$0xff]  ;;  %v183_v45 = vld [vmem:[%s1570_s1 + $0x410] sm:$0xff] }
  0x3b   :  { %807 = vmatprep.subr.mxu0 %v138_v47  ;;  %851 = vmatprep.subr.mxu1 %v170_v48  ;;  %v182_v46 = vld [vmem:[%s1570_s1 + $0x408] sm:$0xff]  ;;  %v181_v47 = vld [vmem:[%s1570_s1 + $0x400] sm:$0xff] }
  0x3c   :  { %359 = vmatmul.mubr.f32.gmra.mxu1 %v28_v49  ;;  %808 = vmatpush3.msra.mxu0 %v122_v50  ;;  %v25_v48 = vld [vmem:[%s1571_s0 + $0x40] sm:$0xff]  ;;  %v43_v49 = vld [vmem:[%s1571_s0 + $0xd0] sm:$0xff]  ;;  %v34_v50 = vld [vmem:[%s1571_s0 + $0x88] sm:$0xff] }
  0x3d   :  { %852 = vmatpush3.msra.mxu1 %v154_v51  ;;  %278 = vmatprep.mubr.f32.mxu0 %v36_v52  ;;  %v52_v51 = vld [vmem:[%s1571_s0 + $0x118] sm:$0xff]  ;;  %v966_v52 = vmov 0.0  }
  0x3e   :  { %809 = vmatprep.subr.mxu0 %v137_v53  ;;  %853 = vmatprep.subr.mxu1 %v169_v54  ;;  %656 = vst [vmem:[%s1572_s4] sm:$0x1] %v966_v52  ;;  %657 = vst [vmem:[%s1573_s5] sm:$0x1] %v966_v52 }
  0x3f   :  { %279 = vmatmul.mubr.f32.gmra.mxu0 %v35_v55  ;;  %854 = vmatpush3.msra.mxu1 %v153_v57 }
  0x40   :  { %810 = vmatpush3.msra.mxu0 %v121_v56  ;;  %363 = vmatprep.mubr.f32.mxu1 %v38_v58 }
  0x41   :  { %811 = vmatprep.subr.mxu0 %v136_v59  ;;  %855 = vmatprep.subr.mxu1 %v168_v60 }
  0x42   :  { %364 = vmatmul.mubr.f32.gmra.mxu1 %v37_v61  ;;  %812 = vmatpush3.msra.mxu0 %v120_v62 }
  0x43   :  { %856 = vmatpush3.msra.mxu1 %v152_v63  ;;  %283 = vmatprep.mubr.f32.mxu0 %v45_v0 }
  0x44   :  { %813 = vmatprep.subr.mxu0 %v135_v1  ;;  %857 = vmatprep.subr.mxu1 %v167_v2 }
  0x45   :  { %284 = vmatmul.mubr.f32.gmra.mxu0 %v44_v3  ;;  %858 = vmatpush3.msra.mxu1 %v151_v5 }
  0x46   :  { %814 = vmatpush3.msra.mxu0 %v119_v4  ;;  %368 = vmatprep.mubr.f32.mxu1 %v47_v6 }
  0x47   :  { %815 = vmatprep.subr.mxu0 %v134_v7  ;;  %859 = vmatprep.subr.mxu1 %v166_v8 }
  0x48   :  { %369 = vmatmul.mubr.f32.gmra.mxu1 %v46_v9  ;;  %816 = vmatpush3.msra.mxu0 %v118_v10 }
  0x49   :  { %860 = vmatpush3.msra.mxu1 %v150_v11  ;;  %817 = vmatprep.subr.mxu0 %v133_v12 }
  0x4a   :  { %861 = vmatprep.subr.mxu1 %v165_v13  ;;  %818 = vmatpush3.msra.mxu0 %v117_v14 }
  0x4b   :  { %438 = vmatprep.mubr.f32.mxu0 %v22_v15  ;;  %862 = vmatpush3.msra.mxu1 %v149_v16 }
  0x4c   :  { %439 = vmatmul.mubr.f32.vlgmr.msra.gmra.mxu0 %v21_v17  ;;  %523 = vmatprep.mubr.f32.mxu1 %v24_v18 }
  0x4d   :  { %895 = vmatprep.subr.mxu0 %v196_v19  ;;  %933 = vmatprep.subr.mxu1 %v196_v19 }
  0x4e   :  { %524 = vmatmul.mubr.f32.vlgmr.msra.gmra.mxu1 %v23_v20  ;;  %896 = vmatpush3.msra.mxu0 %v196_v19 }
  0x4f   :  { %949 = vmatpush3.msra.mxu1 %v196_v19  ;;  %897 = vmatprep.subr.mxu0 %v195_v21 }
  0x50   :  { %934 = vmatprep.subr.mxu1 %v195_v21  ;;  %443 = vmatprep.mubr.f32.mxu0 %v31_v22  ;;  %v698_v22 = vld [vmem:[%s1574_s2] ss:$0 sm:$0xff] }
  0x51   :  { %898 = vmatpush3.msra.mxu0 %v195_v21  ;;  %950 = vmatpush3.msra.mxu1 %v195_v21 }
  0x52   :  { %444 = vmatmul.mubr.f32.gmra.mxu0 %v30_v23  ;;  %899 = vmatprep.subr.mxu0 %v194_v24 }
  0x53   :  { %935 = vmatprep.subr.mxu1 %v194_v24  ;;  %528 = vmatprep.mubr.f32.mxu1 %v33_v25 }
  0x54   :  { %900 = vmatpush3.msra.mxu0 %v194_v24  ;;  %951 = vmatpush3.msra.mxu1 %v194_v24 }
  0x55   :  { %901 = vmatprep.subr.mxu0 %v193_v26  ;;  %529 = vmatmul.mubr.f32.gmra.mxu1 %v32_v27 }
  0x56   :  { %936 = vmatprep.subr.mxu1 %v193_v26  ;;  %448 = vmatprep.mubr.f32.mxu0 %v40_v28 }
  0x57   :  { %902 = vmatpush3.msra.mxu0 %v193_v26  ;;  %952 = vmatpush3.msra.mxu1 %v193_v26 }
  0x58   :  { %449 = vmatmul.mubr.f32.gmra.mxu0 %v39_v29  ;;  %903 = vmatprep.subr.mxu0 %v192_v30 }
  0x59   :  { %937 = vmatprep.subr.mxu1 %v192_v30  ;;  %533 = vmatprep.mubr.f32.mxu1 %v42_v31 }
  0x5a   :  { %904 = vmatpush3.msra.mxu0 %v192_v30  ;;  %953 = vmatpush3.msra.mxu1 %v192_v30 }
  0x5b   :  { %905 = vmatprep.subr.mxu0 %v191_v32  ;;  %534 = vmatmul.mubr.f32.gmra.mxu1 %v41_v33 }
  0x5c   :  { %938 = vmatprep.subr.mxu1 %v191_v32  ;;  %453 = vmatprep.mubr.f32.mxu0 %v49_v34 }
  0x5d   :  { %906 = vmatpush3.msra.mxu0 %v191_v32  ;;  %954 = vmatpush3.msra.mxu1 %v191_v32 }
  0x5e   :  { %454 = vmatmul.mubr.f32.gmra.mxu0 %v48_v35  ;;  %907 = vmatprep.subr.mxu0 %v190_v36 }
  0x5f   :  { %939 = vmatprep.subr.mxu1 %v190_v36  ;;  %538 = vmatprep.mubr.f32.mxu1 %v51_v37 }
  0x60   :  { %908 = vmatpush3.msra.mxu0 %v190_v36  ;;  %955 = vmatpush3.msra.mxu1 %v190_v36 }
  0x61   :  { %909 = vmatprep.subr.mxu0 %v189_v38  ;;  %539 = vmatmul.mubr.f32.gmra.mxu1 %v50_v39 }
  0x62   :  { %940 = vmatprep.subr.mxu1 %v189_v38  ;;  %910 = vmatpush3.msra.mxu0 %v189_v38 }
  0x63   :  { %956 = vmatpush3.msra.mxu1 %v189_v38  ;;  %911 = vmatprep.subr.mxu0 %v188_v40 }
  0x64   :  { %941 = vmatprep.subr.mxu1 %v188_v40  ;;  %912 = vmatpush3.msra.mxu0 %v188_v40 }
  0x65   :  { %957 = vmatpush3.msra.mxu1 %v188_v40  ;;  %913 = vmatprep.subr.mxu0 %v187_v41 }
  0x66   :  { %942 = vmatprep.subr.mxu1 %v187_v41  ;;  %914 = vmatpush3.msra.mxu0 %v187_v41 }
  0x67   :  { %958 = vmatpush3.msra.mxu1 %v187_v41  ;;  %915 = vmatprep.subr.mxu0 %v186_v42 }
  0x68   :  { %943 = vmatprep.subr.mxu1 %v186_v42  ;;  %916 = vmatpush3.msra.mxu0 %v186_v42 }
  0x69   :  { %959 = vmatpush3.msra.mxu1 %v186_v42  ;;  %917 = vmatprep.subr.mxu0 %v185_v43 }
  0x6a   :  { %944 = vmatprep.subr.mxu1 %v185_v43  ;;  %918 = vmatpush3.msra.mxu0 %v185_v43 }
  0x6b   :  { %960 = vmatpush3.msra.mxu1 %v185_v43  ;;  %919 = vmatprep.subr.mxu0 %v184_v44 }
  0x6c   :  { %945 = vmatprep.subr.mxu1 %v184_v44  ;;  %920 = vmatpush3.msra.mxu0 %v184_v44 }
  0x6d   :  { %961 = vmatpush3.msra.mxu1 %v184_v44  ;;  %921 = vmatprep.subr.mxu0 %v183_v45 }
  0x6e   :  { %946 = vmatprep.subr.mxu1 %v183_v45  ;;  %922 = vmatpush3.msra.mxu0 %v183_v45 }
  0x6f   :  { %962 = vmatpush3.msra.mxu1 %v183_v45  ;;  %923 = vmatprep.subr.mxu0 %v182_v46 }
  0x70   :  { %947 = vmatprep.subr.mxu1 %v182_v46  ;;  %924 = vmatpush3.msra.mxu0 %v182_v46 }
  0x71   :  { %963 = vmatpush3.msra.mxu1 %v182_v46  ;;  %925 = vmatprep.subr.mxu0 %v181_v47 }
  0x72   :  { %948 = vmatprep.subr.mxu1 %v181_v47  ;;  %926 = vmatpush3.msra.mxu0 %v181_v47 }
  0x73   :  { %964 = vmatpush3.msra.mxu1 %v181_v47  ;;  %927 = vmatprep.mubr.f32.mxu0 %v25_v48 }
  0x74   :  { %930 = vmatprep.mubr.f32.mxu1 %v43_v49  ;;  %928 = vmatmul.mubr.f32.vlgmr.msra.gmra.mxu0 %v34_v50 }
  0x75   :  { %931 = vmatmul.mubr.f32.vlgmr.msra.gmra.mxu1 %v52_v51 }
  0xe4   :  { %v731_v53 = vpop.f32.mrf.mxu0 }
  0xe6   :  { %v775_v54 = vpop.f32.mrf.mxu1  ;;  %v732_v55 = vpop.f32.mrf.mxu0 }
  0xe7   :  { %v733_v20 = vadd.f32 %v732_v55, %v731_v53 }
  0xe8   :  { %v776_v57 = vpop.f32.mrf.mxu1 }
  0xe9   :  { %v271_v29 = vadd.f32 %v733_v20, %v698_v22  ;;  %v777_v30 = vadd.f32 %v776_v57, %v775_v54  ;;  %v670_v20 = vld [vmem:[%s1573_s5] sm:$0x1] }
  0xeb   :  { %v356_v40 = vadd.f32 %v777_v30, %v271_v29 }
  0xf9   :  { %v734_v56 = vpop.f32.mrf.mxu0 }
  0xfb   :  { %v735_v58 = vpop.f32.mrf.mxu0 }
  0xfc   :  { %v778_v59 = vpop.f32.mrf.mxu1  ;;  %v736_v18 = vadd.f32 %v735_v58, %v734_v56 }
  0xfe   :  { %v779_v60 = vpop.f32.mrf.mxu1  ;;  %v276_v25 = vadd.f32 %v736_v18, %v698_v22 }
  0xff   :  { %v737_v61 = vpop.f32.mrf.mxu0  ;;  %v780_v26 = vadd.f32 %v779_v60, %v778_v59 }
 0x101   :  { %v738_v62 = vpop.f32.mrf.mxu0  ;;  %v361_v36 = vadd.f32 %v780_v26, %v276_v25 }
 0x102   :  { %v781_v63 = vpop.f32.mrf.mxu1  ;;  %v739_v21 = vadd.f32 %v738_v62, %v737_v61 }
 0x104   :  { %v782_v1 = vpop.f32.mrf.mxu1  ;;  %v281_v31 = vadd.f32 %v739_v21, %v698_v22 }
 0x105   :  { %v740_v0 = vpop.f32.mrf.mxu0  ;;  %v783_v32 = vadd.f32 %v782_v1, %v781_v63 }
 0x107   :  { %v741_v2 = vpop.f32.mrf.mxu0  ;;  %v366_v41 = vadd.f32 %v783_v32, %v281_v31 }
 0x108   :  { %v784_v3 = vpop.f32.mrf.mxu1  ;;  %v742_v19 = vadd.f32 %v741_v2, %v740_v0 }
 0x10a   :  { %v785_v4 = vpop.f32.mrf.mxu1  ;;  %v286_v27 = vadd.f32 %v742_v19, %v698_v22 }
 0x10b   :  { %v786_v28 = vadd.f32 %v785_v4, %v784_v3 }
 0x10c   :  { %v819_v5 = vpop.f32.mrf.mxu0 }
 0x10d   :  { %v371_v37 = vadd.f32 %v786_v28, %v286_v27 }
 0x10e   :  { %v863_v6 = vpop.f32.mrf.mxu1  ;;  %v820_v7 = vpop.f32.mrf.mxu0 }
 0x10f   :  { %v821_v38 = vadd.f32 %v820_v7, %v819_v5 }
 0x110   :  { %v864_v8 = vpop.f32.mrf.mxu1 }
 0x111   :  { %v441_v46 = vadd.f32 %v821_v38, %v356_v40  ;;  %v865_v47 = vadd.f32 %v864_v8, %v863_v6 }
 0x112   :  { %v822_v9 = vpop.f32.mrf.mxu0 }
 0x113   :  { %v526_v56 = vadd.f32 %v865_v47, %v441_v46 }
 0x114   :  { %v823_v10 = vpop.f32.mrf.mxu0 }
 0x115   :  { %v866_v11 = vpop.f32.mrf.mxu1  ;;  %v824_v33 = vadd.f32 %v823_v10, %v822_v9 }
 0x117   :  { %v867_v13 = vpop.f32.mrf.mxu1  ;;  %v446_v42 = vadd.f32 %v824_v33, %v361_v36 }
 0x118   :  { %v825_v12 = vpop.f32.mrf.mxu0  ;;  %v868_v43 = vadd.f32 %v867_v13, %v866_v11 }
 0x11a   :  { %v826_v14 = vpop.f32.mrf.mxu0  ;;  %v531_v50 = vadd.f32 %v868_v43, %v446_v42 }
 0x11b   :  { %v869_v15 = vpop.f32.mrf.mxu1  ;;  %v827_v39 = vadd.f32 %v826_v14, %v825_v12 }
 0x11d   :  { %v870_v17 = vpop.f32.mrf.mxu1  ;;  %v451_v48 = vadd.f32 %v827_v39, %v366_v41 }
 0x11e   :  { %v828_v16 = vpop.f32.mrf.mxu0  ;;  %v871_v49 = vadd.f32 %v870_v17, %v869_v15  ;;  %v658_v17 = vld [vmem:[%s1572_s4] sm:$0x1] }
 0x120   :  { %v829_v23 = vpop.f32.mrf.mxu0  ;;  %v536_v57 = vadd.f32 %v871_v49, %v451_v48 }
 0x121   :  { %v872_v24 = vpop.f32.mrf.mxu1  ;;  %v830_v34 = vadd.f32 %v829_v23, %v828_v16 }
 0x123   :  { %v873_v35 = vpop.f32.mrf.mxu1  ;;  %v456_v44 = vadd.f32 %v830_v34, %v371_v37 }
 0x124   :  { %v874_v45 = vadd.f32 %v873_v35, %v872_v24 }
 0x126   :  { %v541_v51 = vadd.f32 %v874_v45, %v456_v44 }
 0x134   :  { %v929_v52 = vpop.f32.mrf.mxu0 }
 0x135   :  { %v932_v53 = vpop.f32.mrf.mxu1  ;;  %v616_v54 = vadd.f32 %v929_v52, %v531_v50 }
 0x136   :  { %v626_v55 = vadd.f32 %v932_v53, %v541_v51  ;;  %v610_v58 = vpop.f32.mrf.mxu0 }
 0x137   :  { %v620_v59 = vpop.f32.mrf.mxu1  ;;  %630 = vst [vmem:[%s1575_s3 + $0x8] sm:$0xff] %v616_v54  ;;  %v611_v60 = vadd.f32 %v610_v58, %v526_v56  ;;  %v672_v62 = vmul.f32 %v616_v54, %v616_v54 }
 0x138   :  { %632 = vst [vmem:[%s1575_s3 + $0x18] sm:$0xff] %v626_v55  ;;  %v621_v61 = vadd.f32 %v620_v59, %v536_v57  ;;  %v674_v4 = vmul.f32 %v626_v55, %v626_v55 }
 0x139   :  { %629 = vst [vmem:[%s1575_s3] sm:$0xff] %v611_v60  ;;  %v659_v63 = vadd.f32 %v616_v54, %v611_v60  ;;  %v671_v0 = vmul.f32 %v611_v60, %v611_v60 }
 0x13a   :  { %631 = vst [vmem:[%s1575_s3 + $0x10] sm:$0xff] %v621_v61  ;;  %v673_v3 = vmul.f32 %v621_v61, %v621_v61 }
 0x13b   :  { %v675_v1 = vadd.f32 %v672_v62, %v671_v0  ;;  %v660_v2 = vadd.f32 %v659_v63, %v621_v61 }
 0x13d   :  { %v661_v5 = vadd.f32 %v660_v2, %v626_v55  ;;  %v676_v6 = vadd.f32 %v675_v1, %v673_v3 }
 0x13f   :  { %v662_v7 = vrot.slane %v661_v5, 4  ;;  %v677_v8 = vadd.f32 %v676_v6, %v674_v4 }
 0x141   :  { %v663_v9 = vadd.f32 %v662_v7, %v661_v5  ;;  %v678_v10 = vrot.slane %v677_v8, 4 }
 0x143   :  { %v664_v11 = vrot.slane %v663_v9, 2  ;;  %v679_v12 = vadd.f32 %v678_v10, %v677_v8 }
 0x145   :  { %v665_v13 = vadd.f32 %v664_v11, %v663_v9  ;;  %v680_v14 = vrot.slane %v679_v12, 2 }
 0x147   :  { %v666_v15 = vrot.slane %v665_v13, 1  ;;  %v681_v16 = vadd.f32 %v680_v14, %v679_v12 }
 0x149   :  { %v667_v18 = vadd.f32 %v666_v15, %v665_v13  ;;  %v682_v19 = vrot.slane %v681_v16, 1 }
 0x14b   :  { %v668_v21 = vadd.f32 %v667_v18, %v658_v17  ;;  %v683_v22 = vadd.f32 %v682_v19, %v681_v16 }
 0x14d   :  { %669 = vst [vmem:[%s1572_s4] sm:$0x1] %v668_v21  ;;  %v684_v23 = vadd.f32 %v683_v22, %v670_v20 }
 0x14f   :  { %685 = vst [vmem:[%s1573_s5] sm:$0x1] %v684_v23 }

// kernel: resnet18_block_forward.60
= control target key start
LH: loop header
LB: loop body
LE: loop exit
PB: predicated region body
PF: predicated region fallthrough
CT: control target
= control target key end

     0   :  { %s320_s1 = inlined_call_operand.vmem [shape: f32[128,128], index: 1, kind: input, shape index: {}]   ;;  %s321_s0 = inlined_call_operand.vmem [shape: f32[32,128], index: 0, kind: input, shape index: {}]   ;;  %s322_s2 = inlined_call_operand.vmem [shape: f32[1,128], index: 2, kind: input, shape index: {}]   ;;  %s323_s3 = inlined_call_operand.vmem [shape: f32[32,128], index: 3, kind: output, shape index: {}]  }
   0x1   :  { %v33_v0 = vld [vmem:[%s320_s1 + $0x78] sm:$0xff]  ;;  %v32_v1 = vld [vmem:[%s320_s1 + $0x70] sm:$0xff]  ;;  %v31_v2 = vld [vmem:[%s320_s1 + $0x68] sm:$0xff] }
   0x2   :  { %155 = vmatprep.subr.mxu0 %v33_v0  ;;  %193 = vmatprep.subr.mxu1 %v33_v0  ;;  %v30_v3 = vld [vmem:[%s320_s1 + $0x60] sm:$0xff]  ;;  %v29_v4 = vld [vmem:[%s320_s1 + $0x58] sm:$0xff]  ;;  %v28_v5 = vld [vmem:[%s320_s1 + $0x50] sm:$0xff] }
   0x3   :  { %156 = vmatpush3.msra.mxu0 %v33_v0  ;;  %209 = vmatpush3.msra.mxu1 %v33_v0  ;;  %v27_v6 = vld [vmem:[%s320_s1 + $0x48] sm:$0xff]  ;;  %v26_v7 = vld [vmem:[%s320_s1 + $0x40] sm:$0xff]  ;;  %v25_v8 = vld [vmem:[%s320_s1 + $0x38] sm:$0xff] }
   0x4   :  { %157 = vmatprep.subr.mxu0 %v32_v1  ;;  %194 = vmatprep.subr.mxu1 %v32_v1  ;;  %v24_v9 = vld [vmem:[%s320_s1 + $0x30] sm:$0xff]  ;;  %v23_v10 = vld [vmem:[%s320_s1 + $0x28] sm:$0xff]  ;;  %v22_v11 = vld [vmem:[%s320_s1 + $0x20] sm:$0xff] }
   0x5   :  { %158 = vmatpush3.msra.mxu0 %v32_v1  ;;  %210 = vmatpush3.msra.mxu1 %v32_v1  ;;  %v21_v12 = vld [vmem:[%s320_s1 + $0x18] sm:$0xff]  ;;  %v20_v13 = vld [vmem:[%s320_s1 + $0x10] sm:$0xff]  ;;  %v19_v14 = vld [vmem:[%s320_s1 + $0x8] sm:$0xff] }
   0x6   :  { %159 = vmatprep.subr.mxu0 %v31_v2  ;;  %195 = vmatprep.subr.mxu1 %v31_v2  ;;  %v18_v15 = vld [vmem:[%s320_s1] sm:$0xff]  ;;  %v16_v17 = vld [vmem:[%s321_s0 + $0x10] sm:$0xff]  ;;  %v15_v18 = vld [vmem:[%s321_s0 + $0x8] sm:$0xff] }
   0x7   :  { %160 = vmatpush3.msra.mxu0 %v31_v2  ;;  %211 = vmatpush3.msra.mxu1 %v31_v2  ;;  %v14_v16 = vld [vmem:[%s321_s0] sm:$0xff]  ;;  %v17_v19 = vld [vmem:[%s321_s0 + $0x18] sm:$0xff] }
   0x8   :  { %161 = vmatprep.subr.mxu0 %v30_v3  ;;  %196 = vmatprep.subr.mxu1 %v30_v3  ;;  %v134_v20 = vld [vmem:[%s322_s2] ss:$0 sm:$0xff] }
   0x9   :  { %162 = vmatpush3.msra.mxu0 %v30_v3  ;;  %212 = vmatpush3.msra.mxu1 %v30_v3 }
   0xa   :  { %163 = vmatprep.subr.mxu0 %v29_v4  ;;  %197 = vmatprep.subr.mxu1 %v29_v4 }
   0xb   :  { %164 = vmatpush3.msra.mxu0 %v29_v4  ;;  %213 = vmatpush3.msra.mxu1 %v29_v4 }
   0xc   :  { %165 = vmatprep.subr.mxu0 %v28_v5  ;;  %198 = vmatprep.subr.mxu1 %v28_v5 }
   0xd   :  { %166 = vmatpush3.msra.mxu0 %v28_v5  ;;  %214 = vmatpush3.msra.mxu1 %v28_v5 }
   0xe   :  { %167 = vmatprep.subr.mxu0 %v27_v6  ;;  %199 = vmatprep.subr.mxu1 %v27_v6 }
   0xf   :  { %168 = vmatpush3.msra.mxu0 %v27_v6  ;;  %215 = vmatpush3.msra.mxu1 %v27_v6 }
  0x10   :  { %169 = vmatprep.subr.mxu0 %v26_v7  ;;  %200 = vmatprep.subr.mxu1 %v26_v7 }
  0x11   :  { %170 = vmatpush3.msra.mxu0 %v26_v7  ;;  %216 = vmatpush3.msra.mxu1 %v26_v7 }
  0x12   :  { %171 = vmatprep.subr.mxu0 %v25_v8  ;;  %201 = vmatprep.subr.mxu1 %v25_v8 }
  0x13   :  { %172 = vmatpush3.msra.mxu0 %v25_v8  ;;  %217 = vmatpush3.msra.mxu1 %v25_v8 }
  0x14   :  { %173 = vmatprep.subr.mxu0 %v24_v9  ;;  %202 = vmatprep.subr.mxu1 %v24_v9 }
  0x15   :  { %174 = vmatpush3.msra.mxu0 %v24_v9  ;;  %218 = vmatpush3.msra.mxu1 %v24_v9 }
  0x16   :  { %175 = vmatprep.subr.mxu0 %v23_v10  ;;  %203 = vmatprep.subr.mxu1 %v23_v10 }
  0x17   :  { %176 = vmatpush3.msra.mxu0 %v23_v10  ;;  %219 = vmatpush3.msra.mxu1 %v23_v10 }
  0x18   :  { %177 = vmatprep.subr.mxu0 %v22_v11  ;;  %204 = vmatprep.subr.mxu1 %v22_v11 }
  0x19   :  { %178 = vmatpush3.msra.mxu0 %v22_v11  ;;  %220 = vmatpush3.msra.mxu1 %v22_v11 }
  0x1a   :  { %179 = vmatprep.subr.mxu0 %v21_v12  ;;  %205 = vmatprep.subr.mxu1 %v21_v12 }
  0x1b   :  { %180 = vmatpush3.msra.mxu0 %v21_v12  ;;  %221 = vmatpush3.msra.mxu1 %v21_v12 }
  0x1c   :  { %181 = vmatprep.subr.mxu0 %v20_v13  ;;  %206 = vmatprep.subr.mxu1 %v20_v13 }
  0x1d   :  { %182 = vmatpush3.msra.mxu0 %v20_v13  ;;  %222 = vmatpush3.msra.mxu1 %v20_v13 }
  0x1e   :  { %183 = vmatprep.subr.mxu0 %v19_v14  ;;  %207 = vmatprep.subr.mxu1 %v19_v14 }
  0x1f   :  { %184 = vmatpush3.msra.mxu0 %v19_v14  ;;  %223 = vmatpush3.msra.mxu1 %v19_v14 }
  0x20   :  { %185 = vmatprep.subr.mxu0 %v18_v15  ;;  %208 = vmatprep.subr.mxu1 %v18_v15 }
  0x21   :  { %186 = vmatpush3.msra.mxu0 %v18_v15  ;;  %224 = vmatpush3.msra.mxu1 %v18_v15 }
  0x22   :  { %187 = vmatprep.mubr.f32.mxu0 %v14_v16  ;;  %190 = vmatprep.mubr.f32.mxu1 %v16_v17 }
  0x23   :  { %188 = vmatmul.mubr.f32.vlgmr.msra.gmra.mxu0 %v15_v18  ;;  %191 = vmatmul.mubr.f32.vlgmr.msra.gmra.mxu1 %v17_v19 }
  0xe3   :  { %v189_v21 = vpop.f32.mrf.mxu0  ;;  %v192_v22 = vpop.f32.mrf.mxu1 }
  0xe4   :  { %v113_v23 = vadd.f32 %v189_v21, %v134_v20  ;;  %v123_v24 = vadd.f32 %v192_v22, %v134_v20 }
  0xe5   :  { %v107_v25 = vpop.f32.mrf.mxu0  ;;  %v117_v26 = vpop.f32.mrf.mxu1 }
  0xe6   :  { %127 = vst [vmem:[%s323_s3 + $0x8] sm:$0xff] %v113_v23  ;;  %129 = vst [vmem:[%s323_s3 + $0x18] sm:$0xff] %v123_v24  ;;  %v108_v27 = vadd.f32 %v134_v20, %v107_v25  ;;  %v118_v28 = vadd.f32 %v134_v20, %v117_v26 }
  0xe8   :  { %126 = vst [vmem:[%s323_s3] sm:$0xff] %v108_v27  ;;  %128 = vst [vmem:[%s323_s3 + $0x10] sm:$0xff] %v118_v28 }

// kernel: resnet18_block_forward.66
= control target key start
LH: loop header
LB: loop body
LE: loop exit
PB: predicated region body
PF: predicated region fallthrough
CT: control target
= control target key end

     0   :  { %vm768_vm0 = vmmov 0   ;;  %s1282_s1 = inlined_call_operand.vmem [shape: f32[1152,128], index: 1, kind: input, shape index: {}]   ;;  %s1283_s0 = inlined_call_operand.vmem [shape: f32[8,1152], index: 0, kind: input, shape index: {}]   ;;  %s1284_s4 = inlined_call_operand.vmem [shape: f32[1,128], index: 4, kind: output, shape index: {1}]   ;;  %s1285_s5 = inlined_call_operand.vmem [shape: f32[1,128], index: 5, kind: output, shape index: {2}]   ;;  %s1286_s2 = inlined_call_operand.vmem [shape: f32[1,128], index: 2, kind: input, shape index: {}]   ;;  %s1287_s3 = inlined_call_operand.vmem [shape: f32[8,128], index: 3, kind: output, shape index: {0}]  }
   0x1   :  { %v57_v0 = vld [vmem:[%s1282_s1 + $0xf8] sm:$0xff]  ;;  %v56_v2 = vld [vmem:[%s1282_s1 + $0xf0] sm:$0xff]  ;;  %v55_v6 = vld [vmem:[%s1282_s1 + $0xe8] sm:$0xff] }
   0x2   :  { %v41_v1 = vld [vmem:[%s1282_s1 + $0x78] sm:$0xff]  ;;  %573 = vmatprep.subr.mxu0 %v57_v0  ;;  %v40_v4 = vld [vmem:[%s1282_s1 + $0x70] sm:$0xff]  ;;  %v39_v8 = vld [vmem:[%s1282_s1 + $0x68] sm:$0xff] }
   0x3   :  { %v89_v3 = vld [vmem:[%s1282_s1 + $0x1f8] sm:$0xff]  ;;  %574 = vmatpush3.msra.mxu0 %v41_v1  ;;  %v88_v7 = vld [vmem:[%s1282_s1 + $0x1f0] sm:$0xff]  ;;  %v87_v10 = vld [vmem:[%s1282_s1 + $0x1e8] sm:$0xff] }
   0x4   :  { %v73_v5 = vld [vmem:[%s1282_s1 + $0x178] sm:$0xff]  ;;  %608 = vmatprep.subr.mxu1 %v89_v3  ;;  %575 = vmatprep.subr.mxu0 %v56_v2  ;;  %v72_v9 = vld [vmem:[%s1282_s1 + $0x170] sm:$0xff]  ;;  %v54_v11 = vld [vmem:[%s1282_s1 + $0xe0] sm:$0xff] }
   0x5   :  { %609 = vmatpush3.msra.mxu1 %v73_v5  ;;  %576 = vmatpush3.msra.mxu0 %v40_v4  ;;  %v71_v12 = vld [vmem:[%s1282_s1 + $0x168] sm:$0xff]  ;;  %v38_v13 = vld [vmem:[%s1282_s1 + $0x60] sm:$0xff]  ;;  %v53_v15 = vld [vmem:[%s1282_s1 + $0xd8] sm:$0xff] }
   0x6   :  { %610 = vmatprep.subr.mxu1 %v88_v7  ;;  %577 = vmatprep.subr.mxu0 %v55_v6  ;;  %v86_v14 = vld [vmem:[%s1282_s1 + $0x1e0] sm:$0xff]  ;;  %v37_v17 = vld [vmem:[%s1282_s1 + $0x58] sm:$0xff]  ;;  %v52_v19 = vld [vmem:[%s1282_s1 + $0xd0] sm:$0xff] }
   0x7   :  { %611 = vmatpush3.msra.mxu1 %v72_v9  ;;  %578 = vmatpush3.msra.mxu0 %v39_v8  ;;  %v70_v16 = vld [vmem:[%s1282_s1 + $0x160] sm:$0xff]  ;;  %v85_v18 = vld [vmem:[%s1282_s1 + $0x1d8] sm:$0xff]  ;;  %v36_v21 = vld [vmem:[%s1282_s1 + $0x50] sm:$0xff] }
   0x8   :  { %612 = vmatprep.subr.mxu1 %v87_v10  ;;  %579 = vmatprep.subr.mxu0 %v54_v11  ;;  %v69_v20 = vld [vmem:[%s1282_s1 + $0x158] sm:$0xff]  ;;  %v84_v22 = vld [vmem:[%s1282_s1 + $0x1d0] sm:$0xff]  ;;  %v51_v23 = vld [vmem:[%s1282_s1 + $0xc8] sm:$0xff] }
   0x9   :  { %613 = vmatpush3.msra.mxu1 %v71_v12  ;;  %580 = vmatpush3.msra.mxu0 %v38_v13  ;;  %v68_v24 = vld [vmem:[%s1282_s1 + $0x150] sm:$0xff]  ;;  %v35_v25 = vld [vmem:[%s1282_s1 + $0x48] sm:$0xff]  ;;  %v50_v27 = vld [vmem:[%s1282_s1 + $0xc0] sm:$0xff] }
   0xa   :  { %614 = vmatprep.subr.mxu1 %v86_v14  ;;  %581 = vmatprep.subr.mxu0 %v53_v15  ;;  %v83_v26 = vld [vmem:[%s1282_s1 + $0x1c8] sm:$0xff]  ;;  %v34_v29 = vld [vmem:[%s1282_s1 + $0x40] sm:$0xff]  ;;  %v49_v31 = vld [vmem:[%s1282_s1 + $0xb8] sm:$0xff] }
   0xb   :  { %615 = vmatpush3.msra.mxu1 %v70_v16  ;;  %582 = vmatpush3.msra.mxu0 %v37_v17  ;;  %v67_v28 = vld [vmem:[%s1282_s1 + $0x148] sm:$0xff]  ;;  %v82_v30 = vld [vmem:[%s1282_s1 + $0x1c0] sm:$0xff]  ;;  %v33_v33 = vld [vmem:[%s1282_s1 + $0x38] sm:$0xff] }
   0xc   :  { %616 = vmatprep.subr.mxu1 %v85_v18  ;;  %583 = vmatprep.subr.mxu0 %v52_v19  ;;  %v66_v32 = vld [vmem:[%s1282_s1 + $0x140] sm:$0xff]  ;;  %v81_v34 = vld [vmem:[%s1282_s1 + $0x1b8] sm:$0xff]  ;;  %v48_v35 = vld [vmem:[%s1282_s1 + $0xb0] sm:$0xff] }
   0xd   :  { %617 = vmatpush3.msra.mxu1 %v69_v20  ;;  %584 = vmatpush3.msra.mxu0 %v36_v21  ;;  %v65_v36 = vld [vmem:[%s1282_s1 + $0x138] sm:$0xff]  ;;  %v32_v37 = vld [vmem:[%s1282_s1 + $0x30] sm:$0xff]  ;;  %v47_v39 = vld [vmem:[%s1282_s1 + $0xa8] sm:$0xff] }
   0xe   :  { %618 = vmatprep.subr.mxu1 %v84_v22  ;;  %585 = vmatprep.subr.mxu0 %v51_v23  ;;  %v80_v38 = vld [vmem:[%s1282_s1 + $0x1b0] sm:$0xff]  ;;  %v31_v41 = vld [vmem:[%s1282_s1 + $0x28] sm:$0xff]  ;;  %v46_v43 = vld [vmem:[%s1282_s1 + $0xa0] sm:$0xff] }
   0xf   :  { %619 = vmatpush3.msra.mxu1 %v68_v24  ;;  %586 = vmatpush3.msra.mxu0 %v35_v25  ;;  %v64_v40 = vld [vmem:[%s1282_s1 + $0x130] sm:$0xff]  ;;  %v79_v42 = vld [vmem:[%s1282_s1 + $0x1a8] sm:$0xff]  ;;  %v30_v45 = vld [vmem:[%s1282_s1 + $0x20] sm:$0xff] }
  0x10   :  { %620 = vmatprep.subr.mxu1 %v83_v26  ;;  %587 = vmatprep.subr.mxu0 %v50_v27  ;;  %v63_v44 = vld [vmem:[%s1282_s1 + $0x128] sm:$0xff]  ;;  %v78_v46 = vld [vmem:[%s1282_s1 + $0x1a0] sm:$0xff]  ;;  %v45_v47 = vld [vmem:[%s1282_s1 + $0x98] sm:$0xff] }
  0x11   :  { %621 = vmatpush3.msra.mxu1 %v67_v28  ;;  %588 = vmatpush3.msra.mxu0 %v34_v29  ;;  %v62_v48 = vld [vmem:[%s1282_s1 + $0x120] sm:$0xff]  ;;  %v29_v49 = vld [vmem:[%s1282_s1 + $0x18] sm:$0xff]  ;;  %v44_v51 = vld [vmem:[%s1282_s1 + $0x90] sm:$0xff] }
  0x12   :  { %622 = vmatprep.subr.mxu1 %v82_v30  ;;  %589 = vmatprep.subr.mxu0 %v49_v31  ;;  %v77_v50 = vld [vmem:[%s1282_s1 + $0x198] sm:$0xff]  ;;  %v28_v53 = vld [vmem:[%s1282_s1 + $0x10] sm:$0xff]  ;;  %v43_v55 = vld [vmem:[%s1282_s1 + $0x88] sm:$0xff] }
  0x13   :  { %623 = vmatpush3.msra.mxu1 %v66_v32  ;;  %590 = vmatpush3.msra.mxu0 %v33_v33  ;;  %v61_v52 = vld [vmem:[%s1282_s1 + $0x118] sm:$0xff]  ;;  %v76_v54 = vld [vmem:[%s1282_s1 + $0x190] sm:$0xff]  ;;  %v27_v57 = vld [vmem:[%s1282_s1 + $0x8] sm:$0xff] }
  0x14   :  { %624 = vmatprep.subr.mxu1 %v81_v34  ;;  %591 = vmatprep.subr.mxu0 %v48_v35  ;;  %v60_v56 = vld [vmem:[%s1282_s1 + $0x110] sm:$0xff]  ;;  %v75_v58 = vld [vmem:[%s1282_s1 + $0x188] sm:$0xff]  ;;  %v42_v59 = vld [vmem:[%s1282_s1 + $0x80] sm:$0xff] }
  0x15   :  { %625 = vmatpush3.msra.mxu1 %v65_v36  ;;  %592 = vmatpush3.msra.mxu0 %v32_v37  ;;  %v18_v60 = vld [vmem:[%s1283_s0 + $0x8] sm:$0xff]  ;;  %v26_v61 = vld [vmem:[%s1282_s1] sm:$0xff]  ;;  %v121_v1 = vld [vmem:[%s1282_s1 + $0x2f8] sm:$0xff] }
  0x16   :  { %626 = vmatprep.subr.mxu1 %v80_v38  ;;  %593 = vmatprep.subr.mxu0 %v47_v39  ;;  %v59_v62 = vld [vmem:[%s1282_s1 + $0x108] sm:$0xff]  ;;  %v17_v63 = vld [vmem:[%s1283_s0] sm:$0xff]  ;;  %v20_v3 = vld [vmem:[%s1283_s0 + $0x18] sm:$0xff] }
  0x17   :  { %627 = vmatpush3.msra.mxu1 %v64_v40  ;;  %594 = vmatpush3.msra.mxu0 %v31_v41  ;;  %v74_v0 = vld [vmem:[%s1282_s1 + $0x180] sm:$0xff]  ;;  %v105_v4 = vld [vmem:[%s1282_s1 + $0x278] sm:$0xff]  ;;  %v19_v5 = vld [vmem:[%s1283_s0 + $0x10] sm:$0xff] }
  0x18   :  { %628 = vmatprep.subr.mxu1 %v79_v42  ;;  %595 = vmatprep.subr.mxu0 %v46_v43  ;;  %v58_v2 = vld [vmem:[%s1282_s1 + $0x100] sm:$0xff]  ;;  %v120_v6 = vld [vmem:[%s1282_s1 + $0x2f0] sm:$0xff]  ;;  %v153_v7 = vld [vmem:[%s1282_s1 + $0x3f8] sm:$0xff] }
  0x19   :  { %629 = vmatpush3.msra.mxu1 %v63_v44  ;;  %596 = vmatpush3.msra.mxu0 %v30_v45  ;;  %v104_v8 = vld [vmem:[%s1282_s1 + $0x270] sm:$0xff]  ;;  %v137_v9 = vld [vmem:[%s1282_s1 + $0x378] sm:$0xff]  ;;  %v119_v10 = vld [vmem:[%s1282_s1 + $0x2e8] sm:$0xff] }
  0x1a   :  { %630 = vmatprep.subr.mxu1 %v78_v46  ;;  %597 = vmatprep.subr.mxu0 %v45_v47  ;;  %v152_v11 = vld [vmem:[%s1282_s1 + $0x3f0] sm:$0xff]  ;;  %v103_v12 = vld [vmem:[%s1282_s1 + $0x268] sm:$0xff]  ;;  %v118_v14 = vld [vmem:[%s1282_s1 + $0x2e0] sm:$0xff] }
  0x1b   :  { %631 = vmatpush3.msra.mxu1 %v62_v48  ;;  %598 = vmatpush3.msra.mxu0 %v29_v49  ;;  %v136_v13 = vld [vmem:[%s1282_s1 + $0x370] sm:$0xff]  ;;  %v151_v15 = vld [vmem:[%s1282_s1 + $0x3e8] sm:$0xff]  ;;  %v102_v16 = vld [vmem:[%s1282_s1 + $0x260] sm:$0xff] }
  0x1c   :  { %632 = vmatprep.subr.mxu1 %v77_v50  ;;  %599 = vmatprep.subr.mxu0 %v44_v51  ;;  %v135_v17 = vld [vmem:[%s1282_s1 + $0x368] sm:$0xff]  ;;  %v117_v18 = vld [vmem:[%s1282_s1 + $0x2d8] sm:$0xff]  ;;  %v150_v19 = vld [vmem:[%s1282_s1 + $0x3e0] sm:$0xff] }
  0x1d   :  { %633 = vmatpush3.msra.mxu1 %v61_v52  ;;  %600 = vmatpush3.msra.mxu0 %v28_v53  ;;  %v101_v20 = vld [vmem:[%s1282_s1 + $0x258] sm:$0xff]  ;;  %v134_v21 = vld [vmem:[%s1282_s1 + $0x360] sm:$0xff]  ;;  %v116_v22 = vld [vmem:[%s1282_s1 + $0x2d0] sm:$0xff] }
  0x1e   :  { %634 = vmatprep.subr.mxu1 %v76_v54  ;;  %601 = vmatprep.subr.mxu0 %v43_v55  ;;  %v149_v23 = vld [vmem:[%s1282_s1 + $0x3d8] sm:$0xff]  ;;  %v100_v24 = vld [vmem:[%s1282_s1 + $0x250] sm:$0xff]  ;;  %v115_v26 = vld [vmem:[%s1282_s1 + $0x2c8] sm:$0xff] }
  0x1f   :  { %635 = vmatpush3.msra.mxu1 %v60_v56  ;;  %602 = vmatpush3.msra.mxu0 %v27_v57  ;;  %v133_v25 = vld [vmem:[%s1282_s1 + $0x358] sm:$0xff]  ;;  %v148_v27 = vld [vmem:[%s1282_s1 + $0x3d0] sm:$0xff]  ;;  %v99_v28 = vld [vmem:[%s1282_s1 + $0x248] sm:$0xff] }
  0x20   :  { %636 = vmatprep.subr.mxu1 %v75_v58  ;;  %603 = vmatprep.subr.mxu0 %v42_v59  ;;  %v132_v29 = vld [vmem:[%s1282_s1 + $0x350] sm:$0xff]  ;;  %v114_v30 = vld [vmem:[%s1282_s1 + $0x2c0] sm:$0xff]  ;;  %v147_v31 = vld [vmem:[%s1282_s1 + $0x3c8] sm:$0xff] }
  0x21   :  { %241 = vmatprep.mubr.f32.mxu0 %v18_v60  ;;  %604 = vmatpush3.msra.mxu0 %v26_v61  ;;  %v98_v32 = vld [vmem:[%s1282_s1 + $0x240] sm:$0xff]  ;;  %v131_v33 = vld [vmem:[%s1282_s1 + $0x348] sm:$0xff]  ;;  %v113_v34 = vld [vmem:[%s1282_s1 + $0x2b8] sm:$0xff] }
  0x22   :  { %637 = vmatpush3.msra.mxu1 %v59_v62  ;;  %242 = vmatmul.mubr.f32.vlgmr.msra.gmra.mxu0 %v17_v63  ;;  %v146_v35 = vld [vmem:[%s1282_s1 + $0x3c0] sm:$0xff]  ;;  %v97_v36 = vld [vmem:[%s1282_s1 + $0x238] sm:$0xff]  ;;  %v112_v38 = vld [vmem:[%s1282_s1 + $0x2b0] sm:$0xff] }
  0x23   :  { %638 = vmatprep.subr.mxu1 %v74_v0  ;;  %643 = vmatprep.subr.mxu0 %v121_v1  ;;  %v130_v37 = vld [vmem:[%s1282_s1 + $0x340] sm:$0xff]  ;;  %v145_v39 = vld [vmem:[%s1282_s1 + $0x3b8] sm:$0xff]  ;;  %v96_v40 = vld [vmem:[%s1282_s1 + $0x230] sm:$0xff] }
  0x24   :  { %639 = vmatpush3.msra.mxu1 %v58_v2  ;;  %311 = vmatprep.mubr.f32.mxu1 %v20_v3  ;;  %v129_v41 = vld [vmem:[%s1282_s1 + $0x338] sm:$0xff]  ;;  %v111_v42 = vld [vmem:[%s1282_s1 + $0x2a8] sm:$0xff]  ;;  %v144_v43 = vld [vmem:[%s1282_s1 + $0x3b0] sm:$0xff] }
  0x25   :  { %644 = vmatpush3.msra.mxu0 %v105_v4  ;;  %312 = vmatmul.mubr.f32.vlgmr.msra.gmra.mxu1 %v19_v5  ;;  %v95_v44 = vld [vmem:[%s1282_s1 + $0x228] sm:$0xff]  ;;  %v128_v45 = vld [vmem:[%s1282_s1 + $0x330] sm:$0xff]  ;;  %v110_v46 = vld [vmem:[%s1282_s1 + $0x2a0] sm:$0xff] }
  0x26   :  { %645 = vmatprep.subr.mxu0 %v120_v6  ;;  %678 = vmatprep.subr.mxu1 %v153_v7  ;;  %v143_v47 = vld [vmem:[%s1282_s1 + $0x3a8] sm:$0xff]  ;;  %v94_v48 = vld [vmem:[%s1282_s1 + $0x220] sm:$0xff]  ;;  %v109_v50 = vld [vmem:[%s1282_s1 + $0x298] sm:$0xff] }
  0x27   :  { %646 = vmatpush3.msra.mxu0 %v104_v8  ;;  %679 = vmatpush3.msra.mxu1 %v137_v9  ;;  %v127_v49 = vld [vmem:[%s1282_s1 + $0x328] sm:$0xff]  ;;  %v142_v51 = vld [vmem:[%s1282_s1 + $0x3a0] sm:$0xff]  ;;  %v93_v52 = vld [vmem:[%s1282_s1 + $0x218] sm:$0xff]  ;;  %v767_v9 = vmov 0.0  }
  0x28   :  { %647 = vmatprep.subr.mxu0 %v119_v10  ;;  %680 = vmatprep.subr.mxu1 %v152_v11  ;;  %v126_v53 = vld [vmem:[%s1282_s1 + $0x320] sm:$0xff]  ;;  %v108_v54 = vld [vmem:[%s1282_s1 + $0x290] sm:$0xff]  ;;  %v141_v55 = vld [vmem:[%s1282_s1 + $0x398] sm:$0xff]  ;;  %539 = vst [vmem:[%s1284_s4] sm:$0x1] %v767_v9 }
  0x29   :  { %648 = vmatpush3.msra.mxu0 %v103_v12  ;;  %681 = vmatpush3.msra.mxu1 %v136_v13  ;;  %v92_v56 = vld [vmem:[%s1282_s1 + $0x210] sm:$0xff]  ;;  %v125_v57 = vld [vmem:[%s1282_s1 + $0x318] sm:$0xff]  ;;  %v107_v58 = vld [vmem:[%s1282_s1 + $0x288] sm:$0xff]  ;;  %540 = vst [vmem:[%s1285_s5] sm:$0x1] %v767_v9 }
  0x2a   :  { %649 = vmatprep.subr.mxu0 %v118_v14  ;;  %682 = vmatprep.subr.mxu1 %v151_v15  ;;  %v140_v59 = vld [vmem:[%s1282_s1 + $0x390] sm:$0xff]  ;;  %v91_v60 = vld [vmem:[%s1282_s1 + $0x208] sm:$0xff]  ;;  %v106_v62 = vld [vmem:[%s1282_s1 + $0x280] sm:$0xff] }
  0x2b   :  { %650 = vmatpush3.msra.mxu0 %v102_v16  ;;  %683 = vmatpush3.msra.mxu1 %v135_v17  ;;  %v124_v61 = vld [vmem:[%s1282_s1 + $0x310] sm:$0xff]  ;;  %v139_v63 = vld [vmem:[%s1282_s1 + $0x388] sm:$0xff]  ;;  %v90_v0 = vld [vmem:[%s1282_s1 + $0x200] sm:$0xff] }
  0x2c   :  { %651 = vmatprep.subr.mxu0 %v117_v18  ;;  %684 = vmatprep.subr.mxu1 %v150_v19  ;;  %v22_v1 = vld [vmem:[%s1283_s0 + $0x28] sm:$0xff]  ;;  %v21_v3 = vld [vmem:[%s1283_s0 + $0x20] sm:$0xff]  ;;  %v24_v6 = vld [vmem:[%s1283_s0 + $0x38] sm:$0xff] }
  0x2d   :  { %652 = vmatpush3.msra.mxu0 %v101_v20  ;;  %685 = vmatpush3.msra.mxu1 %v134_v21  ;;  %v123_v2 = vld [vmem:[%s1282_s1 + $0x308] sm:$0xff]  ;;  %v138_v4 = vld [vmem:[%s1282_s1 + $0x380] sm:$0xff]  ;;  %v169_v7 = vld [vmem:[%s1282_s1 + $0x478] sm:$0xff] }
  0x2e   :  { %653 = vmatprep.subr.mxu0 %v116_v22  ;;  %686 = vmatprep.subr.mxu1 %v149_v23  ;;  %v122_v5 = vld [vmem:[%s1282_s1 + $0x300] sm:$0xff]  ;;  %v23_v8 = vld [vmem:[%s1283_s0 + $0x30] sm:$0xff]  ;;  %v167_v11 = vld [vmem:[%s1282_s1 + $0x468] sm:$0xff] }
  0x2f   :  { %654 = vmatpush3.msra.mxu0 %v100_v24  ;;  %687 = vmatpush3.msra.mxu1 %v133_v25  ;;  %v168_v10 = vld [vmem:[%s1282_s1 + $0x470] sm:$0xff]  ;;  %v166_v12 = vld [vmem:[%s1282_s1 + $0x460] sm:$0xff]  ;;  %v165_v13 = vld [vmem:[%s1282_s1 + $0x458] sm:$0xff] }
  0x30   :  { %655 = vmatprep.subr.mxu0 %v115_v26  ;;  %688 = vmatprep.subr.mxu1 %v148_v27  ;;  %v164_v14 = vld [vmem:[%s1282_s1 + $0x450] sm:$0xff]  ;;  %v163_v15 = vld [vmem:[%s1282_s1 + $0x448] sm:$0xff]  ;;  %v162_v16 = vld [vmem:[%s1282_s1 + $0x440] sm:$0xff] }
  0x31   :  { %656 = vmatpush3.msra.mxu0 %v99_v28  ;;  %689 = vmatpush3.msra.mxu1 %v132_v29  ;;  %v161_v17 = vld [vmem:[%s1282_s1 + $0x438] sm:$0xff]  ;;  %v160_v18 = vld [vmem:[%s1282_s1 + $0x430] sm:$0xff]  ;;  %v159_v19 = vld [vmem:[%s1282_s1 + $0x428] sm:$0xff] }
  0x32   :  { %657 = vmatprep.subr.mxu0 %v114_v30  ;;  %690 = vmatprep.subr.mxu1 %v147_v31  ;;  %v158_v20 = vld [vmem:[%s1282_s1 + $0x420] sm:$0xff]  ;;  %v157_v21 = vld [vmem:[%s1282_s1 + $0x418] sm:$0xff]  ;;  %v156_v22 = vld [vmem:[%s1282_s1 + $0x410] sm:$0xff] }
  0x33   :  { %658 = vmatpush3.msra.mxu0 %v98_v32  ;;  %691 = vmatpush3.msra.mxu1 %v131_v33  ;;  %v155_v23 = vld [vmem:[%s1282_s1 + $0x408] sm:$0xff]  ;;  %v154_v24 = vld [vmem:[%s1282_s1 + $0x400] sm:$0xff] }
  0x34   :  { %659 = vmatprep.subr.mxu0 %v113_v34  ;;  %692 = vmatprep.subr.mxu1 %v146_v35  ;;  %v25_v25 = vld [vmem:[%s1283_s0 + $0x40] sm:$0xff] }
  0x35   :  { %660 = vmatpush3.msra.mxu0 %v97_v36  ;;  %693 = vmatpush3.msra.mxu1 %v130_v37  ;;  %v572_v31 = vld [vmem:[%s1286_s2] ss:$0 sm:$0xff] }
  0x36   :  { %661 = vmatprep.subr.mxu0 %v112_v38  ;;  %694 = vmatprep.subr.mxu1 %v145_v39 }
  0x37   :  { %662 = vmatpush3.msra.mxu0 %v96_v40  ;;  %695 = vmatpush3.msra.mxu1 %v129_v41 }
  0x38   :  { %663 = vmatprep.subr.mxu0 %v111_v42  ;;  %696 = vmatprep.subr.mxu1 %v144_v43 }
  0x39   :  { %664 = vmatpush3.msra.mxu0 %v95_v44  ;;  %697 = vmatpush3.msra.mxu1 %v128_v45 }
  0x3a   :  { %665 = vmatprep.subr.mxu0 %v110_v46  ;;  %698 = vmatprep.subr.mxu1 %v143_v47 }
  0x3b   :  { %666 = vmatpush3.msra.mxu0 %v94_v48  ;;  %699 = vmatpush3.msra.mxu1 %v127_v49 }
  0x3c   :  { %667 = vmatprep.subr.mxu0 %v109_v50  ;;  %700 = vmatprep.subr.mxu1 %v142_v51 }
  0x3d   :  { %668 = vmatpush3.msra.mxu0 %v93_v52  ;;  %701 = vmatpush3.msra.mxu1 %v126_v53 }
  0x3e   :  { %669 = vmatprep.subr.mxu0 %v108_v54  ;;  %702 = vmatprep.subr.mxu1 %v141_v55 }
  0x3f   :  { %670 = vmatpush3.msra.mxu0 %v92_v56  ;;  %703 = vmatpush3.msra.mxu1 %v125_v57  ;;  %v541_v56 = vld [vmem:[%s1284_s4] sm:$0x1] }
  0x40   :  { %671 = vmatprep.subr.mxu0 %v107_v58  ;;  %704 = vmatprep.subr.mxu1 %v140_v59  ;;  %v550_v59 = vld [vmem:[%s1285_s5] sm:$0x1] }
  0x41   :  { %672 = vmatpush3.msra.mxu0 %v91_v60  ;;  %705 = vmatpush3.msra.mxu1 %v124_v61 }
  0x42   :  { %673 = vmatprep.subr.mxu0 %v106_v62  ;;  %706 = vmatprep.subr.mxu1 %v139_v63 }
  0x43   :  { %674 = vmatpush3.msra.mxu0 %v90_v0  ;;  %381 = vmatprep.mubr.f32.mxu0 %v22_v1 }
  0x44   :  { %707 = vmatpush3.msra.mxu1 %v123_v2  ;;  %382 = vmatmul.mubr.f32.vlgmr.msra.gmra.mxu0 %v21_v3 }
  0x45   :  { %708 = vmatprep.subr.mxu1 %v138_v4  ;;  %730 = vmatprep.subr.mxu0 %v767_v9 }
  0x46   :  { %709 = vmatpush3.msra.mxu1 %v122_v5  ;;  %451 = vmatprep.mubr.f32.mxu1 %v24_v6 }
  0x47   :  { %731 = vmatpush3.msra.mxu0 %v169_v7  ;;  %452 = vmatmul.mubr.f32.vlgmr.msra.gmra.mxu1 %v23_v8 }
  0x48   :  { %732 = vmatprep.subr.mxu0 %v767_v9  ;;  %762 = vmatprep.mubr.msk.f32.mxu0 %vm768_vm0, %v767_v9 }
  0x49   :  { %733 = vmatpush3.msra.mxu0 %v168_v10 }
  0x4a   :  { %734 = vmatprep.subr.mxu0 %v767_v9 }
  0x4b   :  { %735 = vmatpush3.msra.mxu0 %v167_v11 }
  0x4c   :  { %736 = vmatprep.subr.mxu0 %v767_v9 }
  0x4d   :  { %737 = vmatpush3.msra.mxu0 %v166_v12 }
  0x4e   :  { %738 = vmatprep.subr.mxu0 %v767_v9 }
  0x4f   :  { %739 = vmatpush3.msra.mxu0 %v165_v13 }
  0x50   :  { %740 = vmatprep.subr.mxu0 %v767_v9 }
  0x51   :  { %741 = vmatpush3.msra.mxu0 %v164_v14 }
  0x52   :  { %742 = vmatprep.subr.mxu0 %v767_v9 }
  0x53   :  { %743 = vmatpush3.msra.mxu0 %v163_v15 }
  0x54   :  { %744 = vmatprep.subr.mxu0 %v767_v9 }
  0x55   :  { %745 = vmatpush3.msra.mxu0 %v162_v16 }
  0x56   :  { %746 = vmatprep.subr.mxu0 %v767_v9 }
  0x57   :  { %747 = vmatpush3.msra.mxu0 %v161_v17 }
  0x58   :  { %748 = vmatprep.subr.mxu0 %v767_v9 }
  0x59   :  { %749 = vmatpush3.msra.mxu0 %v160_v18 }
  0x5a   :  { %750 = vmatprep.subr.mxu0 %v767_v9 }
  0x5b   :  { %751 = vmatpush3.msra.mxu0 %v159_v19 }
  0x5c   :  { %752 = vmatprep.subr.mxu0 %v767_v9 }
  0x5d   :  { %753 = vmatpush3.msra.mxu0 %v158_v20 }
  0x5e   :  { %754 = vmatprep.subr.mxu0 %v767_v9 }
  0x5f   :  { %755 = vmatpush3.msra.mxu0 %v157_v21 }
  0x60   :  { %756 = vmatprep.subr.mxu0 %v767_v9 }
  0x61   :  { %757 = vmatpush3.msra.mxu0 %v156_v22 }
  0x62   :  { %758 = vmatprep.subr.mxu0 %v767_v9 }
  0x63   :  { %759 = vmatpush3.msra.mxu0 %v155_v23 }
  0x64   :  { %760 = vmatprep.subr.mxu0 %v767_v9 }
  0x65   :  { %761 = vmatpush3.msra.mxu0 %v154_v24 }
  0x66   :  { %763 = vmatmul.mubr.f32.vlgmr.msra.gmra.mxu0 %v25_v25 }
  0xe2   :  { %v605_v26 = vpop.f32.mrf.mxu0 }
  0xe4   :  { %v606_v27 = vpop.f32.mrf.mxu0 }
  0xe5   :  { %v640_v28 = vpop.f32.mrf.mxu1  ;;  %v607_v30 = vadd.f32 %v606_v27, %v605_v26 }
  0xe7   :  { %v641_v32 = vpop.f32.mrf.mxu1  ;;  %v244_v35 = vadd.f32 %v607_v30, %v572_v31 }
  0xe8   :  { %v642_v36 = vadd.f32 %v641_v32, %v640_v28 }
  0xea   :  { %v314_v39 = vadd.f32 %v642_v36, %v244_v35 }
 0x104   :  { %v675_v29 = vpop.f32.mrf.mxu0 }
 0x106   :  { %v676_v33 = vpop.f32.mrf.mxu0 }
 0x107   :  { %v710_v34 = vpop.f32.mrf.mxu1  ;;  %v677_v37 = vadd.f32 %v676_v33, %v675_v29 }
 0x109   :  { %v711_v38 = vpop.f32.mrf.mxu1  ;;  %v384_v40 = vadd.f32 %v677_v37, %v314_v39 }
 0x10a   :  { %v712_v41 = vadd.f32 %v711_v38, %v710_v34 }
 0x10c   :  { %v454_v42 = vadd.f32 %v712_v41, %v384_v40 }
 0x126   :  { %v523_v43 = vpop.f32.mrf.mxu0 }
 0x127   :  { %v524_v44 = vadd.f32 %v523_v43, %v454_v42 }
 0x128   :  { %v764_v45 = vpop.f32.mrf.mxu0 }
 0x129   :  { %527 = vst [vmem:[%s1287_s3] sm:$0xff] %v524_v44  ;;  %v542_v46 = vrot.slane %v524_v44, 4  ;;  %v551_v47 = vmul.f32 %v524_v44, %v524_v44 }
 0x12b   :  { %v543_v48 = vadd.f32 %v542_v46, %v524_v44  ;;  %v552_v49 = vrot.slane %v551_v47, 4 }
 0x12d   :  { %v544_v50 = vrot.slane %v543_v48, 2  ;;  %v553_v51 = vadd.f32 %v552_v49, %v551_v47 }
 0x12f   :  { %v545_v52 = vadd.f32 %v544_v50, %v543_v48  ;;  %v554_v53 = vrot.slane %v553_v51, 2 }
 0x131   :  { %v546_v54 = vrot.slane %v545_v52, 1  ;;  %v555_v55 = vadd.f32 %v554_v53, %v553_v51 }
 0x133   :  { %v547_v57 = vadd.f32 %v546_v54, %v545_v52  ;;  %v556_v58 = vrot.slane %v555_v55, 1 }
 0x135   :  { %v548_v60 = vadd.f32 %v547_v57, %v541_v56  ;;  %v557_v61 = vadd.f32 %v556_v58, %v555_v55 }
 0x137   :  { %549 = vst [vmem:[%s1284_s4] sm:$0x1] %v548_v60  ;;  %v558_v62 = vadd.f32 %v557_v61, %v550_v59 }
 0x139   :  { %559 = vst [vmem:[%s1285_s5] sm:$0x1] %v558_v62 }

// kernel: resnet18_block_forward.67
= control target key start
LH: loop header
LB: loop body
LE: loop exit
PB: predicated region body
PF: predicated region fallthrough
CT: control target
= control target key end

     0   :  { %s93_s0 = inlined_call_operand.vmem [shape: f32[8,128], index: 0, kind: input, shape index: {}]   ;;  %s94_s1 = inlined_call_operand.vmem [shape: f32[1,128], index: 1, kind: input, shape index: {}]   ;;  %s95_s2 = inlined_call_operand.vmem [shape: f32[1,128], index: 2, kind: input, shape index: {}]   ;;  %s96_s3 = inlined_call_operand.vmem [shape: f32[8,128], index: 3, kind: output, shape index: {}]  }
   0x1   :  { %v14_v0 = vld [vmem:[%s93_s0] sm:$0xff] }
   0x2   :  { %v53_v1 = vld [vmem:[%s94_s1] ss:$0 sm:$0xff] }
   0x3   :  { %v54_v2 = vld [vmem:[%s95_s2] ss:$0 sm:$0xff]  ;;  %v22_v3 = vmul.f32 %v53_v1, %v14_v0 }
   0x5   :  { %v30_v4 = vadd.f32 %v54_v2, %v22_v3 }
   0x7   :  { %v32_v5 = vand.u32 2147483647, %v30_v4  ;;  %v31_v15 = vmax.f32 %v30_v4, 0.0 }
   0x9   :  { %v33_v6 = vsub.f32 0.0, %v32_v5 }
   0xb   :  { %v34_v7 = vmul.f32 1.442695, %v33_v6 }
   0xd   :  { %55 = vpow2.f32 %v34_v7 }
  0x1a   :  { %v56_v8 = vpop.eup %55 }
  0x1b   :  { %v36_v9 = vadd.f32 1.0, %v56_v8  ;;  %v39_v10 = vmul.f32 -0.5, %v56_v8  ;;  %v42_v12 = vand.u32 2147483647, %v56_v8 }
  0x1d   :  { %57 = vlog2.f32 %v36_v9  ;;  %v40_v11 = vadd.f32 1.0, %v39_v10  ;;  %vm43_vm0 = vcmp.lt.f32.partialorder %v42_v12, 0.0004427343 }
  0x1f   :  { %v41_v13 = vmul.f32 %v56_v8, %v40_v11 }
  0x2a   :  { %v58_v14 = vpop.eup %57 }
  0x2b   :  { %v38_v16 = vmul.f32 0.6931472, %v58_v14 }
  0x2d   :  { %v44_v17 = vsel %vm43_vm0, %v41_v13, %v38_v16 }
  0x2e   :  { %v45_v18 = vadd.f32 %v44_v17, %v31_v15 }
  0x30   :  { %59 = vtanh.f32 %v45_v18 }
  0x3d   :  { %v60_v19 = vpop.eup %59 }
  0x3e   :  { %v47_v20 = vmul.f32 %v60_v19, %v30_v4 }
  0x40   :  { %48 = vst [vmem:[%s96_s3] sm:$0xff] %v47_v20 }

// kernel: resnet18_block_forward.68
= control target key start
LH: loop header
LB: loop body
LE: loop exit
PB: predicated region body
PF: predicated region fallthrough
CT: control target
= control target key end

     0   :  { %vm463_vm0 = vmmov 0   ;;  %vm101_vm1 = vcmask 523264   ;;  %s749_s1 = inlined_call_operand.vmem [shape: f32[576,128], index: 1, kind: input, shape index: {}]   ;;  %s750_s0 = inlined_call_operand.vmem [shape: f32[8,576], index: 0, kind: input, shape index: {}]   ;;  %s751_s4 = inlined_call_operand.vmem [shape: f32[1,128], index: 4, kind: output, shape index: {1}]   ;;  %s752_s5 = inlined_call_operand.vmem [shape: f32[1,128], index: 5, kind: output, shape index: {2}]   ;;  %s753_s2 = inlined_call_operand.vmem [shape: f32[1,128], index: 2, kind: input, shape index: {}]   ;;  %s754_s3 = inlined_call_operand.vmem [shape: f32[8,128], index: 3, kind: output, shape index: {0}]  }
   0x1   :  { %v53_v0 = vld [vmem:[%s749_s1 + $0xf8] sm:$0xff]  ;;  %v52_v2 = vld [vmem:[%s749_s1 + $0xf0] sm:$0xff]  ;;  %v51_v6 = vld [vmem:[%s749_s1 + $0xe8] sm:$0xff] }
   0x2   :  { %v37_v1 = vld [vmem:[%s749_s1 + $0x78] sm:$0xff]  ;;  %362 = vmatprep.subr.mxu0 %v53_v0  ;;  %v36_v4 = vld [vmem:[%s749_s1 + $0x70] sm:$0xff]  ;;  %v35_v8 = vld [vmem:[%s749_s1 + $0x68] sm:$0xff] }
   0x3   :  { %v85_v3 = vld [vmem:[%s749_s1 + $0x1f8] sm:$0xff]  ;;  %363 = vmatpush3.msra.mxu0 %v37_v1  ;;  %v84_v7 = vld [vmem:[%s749_s1 + $0x1f0] sm:$0xff]  ;;  %v83_v10 = vld [vmem:[%s749_s1 + $0x1e8] sm:$0xff] }
   0x4   :  { %v69_v5 = vld [vmem:[%s749_s1 + $0x178] sm:$0xff]  ;;  %397 = vmatprep.subr.mxu1 %v85_v3  ;;  %364 = vmatprep.subr.mxu0 %v52_v2  ;;  %v68_v9 = vld [vmem:[%s749_s1 + $0x170] sm:$0xff]  ;;  %v50_v11 = vld [vmem:[%s749_s1 + $0xe0] sm:$0xff] }
   0x5   :  { %398 = vmatpush3.msra.mxu1 %v69_v5  ;;  %365 = vmatpush3.msra.mxu0 %v36_v4  ;;  %v67_v12 = vld [vmem:[%s749_s1 + $0x168] sm:$0xff]  ;;  %v34_v13 = vld [vmem:[%s749_s1 + $0x60] sm:$0xff]  ;;  %v49_v15 = vld [vmem:[%s749_s1 + $0xd8] sm:$0xff]  ;;  %v462_v5 = vmov 0.0  }
   0x6   :  { %399 = vmatprep.subr.mxu1 %v84_v7  ;;  %366 = vmatprep.subr.mxu0 %v51_v6  ;;  %v82_v14 = vld [vmem:[%s749_s1 + $0x1e0] sm:$0xff]  ;;  %v33_v17 = vld [vmem:[%s749_s1 + $0x58] sm:$0xff]  ;;  %v48_v19 = vld [vmem:[%s749_s1 + $0xd0] sm:$0xff]  ;;  %327 = vst [vmem:[%s751_s4] sm:$0x1] %v462_v5 }
   0x7   :  { %400 = vmatpush3.msra.mxu1 %v68_v9  ;;  %367 = vmatpush3.msra.mxu0 %v35_v8  ;;  %v66_v16 = vld [vmem:[%s749_s1 + $0x160] sm:$0xff]  ;;  %v81_v18 = vld [vmem:[%s749_s1 + $0x1d8] sm:$0xff]  ;;  %v32_v21 = vld [vmem:[%s749_s1 + $0x50] sm:$0xff]  ;;  %328 = vst [vmem:[%s752_s5] sm:$0x1] %v462_v5 }
   0x8   :  { %401 = vmatprep.subr.mxu1 %v83_v10  ;;  %368 = vmatprep.subr.mxu0 %v50_v11  ;;  %v65_v20 = vld [vmem:[%s749_s1 + $0x158] sm:$0xff]  ;;  %v80_v22 = vld [vmem:[%s749_s1 + $0x1d0] sm:$0xff]  ;;  %v47_v23 = vld [vmem:[%s749_s1 + $0xc8] sm:$0xff] }
   0x9   :  { %402 = vmatpush3.msra.mxu1 %v67_v12  ;;  %369 = vmatpush3.msra.mxu0 %v34_v13  ;;  %v64_v24 = vld [vmem:[%s749_s1 + $0x150] sm:$0xff]  ;;  %v31_v25 = vld [vmem:[%s749_s1 + $0x48] sm:$0xff]  ;;  %v46_v27 = vld [vmem:[%s749_s1 + $0xc0] sm:$0xff] }
   0xa   :  { %403 = vmatprep.subr.mxu1 %v82_v14  ;;  %370 = vmatprep.subr.mxu0 %v49_v15  ;;  %v79_v26 = vld [vmem:[%s749_s1 + $0x1c8] sm:$0xff]  ;;  %v30_v29 = vld [vmem:[%s749_s1 + $0x40] sm:$0xff]  ;;  %v45_v31 = vld [vmem:[%s749_s1 + $0xb8] sm:$0xff] }
   0xb   :  { %404 = vmatpush3.msra.mxu1 %v66_v16  ;;  %371 = vmatpush3.msra.mxu0 %v33_v17  ;;  %v63_v28 = vld [vmem:[%s749_s1 + $0x148] sm:$0xff]  ;;  %v78_v30 = vld [vmem:[%s749_s1 + $0x1c0] sm:$0xff]  ;;  %v29_v33 = vld [vmem:[%s749_s1 + $0x38] sm:$0xff] }
   0xc   :  { %405 = vmatprep.subr.mxu1 %v81_v18  ;;  %372 = vmatprep.subr.mxu0 %v48_v19  ;;  %v62_v32 = vld [vmem:[%s749_s1 + $0x140] sm:$0xff]  ;;  %v77_v34 = vld [vmem:[%s749_s1 + $0x1b8] sm:$0xff]  ;;  %v44_v35 = vld [vmem:[%s749_s1 + $0xb0] sm:$0xff] }
   0xd   :  { %406 = vmatpush3.msra.mxu1 %v65_v20  ;;  %373 = vmatpush3.msra.mxu0 %v32_v21  ;;  %v61_v36 = vld [vmem:[%s749_s1 + $0x138] sm:$0xff]  ;;  %v28_v37 = vld [vmem:[%s749_s1 + $0x30] sm:$0xff]  ;;  %v43_v39 = vld [vmem:[%s749_s1 + $0xa8] sm:$0xff] }
   0xe   :  { %407 = vmatprep.subr.mxu1 %v80_v22  ;;  %374 = vmatprep.subr.mxu0 %v47_v23  ;;  %v76_v38 = vld [vmem:[%s749_s1 + $0x1b0] sm:$0xff]  ;;  %v27_v41 = vld [vmem:[%s749_s1 + $0x28] sm:$0xff]  ;;  %v42_v43 = vld [vmem:[%s749_s1 + $0xa0] sm:$0xff] }
   0xf   :  { %408 = vmatpush3.msra.mxu1 %v64_v24  ;;  %375 = vmatpush3.msra.mxu0 %v31_v25  ;;  %v60_v40 = vld [vmem:[%s749_s1 + $0x130] sm:$0xff]  ;;  %v75_v42 = vld [vmem:[%s749_s1 + $0x1a8] sm:$0xff]  ;;  %v26_v45 = vld [vmem:[%s749_s1 + $0x20] sm:$0xff] }
  0x10   :  { %409 = vmatprep.subr.mxu1 %v79_v26  ;;  %376 = vmatprep.subr.mxu0 %v46_v27  ;;  %v59_v44 = vld [vmem:[%s749_s1 + $0x128] sm:$0xff]  ;;  %v74_v46 = vld [vmem:[%s749_s1 + $0x1a0] sm:$0xff]  ;;  %v41_v47 = vld [vmem:[%s749_s1 + $0x98] sm:$0xff] }
  0x11   :  { %410 = vmatpush3.msra.mxu1 %v63_v28  ;;  %377 = vmatpush3.msra.mxu0 %v30_v29  ;;  %v58_v48 = vld [vmem:[%s749_s1 + $0x120] sm:$0xff]  ;;  %v25_v49 = vld [vmem:[%s749_s1 + $0x18] sm:$0xff]  ;;  %v40_v51 = vld [vmem:[%s749_s1 + $0x90] sm:$0xff] }
  0x12   :  { %411 = vmatprep.subr.mxu1 %v78_v30  ;;  %378 = vmatprep.subr.mxu0 %v45_v31  ;;  %v73_v50 = vld [vmem:[%s749_s1 + $0x198] sm:$0xff]  ;;  %v24_v53 = vld [vmem:[%s749_s1 + $0x10] sm:$0xff]  ;;  %v39_v55 = vld [vmem:[%s749_s1 + $0x88] sm:$0xff] }
  0x13   :  { %412 = vmatpush3.msra.mxu1 %v62_v32  ;;  %379 = vmatpush3.msra.mxu0 %v29_v33  ;;  %v57_v52 = vld [vmem:[%s749_s1 + $0x118] sm:$0xff]  ;;  %v72_v54 = vld [vmem:[%s749_s1 + $0x190] sm:$0xff]  ;;  %v23_v57 = vld [vmem:[%s749_s1 + $0x8] sm:$0xff] }
  0x14   :  { %413 = vmatprep.subr.mxu1 %v77_v34  ;;  %380 = vmatprep.subr.mxu0 %v44_v35  ;;  %v56_v56 = vld [vmem:[%s749_s1 + $0x110] sm:$0xff]  ;;  %v71_v58 = vld [vmem:[%s749_s1 + $0x188] sm:$0xff]  ;;  %v38_v59 = vld [vmem:[%s749_s1 + $0x80] sm:$0xff] }
  0x15   :  { %414 = vmatpush3.msra.mxu1 %v61_v36  ;;  %381 = vmatpush3.msra.mxu0 %v28_v37  ;;  %v18_v60 = vld [vmem:[%s750_s0 + $0x8] sm:$0xff]  ;;  %v22_v61 = vld [vmem:[%s749_s1] sm:$0xff]  ;;  %v20_v2 = vld [vmem:[%s750_s0 + $0x18] sm:$0xff] }
  0x16   :  { %415 = vmatprep.subr.mxu1 %v76_v38  ;;  %382 = vmatprep.subr.mxu0 %v43_v39  ;;  %v55_v62 = vld [vmem:[%s749_s1 + $0x108] sm:$0xff]  ;;  %v17_v63 = vld [vmem:[%s750_s0] sm:$0xff]  ;;  %v93_v3 = vld [vmem:[%s749_s1 + $0x238] sm:$0xff] }
  0x17   :  { %416 = vmatpush3.msra.mxu1 %v60_v40  ;;  %383 = vmatpush3.msra.mxu0 %v27_v41  ;;  %v70_v0 = vld [vmem:[%s749_s1 + $0x180] sm:$0xff]  ;;  %v19_v4 = vld [vmem:[%s750_s0 + $0x10] sm:$0xff]  ;;  %v91_v7 = vld [vmem:[%s749_s1 + $0x228] sm:$0xff] }
  0x18   :  { %417 = vmatprep.subr.mxu1 %v75_v42  ;;  %384 = vmatprep.subr.mxu0 %v42_v43  ;;  %v54_v1 = vld [vmem:[%s749_s1 + $0x100] sm:$0xff]  ;;  %v92_v6 = vld [vmem:[%s749_s1 + $0x230] sm:$0xff]  ;;  %v89_v9 = vld [vmem:[%s749_s1 + $0x218] sm:$0xff] }
  0x19   :  { %418 = vmatpush3.msra.mxu1 %v59_v44  ;;  %385 = vmatpush3.msra.mxu0 %v26_v45  ;;  %v90_v8 = vld [vmem:[%s749_s1 + $0x220] sm:$0xff]  ;;  %v88_v10 = vld [vmem:[%s749_s1 + $0x210] sm:$0xff]  ;;  %v87_v11 = vld [vmem:[%s749_s1 + $0x208] sm:$0xff] }
  0x1a   :  { %419 = vmatprep.subr.mxu1 %v74_v46  ;;  %386 = vmatprep.subr.mxu0 %v41_v47  ;;  %v86_v12 = vld [vmem:[%s749_s1 + $0x200] sm:$0xff] }
  0x1b   :  { %420 = vmatpush3.msra.mxu1 %v58_v48  ;;  %387 = vmatpush3.msra.mxu0 %v25_v49  ;;  %v21_v13 = vld [vmem:[%s750_s0 + $0x20] sm:$0xff] }
  0x1c   :  { %421 = vmatprep.subr.mxu1 %v73_v50  ;;  %388 = vmatprep.subr.mxu0 %v40_v51  ;;  %v360_v18 = vld [vmem:[%s753_s2] ss:$0 sm:$0xff] }
  0x1d   :  { %422 = vmatpush3.msra.mxu1 %v57_v52  ;;  %389 = vmatpush3.msra.mxu0 %v24_v53  ;;  %v329_v36 = vld [vmem:[%s751_s4] sm:$0x1] }
  0x1e   :  { %423 = vmatprep.subr.mxu1 %v72_v54  ;;  %390 = vmatprep.subr.mxu0 %v39_v55  ;;  %v338_v39 = vld [vmem:[%s752_s5] sm:$0x1] }
  0x1f   :  { %424 = vmatpush3.msra.mxu1 %v56_v56  ;;  %391 = vmatpush3.msra.mxu0 %v23_v57 }
  0x20   :  { %425 = vmatprep.subr.mxu1 %v71_v58  ;;  %392 = vmatprep.subr.mxu0 %v38_v59 }
  0x21   :  { %169 = vmatprep.mubr.f32.mxu0 %v18_v60  ;;  %393 = vmatpush3.msra.mxu0 %v22_v61 }
  0x22   :  { %426 = vmatpush3.msra.mxu1 %v55_v62  ;;  %170 = vmatmul.mubr.f32.vlgmr.msra.gmra.mxu0 %v17_v63 }
  0x23   :  { %427 = vmatprep.subr.mxu1 %v70_v0  ;;  %441 = vmatprep.subr.mxu0 %v462_v5 }
  0x24   :  { %428 = vmatpush3.msra.mxu1 %v54_v1  ;;  %239 = vmatprep.mubr.f32.mxu1 %v20_v2 }
  0x25   :  { %442 = vmatpush3.msra.mxu0 %v93_v3  ;;  %240 = vmatmul.mubr.f32.vlgmr.msra.gmra.mxu1 %v19_v4 }
  0x26   :  { %443 = vmatprep.subr.mxu0 %v462_v5  ;;  %457 = vmatprep.mubr.msk.f32.mxu0 %vm463_vm0, %v462_v5 }
  0x27   :  { %444 = vmatpush3.msra.mxu0 %v92_v6 }
  0x28   :  { %445 = vmatprep.subr.mxu0 %v462_v5 }
  0x29   :  { %446 = vmatpush3.msra.mxu0 %v91_v7 }
  0x2a   :  { %447 = vmatprep.subr.mxu0 %v462_v5 }
  0x2b   :  { %448 = vmatpush3.msra.mxu0 %v90_v8 }
  0x2c   :  { %449 = vmatprep.subr.mxu0 %v462_v5 }
  0x2d   :  { %450 = vmatpush3.msra.mxu0 %v89_v9 }
  0x2e   :  { %451 = vmatprep.subr.mxu0 %v462_v5 }
  0x2f   :  { %452 = vmatpush3.msra.mxu0 %v88_v10 }
  0x30   :  { %453 = vmatprep.subr.mxu0 %v462_v5 }
  0x31   :  { %454 = vmatpush3.msra.mxu0 %v87_v11 }
  0x32   :  { %455 = vmatprep.subr.mxu0 %v462_v5 }
  0x33   :  { %456 = vmatpush3.msra.mxu0 %v86_v12 }
  0x34   :  { %458 = vmatmul.mubr.msk.f32.vlgmr.msra.gmra.mxu0 %vm101_vm1, %v21_v13 }
  0xe2   :  { %v394_v14 = vpop.f32.mrf.mxu0 }
  0xe4   :  { %v395_v15 = vpop.f32.mrf.mxu0 }
  0xe5   :  { %v429_v16 = vpop.f32.mrf.mxu1  ;;  %v396_v17 = vadd.f32 %v395_v15, %v394_v14 }
  0xe7   :  { %v430_v19 = vpop.f32.mrf.mxu1  ;;  %v172_v20 = vadd.f32 %v396_v17, %v360_v18 }
  0xe8   :  { %v431_v21 = vadd.f32 %v430_v19, %v429_v16 }
  0xea   :  { %v242_v22 = vadd.f32 %v431_v21, %v172_v20 }
  0xf4   :  { %v311_v23 = vpop.f32.mrf.mxu0 }
  0xf5   :  { %v312_v24 = vadd.f32 %v311_v23, %v242_v22 }
  0xf6   :  { %v459_v25 = vpop.f32.mrf.mxu0 }
  0xf7   :  { %315 = vst [vmem:[%s754_s3] sm:$0xff] %v312_v24  ;;  %v330_v26 = vrot.slane %v312_v24, 4  ;;  %v339_v27 = vmul.f32 %v312_v24, %v312_v24 }
  0xf9   :  { %v331_v28 = vadd.f32 %v330_v26, %v312_v24  ;;  %v340_v29 = vrot.slane %v339_v27, 4 }
  0xfb   :  { %v332_v30 = vrot.slane %v331_v28, 2  ;;  %v341_v31 = vadd.f32 %v340_v29, %v339_v27 }
  0xfd   :  { %v333_v32 = vadd.f32 %v332_v30, %v331_v28  ;;  %v342_v33 = vrot.slane %v341_v31, 2 }
  0xff   :  { %v334_v34 = vrot.slane %v333_v32, 1  ;;  %v343_v35 = vadd.f32 %v342_v33, %v341_v31 }
 0x101   :  { %v335_v37 = vadd.f32 %v334_v34, %v333_v32  ;;  %v344_v38 = vrot.slane %v343_v35, 1 }
 0x103   :  { %v336_v40 = vadd.f32 %v335_v37, %v329_v36  ;;  %v345_v41 = vadd.f32 %v344_v38, %v343_v35 }
 0x105   :  { %337 = vst [vmem:[%s751_s4] sm:$0x1] %v336_v40  ;;  %v346_v42 = vadd.f32 %v345_v41, %v338_v39 }
 0x107   :  { %347 = vst [vmem:[%s752_s5] sm:$0x1] %v346_v42 }

// kernel: resnet18_block_forward.70
= control target key start
LH: loop header
LB: loop body
LE: loop exit
PB: predicated region body
PF: predicated region fallthrough
CT: control target
= control target key end

     0   :  { %v141_v0 = vmov 0.0   ;;  %vm142_vm0 = vmmov 0   ;;  %vm30_vm1 = vcmask 523264   ;;  %s196_s1 = inlined_call_operand.vmem [shape: f32[64,128], index: 1, kind: input, shape index: {}]   ;;  %s197_s0 = inlined_call_operand.vmem [shape: f32[8,64], index: 0, kind: input, shape index: {}]   ;;  %s198_s2 = inlined_call_operand.vmem [shape: f32[1,128], index: 2, kind: input, shape index: {}]   ;;  %s199_s3 = inlined_call_operand.vmem [shape: f32[8,128], index: 3, kind: output, shape index: {}]  }
   0x1   :  { %120 = vmatprep.subr.mxu0 %v141_v0  ;;  %v22_v1 = vld [vmem:[%s196_s1 + $0x38] sm:$0xff]  ;;  %v21_v2 = vld [vmem:[%s196_s1 + $0x30] sm:$0xff]  ;;  %136 = vmatprep.mubr.msk.f32.mxu0 %vm142_vm0, %v141_v0  ;;  %v20_v3 = vld [vmem:[%s196_s1 + $0x28] sm:$0xff] }
   0x2   :  { %121 = vmatpush3.msra.mxu0 %v22_v1  ;;  %v19_v4 = vld [vmem:[%s196_s1 + $0x20] sm:$0xff]  ;;  %v18_v5 = vld [vmem:[%s196_s1 + $0x18] sm:$0xff]  ;;  %v17_v6 = vld [vmem:[%s196_s1 + $0x10] sm:$0xff] }
   0x3   :  { %122 = vmatprep.subr.mxu0 %v141_v0  ;;  %v16_v7 = vld [vmem:[%s196_s1 + $0x8] sm:$0xff]  ;;  %v15_v8 = vld [vmem:[%s196_s1] sm:$0xff] }
   0x4   :  { %123 = vmatpush3.msra.mxu0 %v21_v2  ;;  %v14_v9 = vld [vmem:[%s197_s0] sm:$0xff] }
   0x5   :  { %124 = vmatprep.subr.mxu0 %v141_v0  ;;  %v109_v10 = vld [vmem:[%s198_s2] ss:$0 sm:$0xff] }
   0x6   :  { %125 = vmatpush3.msra.mxu0 %v20_v3 }
   0x7   :  { %126 = vmatprep.subr.mxu0 %v141_v0 }
   0x8   :  { %127 = vmatpush3.msra.mxu0 %v19_v4 }
   0x9   :  { %128 = vmatprep.subr.mxu0 %v141_v0 }
   0xa   :  { %129 = vmatpush3.msra.mxu0 %v18_v5 }
   0xb   :  { %130 = vmatprep.subr.mxu0 %v141_v0 }
   0xc   :  { %131 = vmatpush3.msra.mxu0 %v17_v6 }
   0xd   :  { %132 = vmatprep.subr.mxu0 %v141_v0 }
   0xe   :  { %133 = vmatpush3.msra.mxu0 %v16_v7 }
   0xf   :  { %134 = vmatprep.subr.mxu0 %v141_v0 }
  0x10   :  { %135 = vmatpush3.msra.mxu0 %v15_v8 }
  0x11   :  { %137 = vmatmul.mubr.msk.f32.vlgmr.msra.gmra.mxu0 %vm30_vm1, %v14_v9 }
  0xd1   :  { %v100_v11 = vpop.f32.mrf.mxu0 }
  0xd2   :  { %v101_v12 = vadd.f32 %v109_v10, %v100_v11 }
  0xd3   :  { %v138_v13 = vpop.f32.mrf.mxu0 }
  0xd4   :  { %104 = vst [vmem:[%s199_s3] sm:$0xff] %v101_v12 }

// kernel: resnet18_block_forward.69
= control target key start
LH: loop header
LB: loop body
LE: loop exit
PB: predicated region body
PF: predicated region fallthrough
CT: control target
= control target key end

     0   :  { %s106_s0 = inlined_call_operand.vmem [shape: f32[8,128], index: 0, kind: input, shape index: {}]   ;;  %s107_s1 = inlined_call_operand.vmem [shape: f32[1,128], index: 1, kind: input, shape index: {}]   ;;  %s108_s2 = inlined_call_operand.vmem [shape: f32[1,128], index: 2, kind: input, shape index: {}]   ;;  %s109_s3 = inlined_call_operand.vmem [shape: f32[8,128], index: 3, kind: input, shape index: {}]   ;;  %s110_s4 = inlined_call_operand.vmem [shape: f32[8,128], index: 4, kind: output, shape index: {}]  }
   0x1   :  { %v17_v0 = vld [vmem:[%s106_s0] sm:$0xff] }
   0x2   :  { %v58_v1 = vld [vmem:[%s107_s1] ss:$0 sm:$0xff] }
   0x3   :  { %v59_v2 = vld [vmem:[%s108_s2] ss:$0 sm:$0xff]  ;;  %v25_v3 = vmul.f32 %v58_v1, %v17_v0 }
   0x4   :  { %v34_v4 = vld [vmem:[%s109_s3] sm:$0xff] }
   0x5   :  { %v33_v5 = vadd.f32 %v59_v2, %v25_v3 }
   0x7   :  { %v35_v6 = vadd.f32 %v34_v4, %v33_v5 }
   0x9   :  { %v37_v7 = vand.u32 2147483647, %v35_v6  ;;  %v36_v17 = vmax.f32 %v35_v6, 0.0 }
   0xb   :  { %v38_v8 = vsub.f32 0.0, %v37_v7 }
   0xd   :  { %v39_v9 = vmul.f32 1.442695, %v38_v8 }
   0xf   :  { %60 = vpow2.f32 %v39_v9 }
  0x1c   :  { %v61_v10 = vpop.eup %60 }
  0x1d   :  { %v41_v11 = vadd.f32 1.0, %v61_v10  ;;  %v44_v12 = vmul.f32 -0.5, %v61_v10  ;;  %v47_v14 = vand.u32 2147483647, %v61_v10 }
  0x1f   :  { %62 = vlog2.f32 %v41_v11  ;;  %v45_v13 = vadd.f32 1.0, %v44_v12  ;;  %vm48_vm0 = vcmp.lt.f32.partialorder %v47_v14, 0.0004427343 }
  0x21   :  { %v46_v15 = vmul.f32 %v61_v10, %v45_v13 }
  0x2c   :  { %v63_v16 = vpop.eup %62 }
  0x2d   :  { %v43_v18 = vmul.f32 0.6931472, %v63_v16 }
  0x2f   :  { %v49_v19 = vsel %vm48_vm0, %v46_v15, %v43_v18 }
  0x30   :  { %v50_v20 = vadd.f32 %v49_v19, %v36_v17 }
  0x32   :  { %64 = vtanh.f32 %v50_v20 }
  0x3f   :  { %v65_v21 = vpop.eup %64 }
  0x40   :  { %v52_v22 = vmul.f32 %v65_v21, %v35_v6 }
  0x42   :  { %53 = vst [vmem:[%s110_s4] sm:$0xff] %v52_v22 }

// kernel: resnet18_block_forward.65
= control target key start
LH: loop header
LB: loop body
LE: loop exit
PB: predicated region body
PF: predicated region fallthrough
CT: control target
= control target key end

     0   :  { %v168_v0 = vmov 0.0   ;;  %vm169_vm0 = vmmov 0   ;;  %s247_s1 = inlined_call_operand.vmem [shape: f32[128,128], index: 1, kind: input, shape index: {}]   ;;  %s248_s0 = inlined_call_operand.vmem [shape: f32[8,128], index: 0, kind: input, shape index: {}]   ;;  %s249_s2 = inlined_call_operand.vmem [shape: f32[1,128], index: 2, kind: input, shape index: {}]   ;;  %s250_s3 = inlined_call_operand.vmem [shape: f32[8,128], index: 3, kind: output, shape index: {}]  }
   0x1   :  { %131 = vmatprep.subr.mxu0 %v168_v0  ;;  %v30_v1 = vld [vmem:[%s247_s1 + $0x78] sm:$0xff]  ;;  %v29_v2 = vld [vmem:[%s247_s1 + $0x70] sm:$0xff]  ;;  %163 = vmatprep.mubr.msk.f32.mxu0 %vm169_vm0, %v168_v0  ;;  %v28_v3 = vld [vmem:[%s247_s1 + $0x68] sm:$0xff] }
   0x2   :  { %132 = vmatpush3.msra.mxu0 %v30_v1  ;;  %v27_v4 = vld [vmem:[%s247_s1 + $0x60] sm:$0xff]  ;;  %v26_v5 = vld [vmem:[%s247_s1 + $0x58] sm:$0xff]  ;;  %v25_v6 = vld [vmem:[%s247_s1 + $0x50] sm:$0xff] }
   0x3   :  { %133 = vmatprep.subr.mxu0 %v168_v0  ;;  %v24_v7 = vld [vmem:[%s247_s1 + $0x48] sm:$0xff]  ;;  %v23_v8 = vld [vmem:[%s247_s1 + $0x40] sm:$0xff]  ;;  %v22_v9 = vld [vmem:[%s247_s1 + $0x38] sm:$0xff] }
   0x4   :  { %134 = vmatpush3.msra.mxu0 %v29_v2  ;;  %v21_v10 = vld [vmem:[%s247_s1 + $0x30] sm:$0xff]  ;;  %v20_v11 = vld [vmem:[%s247_s1 + $0x28] sm:$0xff]  ;;  %v19_v12 = vld [vmem:[%s247_s1 + $0x20] sm:$0xff] }
   0x5   :  { %135 = vmatprep.subr.mxu0 %v168_v0  ;;  %v18_v13 = vld [vmem:[%s247_s1 + $0x18] sm:$0xff]  ;;  %v17_v14 = vld [vmem:[%s247_s1 + $0x10] sm:$0xff]  ;;  %v16_v15 = vld [vmem:[%s247_s1 + $0x8] sm:$0xff] }
   0x6   :  { %136 = vmatpush3.msra.mxu0 %v28_v3  ;;  %v15_v16 = vld [vmem:[%s247_s1] sm:$0xff] }
   0x7   :  { %137 = vmatprep.subr.mxu0 %v168_v0  ;;  %v14_v17 = vld [vmem:[%s248_s0] sm:$0xff] }
   0x8   :  { %138 = vmatpush3.msra.mxu0 %v27_v4  ;;  %v113_v18 = vld [vmem:[%s249_s2] ss:$0 sm:$0xff] }
   0x9   :  { %139 = vmatprep.subr.mxu0 %v168_v0 }
   0xa   :  { %140 = vmatpush3.msra.mxu0 %v26_v5 }
   0xb   :  { %141 = vmatprep.subr.mxu0 %v168_v0 }
   0xc   :  { %142 = vmatpush3.msra.mxu0 %v25_v6 }
   0xd   :  { %143 = vmatprep.subr.mxu0 %v168_v0 }
   0xe   :  { %144 = vmatpush3.msra.mxu0 %v24_v7 }
   0xf   :  { %145 = vmatprep.subr.mxu0 %v168_v0 }
  0x10   :  { %146 = vmatpush3.msra.mxu0 %v23_v8 }
  0x11   :  { %147 = vmatprep.subr.mxu0 %v168_v0 }
  0x12   :  { %148 = vmatpush3.msra.mxu0 %v22_v9 }
  0x13   :  { %149 = vmatprep.subr.mxu0 %v168_v0 }
  0x14   :  { %150 = vmatpush3.msra.mxu0 %v21_v10 }
  0x15   :  { %151 = vmatprep.subr.mxu0 %v168_v0 }
  0x16   :  { %152 = vmatpush3.msra.mxu0 %v20_v11 }
  0x17   :  { %153 = vmatprep.subr.mxu0 %v168_v0 }
  0x18   :  { %154 = vmatpush3.msra.mxu0 %v19_v12 }
  0x19   :  { %155 = vmatprep.subr.mxu0 %v168_v0 }
  0x1a   :  { %156 = vmatpush3.msra.mxu0 %v18_v13 }
  0x1b   :  { %157 = vmatprep.subr.mxu0 %v168_v0 }
  0x1c   :  { %158 = vmatpush3.msra.mxu0 %v17_v14 }
  0x1d   :  { %159 = vmatprep.subr.mxu0 %v168_v0 }
  0x1e   :  { %160 = vmatpush3.msra.mxu0 %v16_v15 }
  0x1f   :  { %161 = vmatprep.subr.mxu0 %v168_v0 }
  0x20   :  { %162 = vmatpush3.msra.mxu0 %v15_v16 }
  0x21   :  { %164 = vmatmul.mubr.f32.vlgmr.msra.gmra.mxu0 %v14_v17 }
  0xe1   :  { %v104_v19 = vpop.f32.mrf.mxu0 }
  0xe2   :  { %v105_v20 = vadd.f32 %v113_v18, %v104_v19 }
  0xe3   :  { %v165_v21 = vpop.f32.mrf.mxu0 }
  0xe4   :  { %108 = vst [vmem:[%s250_s3] sm:$0xff] %v105_v20 }

// kernel: resnet18_block_forward.76
= control target key start
LH: loop header
LB: loop body
LE: loop exit
PB: predicated region body
PF: predicated region fallthrough
CT: control target
= control target key end

     0   :  { %vm463_vm0 = vmmov 0   ;;  %vm101_vm1 = vcmask 523264   ;;  %s749_s1 = inlined_call_operand.vmem [shape: f32[576,128], index: 1, kind: input, shape index: {}]   ;;  %s750_s0 = inlined_call_operand.vmem [shape: f32[8,576], index: 0, kind: input, shape index: {}]   ;;  %s751_s4 = inlined_call_operand.vmem [shape: f32[1,128], index: 4, kind: output, shape index: {1}]   ;;  %s752_s5 = inlined_call_operand.vmem [shape: f32[1,128], index: 5, kind: output, shape index: {2}]   ;;  %s753_s2 = inlined_call_operand.vmem [shape: f32[1,128], index: 2, kind: input, shape index: {}]   ;;  %s754_s3 = inlined_call_operand.vmem [shape: f32[8,128], index: 3, kind: output, shape index: {0}]  }
   0x1   :  { %v53_v0 = vld [vmem:[%s749_s1 + $0xf8] sm:$0xff]  ;;  %v52_v2 = vld [vmem:[%s749_s1 + $0xf0] sm:$0xff]  ;;  %v51_v6 = vld [vmem:[%s749_s1 + $0xe8] sm:$0xff] }
   0x2   :  { %v37_v1 = vld [vmem:[%s749_s1 + $0x78] sm:$0xff]  ;;  %362 = vmatprep.subr.mxu0 %v53_v0  ;;  %v36_v4 = vld [vmem:[%s749_s1 + $0x70] sm:$0xff]  ;;  %v35_v8 = vld [vmem:[%s749_s1 + $0x68] sm:$0xff] }
   0x3   :  { %v85_v3 = vld [vmem:[%s749_s1 + $0x1f8] sm:$0xff]  ;;  %363 = vmatpush3.msra.mxu0 %v37_v1  ;;  %v84_v7 = vld [vmem:[%s749_s1 + $0x1f0] sm:$0xff]  ;;  %v83_v10 = vld [vmem:[%s749_s1 + $0x1e8] sm:$0xff] }
   0x4   :  { %v69_v5 = vld [vmem:[%s749_s1 + $0x178] sm:$0xff]  ;;  %397 = vmatprep.subr.mxu1 %v85_v3  ;;  %364 = vmatprep.subr.mxu0 %v52_v2  ;;  %v68_v9 = vld [vmem:[%s749_s1 + $0x170] sm:$0xff]  ;;  %v50_v11 = vld [vmem:[%s749_s1 + $0xe0] sm:$0xff] }
   0x5   :  { %398 = vmatpush3.msra.mxu1 %v69_v5  ;;  %365 = vmatpush3.msra.mxu0 %v36_v4  ;;  %v67_v12 = vld [vmem:[%s749_s1 + $0x168] sm:$0xff]  ;;  %v34_v13 = vld [vmem:[%s749_s1 + $0x60] sm:$0xff]  ;;  %v49_v15 = vld [vmem:[%s749_s1 + $0xd8] sm:$0xff]  ;;  %v462_v5 = vmov 0.0  }
   0x6   :  { %399 = vmatprep.subr.mxu1 %v84_v7  ;;  %366 = vmatprep.subr.mxu0 %v51_v6  ;;  %v82_v14 = vld [vmem:[%s749_s1 + $0x1e0] sm:$0xff]  ;;  %v33_v17 = vld [vmem:[%s749_s1 + $0x58] sm:$0xff]  ;;  %v48_v19 = vld [vmem:[%s749_s1 + $0xd0] sm:$0xff]  ;;  %327 = vst [vmem:[%s751_s4] sm:$0x1] %v462_v5 }
   0x7   :  { %400 = vmatpush3.msra.mxu1 %v68_v9  ;;  %367 = vmatpush3.msra.mxu0 %v35_v8  ;;  %v66_v16 = vld [vmem:[%s749_s1 + $0x160] sm:$0xff]  ;;  %v81_v18 = vld [vmem:[%s749_s1 + $0x1d8] sm:$0xff]  ;;  %v32_v21 = vld [vmem:[%s749_s1 + $0x50] sm:$0xff]  ;;  %328 = vst [vmem:[%s752_s5] sm:$0x1] %v462_v5 }
   0x8   :  { %401 = vmatprep.subr.mxu1 %v83_v10  ;;  %368 = vmatprep.subr.mxu0 %v50_v11  ;;  %v65_v20 = vld [vmem:[%s749_s1 + $0x158] sm:$0xff]  ;;  %v80_v22 = vld [vmem:[%s749_s1 + $0x1d0] sm:$0xff]  ;;  %v47_v23 = vld [vmem:[%s749_s1 + $0xc8] sm:$0xff] }
   0x9   :  { %402 = vmatpush3.msra.mxu1 %v67_v12  ;;  %369 = vmatpush3.msra.mxu0 %v34_v13  ;;  %v64_v24 = vld [vmem:[%s749_s1 + $0x150] sm:$0xff]  ;;  %v31_v25 = vld [vmem:[%s749_s1 + $0x48] sm:$0xff]  ;;  %v46_v27 = vld [vmem:[%s749_s1 + $0xc0] sm:$0xff] }
   0xa   :  { %403 = vmatprep.subr.mxu1 %v82_v14  ;;  %370 = vmatprep.subr.mxu0 %v49_v15  ;;  %v79_v26 = vld [vmem:[%s749_s1 + $0x1c8] sm:$0xff]  ;;  %v30_v29 = vld [vmem:[%s749_s1 + $0x40] sm:$0xff]  ;;  %v45_v31 = vld [vmem:[%s749_s1 + $0xb8] sm:$0xff] }
   0xb   :  { %404 = vmatpush3.msra.mxu1 %v66_v16  ;;  %371 = vmatpush3.msra.mxu0 %v33_v17  ;;  %v63_v28 = vld [vmem:[%s749_s1 + $0x148] sm:$0xff]  ;;  %v78_v30 = vld [vmem:[%s749_s1 + $0x1c0] sm:$0xff]  ;;  %v29_v33 = vld [vmem:[%s749_s1 + $0x38] sm:$0xff] }
   0xc   :  { %405 = vmatprep.subr.mxu1 %v81_v18  ;;  %372 = vmatprep.subr.mxu0 %v48_v19  ;;  %v62_v32 = vld [vmem:[%s749_s1 + $0x140] sm:$0xff]  ;;  %v77_v34 = vld [vmem:[%s749_s1 + $0x1b8] sm:$0xff]  ;;  %v44_v35 = vld [vmem:[%s749_s1 + $0xb0] sm:$0xff] }
   0xd   :  { %406 = vmatpush3.msra.mxu1 %v65_v20  ;;  %373 = vmatpush3.msra.mxu0 %v32_v21  ;;  %v61_v36 = vld [vmem:[%s749_s1 + $0x138] sm:$0xff]  ;;  %v28_v37 = vld [vmem:[%s749_s1 + $0x30] sm:$0xff]  ;;  %v43_v39 = vld [vmem:[%s749_s1 + $0xa8] sm:$0xff]  ;;  %v316_v20 = vlaneseq }
   0xe   :  { %407 = vmatprep.subr.mxu1 %v80_v22  ;;  %374 = vmatprep.subr.mxu0 %v47_v23  ;;  %v76_v38 = vld [vmem:[%s749_s1 + $0x1b0] sm:$0xff]  ;;  %v27_v41 = vld [vmem:[%s749_s1 + $0x28] sm:$0xff]  ;;  %v42_v43 = vld [vmem:[%s749_s1 + $0xa0] sm:$0xff] }
   0xf   :  { %408 = vmatpush3.msra.mxu1 %v64_v24  ;;  %375 = vmatpush3.msra.mxu0 %v31_v25  ;;  %v60_v40 = vld [vmem:[%s749_s1 + $0x130] sm:$0xff]  ;;  %v75_v42 = vld [vmem:[%s749_s1 + $0x1a8] sm:$0xff]  ;;  %v26_v45 = vld [vmem:[%s749_s1 + $0x20] sm:$0xff]  ;;  %v317_v23 = vshrl.u32 %v316_v20, 7 }
  0x10   :  { %409 = vmatprep.subr.mxu1 %v79_v26  ;;  %376 = vmatprep.subr.mxu0 %v46_v27  ;;  %v59_v44 = vld [vmem:[%s749_s1 + $0x128] sm:$0xff]  ;;  %v74_v46 = vld [vmem:[%s749_s1 + $0x1a0] sm:$0xff]  ;;  %v41_v47 = vld [vmem:[%s749_s1 + $0x98] sm:$0xff] }
  0x11   :  { %410 = vmatpush3.msra.mxu1 %v63_v28  ;;  %377 = vmatpush3.msra.mxu0 %v30_v29  ;;  %v58_v48 = vld [vmem:[%s749_s1 + $0x120] sm:$0xff]  ;;  %v25_v49 = vld [vmem:[%s749_s1 + $0x18] sm:$0xff]  ;;  %v40_v51 = vld [vmem:[%s749_s1 + $0x90] sm:$0xff]  ;;  %vm321_vm2 = vcmp.lt.s32.totalorder %v317_v23, 2 }
  0x12   :  { %411 = vmatprep.subr.mxu1 %v78_v30  ;;  %378 = vmatprep.subr.mxu0 %v45_v31  ;;  %v73_v50 = vld [vmem:[%s749_s1 + $0x198] sm:$0xff]  ;;  %v24_v53 = vld [vmem:[%s749_s1 + $0x10] sm:$0xff]  ;;  %v39_v55 = vld [vmem:[%s749_s1 + $0x88] sm:$0xff] }
  0x13   :  { %412 = vmatpush3.msra.mxu1 %v62_v32  ;;  %379 = vmatpush3.msra.mxu0 %v29_v33  ;;  %v57_v52 = vld [vmem:[%s749_s1 + $0x118] sm:$0xff]  ;;  %v72_v54 = vld [vmem:[%s749_s1 + $0x190] sm:$0xff]  ;;  %v23_v57 = vld [vmem:[%s749_s1 + $0x8] sm:$0xff] }
  0x14   :  { %413 = vmatprep.subr.mxu1 %v77_v34  ;;  %380 = vmatprep.subr.mxu0 %v44_v35  ;;  %v56_v56 = vld [vmem:[%s749_s1 + $0x110] sm:$0xff]  ;;  %v71_v58 = vld [vmem:[%s749_s1 + $0x188] sm:$0xff]  ;;  %v38_v59 = vld [vmem:[%s749_s1 + $0x80] sm:$0xff] }
  0x15   :  { %414 = vmatpush3.msra.mxu1 %v61_v36  ;;  %381 = vmatpush3.msra.mxu0 %v28_v37  ;;  %v18_v60 = vld [vmem:[%s750_s0 + $0x8] sm:$0xff]  ;;  %v22_v61 = vld [vmem:[%s749_s1] sm:$0xff]  ;;  %v20_v2 = vld [vmem:[%s750_s0 + $0x18] sm:$0xff] }
  0x16   :  { %415 = vmatprep.subr.mxu1 %v76_v38  ;;  %382 = vmatprep.subr.mxu0 %v43_v39  ;;  %v55_v62 = vld [vmem:[%s749_s1 + $0x108] sm:$0xff]  ;;  %v17_v63 = vld [vmem:[%s750_s0] sm:$0xff]  ;;  %v93_v3 = vld [vmem:[%s749_s1 + $0x238] sm:$0xff] }
  0x17   :  { %416 = vmatpush3.msra.mxu1 %v60_v40  ;;  %383 = vmatpush3.msra.mxu0 %v27_v41  ;;  %v70_v0 = vld [vmem:[%s749_s1 + $0x180] sm:$0xff]  ;;  %v19_v4 = vld [vmem:[%s750_s0 + $0x10] sm:$0xff]  ;;  %v91_v7 = vld [vmem:[%s749_s1 + $0x228] sm:$0xff] }
  0x18   :  { %417 = vmatprep.subr.mxu1 %v75_v42  ;;  %384 = vmatprep.subr.mxu0 %v42_v43  ;;  %v54_v1 = vld [vmem:[%s749_s1 + $0x100] sm:$0xff]  ;;  %v92_v6 = vld [vmem:[%s749_s1 + $0x230] sm:$0xff]  ;;  %v89_v9 = vld [vmem:[%s749_s1 + $0x218] sm:$0xff] }
  0x19   :  { %418 = vmatpush3.msra.mxu1 %v59_v44  ;;  %385 = vmatpush3.msra.mxu0 %v26_v45  ;;  %v90_v8 = vld [vmem:[%s749_s1 + $0x220] sm:$0xff]  ;;  %v88_v10 = vld [vmem:[%s749_s1 + $0x210] sm:$0xff]  ;;  %v87_v11 = vld [vmem:[%s749_s1 + $0x208] sm:$0xff] }
  0x1a   :  { %419 = vmatprep.subr.mxu1 %v74_v46  ;;  %386 = vmatprep.subr.mxu0 %v41_v47  ;;  %v86_v12 = vld [vmem:[%s749_s1 + $0x200] sm:$0xff] }
  0x1b   :  { %420 = vmatpush3.msra.mxu1 %v58_v48  ;;  %387 = vmatpush3.msra.mxu0 %v25_v49  ;;  %v21_v13 = vld [vmem:[%s750_s0 + $0x20] sm:$0xff] }
  0x1c   :  { %421 = vmatprep.subr.mxu1 %v73_v50  ;;  %388 = vmatprep.subr.mxu0 %v40_v51  ;;  %v360_v18 = vld [vmem:[%s753_s2] ss:$0 sm:$0xff] }
  0x1d   :  { %422 = vmatpush3.msra.mxu1 %v57_v52  ;;  %389 = vmatpush3.msra.mxu0 %v24_v53  ;;  %v329_v39 = vld [vmem:[%s751_s4] sm:$0x1] }
  0x1e   :  { %423 = vmatprep.subr.mxu1 %v72_v54  ;;  %390 = vmatprep.subr.mxu0 %v39_v55  ;;  %v338_v42 = vld [vmem:[%s752_s5] sm:$0x1] }
  0x1f   :  { %424 = vmatpush3.msra.mxu1 %v56_v56  ;;  %391 = vmatpush3.msra.mxu0 %v23_v57 }
  0x20   :  { %425 = vmatprep.subr.mxu1 %v71_v58  ;;  %392 = vmatprep.subr.mxu0 %v38_v59 }
  0x21   :  { %169 = vmatprep.mubr.f32.mxu0 %v18_v60  ;;  %393 = vmatpush3.msra.mxu0 %v22_v61 }
  0x22   :  { %426 = vmatpush3.msra.mxu1 %v55_v62  ;;  %170 = vmatmul.mubr.f32.vlgmr.msra.gmra.mxu0 %v17_v63 }
  0x23   :  { %427 = vmatprep.subr.mxu1 %v70_v0  ;;  %441 = vmatprep.subr.mxu0 %v462_v5 }
  0x24   :  { %428 = vmatpush3.msra.mxu1 %v54_v1  ;;  %239 = vmatprep.mubr.f32.mxu1 %v20_v2 }
  0x25   :  { %442 = vmatpush3.msra.mxu0 %v93_v3  ;;  %240 = vmatmul.mubr.f32.vlgmr.msra.gmra.mxu1 %v19_v4 }
  0x26   :  { %443 = vmatprep.subr.mxu0 %v462_v5  ;;  %457 = vmatprep.mubr.msk.f32.mxu0 %vm463_vm0, %v462_v5 }
  0x27   :  { %444 = vmatpush3.msra.mxu0 %v92_v6 }
  0x28   :  { %445 = vmatprep.subr.mxu0 %v462_v5 }
  0x29   :  { %446 = vmatpush3.msra.mxu0 %v91_v7 }
  0x2a   :  { %447 = vmatprep.subr.mxu0 %v462_v5 }
  0x2b   :  { %448 = vmatpush3.msra.mxu0 %v90_v8 }
  0x2c   :  { %449 = vmatprep.subr.mxu0 %v462_v5 }
  0x2d   :  { %450 = vmatpush3.msra.mxu0 %v89_v9 }
  0x2e   :  { %451 = vmatprep.subr.mxu0 %v462_v5 }
  0x2f   :  { %452 = vmatpush3.msra.mxu0 %v88_v10 }
  0x30   :  { %453 = vmatprep.subr.mxu0 %v462_v5 }
  0x31   :  { %454 = vmatpush3.msra.mxu0 %v87_v11 }
  0x32   :  { %455 = vmatprep.subr.mxu0 %v462_v5 }
  0x33   :  { %456 = vmatpush3.msra.mxu0 %v86_v12 }
  0x34   :  { %458 = vmatmul.mubr.msk.f32.vlgmr.msra.gmra.mxu0 %vm101_vm1, %v21_v13 }
  0xe2   :  { %v394_v14 = vpop.f32.mrf.mxu0 }
  0xe4   :  { %v395_v15 = vpop.f32.mrf.mxu0 }
  0xe5   :  { %v429_v16 = vpop.f32.mrf.mxu1  ;;  %v396_v17 = vadd.f32 %v395_v15, %v394_v14 }
  0xe7   :  { %v430_v19 = vpop.f32.mrf.mxu1  ;;  %v172_v21 = vadd.f32 %v396_v17, %v360_v18 }
  0xe8   :  { %v431_v22 = vadd.f32 %v430_v19, %v429_v16 }
  0xea   :  { %v242_v24 = vadd.f32 %v431_v22, %v172_v21 }
  0xf4   :  { %v311_v25 = vpop.f32.mrf.mxu0 }
  0xf5   :  { %v312_v26 = vadd.f32 %v311_v25, %v242_v24 }
  0xf6   :  { %v459_v27 = vpop.f32.mrf.mxu0 }
  0xf7   :  { %315 = vst [vmem:[%s754_s3] sm:$0xff] %v312_v26  ;;  %v322_v28 = vsel %vm321_vm2, %v312_v26, 0.0 }
  0xf8   :  { %v330_v29 = vrot.slane %v322_v28, 4  ;;  %v339_v30 = vmul.f32 %v322_v28, %v322_v28 }
  0xfa   :  { %v331_v31 = vadd.f32 %v330_v29, %v322_v28  ;;  %v340_v32 = vrot.slane %v339_v30, 4 }
  0xfc   :  { %v332_v33 = vrot.slane %v331_v31, 2  ;;  %v341_v34 = vadd.f32 %v340_v32, %v339_v30 }
  0xfe   :  { %v333_v35 = vadd.f32 %v332_v33, %v331_v31  ;;  %v342_v36 = vrot.slane %v341_v34, 2 }
 0x100   :  { %v334_v37 = vrot.slane %v333_v35, 1  ;;  %v343_v38 = vadd.f32 %v342_v36, %v341_v34 }
 0x102   :  { %v335_v40 = vadd.f32 %v334_v37, %v333_v35  ;;  %v344_v41 = vrot.slane %v343_v38, 1 }
 0x104   :  { %v336_v43 = vadd.f32 %v335_v40, %v329_v39  ;;  %v345_v44 = vadd.f32 %v344_v41, %v343_v38 }
 0x106   :  { %337 = vst [vmem:[%s751_s4] sm:$0x1] %v336_v43  ;;  %v346_v45 = vadd.f32 %v345_v44, %v338_v42 }
 0x108   :  { %347 = vst [vmem:[%s752_s5] sm:$0x1] %v346_v45 }

// kernel: resnet18_block_forward.81
= control target key start
LH: loop header
LB: loop body
LE: loop exit
PB: predicated region body
PF: predicated region fallthrough
CT: control target
= control target key end

     0   :  { %v307_v3 = vmov 0.0   ;;  %vm308_vm0 = vmmov 0   ;;  %vm63_vm1 = vcmask 261120   ;;  %v208_v42 = vlaneseq  ;;  %s487_s1 = inlined_call_operand.vmem [shape: f32[288,128], index: 1, kind: input, shape index: {}]   ;;  %s488_s0 = inlined_call_operand.vmem [shape: f32[8,288], index: 0, kind: input, shape index: {}]   ;;  %s489_s4 = inlined_call_operand.vmem [shape: f32[1,128], index: 4, kind: output, shape index: {1}]   ;;  %s490_s5 = inlined_call_operand.vmem [shape: f32[1,128], index: 5, kind: output, shape index: {2}]   ;;  %s491_s2 = inlined_call_operand.vmem [shape: f32[1,128], index: 2, kind: input, shape index: {}]   ;;  %s492_s3 = inlined_call_operand.vmem [shape: f32[8,128], index: 3, kind: output, shape index: {0}]  }
   0x1   :  { %v51_v0 = vld [vmem:[%s487_s1 + $0xf8] sm:$0xff]  ;;  %v50_v2 = vld [vmem:[%s487_s1 + $0xf0] sm:$0xff]  ;;  %294 = vmatprep.subr.mxu1 %v307_v3  ;;  %302 = vmatprep.mubr.msk.f32.mxu1 %vm308_vm0, %v307_v3  ;;  %v49_v5 = vld [vmem:[%s487_s1 + $0xe8] sm:$0xff]  ;;  %219 = vst [vmem:[%s489_s4] sm:$0x1] %v307_v3 }
   0x2   :  { %v35_v1 = vld [vmem:[%s487_s1 + $0x78] sm:$0xff]  ;;  %254 = vmatprep.subr.mxu0 %v51_v0  ;;  %v34_v4 = vld [vmem:[%s487_s1 + $0x70] sm:$0xff]  ;;  %v33_v6 = vld [vmem:[%s487_s1 + $0x68] sm:$0xff]  ;;  %220 = vst [vmem:[%s490_s5] sm:$0x1] %v307_v3  ;;  %v209_v46 = vshrl.u32 %v208_v42, 7 }
   0x3   :  { %255 = vmatpush3.msra.mxu0 %v35_v1  ;;  %v48_v7 = vld [vmem:[%s487_s1 + $0xe0] sm:$0xff]  ;;  %v47_v9 = vld [vmem:[%s487_s1 + $0xd8] sm:$0xff]  ;;  %v46_v11 = vld [vmem:[%s487_s1 + $0xd0] sm:$0xff] }
   0x4   :  { %256 = vmatprep.subr.mxu0 %v50_v2  ;;  %v32_v8 = vld [vmem:[%s487_s1 + $0x60] sm:$0xff]  ;;  %v31_v10 = vld [vmem:[%s487_s1 + $0x58] sm:$0xff]  ;;  %v30_v12 = vld [vmem:[%s487_s1 + $0x50] sm:$0xff]  ;;  %vm213_vm2 = vcmp.lt.s32.totalorder %v209_v46, 2 }
   0x5   :  { %257 = vmatpush3.msra.mxu0 %v34_v4  ;;  %v45_v13 = vld [vmem:[%s487_s1 + $0xc8] sm:$0xff]  ;;  %v55_v14 = vld [vmem:[%s487_s1 + $0x118] sm:$0xff]  ;;  %v54_v17 = vld [vmem:[%s487_s1 + $0x110] sm:$0xff] }
   0x6   :  { %258 = vmatprep.subr.mxu0 %v49_v5  ;;  %v29_v15 = vld [vmem:[%s487_s1 + $0x48] sm:$0xff]  ;;  %295 = vmatpush3.msra.mxu1 %v55_v14  ;;  %v44_v18 = vld [vmem:[%s487_s1 + $0xc0] sm:$0xff]  ;;  %v43_v21 = vld [vmem:[%s487_s1 + $0xb8] sm:$0xff] }
   0x7   :  { %259 = vmatpush3.msra.mxu0 %v33_v6  ;;  %v18_v16 = vld [vmem:[%s488_s0 + $0x8] sm:$0xff]  ;;  %296 = vmatprep.subr.mxu1 %v307_v3  ;;  %v28_v19 = vld [vmem:[%s487_s1 + $0x40] sm:$0xff]  ;;  %v27_v22 = vld [vmem:[%s487_s1 + $0x38] sm:$0xff] }
   0x8   :  { %260 = vmatprep.subr.mxu0 %v48_v7  ;;  %131 = vmatprep.mubr.f32.mxu0 %v18_v16  ;;  %v53_v20 = vld [vmem:[%s487_s1 + $0x108] sm:$0xff]  ;;  %v52_v23 = vld [vmem:[%s487_s1 + $0x100] sm:$0xff]  ;;  %v42_v24 = vld [vmem:[%s487_s1 + $0xb0] sm:$0xff] }
   0x9   :  { %261 = vmatpush3.msra.mxu0 %v32_v8  ;;  %297 = vmatpush3.msra.mxu1 %v54_v17  ;;  %v19_v25 = vld [vmem:[%s488_s0 + $0x10] sm:$0xff]  ;;  %v41_v27 = vld [vmem:[%s487_s1 + $0xa8] sm:$0xff]  ;;  %v40_v29 = vld [vmem:[%s487_s1 + $0xa0] sm:$0xff] }
   0xa   :  { %262 = vmatprep.subr.mxu0 %v47_v9  ;;  %298 = vmatprep.subr.mxu1 %v307_v3  ;;  %v26_v26 = vld [vmem:[%s487_s1 + $0x30] sm:$0xff]  ;;  %v25_v28 = vld [vmem:[%s487_s1 + $0x28] sm:$0xff]  ;;  %v24_v30 = vld [vmem:[%s487_s1 + $0x20] sm:$0xff] }
   0xb   :  { %263 = vmatpush3.msra.mxu0 %v31_v10  ;;  %299 = vmatpush3.msra.mxu1 %v53_v20  ;;  %v39_v31 = vld [vmem:[%s487_s1 + $0x98] sm:$0xff]  ;;  %v38_v33 = vld [vmem:[%s487_s1 + $0x90] sm:$0xff]  ;;  %v37_v35 = vld [vmem:[%s487_s1 + $0x88] sm:$0xff] }
   0xc   :  { %264 = vmatprep.subr.mxu0 %v46_v11  ;;  %300 = vmatprep.subr.mxu1 %v307_v3  ;;  %v23_v32 = vld [vmem:[%s487_s1 + $0x18] sm:$0xff]  ;;  %v22_v34 = vld [vmem:[%s487_s1 + $0x10] sm:$0xff]  ;;  %v21_v36 = vld [vmem:[%s487_s1 + $0x8] sm:$0xff] }
   0xd   :  { %265 = vmatpush3.msra.mxu0 %v30_v12  ;;  %301 = vmatpush3.msra.mxu1 %v52_v23  ;;  %v36_v37 = vld [vmem:[%s487_s1 + $0x80] sm:$0xff] }
   0xe   :  { %266 = vmatprep.subr.mxu0 %v45_v13  ;;  %303 = vmatmul.mubr.msk.f32.vlgmr.msra.gmra.mxu1 %vm63_vm1, %v19_v25  ;;  %v20_v38 = vld [vmem:[%s487_s1] sm:$0xff] }
   0xf   :  { %267 = vmatpush3.msra.mxu0 %v29_v15  ;;  %v17_v39 = vld [vmem:[%s488_s0] sm:$0xff] }
  0x10   :  { %268 = vmatprep.subr.mxu0 %v44_v18  ;;  %v252_v45 = vld [vmem:[%s491_s2] ss:$0 sm:$0xff] }
  0x11   :  { %269 = vmatpush3.msra.mxu0 %v28_v19  ;;  %v221_v61 = vld [vmem:[%s489_s4] sm:$0x1] }
  0x12   :  { %270 = vmatprep.subr.mxu0 %v43_v21  ;;  %v230_v0 = vld [vmem:[%s490_s5] sm:$0x1] }
  0x13   :  { %271 = vmatpush3.msra.mxu0 %v27_v22 }
  0x14   :  { %272 = vmatprep.subr.mxu0 %v42_v24 }
  0x15   :  { %273 = vmatpush3.msra.mxu0 %v26_v26 }
  0x16   :  { %274 = vmatprep.subr.mxu0 %v41_v27 }
  0x17   :  { %275 = vmatpush3.msra.mxu0 %v25_v28 }
  0x18   :  { %276 = vmatprep.subr.mxu0 %v40_v29 }
  0x19   :  { %277 = vmatpush3.msra.mxu0 %v24_v30 }
  0x1a   :  { %278 = vmatprep.subr.mxu0 %v39_v31 }
  0x1b   :  { %279 = vmatpush3.msra.mxu0 %v23_v32 }
  0x1c   :  { %280 = vmatprep.subr.mxu0 %v38_v33 }
  0x1d   :  { %281 = vmatpush3.msra.mxu0 %v22_v34 }
  0x1e   :  { %282 = vmatprep.subr.mxu0 %v37_v35 }
  0x1f   :  { %283 = vmatpush3.msra.mxu0 %v21_v36 }
  0x20   :  { %284 = vmatprep.subr.mxu0 %v36_v37 }
  0x21   :  { %285 = vmatpush3.msra.mxu0 %v20_v38 }
  0x22   :  { %132 = vmatmul.mubr.f32.vlgmr.msra.gmra.mxu0 %v17_v39 }
  0xce   :  { %v203_v40 = vpop.f32.mrf.mxu1 }
  0xd0   :  { %v304_v41 = vpop.f32.mrf.mxu1 }
  0xe2   :  { %v286_v43 = vpop.f32.mrf.mxu0 }
  0xe4   :  { %v287_v44 = vpop.f32.mrf.mxu0 }
  0xe5   :  { %v288_v47 = vadd.f32 %v287_v44, %v286_v43 }
  0xe7   :  { %v134_v48 = vadd.f32 %v288_v47, %v252_v45 }
  0xe9   :  { %v204_v49 = vadd.f32 %v203_v40, %v134_v48 }
  0xeb   :  { %207 = vst [vmem:[%s492_s3] sm:$0xff] %v204_v49  ;;  %v214_v50 = vsel %vm213_vm2, %v204_v49, 0.0 }
  0xec   :  { %v222_v51 = vrot.slane %v214_v50, 4  ;;  %v231_v52 = vmul.f32 %v214_v50, %v214_v50 }
  0xee   :  { %v223_v53 = vadd.f32 %v222_v51, %v214_v50  ;;  %v232_v54 = vrot.slane %v231_v52, 4 }
  0xf0   :  { %v224_v55 = vrot.slane %v223_v53, 2  ;;  %v233_v56 = vadd.f32 %v232_v54, %v231_v52 }
  0xf2   :  { %v225_v57 = vadd.f32 %v224_v55, %v223_v53  ;;  %v234_v58 = vrot.slane %v233_v56, 2 }
  0xf4   :  { %v226_v59 = vrot.slane %v225_v57, 1  ;;  %v235_v60 = vadd.f32 %v234_v58, %v233_v56 }
  0xf6   :  { %v227_v62 = vadd.f32 %v226_v59, %v225_v57  ;;  %v236_v63 = vrot.slane %v235_v60, 1 }
  0xf8   :  { %v228_v1 = vadd.f32 %v227_v62, %v221_v61  ;;  %v237_v2 = vadd.f32 %v236_v63, %v235_v60 }
  0xfa   :  { %229 = vst [vmem:[%s489_s4] sm:$0x1] %v228_v1  ;;  %v238_v3 = vadd.f32 %v237_v2, %v230_v0 }
  0xfc   :  { %239 = vst [vmem:[%s490_s5] sm:$0x1] %v238_v3 }

// kernel: resnet18_block_forward.83
= control target key start
LH: loop header
LB: loop body
LE: loop exit
PB: predicated region body
PF: predicated region fallthrough
CT: control target
= control target key end

     0   :  { %vm31_vm0 = vcmask 1041408   ;;  %v163_v0 = vmov 0.0   ;;  %vm164_vm1 = vmmov 0   ;;  %vm27_vm2 = vcmask 146432   ;;  %s223_s1 = inlined_call_operand.vmem [shape: f32[18,128], index: 1, kind: input, shape index: {}]   ;;  %s224_s3 = inlined_call_operand.vmem [shape: f32[1,128], index: 3, kind: output, shape index: {0}]   ;;  %s225_s4 = inlined_call_operand.vmem [shape: f32[1,128], index: 4, kind: output, shape index: {1}]   ;;  %s226_s0 = inlined_call_operand.vmem [shape: f32[8,18], index: 0, kind: input, shape index: {}]   ;;  %s227_s2 = inlined_call_operand.vmem [shape: f32[1,128], index: 2, kind: input, shape index: {}]  }
   0x1   :  { %152 = vmatprep.subr.mxu0 %v163_v0  ;;  %v19_v1 = vld [vmem:[%s223_s1 + $0x10] sm:$0x3]  ;;  %v18_v2 = vld [vmem:[%s223_s1 + $0x8] sm:$0xff]  ;;  %158 = vmatprep.mubr.msk.f32.mxu0 %vm164_vm1, %v163_v0  ;;  %116 = vst [vmem:[%s224_s3] sm:$0x1] %v163_v0  ;;  %117 = vst [vmem:[%s225_s4] sm:$0x1] %v163_v0  ;;  %v105_v5 = vlaneseq }
   0x2   :  { %153 = vmatpush3.msk.msra.mxu0 %vm31_vm0, %v19_v1  ;;  %v17_v3 = vld [vmem:[%s223_s1] sm:$0xff] }
   0x3   :  { %154 = vmatprep.subr.mxu0 %v163_v0  ;;  %v16_v4 = vld [vmem:[%s226_s0] sm:$0xff]  ;;  %v106_v6 = vshrl.u32 %v105_v5, 7 }
   0x4   :  { %155 = vmatpush3.msra.mxu0 %v18_v2  ;;  %v145_v7 = vld [vmem:[%s227_s2] ss:$0 sm:$0xff] }
   0x5   :  { %156 = vmatprep.subr.mxu0 %v163_v0  ;;  %vm110_vm3 = vcmp.lt.s32.totalorder %v106_v6, 2 }
   0x6   :  { %157 = vmatpush3.msra.mxu0 %v17_v3 }
   0x7   :  { %159 = vmatmul.mubr.msk.f32.vlgmr.msra.gmra.mxu0 %vm27_vm2, %v16_v4 }
   0x8   :  { %v118_v22 = vld [vmem:[%s224_s3] sm:$0x1] }
   0x9   :  { %v127_v25 = vld [vmem:[%s225_s4] sm:$0x1] }
  0xc7   :  { %v101_v8 = vpop.f32.mrf.mxu0 }
  0xc8   :  { %v102_v9 = vadd.f32 %v145_v7, %v101_v8 }
  0xc9   :  { %v160_v10 = vpop.f32.mrf.mxu0 }
  0xca   :  { %v111_v11 = vsel %vm110_vm3, %v102_v9, 0.0 }
  0xcb   :  { %v119_v12 = vrot.slane %v111_v11, 4  ;;  %v128_v13 = vmul.f32 %v111_v11, %v111_v11 }
  0xcd   :  { %v120_v14 = vadd.f32 %v119_v12, %v111_v11  ;;  %v129_v15 = vrot.slane %v128_v13, 4 }
  0xcf   :  { %v121_v16 = vrot.slane %v120_v14, 2  ;;  %v130_v17 = vadd.f32 %v129_v15, %v128_v13 }
  0xd1   :  { %v122_v18 = vadd.f32 %v121_v16, %v120_v14  ;;  %v131_v19 = vrot.slane %v130_v17, 2 }
  0xd3   :  { %v123_v20 = vrot.slane %v122_v18, 1  ;;  %v132_v21 = vadd.f32 %v131_v19, %v130_v17 }
  0xd5   :  { %v124_v23 = vadd.f32 %v123_v20, %v122_v18  ;;  %v133_v24 = vrot.slane %v132_v21, 1 }
  0xd7   :  { %v125_v26 = vadd.f32 %v124_v23, %v118_v22  ;;  %v134_v27 = vadd.f32 %v133_v24, %v132_v21 }
  0xd9   :  { %126 = vst [vmem:[%s224_s3] sm:$0x1] %v125_v26  ;;  %v135_v28 = vadd.f32 %v134_v27, %v127_v25 }
  0xdb   :  { %136 = vst [vmem:[%s225_s4] sm:$0x1] %v135_v28 }

// kernel: resnet18_block_forward.84
= control target key start
LH: loop header
LB: loop body
LE: loop exit
PB: predicated region body
PF: predicated region fallthrough
CT: control target
= control target key end

     0   :  { %vm32_vm0 = vcmask 1041408   ;;  %v154_v0 = vmov 0.0   ;;  %vm155_vm1 = vmmov 0   ;;  %vm28_vm2 = vcmask 146432   ;;  %s202_s1 = inlined_call_operand.vmem [shape: f32[18,128], index: 1, kind: input, shape index: {}]   ;;  %s203_s0 = inlined_call_operand.vmem [shape: f32[8,18], index: 0, kind: input, shape index: {}]   ;;  %s204_s2 = inlined_call_operand.vmem [shape: f32[1,128], index: 2, kind: input, shape index: {}]   ;;  %s205_s3 = inlined_call_operand.vmem [shape: f32[8,128], index: 3, kind: input, shape index: {}]   ;;  %s206_s4 = inlined_call_operand.vmem [shape: f32[8,128], index: 4, kind: output, shape index: {}]  }
   0x1   :  { %137 = vmatprep.subr.mxu0 %v154_v0  ;;  %v20_v1 = vld [vmem:[%s202_s1 + $0x10] sm:$0x3]  ;;  %v19_v2 = vld [vmem:[%s202_s1 + $0x8] sm:$0xff]  ;;  %143 = vmatprep.mubr.msk.f32.mxu0 %vm155_vm1, %v154_v0  ;;  %v18_v3 = vld [vmem:[%s202_s1] sm:$0xff] }
   0x2   :  { %138 = vmatpush3.msk.msra.mxu0 %vm32_vm0, %v20_v1  ;;  %v17_v4 = vld [vmem:[%s203_s0] sm:$0xff] }
   0x3   :  { %139 = vmatprep.subr.mxu0 %v154_v0  ;;  %v130_v5 = vld [vmem:[%s204_s2] ss:$0 sm:$0xff] }
   0x4   :  { %140 = vmatpush3.msra.mxu0 %v19_v2  ;;  %v106_v7 = vld [vmem:[%s205_s3] sm:$0xff] }
   0x5   :  { %141 = vmatprep.subr.mxu0 %v154_v0 }
   0x6   :  { %142 = vmatpush3.msra.mxu0 %v18_v3 }
   0x7   :  { %144 = vmatmul.mubr.msk.f32.vlgmr.msra.gmra.mxu0 %vm28_vm2, %v17_v4 }
  0xc7   :  { %v102_v6 = vpop.f32.mrf.mxu0 }
  0xc8   :  { %v103_v8 = vadd.f32 %v130_v5, %v102_v6 }
  0xc9   :  { %v145_v9 = vpop.f32.mrf.mxu0 }
  0xca   :  { %v107_v10 = vadd.f32 %v106_v7, %v103_v8 }
  0xcc   :  { %v109_v11 = vand.u32 2147483647, %v107_v10  ;;  %v108_v22 = vmax.f32 %v107_v10, 0.0 }
  0xce   :  { %v110_v12 = vsub.f32 0.0, %v109_v11 }
  0xd0   :  { %v111_v13 = vmul.f32 1.442695, %v110_v12 }
  0xd2   :  { %148 = vpow2.f32 %v111_v13 }
  0xdf   :  { %v149_v14 = vpop.eup %148 }
  0xe0   :  { %v113_v15 = vadd.f32 1.0, %v149_v14  ;;  %v116_v16 = vmul.f32 -0.5, %v149_v14  ;;  %v119_v18 = vand.u32 2147483647, %v149_v14 }
  0xe2   :  { %150 = vlog2.f32 %v113_v15  ;;  %v117_v17 = vadd.f32 1.0, %v116_v16  ;;  %vm120_vm3 = vcmp.lt.f32.partialorder %v119_v18, 0.0004427343 }
  0xe4   :  { %v118_v21 = vmul.f32 %v149_v14, %v117_v17 }
  0xef   :  { %v151_v19 = vpop.eup %150 }
  0xf0   :  { %v115_v20 = vmul.f32 0.6931472, %v151_v19 }
  0xf2   :  { %v121_v23 = vsel %vm120_vm3, %v118_v21, %v115_v20 }
  0xf3   :  { %v122_v24 = vadd.f32 %v121_v23, %v108_v22 }
  0xf5   :  { %152 = vtanh.f32 %v122_v24 }
 0x102   :  { %v153_v25 = vpop.eup %152 }
 0x103   :  { %v124_v26 = vmul.f32 %v153_v25, %v107_v10 }
 0x105   :  { %125 = vst [vmem:[%s206_s4] sm:$0xff] %v124_v26 }

// kernel: resnet18_block_forward.80
= control target key start
LH: loop header
LB: loop body
LE: loop exit
PB: predicated region body
PF: predicated region fallthrough
CT: control target
= control target key end

     0   :  { %v125_v0 = vmov 0.0   ;;  %vm126_vm0 = vmmov 0   ;;  %vm26_vm1 = vcmask 261120   ;;  %s168_s1 = inlined_call_operand.vmem [shape: f32[32,128], index: 1, kind: input, shape index: {}]   ;;  %s169_s0 = inlined_call_operand.vmem [shape: f32[8,32], index: 0, kind: input, shape index: {}]   ;;  %s170_s2 = inlined_call_operand.vmem [shape: f32[1,128], index: 2, kind: input, shape index: {}]   ;;  %s171_s3 = inlined_call_operand.vmem [shape: f32[8,128], index: 3, kind: output, shape index: {}]  }
   0x1   :  { %112 = vmatprep.subr.mxu0 %v125_v0  ;;  %v18_v1 = vld [vmem:[%s168_s1 + $0x18] sm:$0xff]  ;;  %v17_v2 = vld [vmem:[%s168_s1 + $0x10] sm:$0xff]  ;;  %120 = vmatprep.mubr.msk.f32.mxu0 %vm126_vm0, %v125_v0  ;;  %v16_v3 = vld [vmem:[%s168_s1 + $0x8] sm:$0xff] }
   0x2   :  { %113 = vmatpush3.msra.mxu0 %v18_v1  ;;  %v15_v4 = vld [vmem:[%s168_s1] sm:$0xff] }
   0x3   :  { %114 = vmatprep.subr.mxu0 %v125_v0  ;;  %v14_v5 = vld [vmem:[%s169_s0] sm:$0xff] }
   0x4   :  { %115 = vmatpush3.msra.mxu0 %v17_v2  ;;  %v105_v6 = vld [vmem:[%s170_s2] ss:$0 sm:$0xff] }
   0x5   :  { %116 = vmatprep.subr.mxu0 %v125_v0 }
   0x6   :  { %117 = vmatpush3.msra.mxu0 %v16_v3 }
   0x7   :  { %118 = vmatprep.subr.mxu0 %v125_v0 }
   0x8   :  { %119 = vmatpush3.msra.mxu0 %v15_v4 }
   0x9   :  { %121 = vmatmul.mubr.msk.f32.vlgmr.msra.gmra.mxu0 %vm26_vm1, %v14_v5 }
  0xc9   :  { %v96_v7 = vpop.f32.mrf.mxu0 }
  0xca   :  { %v97_v8 = vadd.f32 %v105_v6, %v96_v7 }
  0xcb   :  { %v122_v9 = vpop.f32.mrf.mxu0 }
  0xcc   :  { %100 = vst [vmem:[%s171_s3] sm:$0xff] %v97_v8 }

// kernel: resnet18_block_forward.85
= control target key start
LH: loop header
LB: loop body
LE: loop exit
PB: predicated region body
PF: predicated region fallthrough
CT: control target
= control target key end

     0   :  { %v19_v2 = vlaneseq  ;;  %v71_v3 = vmov 1966171168   ;;  %s92_s0 = inlined_call_operand.vmem [shape: f32[2,1,128], index: 0, kind: input, shape index: {}]   ;;  %s93_s1 = inlined_call_operand.hbm [shape: f32[2,128], index: 1, kind: output, shape index: {}]  }
   0x1   :  { %v9_v0 = vld [vmem:[%s92_s0] sm:$0x1]  ;;  %v10_v1 = vld [vmem:[%s92_s0 + $0x1] sm:$0x1]  ;;  %v17_v4 = vunpack.c.l.s4 %v71_v3 }
   0x2   :  { %6 = vsyncpa [#allocation3], 0  ;;  %v20_v5 = vshrl.u32 %v19_v2, 7  ;;  %v15_v6 = vcombine.low %v9_v0, %v10_v1  ;;  %s72_s10 = smov [#allocation2]  }
   0x3   :  { %v18_v7 = vunpack.c.0.s8 %v17_v4  ;;  %s38_s11 = sshll.u32 %s72_s10, 4  ;;  %s39_s11 = int_to_ptr.vmem [resolvable:$true] %s38_s11 }
   0x4   :  { %s49_s12 = scalar_lea.vmem %s39_s11, 32  ;;  %p54_p1 = scmp.lt.s32.totalorder %s39_s11, %s39_s11 }
   0x5   :  { %v21_v8 = vsub.s32 %v18_v7, %v20_v5  ;;  %p50_p0 = scmp.ne.s32.totalorder %s39_s11, %s49_s12  ;;  %p55_p2 = scmp.lt.s32.totalorder %s49_s12, %s49_s12 }
   0x7   :  { %v22_v9 = vrot.slane %v15_v6, %v21_v8  ;;  %p56_p3 = por %p55_p2, %p54_p1 }
   0x9   :  { %46 = vst.sshfl [vmem:[#allocation2] sm:$0x5 pattern:$0x73625140] %v22_v9  ;;  %p57_p4 = pnand %p56_p3, %p50_p0 }
   0xb   :  { %60 = shalt.err (!%p57_p4)
}
   0xc   :  { %41 = dma.vmem_to_hbm [thread:$0]  %s39_s11, 32, %s93_s1, [#allocation3]  }
   0xd   :  { %69 = dma.done.wait [#allocation3], 32  }
   0xe   :  { %70 = vsyncadd [#allocation3], 4294967264 }
   0xf   :  { %45 = vsyncpa [#allocation3], 1 }

</bundles_post_ra>
